<compile_context>
chip_gen: v7x
topology: tpu7x:2x2x1
jax: 0.10.0
libtpu: 0.0.40
codegen_flags: <defaults>
</compile_context>

<pallas_src>
import functools

import numpy as np
import jax
import jax.numpy as jnp
from jax.experimental import pallas as pl
from jax.experimental.pallas import tpu as pltpu


def _round_up(x, m):
    return (x + m - 1) // m * m


# ------------------------------------------------------------------ kernel

def fused_cnn_kernel(x_ref, m1_ref, sel_ref,
                     w1_ref, s1_ref, w2_ref, s2_ref,
                     fw1_ref, fb1_ref, fw2_ref, fb2_ref,
                     o_ref,
                     slab1_ref, act_ref,
                     *, W, PADH, L):
    """Whole SimpleCNN forward for one batch tile.

    x_ref   : [B*R, 3]  bf16  stacked, (H+2)x(W+2)-padded image slabs
    m1_ref  : [L, 1]    f32   1.0 at real conv-output rows, 0.0 at pad rows
    sel_ref : [B, L]    f32   4/(H*W) at pool-window top-left rows of image b
    w*_ref  : [9, Cin, Cout] bf16 folded conv+BN weights; s*_ref: [1, Cout] f32 shifts
    fw*/fb* : classifier weights (bf16) / biases (f32)
    o_ref   : [B, num_classes] f32 logits
    """
    Wp = W + 2
    taps = [(kh - 1) * Wp + (kw - 1) for kh in range(3) for kw in range(3)]
    C1 = w1_ref.shape[-1]
    C2 = w2_ref.shape[-1]

    # ---- conv1 + folded BN1: 9 accumulated MXU matmuls over shifted slab views ----
    acc1 = jnp.zeros((L, C1), jnp.float32)
    for t, s in enumerate(taps):
        acc1 = acc1 + jnp.dot(x_ref[pl.ds(PADH + s, L), :], w1_ref[t],
                              preferred_element_type=jnp.float32)
    # zero every padding / inter-image row so conv2 sees true zero padding
    out1 = (acc1 + s1_ref[...]) * m1_ref[...]

    # conv1 output stays in VMEM (same row layout as the input slab); payload is
    # written once, only the small head/tail pad regions get zero stores.
    slab1_ref[pl.ds(0, PADH), :] = jnp.zeros((PADH, C1), slab1_ref.dtype)
    slab1_ref[pl.ds(PADH, L), :] = out1.astype(slab1_ref.dtype)
    tail = slab1_ref.shape[0] - (PADH + L)
    slab1_ref[pl.ds(PADH + L, tail), :] = jnp.zeros((tail, C1), slab1_ref.dtype)

    # ---- conv2 + folded BN2 + ReLU ----
    acc2 = jnp.zeros((L, C2), jnp.float32)
    for t, s in enumerate(taps):
        acc2 = acc2 + jnp.dot(slab1_ref[pl.ds(PADH + s, L), :], w2_ref[t],
                              preferred_element_type=jnp.float32)
    act = jnp.maximum(acc2 + s2_ref[...], 0.0)                    # [L, C2] f32

    # ---- MaxPool(2,2): window max via 3 shifted reads of an f32 VMEM scratch ----
    act_ref[pl.ds(0, L), :] = act
    atail = act_ref.shape[0] - L
    act_ref[pl.ds(L, atail), :] = jnp.zeros((atail, C2), jnp.float32)
    wmax = jnp.maximum(jnp.maximum(act, act_ref[pl.ds(1, L), :]),
                       jnp.maximum(act_ref[pl.ds(Wp, L), :],
                                   act_ref[pl.ds(Wp + 1, L), :]))

    # ---- AdaptiveAvgPool2d(1) + flatten: one selection matmul -> [B, C2] ----
    feat = jnp.dot(sel_ref[...], wmax, preferred_element_type=jnp.float32)

    # ---- classifier: Linear + ReLU (+ Dropout=identity) + Linear ----
    h = jnp.dot(feat.astype(jnp.bfloat16), fw1_ref[...],
                preferred_element_type=jnp.float32) + fb1_ref[...]
    h = jnp.maximum(h, 0.0)
    o_ref[...] = jnp.dot(h.astype(jnp.bfloat16), fw2_ref[...],
                         preferred_element_type=jnp.float32) + fb2_ref[...]


# ------------------------------------------------------------------ host helpers

def _fold_conv_bn(w_oihw, bias, gamma, beta, mean, var, eps=1e-5):
    """Fold inference-mode BatchNorm (+conv bias) into conv weights / a per-channel shift."""
    cout, cin = w_oihw.shape[0], w_oihw.shape[1]
    scale = gamma / jnp.sqrt(var + eps)                            # [Cout]
    w = jnp.transpose(w_oihw, (2, 3, 1, 0)) * scale                # [kh,kw,Cin,Cout]
    w9 = w.reshape(9, cin, cout).astype(jnp.bfloat16)
    shift = (beta + (bias - mean) * scale).reshape(1, cout).astype(jnp.float32)
    return w9, shift


def _to_slab(x_nhwc, R, PADH):
    """[N,H,W,C] -> stacked, zero-padded slabs [N*R, C]; image n's (H+2)x(W+2) grid
    occupies rows [n*R+PADH, n*R+PADH+(H+2)*(W+2))."""
    N, H, W, C = x_nhwc.shape
    Sp = (H + 2) * (W + 2)
    xp = jnp.pad(x_nhwc, ((0, 0), (1, 1), (1, 1), (0, 0)))
    grid = xp.reshape(N, Sp, C)
    slab = jnp.pad(grid, ((0, 0), (PADH, R - PADH - Sp), (0, 0)))
    return slab.reshape(N * R, C)


def _host_masks(H, W, R, PADH, B):
    """Trace-time constants: conv-output validity mask and pool-selection matrix."""
    Wp, Sp = W + 2, (H + 2) * (W + 2)
    L = (B - 1) * R + Sp
    r = np.arange(L)
    j = r // R
    q = r - j * R
    h = q // Wp
    w = q % Wp
    valid = (q < Sp) & (h >= 1) & (h <= H) & (w >= 1) & (w <= W)
    mask1 = valid.astype(np.float32).reshape(L, 1)
    corner = valid & (h % 2 == 1) & (w % 2 == 1)        # 2x2-window top-left rows
    sel = np.zeros((B, L), np.float32)
    sel[j[corner], r[corner]] = 4.0 / (H * W)           # MaxPool corners, avg-pool scale
    return jnp.asarray(mask1), jnp.asarray(sel), L


# ------------------------------------------------------------------ model

def init_params(key):
    ks = jax.random.split(key, 12)
    p = {}
    p["w1"] = jax.random.normal(ks[0], (16, 3, 3, 3), jnp.float32) * 0.1
    p["b1"] = jax.random.normal(ks[1], (16,), jnp.float32) * 0.05
    p["bn1_gamma"] = 1.0 + 0.1 * jax.random.normal(ks[2], (16,), jnp.float32)
    p["bn1_beta"] = 0.05 * jax.random.normal(ks[3], (16,), jnp.float32)
    p["bn1_mean"] = 0.02 * jax.random.normal(ks[4], (16,), jnp.float32)
    p["bn1_var"] = 0.5 + jax.random.uniform(ks[5], (16,), jnp.float32)
    p["w2"] = jax.random.normal(ks[6], (32, 16, 3, 3), jnp.float32) * 0.05
    p["b2"] = jax.random.normal(ks[7], (32,), jnp.float32) * 0.05
    p["bn2_gamma"] = 1.0 + 0.1 * jax.random.normal(ks[8], (32,), jnp.float32)
    p["bn2_beta"] = 0.05 * jax.random.normal(ks[9], (32,), jnp.float32)
    p["bn2_mean"] = 0.02 * jax.random.normal(ks[10], (32,), jnp.float32)
    p["bn2_var"] = 0.5 + jax.random.uniform(ks[11], (32,), jnp.float32)
    ks2 = jax.random.split(jax.random.PRNGKey(1), 4)
    p["fc1_w"] = jax.random.normal(ks2[0], (64, 32), jnp.float32) * 0.1
    p["fc1_b"] = jax.random.normal(ks2[1], (64,), jnp.float32) * 0.05
    p["fc2_w"] = jax.random.normal(ks2[2], (10, 64), jnp.float32) * 0.1
    p["fc2_b"] = jax.random.normal(ks2[3], (10,), jnp.float32) * 0.05
    return p


def simple_cnn_forward(x_nchw, p, *, b_tile_cap=8):
    N, C, H, W = x_nchw.shape
    assert C == 3 and H % 2 == 0 and W % 2 == 0 and H >= 2 and W >= 2
    num_classes = p["fc2_w"].shape[0]
    Sp = (H + 2) * (W + 2)
    PADH = _round_up(W + 3, 8)                       # head pad >= max tap shift
    R = _round_up(PADH + Sp + (W + 3), 8)            # per-image row stride (8-aligned)

    if N <= b_tile_cap:
        B, Np = N, N
    else:
        B, Np = b_tile_cap, _round_up(N, b_tile_cap)

    # layout glue: NCHW -> NHWC, bf16 for the MXU, stacked zero-padded slab
    x = jnp.transpose(x_nchw, (0, 2, 3, 1)).astype(jnp.bfloat16)
    if Np != N:
        x = jnp.pad(x, ((0, Np - N), (0, 0), (0, 0), (0, 0)))
    slab = _to_slab(x, R, PADH)                                   # [Np*R, 3] bf16

    mask1, sel, L = _host_masks(H, W, R, PADH, B)

    w1, s1 = _fold_conv_bn(p["w1"], p["b1"], p["bn1_gamma"], p["bn1_beta"],
                           p["bn1_mean"], p["bn1_var"])
    w2, s2 = _fold_conv_bn(p["w2"], p["b2"], p["bn2_gamma"], p["bn2_beta"],
                           p["bn2_mean"], p["bn2_var"])
    fw1 = p["fc1_w"].T.astype(jnp.bfloat16)                       # [32, 64]
    fb1 = p["fc1_b"].reshape(1, -1).astype(jnp.float32)
    fw2 = p["fc2_w"].T.astype(jnp.bfloat16)                       # [64, num_classes]
    fb2 = p["fc2_b"].reshape(1, -1).astype(jnp.float32)
    C1, C2, Hd = w1.shape[-1], w2.shape[-1], fw1.shape[-1]

    kern = functools.partial(fused_cnn_kernel, W=W, PADH=PADH, L=L)
    logits = pl.pallas_call(
        kern,
        out_shape=jax.ShapeDtypeStruct((Np, num_classes), jnp.float32),
        grid=(Np // B,),
        in_specs=[
            pl.BlockSpec((B * R, 3), lambda i: (i, 0)),            # stacked slab
            pl.BlockSpec((L, 1), lambda i: (0, 0)),                # conv1 validity mask
            pl.BlockSpec((B, L), lambda i: (0, 0)),                # pool selection matrix
            pl.BlockSpec((9, 3, C1), lambda i: (0, 0, 0)),         # conv1 weights
            pl.BlockSpec((1, C1), lambda i: (0, 0)),               # conv1 shift
            pl.BlockSpec((9, C1, C2), lambda i: (0, 0, 0)),        # conv2 weights
            pl.BlockSpec((1, C2), lambda i: (0, 0)),               # conv2 shift
            pl.BlockSpec((C2, Hd), lambda i: (0, 0)),              # fc1 w
            pl.BlockSpec((1, Hd), lambda i: (0, 0)),               # fc1 b
            pl.BlockSpec((Hd, num_classes), lambda i: (0, 0)),     # fc2 w
            pl.BlockSpec((1, num_classes), lambda i: (0, 0)),      # fc2 b
        ],
        out_specs=pl.BlockSpec((B, num_classes), lambda i: (i, 0)),
        scratch_shapes=[
            pltpu.VMEM((B * R, C1), jnp.bfloat16),                 # conv1 output slab
            pltpu.VMEM((L + _round_up(W + 3, 8), C2), jnp.float32),  # conv2 act (pool taps)
        ],
        compiler_params=pltpu.CompilerParams(
            dimension_semantics=("parallel",),
            vmem_limit_bytes=48 * 1024 * 1024),                    # fits v7x's 64 MiB too
    )(slab, mask1, sel, w1, s1, w2, s2, fw1, fb1, fw2, fb2)
    return logits[:N] if Np != N else logits


if __name__ == "__main__":
    key = jax.random.PRNGKey(0)
    k_x, k_p = jax.random.split(key)
    x = jax.random.normal(k_x, (2, 3, 16, 16), jnp.float32)        # NCHW like PyTorch
    params = init_params(k_p)
    fwd = jax.jit(simple_cnn_forward)
    out = jax.block_until_ready(fwd(x, params))
    assert out.shape == (2, 10) and out.dtype == jnp.float32
    assert bool(jnp.all(jnp.isfinite(out)))
    print("KERNEL_OK")
</pallas_src>

<mosaic_0001>
module attributes {stable_mosaic.version = 11 : i64} {
  func.func @fused_cnn_kernel(%arg0: i32, %arg1: memref<736x3xbf16, #tpu.memory_space<vmem>>, %arg2: memref<692x1xf32, #tpu.memory_space<vmem>>, %arg3: memref<2x692xf32, #tpu.memory_space<vmem>>, %arg4: memref<9x3x16xbf16, #tpu.memory_space<vmem>>, %arg5: memref<1x16xf32, #tpu.memory_space<vmem>>, %arg6: memref<9x16x32xbf16, #tpu.memory_space<vmem>>, %arg7: memref<1x32xf32, #tpu.memory_space<vmem>>, %arg8: memref<32x64xbf16, #tpu.memory_space<vmem>>, %arg9: memref<1x64xf32, #tpu.memory_space<vmem>>, %arg10: memref<64x10xbf16, #tpu.memory_space<vmem>>, %arg11: memref<1x10xf32, #tpu.memory_space<vmem>>, %arg12: memref<2x10xf32, #tpu.memory_space<vmem>>, %arg13: memref<736x16xbf16, #tpu.memory_space<vmem>>, %arg14: memref<716x32xf32, #tpu.memory_space<vmem>>) attributes {dimension_semantics = [#tpu.dimension_semantics<parallel>], iteration_bounds = array<i64: 1>, scalar_prefetch = 0 : i64, scratch_operands = 2 : i64, tpu.core_type = #tpu.core_type<tc>, window_params = [{transform_indices = @transform_0, window_bounds = array<i64: 736, 3>}, {pipeline_mode = #tpu.pipeline_mode<synchronous>, transform_indices = @transform_1, window_bounds = array<i64: 692, 1>}, {pipeline_mode = #tpu.pipeline_mode<synchronous>, transform_indices = @transform_2, window_bounds = array<i64: 2, 692>}, {pipeline_mode = #tpu.pipeline_mode<synchronous>, transform_indices = @transform_3, window_bounds = array<i64: 9, 3, 16>}, {pipeline_mode = #tpu.pipeline_mode<synchronous>, transform_indices = @transform_4, window_bounds = array<i64: 1, 16>}, {pipeline_mode = #tpu.pipeline_mode<synchronous>, transform_indices = @transform_5, window_bounds = array<i64: 9, 16, 32>}, {pipeline_mode = #tpu.pipeline_mode<synchronous>, transform_indices = @transform_6, window_bounds = array<i64: 1, 32>}, {pipeline_mode = #tpu.pipeline_mode<synchronous>, transform_indices = @transform_7, window_bounds = array<i64: 32, 64>}, {pipeline_mode = #tpu.pipeline_mode<synchronous>, transform_indices = @transform_8, window_bounds = array<i64: 1, 64>}, {pipeline_mode = #tpu.pipeline_mode<synchronous>, transform_indices = @transform_9, window_bounds = array<i64: 64, 10>}, {pipeline_mode = #tpu.pipeline_mode<synchronous>, transform_indices = @transform_10, window_bounds = array<i64: 1, 10>}, {transform_indices = @transform_11, window_bounds = array<i64: 2, 10>}]} {
    %cst = arith.constant 0.000000e+00 : f32
    %0 = vector.broadcast %cst : f32 to vector<692x16xf32>
    %c5 = arith.constant 5 : index
    %c0 = arith.constant 0 : index
    %1 = vector.load %arg1[%c5, %c0] : memref<736x3xbf16, #tpu.memory_space<vmem>>, vector<692x3xbf16>
    %c0_0 = arith.constant 0 : index
    %c0_1 = arith.constant 0 : index
    %c0_2 = arith.constant 0 : index
    %2 = vector.load %arg4[%c0_0, %c0_1, %c0_2] : memref<9x3x16xbf16, #tpu.memory_space<vmem>>, vector<1x3x16xbf16>
    %3 = vector.shape_cast %2 : vector<1x3x16xbf16> to vector<3x16xbf16>
    %cst_3 = arith.constant dense<0.000000e+00> : vector<692x16xf32>
    %4 = tpu.matmul %1, %3, %cst_3 {dimension_numbers = #tpu.dot_dimension_numbers<[1], [0], [0], [1], [0, 0, 1, 1], [], []>} : vector<692x3xbf16>, vector<3x16xbf16>, vector<692x16xf32> -> vector<692x16xf32>
    %5 = arith.addf %0, %4 : vector<692x16xf32>
    %c6 = arith.constant 6 : index
    %c0_4 = arith.constant 0 : index
    %6 = vector.load %arg1[%c6, %c0_4] : memref<736x3xbf16, #tpu.memory_space<vmem>>, vector<692x3xbf16>
    %c1 = arith.constant 1 : index
    %c0_5 = arith.constant 0 : index
    %c0_6 = arith.constant 0 : index
    %7 = vector.load %arg4[%c1, %c0_5, %c0_6] : memref<9x3x16xbf16, #tpu.memory_space<vmem>>, vector<1x3x16xbf16>
    %8 = vector.shape_cast %7 : vector<1x3x16xbf16> to vector<3x16xbf16>
    %cst_7 = arith.constant dense<0.000000e+00> : vector<692x16xf32>
    %9 = tpu.matmul %6, %8, %cst_7 {dimension_numbers = #tpu.dot_dimension_numbers<[1], [0], [0], [1], [0, 0, 1, 1], [], []>} : vector<692x3xbf16>, vector<3x16xbf16>, vector<692x16xf32> -> vector<692x16xf32>
    %10 = arith.addf %5, %9 : vector<692x16xf32>
    %c7 = arith.constant 7 : index
    %c0_8 = arith.constant 0 : index
    %11 = vector.load %arg1[%c7, %c0_8] : memref<736x3xbf16, #tpu.memory_space<vmem>>, vector<692x3xbf16>
    %c2 = arith.constant 2 : index
    %c0_9 = arith.constant 0 : index
    %c0_10 = arith.constant 0 : index
    %12 = vector.load %arg4[%c2, %c0_9, %c0_10] : memref<9x3x16xbf16, #tpu.memory_space<vmem>>, vector<1x3x16xbf16>
    %13 = vector.shape_cast %12 : vector<1x3x16xbf16> to vector<3x16xbf16>
    %cst_11 = arith.constant dense<0.000000e+00> : vector<692x16xf32>
    %14 = tpu.matmul %11, %13, %cst_11 {dimension_numbers = #tpu.dot_dimension_numbers<[1], [0], [0], [1], [0, 0, 1, 1], [], []>} : vector<692x3xbf16>, vector<3x16xbf16>, vector<692x16xf32> -> vector<692x16xf32>
    %15 = arith.addf %10, %14 : vector<692x16xf32>
    %c23 = arith.constant 23 : index
    %c0_12 = arith.constant 0 : index
    %16 = vector.load %arg1[%c23, %c0_12] : memref<736x3xbf16, #tpu.memory_space<vmem>>, vector<692x3xbf16>
    %c3 = arith.constant 3 : index
    %c0_13 = arith.constant 0 : index
    %c0_14 = arith.constant 0 : index
    %17 = vector.load %arg4[%c3, %c0_13, %c0_14] : memref<9x3x16xbf16, #tpu.memory_space<vmem>>, vector<1x3x16xbf16>
    %18 = vector.shape_cast %17 : vector<1x3x16xbf16> to vector<3x16xbf16>
    %cst_15 = arith.constant dense<0.000000e+00> : vector<692x16xf32>
    %19 = tpu.matmul %16, %18, %cst_15 {dimension_numbers = #tpu.dot_dimension_numbers<[1], [0], [0], [1], [0, 0, 1, 1], [], []>} : vector<692x3xbf16>, vector<3x16xbf16>, vector<692x16xf32> -> vector<692x16xf32>
    %20 = arith.addf %15, %19 : vector<692x16xf32>
    %c24 = arith.constant 24 : index
    %c0_16 = arith.constant 0 : index
    %21 = vector.load %arg1[%c24, %c0_16] : memref<736x3xbf16, #tpu.memory_space<vmem>>, vector<692x3xbf16>
    %c4 = arith.constant 4 : index
    %c0_17 = arith.constant 0 : index
    %c0_18 = arith.constant 0 : index
    %22 = vector.load %arg4[%c4, %c0_17, %c0_18] : memref<9x3x16xbf16, #tpu.memory_space<vmem>>, vector<1x3x16xbf16>
    %23 = vector.shape_cast %22 : vector<1x3x16xbf16> to vector<3x16xbf16>
    %cst_19 = arith.constant dense<0.000000e+00> : vector<692x16xf32>
    %24 = tpu.matmul %21, %23, %cst_19 {dimension_numbers = #tpu.dot_dimension_numbers<[1], [0], [0], [1], [0, 0, 1, 1], [], []>} : vector<692x3xbf16>, vector<3x16xbf16>, vector<692x16xf32> -> vector<692x16xf32>
    %25 = arith.addf %20, %24 : vector<692x16xf32>
    %c25 = arith.constant 25 : index
    %c0_20 = arith.constant 0 : index
    %26 = vector.load %arg1[%c25, %c0_20] : memref<736x3xbf16, #tpu.memory_space<vmem>>, vector<692x3xbf16>
    %c5_21 = arith.constant 5 : index
    %c0_22 = arith.constant 0 : index
    %c0_23 = arith.constant 0 : index
    %27 = vector.load %arg4[%c5_21, %c0_22, %c0_23] : memref<9x3x16xbf16, #tpu.memory_space<vmem>>, vector<1x3x16xbf16>
    %28 = vector.shape_cast %27 : vector<1x3x16xbf16> to vector<3x16xbf16>
    %cst_24 = arith.constant dense<0.000000e+00> : vector<692x16xf32>
    %29 = tpu.matmul %26, %28, %cst_24 {dimension_numbers = #tpu.dot_dimension_numbers<[1], [0], [0], [1], [0, 0, 1, 1], [], []>} : vector<692x3xbf16>, vector<3x16xbf16>, vector<692x16xf32> -> vector<692x16xf32>
    %30 = arith.addf %25, %29 : vector<692x16xf32>
    %c41 = arith.constant 41 : index
    %c0_25 = arith.constant 0 : index
    %31 = vector.load %arg1[%c41, %c0_25] : memref<736x3xbf16, #tpu.memory_space<vmem>>, vector<692x3xbf16>
    %c6_26 = arith.constant 6 : index
    %c0_27 = arith.constant 0 : index
    %c0_28 = arith.constant 0 : index
    %32 = vector.load %arg4[%c6_26, %c0_27, %c0_28] : memref<9x3x16xbf16, #tpu.memory_space<vmem>>, vector<1x3x16xbf16>
    %33 = vector.shape_cast %32 : vector<1x3x16xbf16> to vector<3x16xbf16>
    %cst_29 = arith.constant dense<0.000000e+00> : vector<692x16xf32>
    %34 = tpu.matmul %31, %33, %cst_29 {dimension_numbers = #tpu.dot_dimension_numbers<[1], [0], [0], [1], [0, 0, 1, 1], [], []>} : vector<692x3xbf16>, vector<3x16xbf16>, vector<692x16xf32> -> vector<692x16xf32>
    %35 = arith.addf %30, %34 : vector<692x16xf32>
    %c42 = arith.constant 42 : index
    %c0_30 = arith.constant 0 : index
    %36 = vector.load %arg1[%c42, %c0_30] : memref<736x3xbf16, #tpu.memory_space<vmem>>, vector<692x3xbf16>
    %c7_31 = arith.constant 7 : index
    %c0_32 = arith.constant 0 : index
    %c0_33 = arith.constant 0 : index
    %37 = vector.load %arg4[%c7_31, %c0_32, %c0_33] : memref<9x3x16xbf16, #tpu.memory_space<vmem>>, vector<1x3x16xbf16>
    %38 = vector.shape_cast %37 : vector<1x3x16xbf16> to vector<3x16xbf16>
    %cst_34 = arith.constant dense<0.000000e+00> : vector<692x16xf32>
    %39 = tpu.matmul %36, %38, %cst_34 {dimension_numbers = #tpu.dot_dimension_numbers<[1], [0], [0], [1], [0, 0, 1, 1], [], []>} : vector<692x3xbf16>, vector<3x16xbf16>, vector<692x16xf32> -> vector<692x16xf32>
    %40 = arith.addf %35, %39 : vector<692x16xf32>
    %c43 = arith.constant 43 : index
    %c0_35 = arith.constant 0 : index
    %41 = vector.load %arg1[%c43, %c0_35] : memref<736x3xbf16, #tpu.memory_space<vmem>>, vector<692x3xbf16>
    %c8 = arith.constant 8 : index
    %c0_36 = arith.constant 0 : index
    %c0_37 = arith.constant 0 : index
    %42 = vector.load %arg4[%c8, %c0_36, %c0_37] : memref<9x3x16xbf16, #tpu.memory_space<vmem>>, vector<1x3x16xbf16>
    %43 = vector.shape_cast %42 : vector<1x3x16xbf16> to vector<3x16xbf16>
    %cst_38 = arith.constant dense<0.000000e+00> : vector<692x16xf32>
    %44 = tpu.matmul %41, %43, %cst_38 {dimension_numbers = #tpu.dot_dimension_numbers<[1], [0], [0], [1], [0, 0, 1, 1], [], []>} : vector<692x3xbf16>, vector<3x16xbf16>, vector<692x16xf32> -> vector<692x16xf32>
    %45 = arith.addf %40, %44 : vector<692x16xf32>
    %c0_39 = arith.constant 0 : index
    %c0_40 = arith.constant 0 : index
    %46 = vector.load %arg5[%c0_39, %c0_40] : memref<1x16xf32, #tpu.memory_space<vmem>>, vector<1x16xf32>
    %47 = vector.broadcast %46 : vector<1x16xf32> to vector<692x16xf32>
    %48 = arith.addf %45, %47 : vector<692x16xf32>
    %c0_41 = arith.constant 0 : index
    %c0_42 = arith.constant 0 : index
    %49 = vector.load %arg2[%c0_41, %c0_42] : memref<692x1xf32, #tpu.memory_space<vmem>>, vector<692x1xf32>
    %50 = vector.broadcast %49 : vector<692x1xf32> to vector<692x16xf32>
    %51 = arith.mulf %48, %50 : vector<692x16xf32>
    %cst_43 = arith.constant 0.000000e+00 : bf16
    %52 = vector.broadcast %cst_43 : bf16 to vector<24x16xbf16>
    %c0_44 = arith.constant 0 : index
    %c0_45 = arith.constant 0 : index
    %53 = vector.load %arg13[%c0_44, %c0_45] : memref<736x16xbf16, #tpu.memory_space<vmem>>, vector<24x16xbf16>
    tpu.vector_store %arg13[%c0_44, %c0_45], %52 {strides = array<i32>} : memref<736x16xbf16, #tpu.memory_space<vmem>>, vector<24x16xbf16>,
    %54 = arith.truncf %51 : vector<692x16xf32> to vector<692x16xbf16>
    %c24_46 = arith.constant 24 : index
    %c0_47 = arith.constant 0 : index
    %55 = vector.load %arg13[%c24_46, %c0_47] : memref<736x16xbf16, #tpu.memory_space<vmem>>, vector<692x16xbf16>
    tpu.vector_store %arg13[%c24_46, %c0_47], %54 {strides = array<i32>} : memref<736x16xbf16, #tpu.memory_space<vmem>>, vector<692x16xbf16>,
    %cst_48 = arith.constant 0.000000e+00 : bf16
    %56 = vector.broadcast %cst_48 : bf16 to vector<20x16xbf16>
    %c716 = arith.constant 716 : index
    %c0_49 = arith.constant 0 : index
    %57 = vector.load %arg13[%c716, %c0_49] : memref<736x16xbf16, #tpu.memory_space<vmem>>, vector<20x16xbf16>
    tpu.vector_store %arg13[%c716, %c0_49], %56 {strides = array<i32>} : memref<736x16xbf16, #tpu.memory_space<vmem>>, vector<20x16xbf16>,
    %cst_50 = arith.constant 0.000000e+00 : f32
    %58 = vector.broadcast %cst_50 : f32 to vector<692x32xf32>
    %c5_51 = arith.constant 5 : index
    %c0_52 = arith.constant 0 : index
    %59 = vector.load %arg13[%c5_51, %c0_52] : memref<736x16xbf16, #tpu.memory_space<vmem>>, vector<692x16xbf16>
    %c0_53 = arith.constant 0 : index
    %c0_54 = arith.constant 0 : index
    %c0_55 = arith.constant 0 : index
    %60 = vector.load %arg6[%c0_53, %c0_54, %c0_55] : memref<9x16x32xbf16, #tpu.memory_space<vmem>>, vector<1x16x32xbf16>
    %61 = vector.shape_cast %60 : vector<1x16x32xbf16> to vector<16x32xbf16>
    %cst_56 = arith.constant dense<0.000000e+00> : vector<692x32xf32>
    %62 = tpu.matmul %59, %61, %cst_56 {dimension_numbers = #tpu.dot_dimension_numbers<[1], [0], [0], [1], [0, 0, 1, 1], [], []>} : vector<692x16xbf16>, vector<16x32xbf16>, vector<692x32xf32> -> vector<692x32xf32>
    %63 = arith.addf %58, %62 : vector<692x32xf32>
    %c6_57 = arith.constant 6 : index
    %c0_58 = arith.constant 0 : index
    %64 = vector.load %arg13[%c6_57, %c0_58] : memref<736x16xbf16, #tpu.memory_space<vmem>>, vector<692x16xbf16>
    %c1_59 = arith.constant 1 : index
    %c0_60 = arith.constant 0 : index
    %c0_61 = arith.constant 0 : index
    %65 = vector.load %arg6[%c1_59, %c0_60, %c0_61] : memref<9x16x32xbf16, #tpu.memory_space<vmem>>, vector<1x16x32xbf16>
    %66 = vector.shape_cast %65 : vector<1x16x32xbf16> to vector<16x32xbf16>
    %cst_62 = arith.constant dense<0.000000e+00> : vector<692x32xf32>
    %67 = tpu.matmul %64, %66, %cst_62 {dimension_numbers = #tpu.dot_dimension_numbers<[1], [0], [0], [1], [0, 0, 1, 1], [], []>} : vector<692x16xbf16>, vector<16x32xbf16>, vector<692x32xf32> -> vector<692x32xf32>
    %68 = arith.addf %63, %67 : vector<692x32xf32>
    %c7_63 = arith.constant 7 : index
    %c0_64 = arith.constant 0 : index
    %69 = vector.load %arg13[%c7_63, %c0_64] : memref<736x16xbf16, #tpu.memory_space<vmem>>, vector<692x16xbf16>
    %c2_65 = arith.constant 2 : index
    %c0_66 = arith.constant 0 : index
    %c0_67 = arith.constant 0 : index
    %70 = vector.load %arg6[%c2_65, %c0_66, %c0_67] : memref<9x16x32xbf16, #tpu.memory_space<vmem>>, vector<1x16x32xbf16>
    %71 = vector.shape_cast %70 : vector<1x16x32xbf16> to vector<16x32xbf16>
    %cst_68 = arith.constant dense<0.000000e+00> : vector<692x32xf32>
    %72 = tpu.matmul %69, %71, %cst_68 {dimension_numbers = #tpu.dot_dimension_numbers<[1], [0], [0], [1], [0, 0, 1, 1], [], []>} : vector<692x16xbf16>, vector<16x32xbf16>, vector<692x32xf32> -> vector<692x32xf32>
    %73 = arith.addf %68, %72 : vector<692x32xf32>
    %c23_69 = arith.constant 23 : index
    %c0_70 = arith.constant 0 : index
    %74 = vector.load %arg13[%c23_69, %c0_70] : memref<736x16xbf16, #tpu.memory_space<vmem>>, vector<692x16xbf16>
    %c3_71 = arith.constant 3 : index
    %c0_72 = arith.constant 0 : index
    %c0_73 = arith.constant 0 : index
    %75 = vector.load %arg6[%c3_71, %c0_72, %c0_73] : memref<9x16x32xbf16, #tpu.memory_space<vmem>>, vector<1x16x32xbf16>
    %76 = vector.shape_cast %75 : vector<1x16x32xbf16> to vector<16x32xbf16>
    %cst_74 = arith.constant dense<0.000000e+00> : vector<692x32xf32>
    %77 = tpu.matmul %74, %76, %cst_74 {dimension_numbers = #tpu.dot_dimension_numbers<[1], [0], [0], [1], [0, 0, 1, 1], [], []>} : vector<692x16xbf16>, vector<16x32xbf16>, vector<692x32xf32> -> vector<692x32xf32>
    %78 = arith.addf %73, %77 : vector<692x32xf32>
    %c24_75 = arith.constant 24 : index
    %c0_76 = arith.constant 0 : index
    %79 = vector.load %arg13[%c24_75, %c0_76] : memref<736x16xbf16, #tpu.memory_space<vmem>>, vector<692x16xbf16>
    %c4_77 = arith.constant 4 : index
    %c0_78 = arith.constant 0 : index
    %c0_79 = arith.constant 0 : index
    %80 = vector.load %arg6[%c4_77, %c0_78, %c0_79] : memref<9x16x32xbf16, #tpu.memory_space<vmem>>, vector<1x16x32xbf16>
    %81 = vector.shape_cast %80 : vector<1x16x32xbf16> to vector<16x32xbf16>
    %cst_80 = arith.constant dense<0.000000e+00> : vector<692x32xf32>
    %82 = tpu.matmul %79, %81, %cst_80 {dimension_numbers = #tpu.dot_dimension_numbers<[1], [0], [0], [1], [0, 0, 1, 1], [], []>} : vector<692x16xbf16>, vector<16x32xbf16>, vector<692x32xf32> -> vector<692x32xf32>
    %83 = arith.addf %78, %82 : vector<692x32xf32>
    %c25_81 = arith.constant 25 : index
    %c0_82 = arith.constant 0 : index
    %84 = vector.load %arg13[%c25_81, %c0_82] : memref<736x16xbf16, #tpu.memory_space<vmem>>, vector<692x16xbf16>
    %c5_83 = arith.constant 5 : index
    %c0_84 = arith.constant 0 : index
    %c0_85 = arith.constant 0 : index
    %85 = vector.load %arg6[%c5_83, %c0_84, %c0_85] : memref<9x16x32xbf16, #tpu.memory_space<vmem>>, vector<1x16x32xbf16>
    %86 = vector.shape_cast %85 : vector<1x16x32xbf16> to vector<16x32xbf16>
    %cst_86 = arith.constant dense<0.000000e+00> : vector<692x32xf32>
    %87 = tpu.matmul %84, %86, %cst_86 {dimension_numbers = #tpu.dot_dimension_numbers<[1], [0], [0], [1], [0, 0, 1, 1], [], []>} : vector<692x16xbf16>, vector<16x32xbf16>, vector<692x32xf32> -> vector<692x32xf32>
    %88 = arith.addf %83, %87 : vector<692x32xf32>
    %c41_87 = arith.constant 41 : index
    %c0_88 = arith.constant 0 : index
    %89 = vector.load %arg13[%c41_87, %c0_88] : memref<736x16xbf16, #tpu.memory_space<vmem>>, vector<692x16xbf16>
    %c6_89 = arith.constant 6 : index
    %c0_90 = arith.constant 0 : index
    %c0_91 = arith.constant 0 : index
    %90 = vector.load %arg6[%c6_89, %c0_90, %c0_91] : memref<9x16x32xbf16, #tpu.memory_space<vmem>>, vector<1x16x32xbf16>
    %91 = vector.shape_cast %90 : vector<1x16x32xbf16> to vector<16x32xbf16>
    %cst_92 = arith.constant dense<0.000000e+00> : vector<692x32xf32>
    %92 = tpu.matmul %89, %91, %cst_92 {dimension_numbers = #tpu.dot_dimension_numbers<[1], [0], [0], [1], [0, 0, 1, 1], [], []>} : vector<692x16xbf16>, vector<16x32xbf16>, vector<692x32xf32> -> vector<692x32xf32>
    %93 = arith.addf %88, %92 : vector<692x32xf32>
    %c42_93 = arith.constant 42 : index
    %c0_94 = arith.constant 0 : index
    %94 = vector.load %arg13[%c42_93, %c0_94] : memref<736x16xbf16, #tpu.memory_space<vmem>>, vector<692x16xbf16>
    %c7_95 = arith.constant 7 : index
    %c0_96 = arith.constant 0 : index
    %c0_97 = arith.constant 0 : index
    %95 = vector.load %arg6[%c7_95, %c0_96, %c0_97] : memref<9x16x32xbf16, #tpu.memory_space<vmem>>, vector<1x16x32xbf16>
    %96 = vector.shape_cast %95 : vector<1x16x32xbf16> to vector<16x32xbf16>
    %cst_98 = arith.constant dense<0.000000e+00> : vector<692x32xf32>
    %97 = tpu.matmul %94, %96, %cst_98 {dimension_numbers = #tpu.dot_dimension_numbers<[1], [0], [0], [1], [0, 0, 1, 1], [], []>} : vector<692x16xbf16>, vector<16x32xbf16>, vector<692x32xf32> -> vector<692x32xf32>
    %98 = arith.addf %93, %97 : vector<692x32xf32>
    %c43_99 = arith.constant 43 : index
    %c0_100 = arith.constant 0 : index
    %99 = vector.load %arg13[%c43_99, %c0_100] : memref<736x16xbf16, #tpu.memory_space<vmem>>, vector<692x16xbf16>
    %c8_101 = arith.constant 8 : index
    %c0_102 = arith.constant 0 : index
    %c0_103 = arith.constant 0 : index
    %100 = vector.load %arg6[%c8_101, %c0_102, %c0_103] : memref<9x16x32xbf16, #tpu.memory_space<vmem>>, vector<1x16x32xbf16>
    %101 = vector.shape_cast %100 : vector<1x16x32xbf16> to vector<16x32xbf16>
    %cst_104 = arith.constant dense<0.000000e+00> : vector<692x32xf32>
    %102 = tpu.matmul %99, %101, %cst_104 {dimension_numbers = #tpu.dot_dimension_numbers<[1], [0], [0], [1], [0, 0, 1, 1], [], []>} : vector<692x16xbf16>, vector<16x32xbf16>, vector<692x32xf32> -> vector<692x32xf32>
    %103 = arith.addf %98, %102 : vector<692x32xf32>
    %c0_105 = arith.constant 0 : index
    %c0_106 = arith.constant 0 : index
    %104 = vector.load %arg7[%c0_105, %c0_106] : memref<1x32xf32, #tpu.memory_space<vmem>>, vector<1x32xf32>
    %105 = vector.broadcast %104 : vector<1x32xf32> to vector<692x32xf32>
    %106 = arith.addf %103, %105 : vector<692x32xf32>
    %cst_107 = arith.constant 0.000000e+00 : f32
    %107 = vector.broadcast %cst_107 : f32 to vector<692x32xf32>
    %108 = arith.maximumf %106, %107 : vector<692x32xf32>
    %c0_108 = arith.constant 0 : index
    %c0_109 = arith.constant 0 : index
    %109 = vector.load %arg14[%c0_108, %c0_109] : memref<716x32xf32, #tpu.memory_space<vmem>>, vector<692x32xf32>
    tpu.vector_store %arg14[%c0_108, %c0_109], %108 {strides = array<i32>} : memref<716x32xf32, #tpu.memory_space<vmem>>, vector<692x32xf32>,
    %cst_110 = arith.constant 0.000000e+00 : f32
    %110 = vector.broadcast %cst_110 : f32 to vector<24x32xf32>
    %c692 = arith.constant 692 : index
    %c0_111 = arith.constant 0 : index
    %111 = vector.load %arg14[%c692, %c0_111] : memref<716x32xf32, #tpu.memory_space<vmem>>, vector<24x32xf32>
    tpu.vector_store %arg14[%c692, %c0_111], %110 {strides = array<i32>} : memref<716x32xf32, #tpu.memory_space<vmem>>, vector<24x32xf32>,
    %c1_112 = arith.constant 1 : index
    %c0_113 = arith.constant 0 : index
    %112 = vector.load %arg14[%c1_112, %c0_113] : memref<716x32xf32, #tpu.memory_space<vmem>>, vector<692x32xf32>
    %113 = arith.maximumf %108, %112 : vector<692x32xf32>
    %c18 = arith.constant 18 : index
    %c0_114 = arith.constant 0 : index
    %114 = vector.load %arg14[%c18, %c0_114] : memref<716x32xf32, #tpu.memory_space<vmem>>, vector<692x32xf32>
    %c19 = arith.constant 19 : index
    %c0_115 = arith.constant 0 : index
    %115 = vector.load %arg14[%c19, %c0_115] : memref<716x32xf32, #tpu.memory_space<vmem>>, vector<692x32xf32>
    %116 = arith.maximumf %114, %115 : vector<692x32xf32>
    %117 = arith.maximumf %113, %116 : vector<692x32xf32>
    %c0_116 = arith.constant 0 : index
    %c0_117 = arith.constant 0 : index
    %118 = vector.load %arg3[%c0_116, %c0_117] : memref<2x692xf32, #tpu.memory_space<vmem>>, vector<2x692xf32>
    %cst_118 = arith.constant dense<0.000000e+00> : vector<2x32xf32>
    %119 = tpu.matmul %118, %117, %cst_118 {dimension_numbers = #tpu.dot_dimension_numbers<[1], [0], [0], [1], [0, 0, 1, 1], [], []>} : vector<2x692xf32>, vector<692x32xf32>, vector<2x32xf32> -> vector<2x32xf32>
    %120 = arith.truncf %119 : vector<2x32xf32> to vector<2x32xbf16>
    %c0_119 = arith.constant 0 : index
    %c0_120 = arith.constant 0 : index
    %121 = vector.load %arg8[%c0_119, %c0_120] : memref<32x64xbf16, #tpu.memory_space<vmem>>, vector<32x64xbf16>
    %cst_121 = arith.constant dense<0.000000e+00> : vector<2x64xf32>
    %122 = tpu.matmul %120, %121, %cst_121 {dimension_numbers = #tpu.dot_dimension_numbers<[1], [0], [0], [1], [0, 0, 1, 1], [], []>} : vector<2x32xbf16>, vector<32x64xbf16>, vector<2x64xf32> -> vector<2x64xf32>
    %c0_122 = arith.constant 0 : index
    %c0_123 = arith.constant 0 : index
    %123 = vector.load %arg9[%c0_122, %c0_123] : memref<1x64xf32, #tpu.memory_space<vmem>>, vector<1x64xf32>
    %124 = vector.broadcast %123 : vector<1x64xf32> to vector<2x64xf32>
    %125 = arith.addf %122, %124 : vector<2x64xf32>
    %cst_124 = arith.constant 0.000000e+00 : f32
    %126 = vector.broadcast %cst_124 : f32 to vector<2x64xf32>
    %127 = arith.maximumf %125, %126 : vector<2x64xf32>
    %128 = arith.truncf %127 : vector<2x64xf32> to vector<2x64xbf16>
    %c0_125 = arith.constant 0 : index
    %c0_126 = arith.constant 0 : index
    %129 = vector.load %arg10[%c0_125, %c0_126] : memref<64x10xbf16, #tpu.memory_space<vmem>>, vector<64x10xbf16>
    %cst_127 = arith.constant dense<0.000000e+00> : vector<2x10xf32>
    %130 = tpu.matmul %128, %129, %cst_127 {dimension_numbers = #tpu.dot_dimension_numbers<[1], [0], [0], [1], [0, 0, 1, 1], [], []>} : vector<2x64xbf16>, vector<64x10xbf16>, vector<2x10xf32> -> vector<2x10xf32>
    %c0_128 = arith.constant 0 : index
    %c0_129 = arith.constant 0 : index
    %131 = vector.load %arg11[%c0_128, %c0_129] : memref<1x10xf32, #tpu.memory_space<vmem>>, vector<1x10xf32>
    %132 = vector.broadcast %131 : vector<1x10xf32> to vector<2x10xf32>
    %133 = arith.addf %130, %132 : vector<2x10xf32>
    %c0_130 = arith.constant 0 : index
    %c0_131 = arith.constant 0 : index
    %134 = vector.load %arg12[%c0_130, %c0_131] : memref<2x10xf32, #tpu.memory_space<vmem>>, vector<2x10xf32>
    tpu.vector_store %arg12[%c0_130, %c0_131], %133 {strides = array<i32>} : memref<2x10xf32, #tpu.memory_space<vmem>>, vector<2x10xf32>,
    return
  }
  func.func @transform_0(%arg0: i32) -> (i32, i32) {
    %c0_i32 = arith.constant 0 : i32
    %c0_i32_0 = arith.constant 0 : i32
    return %arg0, %c0_i32 : i32, i32
  }
  func.func @transform_1(%arg0: i32) -> (i32, i32) {
    %c0_i32 = arith.constant 0 : i32
    %c0_i32_0 = arith.constant 0 : i32
    %c0_i32_1 = arith.constant 0 : i32
    return %c0_i32, %c0_i32_0 : i32, i32
  }
  func.func @transform_2(%arg0: i32) -> (i32, i32) {
    %c0_i32 = arith.constant 0 : i32
    %c0_i32_0 = arith.constant 0 : i32
    %c0_i32_1 = arith.constant 0 : i32
    return %c0_i32, %c0_i32_0 : i32, i32
  }
  func.func @transform_3(%arg0: i32) -> (i32, i32, i32) {
    %c0_i32 = arith.constant 0 : i32
    %c0_i32_0 = arith.constant 0 : i32
    %c0_i32_1 = arith.constant 0 : i32
    %c0_i32_2 = arith.constant 0 : i32
    return %c0_i32, %c0_i32_0, %c0_i32_1 : i32, i32, i32
  }
  func.func @transform_4(%arg0: i32) -> (i32, i32) {
    %c0_i32 = arith.constant 0 : i32
    %c0_i32_0 = arith.constant 0 : i32
    %c0_i32_1 = arith.constant 0 : i32
    return %c0_i32, %c0_i32_0 : i32, i32
  }
  func.func @transform_5(%arg0: i32) -> (i32, i32, i32) {
    %c0_i32 = arith.constant 0 : i32
    %c0_i32_0 = arith.constant 0 : i32
    %c0_i32_1 = arith.constant 0 : i32
    %c0_i32_2 = arith.constant 0 : i32
    return %c0_i32, %c0_i32_0, %c0_i32_1 : i32, i32, i32
  }
  func.func @transform_6(%arg0: i32) -> (i32, i32) {
    %c0_i32 = arith.constant 0 : i32
    %c0_i32_0 = arith.constant 0 : i32
    %c0_i32_1 = arith.constant 0 : i32
    return %c0_i32, %c0_i32_0 : i32, i32
  }
  func.func @transform_7(%arg0: i32) -> (i32, i32) {
    %c0_i32 = arith.constant 0 : i32
    %c0_i32_0 = arith.constant 0 : i32
    %c0_i32_1 = arith.constant 0 : i32
    return %c0_i32, %c0_i32_0 : i32, i32
  }
  func.func @transform_8(%arg0: i32) -> (i32, i32) {
    %c0_i32 = arith.constant 0 : i32
    %c0_i32_0 = arith.constant 0 : i32
    %c0_i32_1 = arith.constant 0 : i32
    return %c0_i32, %c0_i32_0 : i32, i32
  }
  func.func @transform_9(%arg0: i32) -> (i32, i32) {
    %c0_i32 = arith.constant 0 : i32
    %c0_i32_0 = arith.constant 0 : i32
    %c0_i32_1 = arith.constant 0 : i32
    return %c0_i32, %c0_i32_0 : i32, i32
  }
  func.func @transform_10(%arg0: i32) -> (i32, i32) {
    %c0_i32 = arith.constant 0 : i32
    %c0_i32_0 = arith.constant 0 : i32
    %c0_i32_1 = arith.constant 0 : i32
    return %c0_i32, %c0_i32_0 : i32, i32
  }
  func.func @transform_11(%arg0: i32) -> (i32, i32) {
    %c0_i32 = arith.constant 0 : i32
    %c0_i32_0 = arith.constant 0 : i32
    return %arg0, %c0_i32 : i32, i32
  }
}

</mosaic_0001>

<bundles_post_ra>
// kernel: simple_cnn_forward.1
= control target key start
LH: loop header
LB: loop body
LE: loop exit
PB: predicated region body
PF: predicated region fallthrough
CT: control target
= control target key end

     0   :  { %vm573_vm0 = vcmask 1040384   ;;  %vm574_vm1 = vcmask 1041408   ;;  %v23434_v2 = vmov 65535   ;;  %vm352_vm2 = vcmask 1044480   ;;  %s31292_s0 = inlined_call_operand.vmem [shape: bf16[736,3], index: 0, kind: input, shape index: {}]   ;;  %s31293_s1 = inlined_call_operand.vmem [shape: f32[692,1], index: 1, kind: input, shape index: {}]   ;;  %s31294_s2 = inlined_call_operand.vmem [shape: f32[2,692], index: 2, kind: input, shape index: {}]   ;;  %s31295_s3 = inlined_call_operand.vmem [shape: bf16[9,3,16], index: 3, kind: input, shape index: {}]   ;;  %s31296_s4 = inlined_call_operand.vmem [shape: f32[1,16], index: 4, kind: input, shape index: {}]   ;;  %s31297_s5 = inlined_call_operand.vmem [shape: bf16[9,16,32], index: 5, kind: input, shape index: {}]   ;;  %s31298_s6 = inlined_call_operand.vmem [shape: f32[1,32], index: 6, kind: input, shape index: {}]   ;;  %s31299_s7 = inlined_call_operand.vmem [shape: bf16[32,64], index: 7, kind: input, shape index: {}]   ;;  %s31300_s8 = inlined_call_operand.vmem [shape: f32[1,64], index: 8, kind: input, shape index: {}]   ;;  %s31301_s9 = inlined_call_operand.vmem [shape: bf16[64,10], index: 9, kind: input, shape index: {}]   ;;  %s31302_s10 = inlined_call_operand.vmem [shape: f32[1,10], index: 10, kind: input, shape index: {}]   ;;  %s31303_s11 = inlined_call_operand.hbm [shape: f32[2,10], index: 11, kind: output, shape index: {}]  }
   0x1   :  { %v18123_v0 = vld [vmem:[%s31295_s3 + $0x2] sm:$0x3]  ;;  %v23507_v1 = vld [vmem:[%s31292_s0 + $0x8] sm:$0xff]   ;;  %v575_v3 = vsel %vm573_vm0, 4294967295, %v23434_v2  ;;  %v23512_v4 = vld [vmem:[%s31292_s0 + $0x4] sm:$0xf] }
   0x2   :  { %v23514_v5 = vsel %vm574_vm1, %v575_v3, 0  ;;  %v129_v7 = vld [vmem:[%s31292_s0] sm:$0x8]  ;;  %v354_v8 = vrot.slane %v23507_v1, 3  ;;  %v23524_v9 = vld [vmem:[%s31292_s0 + $0x10] sm:$0xff]   ;;  %v23533_v12 = vld [vmem:[%s31292_s0 + $0x18] sm:$0xff]  }
   0x3   :  { %31853 = vst [vmem:[#allocation7_spill] sm:$0xff] %v23514_v5  ;;  %v578_v6 = vand.u32 %v18123_v0, %v23514_v5  ;;  %v23527_v10 = vcombine.low %v129_v7, %v23512_v4  ;;  %v356_v11 = vrot.slane %v23524_v9, 3  ;;  %vm440_vm3 = vcmask 23552   ;;  %v23541_v16 = vld [vmem:[%s31292_s0 + $0x20] sm:$0xff]   ;;  %v23547_v18 = vld [vmem:[%s31292_s0 + $0x28] sm:$0xff]   ;;  %v23559_v23 = vld [vmem:[%s31292_s0 + $0x30] sm:$0xff]  }
   0x4   :  { %v358_v15 = vrot.slane %v23533_v12, 3  ;;  %v360_v20 = vrot.slane %v23541_v16, 3  ;;  %v362_v21 = vrot.slane %v23547_v18, 3  ;;  %v23565_v25 = vld [vmem:[%s31292_s0 + $0x38] sm:$0xff]   ;;  %v364_v26 = vrot.slane %v23559_v23, 3  ;;  %v23575_v29 = vld [vmem:[%s31292_s0 + $0x40] sm:$0xff]  }
   0x5   :  { %20032 = vmatprep.subr.bf16.mxu0 %v578_v6  ;;  %21769 = vmatprep.subr.bf16.mxu1 %v578_v6  ;;  %v353_v13 = vrot.slane %v23527_v10, 3  ;;  %v357_v14 = vsel %vm352_vm2, %v354_v8, %v356_v11  ;;  %v366_v27 = vrot.slane %v23565_v25, 3  ;;  %v23581_v31 = vld [vmem:[%s31292_s0 + $0x48] sm:$0xff]   ;;  %v368_v32 = vrot.slane %v23575_v29, 3  ;;  %v128_v34 = vld [vmem:[%s31295_s3] sm:$0x3] }
   0x6   :  { %20033 = vmatpush3.bf16.msra.mxu0 %v578_v6  ;;  %21770 = vmatpush3.bf16.msra.mxu1 %v578_v6  ;;  %v359_v19 = vsel %vm352_vm2, %v356_v11, %v358_v15  ;;  %v361_v22 = vsel %vm352_vm2, %v358_v15, %v360_v20  ;;  %v363_v24 = vsel %vm352_vm2, %v360_v20, %v362_v21  ;;  %v370_v33 = vrot.slane %v23581_v31, 3  ;;  %v23595_v37 = vld [vmem:[%s31292_s0 + $0x50] sm:$0xff]   ;;  %v23601_v39 = vld [vmem:[%s31292_s0 + $0x58] sm:$0xff]   ;;  %v23611_v43 = vld [vmem:[%s31292_s0 + $0x60] sm:$0xff]  }
   0x7   :  { %v355_v17 = vsel %vm352_vm2, %v353_v13, %v354_v8  ;;  %v365_v28 = vsel %vm352_vm2, %v362_v21, %v364_v26  ;;  %v367_v30 = vsel %vm352_vm2, %v364_v26, %v366_v27  ;;  %v1496_v35 = vand.u32 %v23514_v5, %v128_v34  ;;  %v23617_v45 = vld [vmem:[%s31292_s0 + $0x68] sm:$0xff]   ;;  %v23627_v49 = vld [vmem:[%s31292_s0 + $0x70] sm:$0xff]   ;;  %v23633_v51 = vld [vmem:[%s31292_s0 + $0x78] sm:$0xff]  }
   0x8   :  { %20034 = vmatprep.mubr.msk.bf16.mxu0 %vm440_vm3, %v355_v17  ;;  %v369_v36 = vsel %vm352_vm2, %v366_v27, %v368_v32  ;;  %v371_v38 = vsel %vm352_vm2, %v368_v32, %v370_v33  ;;  %v372_v40 = vrot.slane %v23595_v37, 3  ;;  %v374_v41 = vrot.slane %v23601_v39, 3  ;;  %v23642_v54 = vld [vmem:[%s31292_s0 + $0x80] sm:$0xff]   ;;  %v23647_v55 = vld [vmem:[%s31292_s0 + $0x88] sm:$0xff]   ;;  %v23658_v60 = vld [vmem:[%s31292_s0 + $0x90] sm:$0xff]  }
   0x9   :  { %20035 = vmatmul.mubr.msk.bf16.vlgmr.msra.gmra.mrb[0].mxu0 %vm440_vm3, %v357_v14  ;;  %20122 = vmatprep.subr.bf16.mxu0 %v1496_v35  ;;  %v376_v46 = vrot.slane %v23611_v43, 3  ;;  %v378_v47 = vrot.slane %v23617_v45, 3  ;;  %v380_v52 = vrot.slane %v23627_v49, 3  ;;  %v382_v53 = vrot.slane %v23633_v51, 3  ;;  %v23663_v61 = vld [vmem:[%s31292_s0 + $0x98] sm:$0xff]   ;;  %v23674_v3 = vld [vmem:[%s31292_s0 + $0xa0] sm:$0xff]  }
   0xa   :  { %20038 = vmatprep.mubr.msk.bf16.mxu0 %vm440_vm3, %v359_v19  ;;  %20123 = vmatpush3.bf16.msra.mxu0 %v1496_v35  ;;  %v373_v42 = vsel %vm352_vm2, %v370_v33, %v372_v40  ;;  %v375_v44 = vsel %vm352_vm2, %v372_v40, %v374_v41  ;;  %v384_v58 = vrot.slane %v23642_v54, 3  ;;  %v386_v59 = vrot.slane %v23647_v55, 3  ;;  %v23679_v6 = vld [vmem:[%s31292_s0 + $0xa8] sm:$0xff]   ;;  %v23690_v14 = vld [vmem:[%s31292_s0 + $0xb0] sm:$0xff]   ;;  %v23695_v15 = vld [vmem:[%s31292_s0 + $0xb8] sm:$0xff]  }
   0xb   :  { %v377_v48 = vsel %vm352_vm2, %v374_v41, %v376_v46  ;;  %v379_v50 = vsel %vm352_vm2, %v376_v46, %v378_v47  ;;  %v381_v56 = vsel %vm352_vm2, %v378_v47, %v380_v52  ;;  %v383_v57 = vsel %vm352_vm2, %v380_v52, %v382_v53  ;;  %v23723_v33 = vld [vmem:[%s31292_s0 + $0xd0] sm:$0xff]  }
   0xc   :  { %v385_v62 = vsel %vm352_vm2, %v382_v53, %v384_v58  ;;  %v387_v63 = vsel %vm352_vm2, %v384_v58, %v386_v59  ;;  %v388_v0 = vrot.slane %v23658_v60, 3  ;;  %v390_v2 = vrot.slane %v23663_v61, 3 }
   0xd   :  { %v392_v11 = vrot.slane %v23674_v3, 3  ;;  %v394_v13 = vrot.slane %v23679_v6, 3  ;;  %v396_v20 = vrot.slane %v23690_v14, 3  ;;  %v398_v21 = vrot.slane %v23695_v15, 3 }
   0xe   :  { %v389_v7 = vsel %vm352_vm2, %v386_v59, %v388_v0  ;;  %v391_v8 = vsel %vm352_vm2, %v388_v0, %v390_v2 }
   0xf   :  { %v393_v17 = vsel %vm352_vm2, %v390_v2, %v392_v11  ;;  %v395_v19 = vsel %vm352_vm2, %v392_v11, %v394_v13  ;;  %v397_v26 = vsel %vm352_vm2, %v394_v13, %v396_v20  ;;  %v399_v27 = vsel %vm352_vm2, %v396_v20, %v398_v21 }
  0x11   :  { %20039 = vmatmul.mubr.msk.bf16.gmra.mrb[4].mxu0 %vm440_vm3, %v361_v22  ;;  %v23706_v22 = vld [vmem:[%s31292_s0 + $0xc0] sm:$0xff]  }
  0x12   :  { %20042 = vmatprep.mubr.msk.bf16.mxu0 %vm440_vm3, %v363_v24  ;;  %v23711_v24 = vld [vmem:[%s31292_s0 + $0xc8] sm:$0xff]  }
  0x19   :  { %20043 = vmatmul.mubr.msk.bf16.gmra.mrb[8].mxu0 %vm440_vm3, %v365_v28  ;;  %v400_v28 = vrot.slane %v23706_v22, 3 }
  0x1a   :  { %20046 = vmatprep.mubr.msk.bf16.mxu0 %vm440_vm3, %v367_v30  ;;  %v402_v30 = vrot.slane %v23711_v24, 3 }
  0x1b   :  { %v401_v32 = vsel %vm352_vm2, %v398_v21, %v400_v28 }
  0x21   :  { %20047 = vmatmul.mubr.msk.bf16.gmra.mrb[12].mxu0 %vm440_vm3, %v369_v36 }
  0x22   :  { %20050 = vmatprep.mubr.msk.bf16.mxu0 %vm440_vm3, %v371_v38 }
  0x29   :  { %20051 = vmatmul.mubr.msk.bf16.gmra.mrb[16].mxu0 %vm440_vm3, %v373_v42 }
  0x2a   :  { %20054 = vmatprep.mubr.msk.bf16.mxu0 %vm440_vm3, %v375_v44 }
  0x31   :  { %20055 = vmatmul.mubr.msk.bf16.gmra.mrb[20].mxu0 %vm440_vm3, %v377_v48 }
  0x32   :  { %20058 = vmatprep.mubr.msk.bf16.mxu0 %vm440_vm3, %v379_v50 }
  0x39   :  { %20059 = vmatmul.mubr.msk.bf16.gmra.mrb[24].mxu0 %vm440_vm3, %v381_v56 }
  0x3a   :  { %20062 = vmatprep.mubr.msk.bf16.mxu0 %vm440_vm3, %v383_v57 }
  0x41   :  { %20063 = vmatmul.mubr.msk.bf16.gmra.mrb[28].mxu0 %vm440_vm3, %v385_v62 }
  0x42   :  { %20066 = vmatprep.mubr.msk.bf16.mxu0 %vm440_vm3, %v387_v63 }
  0x49   :  { %20067 = vmatmul.mubr.msk.bf16.gmra.mrb[32].mxu0 %vm440_vm3, %v389_v7 }
  0x4a   :  { %20070 = vmatprep.mubr.msk.bf16.mxu0 %vm440_vm3, %v391_v8 }
  0x51   :  { %20071 = vmatmul.mubr.msk.bf16.gmra.mrb[36].mxu0 %vm440_vm3, %v393_v17 }
  0x52   :  { %20074 = vmatprep.mubr.msk.bf16.mxu0 %vm440_vm3, %v395_v19 }
  0x59   :  { %20075 = vmatmul.mubr.msk.bf16.gmra.mrb[40].mxu0 %vm440_vm3, %v397_v26 }
  0x5a   :  { %20078 = vmatprep.mubr.msk.bf16.mxu0 %vm440_vm3, %v399_v27 }
  0x5b   :  { %16 = vsyncpa [#allocation5], 0  ;;  %v403_v34 = vsel %vm352_vm2, %v400_v28, %v402_v30  ;;  %v23729_v35 = vld [vmem:[%s31292_s0 + $0xd8] sm:$0xff]   ;;  %v404_v36 = vrot.slane %v23723_v33, 3  ;;  %v23739_v41 = vld [vmem:[%s31292_s0 + $0xe0] sm:$0xff]   ;;  %vm9029_vm7 = vcmask 130048  }
  0x5c   :  { %v406_v38 = vrot.slane %v23729_v35, 3  ;;  %v23745_v44 = vld [vmem:[%s31292_s0 + $0xe8] sm:$0xff]   ;;  %v408_v46 = vrot.slane %v23739_v41, 3  ;;  %v23755_v50 = vld [vmem:[%s31292_s0 + $0xf0] sm:$0xff]   ;;  %v23761_v53 = vld [vmem:[%s31292_s0 + $0xf8] sm:$0xff]   ;;  %vm9031_vm8 = vcmask 125952  }
  0x5d   :  { %v405_v40 = vsel %vm352_vm2, %v402_v30, %v404_v36  ;;  %v410_v47 = vrot.slane %v23745_v44, 3  ;;  %v412_v56 = vrot.slane %v23755_v50, 3  ;;  %v414_v57 = vrot.slane %v23761_v53, 3  ;;  %v23771_v59 = vld [vmem:[%s31292_s0 + $0x100] sm:$0xff]   ;;  %v23777_v63 = vld [vmem:[%s31292_s0 + $0x108] sm:$0xff]   ;;  %v23787_v8 = vld [vmem:[%s31292_s0 + $0x110] sm:$0xff]  }
  0x5e   :  { %v407_v42 = vsel %vm352_vm2, %v404_v36, %v406_v38  ;;  %v409_v48 = vsel %vm352_vm2, %v406_v38, %v408_v46  ;;  %v416_v0 = vrot.slane %v23771_v59, 3  ;;  %v418_v2 = vrot.slane %v23777_v63, 3  ;;  %v23793_v13 = vld [vmem:[%s31292_s0 + $0x118] sm:$0xff]   ;;  %v23803_v21 = vld [vmem:[%s31292_s0 + $0x120] sm:$0xff]   ;;  %v23809_v27 = vld [vmem:[%s31292_s0 + $0x128] sm:$0xff]  }
  0x5f   :  { %v411_v52 = vsel %vm352_vm2, %v408_v46, %v410_v47  ;;  %v413_v58 = vsel %vm352_vm2, %v410_v47, %v412_v56  ;;  %v415_v62 = vsel %vm352_vm2, %v412_v56, %v414_v57  ;;  %v420_v17 = vrot.slane %v23787_v8, 3  ;;  %v23825_v38 = vld [vmem:[%s31292_s0 + $0x138] sm:$0xff]   ;;  %v23842_v56 = vld [vmem:[%s31292_s0 + $0x140] sm:$0xff]  }
  0x60   :  { %v417_v7 = vsel %vm352_vm2, %v414_v57, %v416_v0  ;;  %v419_v11 = vsel %vm352_vm2, %v416_v0, %v418_v2  ;;  %v422_v19 = vrot.slane %v23793_v13, 3  ;;  %v424_v28 = vrot.slane %v23803_v21, 3  ;;  %v23847_v57 = vld [vmem:[%s31292_s0 + $0x148] sm:$0xff]  }
  0x61   :  { %20079 = vmatmul.mubr.msk.bf16.gmra.mrb[44].mxu0 %vm440_vm3, %v401_v32  ;;  %v421_v20 = vsel %vm352_vm2, %v418_v2, %v420_v17  ;;  %v426_v30 = vrot.slane %v23809_v27, 3  ;;  %v430_v47 = vrot.slane %v23825_v38, 3  ;;  %v432_v0 = vrot.slane %v23842_v56, 3 }
  0x62   :  { %20082 = vmatprep.mubr.msk.bf16.mxu0 %vm440_vm3, %v403_v34  ;;  %v423_v26 = vsel %vm352_vm2, %v420_v17, %v422_v19  ;;  %v425_v32 = vsel %vm352_vm2, %v422_v19, %v424_v28  ;;  %v23819_v34 = vld [vmem:[%s31292_s0 + $0x130] sm:$0xff]   ;;  %v434_v2 = vrot.slane %v23847_v57, 3  ;;  %v31386_v17 = vshrl.u32 %v23507_v1, 16 }
  0x63   :  { %v427_v36 = vsel %vm352_vm2, %v424_v28, %v426_v30  ;;  %v31327_v19 = vshll.u32 %v23507_v1, 16  ;;  %vm967_vm4 = vsmask.f32 5376  ;;  %vm1888_vm5 = vsmask.f32 4352 }
  0x64   :  { %vm4649_vm6 = vsmask.f32 7424  ;;  %vm9299_vm9 = vcmask 130054   ;;  %vm6834_vm10 = vcmask 1046528   ;;  %vm7534_vm11 = vsmask.f32 6400 }
  0x65   :  { %vm9121_vm12 = vcmask 1043456   ;;  %vm9253_vm13 = vcmask 130052   ;;  %vm9297_vm14 = vcmask 128000   ;;  %vm15413_vm15 = vcmask 1042432  }
  0x66   :  { %vm13519_vm0 = vsmask.f32 3328  ;;  %vm16114_vm1 = vsmask.f32 2304 }
  0x69   :  { %20083 = vmatmul.mubr.msk.bf16.gmra.mrb[48].mxu0 %vm440_vm3, %v405_v40  ;;  %v18257_v40 = vld [vmem:[%s31295_s3 + $0x4] sm:$0x3] }
  0x6a   :  { %20086 = vmatprep.mubr.msk.bf16.mxu0 %vm440_vm3, %v407_v42  ;;  %v428_v42 = vrot.slane %v23819_v34, 3  ;;  %v2207_v46 = vand.u32 %v18257_v40, %v23514_v5 }
  0x6c   :  { %20212 = vmatprep.subr.bf16.mxu0 %v2207_v46 }
  0x71   :  { %20087 = vmatmul.mubr.msk.bf16.gmra.mrb[52].mxu0 %vm440_vm3, %v409_v48  ;;  %v40_v48 = vld [vmem:[%s31292_s0] sm:$0xc] }
  0x72   :  { %20090 = vmatprep.mubr.msk.bf16.mxu0 %vm440_vm3, %v411_v52  ;;  %v429_v52 = vsel %vm352_vm2, %v426_v30, %v428_v42 }
  0x79   :  { %20091 = vmatmul.mubr.msk.bf16.gmra.mrb[56].mxu0 %vm440_vm3, %v413_v58  ;;  %v18212_v58 = vcombine.low %v40_v48, %v23512_v4  ;;  %v435_v4 = vsel %vm352_vm2, %v432_v0, %v434_v2 }
  0x7a   :  { %20094 = vmatprep.mubr.msk.bf16.mxu0 %vm440_vm3, %v415_v62  ;;  %v431_v62 = vsel %vm352_vm2, %v428_v42, %v430_v47  ;;  %v31305_v42 = vshrl.u32 %v23524_v9, 16 }
  0x81   :  { %20095 = vmatmul.mubr.msk.bf16.gmra.mrb[60].mxu0 %vm440_vm3, %v417_v7  ;;  %v969_v7 = vshrl.u32 %v18212_v58, 16 }
  0x82   :  { %20098 = vmatprep.mubr.msk.bf16.mxu0 %vm440_vm3, %v419_v11  ;;  %v972_v11 = vshll.u32 %v18212_v58, 16  ;;  %v31306_v58 = vshrl.u32 %v23533_v12, 16 }
  0x83   :  { %v971_v28 = vrot.slane %v969_v7, 2  ;;  %v988_v7 = vrot.slane %v31305_v42, 2 }
  0x84   :  { %v974_v30 = vrot.slane %v972_v11, 3 }
  0x86   :  { %v975_v48 = vor.u32 %v974_v30, %v971_v28 }
  0x89   :  { %20099 = vmatmul.mubr.msk.bf16.gmra.mrb[64].mxu0 %vm440_vm3, %v421_v20  ;;  %v433_v20 = vsel %vm352_vm2, %v430_v47, %v432_v0  ;;  %v31304_v47 = vshll.u32 %v23524_v9, 16 }
  0x8a   :  { %20102 = vmatprep.mubr.msk.bf16.mxu0 %vm440_vm3, %v423_v26  ;;  %v23862_v26 = vld [vmem:[%s31292_s0 + $0x150] sm:$0xff]  }
  0x8b   :  { %v436_v40 = vrot.slane %v23862_v26, 3  ;;  %v991_v11 = vrot.slane %v31304_v47, 3  ;;  %v31309_v47 = vshrl.u32 %v23547_v18, 16 }
  0x8d   :  { %v437_v0 = vsel %vm352_vm2, %v434_v2, %v436_v40  ;;  %v992_v30 = vor.u32 %v991_v11, %v988_v7  ;;  %v31307_v2 = vshrl.u32 %v23541_v16, 16  ;;  %v1015_v7 = vrot.slane %v31309_v47, 2 }
  0x91   :  { %20103 = vmatmul.mubr.msk.bf16.gmra.mrb[68].mxu0 %vm440_vm3, %v425_v32  ;;  %v979_v32 = vrot.slane %v31386_v17, 2 }
  0x92   :  { %20106 = vmatprep.mubr.msk.bf16.mxu0 %vm440_vm3, %v427_v36  ;;  %v982_v36 = vrot.slane %v31327_v19, 3  ;;  %v31333_v19 = vshll.u32 %v23633_v51, 16 }
  0x99   :  { %20107 = vmatmul.mubr.msk.bf16.gmra.mrb[72].mxu0 %vm440_vm3, %v429_v52  ;;  %v983_v52 = vor.u32 %v982_v36, %v979_v32  ;;  %v31308_v32 = vshll.u32 %v23541_v16, 16 }
  0x9a   :  { %20110 = vmatprep.mubr.msk.bf16.mxu0 %vm440_vm3, %v431_v62  ;;  %v31325_v62 = vshll.u32 %v23533_v12, 16 }
  0x9b   :  { %v993_v42 = vsel %vm967_vm4, %v983_v52, %v992_v30 }
  0x9c   :  { %v1000_v28 = vrot.slane %v31325_v62, 3 }
  0xa1   :  { %20111 = vmatmul.mubr.msk.bf16.gmra.mrb[76].mxu0 %vm440_vm3, %v433_v20  ;;  %v984_v20 = vsel %vm967_vm4, %v975_v48, %v983_v52  ;;  %v31310_v48 = vshll.u32 %v23547_v18, 16  ;;  %v31312_v52 = vshrl.u32 %v23559_v23, 16 }
  0xa2   :  { %20114 = vmatprep.mubr.msk.bf16.mxu0 %vm440_vm3, %v435_v4  ;;  %v997_v4 = vrot.slane %v31306_v58, 2  ;;  %v1006_v58 = vrot.slane %v31307_v2, 2 }
  0xa3   :  { %v1018_v11 = vrot.slane %v31310_v48, 3  ;;  %v1024_v48 = vrot.slane %v31312_v52, 2 }
  0xa4   :  { %v1001_v36 = vor.u32 %v1000_v28, %v997_v4  ;;  %v31311_v28 = vshll.u32 %v23559_v23, 16 }
  0xa5   :  { %v1019_v2 = vor.u32 %v1018_v11, %v1015_v7  ;;  %v31315_v7 = vshll.u32 %v23575_v29, 16 }
  0xa9   :  { %20115 = vmatmul.mubr.msk.bf16.gmra.mrb[80].mxu0 %vm440_vm3, %v437_v0  ;;  %v1009_v0 = vrot.slane %v31308_v32, 3  ;;  %v31313_v32 = vshrl.u32 %v23565_v25, 16 }
  0xaa   :  { %20124 = vmatprep.mubr.msk.bf16.mxu0 %vm440_vm3, %v984_v20  ;;  %v1002_v20 = vsel %vm967_vm4, %v992_v30, %v1001_v36  ;;  %v31316_v30 = vshll.u32 %v23565_v25, 16 }
  0xab   :  { %v1010_v4 = vor.u32 %v1009_v0, %v1006_v58  ;;  %v1033_v0 = vrot.slane %v31313_v32, 2 }
  0xad   :  { %v1011_v47 = vsel %vm967_vm4, %v1001_v36, %v1010_v4  ;;  %v1020_v58 = vsel %vm967_vm4, %v1010_v4, %v1019_v2  ;;  %v31314_v36 = vshrl.u32 %v23575_v29, 16  ;;  %v31320_v4 = vshll.u32 %v23581_v31, 16 }
  0xaf   :  { %v1042_v32 = vrot.slane %v31314_v36, 2 }
  0xb1   :  { %20125 = vmatmul.mubr.msk.bf16.vlgmr.msra.gmra.mrb[0].mxu0 %vm440_vm3, %v993_v42  ;;  %v1027_v42 = vrot.slane %v31311_v28, 3  ;;  %v31317_v28 = vshrl.u32 %v23581_v31, 16 }
  0xb2   :  { %20128 = vmatprep.mubr.msk.bf16.mxu0 %vm440_vm3, %v1002_v20  ;;  %20213 = vmatpush3.bf16.msra.mxu0 %v2207_v46  ;;  %v1036_v46 = vrot.slane %v31316_v30, 3 }
  0xb3   :  { %v1028_v20 = vor.u32 %v1027_v42, %v1024_v48  ;;  %v1051_v48 = vrot.slane %v31317_v28, 2  ;;  %v1054_v42 = vrot.slane %v31320_v4, 3 }
  0xb4   :  { %v1037_v11 = vor.u32 %v1036_v46, %v1033_v0  ;;  %v31319_v46 = vshll.u32 %v23595_v37, 16 }
  0xb5   :  { %v1029_v52 = vsel %vm967_vm4, %v1019_v2, %v1028_v20  ;;  %v31318_v2 = vshrl.u32 %v23595_v37, 16  ;;  %v1055_v36 = vor.u32 %v1054_v42, %v1051_v48  ;;  %v31322_v42 = vshll.u32 %v23611_v43, 16 }
  0xb7   :  { %v1060_v28 = vrot.slane %v31318_v2, 2 }
  0xb9   :  { %20129 = vmatmul.mubr.msk.bf16.gmra.mrb[4].mxu0 %vm440_vm3, %v1011_v47  ;;  %v1045_v47 = vrot.slane %v31315_v7, 3  ;;  %v31321_v7 = vshrl.u32 %v23601_v39, 16 }
  0xba   :  { %20132 = vmatprep.mubr.msk.bf16.mxu0 %vm440_vm3, %v1020_v58  ;;  %v1038_v58 = vsel %vm967_vm4, %v1028_v20, %v1037_v11  ;;  %v31324_v20 = vshll.u32 %v23601_v39, 16 }
  0xbb   :  { %v1046_v0 = vor.u32 %v1045_v47, %v1042_v32  ;;  %v1069_v32 = vrot.slane %v31321_v7, 2 }
  0xbc   :  { %v1072_v47 = vrot.slane %v31324_v20, 3  ;;  %v31329_v20 = vshrl.u32 %v23627_v49, 16 }
  0xbd   :  { %v1047_v30 = vsel %vm967_vm4, %v1037_v11, %v1046_v0  ;;  %v31323_v11 = vshrl.u32 %v23611_v43, 16 }
  0xbe   :  { %v1073_v2 = vor.u32 %v1072_v47, %v1069_v32 }
  0xbf   :  { %v1078_v7 = vrot.slane %v31323_v11, 2 }
  0xc1   :  { %20133 = vmatmul.mubr.msk.bf16.gmra.mrb[8].mxu0 %vm440_vm3, %v1029_v52  ;;  %v1063_v52 = vrot.slane %v31319_v46, 3  ;;  %v31326_v46 = vshrl.u32 %v23617_v45, 16 }
  0xc2   :  { %20136 = vmatprep.mubr.msk.bf16.mxu0 %vm440_vm3, %v1038_v58  ;;  %v1056_v58 = vsel %vm967_vm4, %v1046_v0, %v1055_v36  ;;  %v31380_v0 = vshll.u32 %v23617_v45, 16 }
  0xc3   :  { %v1064_v48 = vor.u32 %v1063_v52, %v1060_v28  ;;  %v23965_v28 = vld [vmem:[%s31292_s0 + $0x158] sm:$0xf]  ;;  %v127_v52 = vld [vmem:[%s31292_s0 + $0x15c] sm:$0x1] }
  0xc4   :  { %v1090_v32 = vrot.slane %v31380_v0, 3  ;;  %v23976_v47 = vcombine.low %v23965_v28, %v127_v52 }
  0xc5   :  { %v1065_v4 = vsel %vm967_vm4, %v1055_v36, %v1064_v48  ;;  %v1087_v36 = vrot.slane %v31326_v46, 2  ;;  %v31330_v46 = vshrl.u32 %v23633_v51, 16 }
  0xc7   :  { %v1091_v62 = vor.u32 %v1090_v32, %v1087_v36  ;;  %v1105_v36 = vrot.slane %v31330_v46, 2  ;;  %v31332_v32 = vshll.u32 %v23642_v54, 16 }
  0xc9   :  { %20137 = vmatmul.mubr.msk.bf16.gmra.mrb[12].mxu0 %vm440_vm3, %v1047_v30  ;;  %v1081_v30 = vrot.slane %v31322_v42, 3  ;;  %v438_v42 = vrot.slane %v23976_v47, 3 }
  0xca   :  { %20140 = vmatprep.mubr.msk.bf16.mxu0 %vm440_vm3, %v1056_v58  ;;  %v1074_v58 = vsel %vm967_vm4, %v1064_v48, %v1073_v2  ;;  %v31328_v48 = vshll.u32 %v23627_v49, 16 }
  0xcb   :  { %v1082_v11 = vor.u32 %v1081_v30, %v1078_v7  ;;  %v439_v52 = vsel %vm352_vm2, %v436_v40, %v438_v42  ;;  %v1096_v7 = vrot.slane %v31329_v20, 2  ;;  %v1108_v40 = vrot.slane %v31333_v19, 3 }
  0xcc   :  { %20118 = vmatprep.mubr.msk.bf16.mxu1 %vm440_vm3, %v439_v52  ;;  %v1099_v30 = vrot.slane %v31328_v48, 3  ;;  %v31334_v48 = vshrl.u32 %v23647_v55, 16 }
  0xcd   :  { %20119 = vmatmul.mubr.msk.bf16.vlgmr.msra.gmra.mrb[0].mxu1 %vm440_vm3, %v438_v42  ;;  %v1109_v52 = vor.u32 %v1108_v40, %v1105_v36  ;;  %v31336_v40 = vshll.u32 %v23658_v60, 16 }
  0xce   :  { %v1100_v42 = vor.u32 %v1099_v30, %v1096_v7  ;;  %v1123_v7 = vrot.slane %v31334_v48, 2 }
  0xd0   :  { %v1101_v20 = vsel %vm967_vm4, %v1091_v62, %v1100_v42 }
  0xd1   :  { %20141 = vmatmul.mubr.msk.bf16.gmra.mrb[16].mxu0 %vm440_vm3, %v1065_v4  ;;  %v1083_v4 = vsel %vm967_vm4, %v1073_v2, %v1082_v11  ;;  %v31331_v2 = vshrl.u32 %v23642_v54, 16 }
  0xd2   :  { %20144 = vmatprep.mubr.msk.bf16.mxu0 %vm440_vm3, %v1074_v58  ;;  %v1092_v58 = vsel %vm967_vm4, %v1082_v11, %v1091_v62  ;;  %v31337_v11 = vshll.u32 %v23647_v55, 16  ;;  %v31335_v62 = vshrl.u32 %v23658_v60, 16 }
  0xd3   :  { %v1114_v46 = vrot.slane %v31331_v2, 2 }
  0xd4   :  { %v1126_v30 = vrot.slane %v31337_v11, 3  ;;  %v1132_v48 = vrot.slane %v31335_v62, 2 }
  0xd6   :  { %v1127_v2 = vor.u32 %v1126_v30, %v1123_v7  ;;  %v31340_v30 = vshll.u32 %v23674_v3, 16 }
  0xd9   :  { %20145 = vmatmul.mubr.msk.bf16.gmra.mrb[20].mxu0 %vm440_vm3, %v1083_v4  ;;  %v1117_v4 = vrot.slane %v31332_v32, 3  ;;  %v31338_v32 = vshrl.u32 %v23663_v61, 16 }
  0xda   :  { %20148 = vmatprep.mubr.msk.bf16.mxu0 %vm440_vm3, %v1092_v58  ;;  %v1110_v58 = vsel %vm967_vm4, %v1100_v42, %v1109_v52  ;;  %v31341_v42 = vshll.u32 %v23663_v61, 16 }
  0xdb   :  { %v1118_v36 = vor.u32 %v1117_v4, %v1114_v46  ;;  %v1141_v46 = vrot.slane %v31338_v32, 2 }
  0xdc   :  { %v1144_v4 = vrot.slane %v31341_v42, 3 }
  0xdd   :  { %v1119_v19 = vsel %vm967_vm4, %v1109_v52, %v1118_v36  ;;  %v31339_v52 = vshrl.u32 %v23674_v3, 16 }
  0xde   :  { %v1145_v62 = vor.u32 %v1144_v4, %v1141_v46  ;;  %v31344_v4 = vshll.u32 %v23690_v14, 16 }
  0xdf   :  { %v1150_v32 = vrot.slane %v31339_v52, 2 }
  0xe1   :  { %20149 = vmatmul.mubr.msk.bf16.gmra.mrb[24].mxu0 %vm440_vm3, %v1101_v20  ;;  %v1135_v20 = vrot.slane %v31336_v40, 3  ;;  %v31342_v40 = vshrl.u32 %v23679_v6, 16 }
  0xe2   :  { %20152 = vmatprep.mubr.msk.bf16.mxu0 %vm440_vm3, %v1110_v58  ;;  %v1128_v58 = vsel %vm967_vm4, %v1118_v36, %v1127_v2  ;;  %v31345_v36 = vshll.u32 %v23679_v6, 16 }
  0xe3   :  { %v1136_v7 = vor.u32 %v1135_v20, %v1132_v48  ;;  %v1159_v48 = vrot.slane %v31342_v40, 2 }
  0xe4   :  { %v1162_v20 = vrot.slane %v31345_v36, 3 }
  0xe5   :  { %v1137_v11 = vsel %vm967_vm4, %v1127_v2, %v1136_v7  ;;  %v31343_v2 = vshrl.u32 %v23690_v14, 16 }
  0xe6   :  { %v1163_v52 = vor.u32 %v1162_v20, %v1159_v48  ;;  %v31348_v20 = vshll.u32 %v23706_v22, 16 }
  0xe7   :  { %v1168_v40 = vrot.slane %v31343_v2, 2 }
  0xe9   :  { %20153 = vmatmul.mubr.msk.bf16.gmra.mrb[28].mxu0 %vm440_vm3, %v1119_v19  ;;  %v1153_v19 = vrot.slane %v31340_v30, 3  ;;  %v31346_v30 = vshrl.u32 %v23695_v15, 16 }
  0xea   :  { %20156 = vmatprep.mubr.msk.bf16.mxu0 %vm440_vm3, %v1128_v58  ;;  %v1146_v58 = vsel %vm967_vm4, %v1136_v7, %v1145_v62  ;;  %v31349_v7 = vshll.u32 %v23695_v15, 16 }
  0xeb   :  { %v1154_v46 = vor.u32 %v1153_v19, %v1150_v32  ;;  %v1177_v32 = vrot.slane %v31346_v30, 2 }
  0xec   :  { %v1180_v19 = vrot.slane %v31349_v7, 3 }
  0xed   :  { %v1155_v42 = vsel %vm967_vm4, %v1145_v62, %v1154_v46  ;;  %v31347_v62 = vshrl.u32 %v23706_v22, 16 }
  0xee   :  { %v1181_v2 = vor.u32 %v1180_v19, %v1177_v32  ;;  %v31352_v19 = vshll.u32 %v23723_v33, 16 }
  0xef   :  { %v1186_v30 = vrot.slane %v31347_v62, 2 }
  0xf1   :  { %20157 = vmatmul.mubr.msk.bf16.gmra.mrb[32].mxu0 %vm440_vm3, %v1137_v11  ;;  %v1171_v11 = vrot.slane %v31344_v4, 3  ;;  %v31350_v4 = vshrl.u32 %v23711_v24, 16 }
  0xf2   :  { %20160 = vmatprep.mubr.msk.bf16.mxu0 %vm440_vm3, %v1146_v58  ;;  %v1164_v58 = vsel %vm967_vm4, %v1154_v46, %v1163_v52  ;;  %v31353_v46 = vshll.u32 %v23711_v24, 16 }
  0xf3   :  { %v1172_v48 = vor.u32 %v1171_v11, %v1168_v40  ;;  %v1195_v40 = vrot.slane %v31350_v4, 2 }
  0xf4   :  { %v1198_v11 = vrot.slane %v31353_v46, 3 }
  0xf5   :  { %v1173_v36 = vsel %vm967_vm4, %v1163_v52, %v1172_v48  ;;  %v31351_v52 = vshrl.u32 %v23723_v33, 16 }
  0xf6   :  { %v1199_v62 = vor.u32 %v1198_v11, %v1195_v40  ;;  %v31356_v11 = vshll.u32 %v23739_v41, 16 }
  0xf7   :  { %v1204_v4 = vrot.slane %v31351_v52, 2 }
  0xf9   :  { %20161 = vmatmul.mubr.msk.bf16.gmra.mrb[36].mxu0 %vm440_vm3, %v1155_v42  ;;  %v1189_v42 = vrot.slane %v31348_v20, 3  ;;  %v31354_v20 = vshrl.u32 %v23729_v35, 16 }
  0xfa   :  { %20164 = vmatprep.mubr.msk.bf16.mxu0 %vm440_vm3, %v1164_v58  ;;  %v1182_v58 = vsel %vm967_vm4, %v1172_v48, %v1181_v2  ;;  %v31357_v48 = vshll.u32 %v23729_v35, 16 }
  0xfb   :  { %v1190_v32 = vor.u32 %v1189_v42, %v1186_v30  ;;  %v1213_v30 = vrot.slane %v31354_v20, 2 }
  0xfc   :  { %v1216_v42 = vrot.slane %v31357_v48, 3 }
  0xfd   :  { %v1191_v7 = vsel %vm967_vm4, %v1181_v2, %v1190_v32  ;;  %v31355_v2 = vshrl.u32 %v23739_v41, 16 }
  0xfe   :  { %v1217_v52 = vor.u32 %v1216_v42, %v1213_v30  ;;  %v31360_v42 = vshll.u32 %v23755_v50, 16 }
  0xff   :  { %v1222_v20 = vrot.slane %v31355_v2, 2 }
 0x101   :  { %20165 = vmatmul.mubr.msk.bf16.gmra.mrb[40].mxu0 %vm440_vm3, %v1173_v36  ;;  %v1207_v36 = vrot.slane %v31352_v19, 3  ;;  %v31358_v19 = vshrl.u32 %v23745_v44, 16 }
 0x102   :  { %20168 = vmatprep.mubr.msk.bf16.mxu0 %vm440_vm3, %v1182_v58  ;;  %v1200_v58 = vsel %vm967_vm4, %v1190_v32, %v1199_v62  ;;  %v31361_v32 = vshll.u32 %v23745_v44, 16 }
 0x103   :  { %v1208_v40 = vor.u32 %v1207_v36, %v1204_v4  ;;  %v1231_v4 = vrot.slane %v31358_v19, 2 }
 0x104   :  { %v1234_v36 = vrot.slane %v31361_v32, 3 }
 0x105   :  { %v1209_v46 = vsel %vm967_vm4, %v1199_v62, %v1208_v40  ;;  %v31359_v62 = vshrl.u32 %v23755_v50, 16 }
 0x106   :  { %v1235_v2 = vor.u32 %v1234_v36, %v1231_v4  ;;  %v31364_v36 = vshll.u32 %v23771_v59, 16 }
 0x107   :  { %v1240_v19 = vrot.slane %v31359_v62, 2 }
 0x109   :  { %20169 = vmatmul.mubr.msk.bf16.gmra.mrb[44].mxu0 %vm440_vm3, %v1191_v7  ;;  %v1225_v7 = vrot.slane %v31356_v11, 3  ;;  %v31362_v11 = vshrl.u32 %v23761_v53, 16 }
 0x10a   :  { %20172 = vmatprep.mubr.msk.bf16.mxu0 %vm440_vm3, %v1200_v58  ;;  %v1218_v58 = vsel %vm967_vm4, %v1208_v40, %v1217_v52  ;;  %v31365_v40 = vshll.u32 %v23761_v53, 16 }
 0x10b   :  { %v1226_v30 = vor.u32 %v1225_v7, %v1222_v20  ;;  %v1249_v20 = vrot.slane %v31362_v11, 2 }
 0x10c   :  { %v1252_v7 = vrot.slane %v31365_v40, 3 }
 0x10d   :  { %v1227_v48 = vsel %vm967_vm4, %v1217_v52, %v1226_v30  ;;  %v31363_v52 = vshrl.u32 %v23771_v59, 16 }
 0x10e   :  { %v1253_v62 = vor.u32 %v1252_v7, %v1249_v20  ;;  %v31368_v7 = vshll.u32 %v23787_v8, 16 }
 0x10f   :  { %v1258_v11 = vrot.slane %v31363_v52, 2 }
 0x111   :  { %20173 = vmatmul.mubr.msk.bf16.gmra.mrb[48].mxu0 %vm440_vm3, %v1209_v46  ;;  %v1243_v46 = vrot.slane %v31360_v42, 3  ;;  %v31366_v42 = vshrl.u32 %v23777_v63, 16 }
 0x112   :  { %20176 = vmatprep.mubr.msk.bf16.mxu0 %vm440_vm3, %v1218_v58  ;;  %v1236_v58 = vsel %vm967_vm4, %v1226_v30, %v1235_v2  ;;  %v31369_v30 = vshll.u32 %v23777_v63, 16 }
 0x113   :  { %v1244_v4 = vor.u32 %v1243_v46, %v1240_v19  ;;  %v1267_v19 = vrot.slane %v31366_v42, 2 }
 0x114   :  { %v1270_v46 = vrot.slane %v31369_v30, 3 }
 0x115   :  { %v1245_v32 = vsel %vm967_vm4, %v1235_v2, %v1244_v4  ;;  %v31367_v2 = vshrl.u32 %v23787_v8, 16 }
 0x116   :  { %v1271_v52 = vor.u32 %v1270_v46, %v1267_v19  ;;  %v31372_v46 = vshll.u32 %v23803_v21, 16 }
 0x117   :  { %v1276_v42 = vrot.slane %v31367_v2, 2 }
 0x119   :  { %20177 = vmatmul.mubr.msk.bf16.gmra.mrb[52].mxu0 %vm440_vm3, %v1227_v48  ;;  %v1261_v48 = vrot.slane %v31364_v36, 3  ;;  %v31370_v36 = vshrl.u32 %v23793_v13, 16 }
 0x11a   :  { %20180 = vmatprep.mubr.msk.bf16.mxu0 %vm440_vm3, %v1236_v58  ;;  %v1254_v58 = vsel %vm967_vm4, %v1244_v4, %v1253_v62  ;;  %v31373_v4 = vshll.u32 %v23793_v13, 16 }
 0x11b   :  { %v1262_v20 = vor.u32 %v1261_v48, %v1258_v11  ;;  %v1285_v11 = vrot.slane %v31370_v36, 2 }
 0x11c   :  { %v1288_v48 = vrot.slane %v31373_v4, 3 }
 0x11d   :  { %v1263_v40 = vsel %vm967_vm4, %v1253_v62, %v1262_v20  ;;  %v31371_v62 = vshrl.u32 %v23803_v21, 16 }
 0x11e   :  { %v1289_v2 = vor.u32 %v1288_v48, %v1285_v11  ;;  %v31376_v48 = vshll.u32 %v23819_v34, 16 }
 0x11f   :  { %v1294_v36 = vrot.slane %v31371_v62, 2 }
 0x121   :  { %20181 = vmatmul.mubr.msk.bf16.gmra.mrb[56].mxu0 %vm440_vm3, %v1245_v32  ;;  %v1279_v32 = vrot.slane %v31368_v7, 3  ;;  %v31374_v7 = vshrl.u32 %v23809_v27, 16 }
 0x122   :  { %20184 = vmatprep.mubr.msk.bf16.mxu0 %vm440_vm3, %v1254_v58  ;;  %v1272_v58 = vsel %vm967_vm4, %v1262_v20, %v1271_v52  ;;  %v31379_v20 = vshll.u32 %v23809_v27, 16 }
 0x123   :  { %v1280_v19 = vor.u32 %v1279_v32, %v1276_v42  ;;  %v1303_v42 = vrot.slane %v31374_v7, 2 }
 0x124   :  { %v1306_v32 = vrot.slane %v31379_v20, 3 }
 0x125   :  { %v1281_v30 = vsel %vm967_vm4, %v1271_v52, %v1280_v19  ;;  %v31375_v52 = vshrl.u32 %v23819_v34, 16 }
 0x126   :  { %v1307_v62 = vor.u32 %v1306_v32, %v1303_v42  ;;  %v31384_v42 = vshrl.u32 %v23842_v56, 16 }
 0x127   :  { %v1312_v7 = vrot.slane %v31375_v52, 2 }
 0x129   :  { %20185 = vmatmul.mubr.msk.bf16.gmra.mrb[60].mxu0 %vm440_vm3, %v1263_v40  ;;  %v1297_v40 = vrot.slane %v31372_v46, 3  ;;  %v31377_v46 = vshrl.u32 %v23825_v38, 16 }
 0x12a   :  { %20188 = vmatprep.mubr.msk.bf16.mxu0 %vm440_vm3, %v1272_v58  ;;  %v1290_v58 = vsel %vm967_vm4, %v1280_v19, %v1289_v2  ;;  %v31378_v19 = vshll.u32 %v23825_v38, 16 }
 0x12b   :  { %v1298_v11 = vor.u32 %v1297_v40, %v1294_v36  ;;  %v1321_v36 = vrot.slane %v31377_v46, 2  ;;  %v1330_v46 = vrot.slane %v31384_v42, 2 }
 0x12c   :  { %v1324_v40 = vrot.slane %v31378_v19, 3 }
 0x12d   :  { %v1299_v4 = vsel %vm967_vm4, %v1289_v2, %v1298_v11  ;;  %v31383_v2 = vshll.u32 %v23842_v56, 16 }
 0x12e   :  { %v1325_v52 = vor.u32 %v1324_v40, %v1321_v36  ;;  %v18303_v36 = vld [vmem:[%s31295_s3 + $0x6] sm:$0x3]  ;;  %v1355_v40 = vshrl.u32 %v23976_v47, 16 }
 0x12f   :  { %v1333_v19 = vrot.slane %v31383_v2, 3 }
 0x130   :  { %v1357_v2 = vrot.slane %v1355_v40, 2  ;;  %v31854_v40 = vshrl.u32 %v23507_v1, 16 }
 0x131   :  { %20189 = vmatmul.mubr.msk.bf16.gmra.mrb[64].mxu0 %vm440_vm3, %v1281_v30  ;;  %v1315_v30 = vrot.slane %v31376_v48, 3  ;;  %v31381_v48 = vshrl.u32 %v23847_v57, 16 }
 0x132   :  { %20192 = vmatprep.mubr.msk.bf16.mxu0 %vm440_vm3, %v1290_v58  ;;  %v1308_v58 = vsel %vm967_vm4, %v1298_v11, %v1307_v62  ;;  %v31382_v11 = vshll.u32 %v23847_v57, 16 }
 0x133   :  { %v1316_v32 = vor.u32 %v1315_v30, %v1312_v7  ;;  %v1339_v0 = vrot.slane %v31381_v48, 2  ;;  %v1334_v30 = vor.u32 %v1333_v19, %v1330_v46  ;;  %v3518_v48 = vand.u32 %v18303_v36, %v23514_v5 }
 0x134   :  { %v1342_v7 = vrot.slane %v31382_v11, 3 }
 0x135   :  { %v1326_v20 = vsel %vm967_vm4, %v1316_v32, %v1325_v52  ;;  %20302 = vmatprep.subr.bf16.mxu0 %v3518_v48  ;;  %v1335_v46 = vsel %vm967_vm4, %v1325_v52, %v1334_v30  ;;  %v1893_v52 = vshll.u32 %v23527_v10, 16 }
 0x136   :  { %v1343_v11 = vor.u32 %v1342_v7, %v1339_v0  ;;  %v1890_v0 = vshrl.u32 %v23527_v10, 16  ;;  %v31856_v10 = vshrl.u32 %v23524_v9, 16 }
 0x138   :  { %v1344_v42 = vsel %vm967_vm4, %v1334_v30, %v1343_v11  ;;  %v1892_v17 = vrot.slane %v1890_v0, 3  ;;  %v31855_v30 = vshll.u32 %v23507_v1, 16  ;;  %v31859_v1 = vshll.u32 %v23533_v12, 16 }
 0x139   :  { %20193 = vmatmul.mubr.msk.bf16.gmra.mrb[68].mxu0 %vm440_vm3, %v1299_v4  ;;  %v1317_v4 = vsel %vm967_vm4, %v1307_v62, %v1316_v32  ;;  %v31387_v62 = vshll.u32 %v23862_v26, 16  ;;  %v1358_v32 = vshll.u32 %v23976_v47, 16 }
 0x13a   :  { %20196 = vmatprep.mubr.msk.bf16.mxu0 %vm440_vm3, %v1308_v58  ;;  %v31385_v58 = vshrl.u32 %v23862_v26, 16 }
 0x13c   :  { %v1348_v19 = vrot.slane %v31385_v58, 2 }
 0x141   :  { %20197 = vmatmul.mubr.msk.bf16.gmra.mrb[72].mxu0 %vm440_vm3, %v1317_v4  ;;  %v1351_v4 = vrot.slane %v31387_v62, 3  ;;  %v1895_v62 = vrot.slane %v1893_v52, 4  ;;  %v1906_v52 = vrot.slane %v31859_v1, 4  ;;  %v31867_v1 = vshll.u32 %v23565_v25, 16 }
 0x142   :  { %20200 = vmatprep.mubr.msk.bf16.mxu0 %vm440_vm3, %v1326_v20  ;;  %v1360_v20 = vrot.slane %v1358_v32, 3  ;;  %v1897_v32 = vrot.slane %v31854_v40, 3  ;;  %v31861_v40 = vshll.u32 %v23541_v16, 16 }
 0x143   :  { %v1352_v47 = vor.u32 %v1351_v4, %v1348_v19  ;;  %v31857_v19 = vshll.u32 %v23524_v9, 16 }
 0x144   :  { %v1361_v36 = vor.u32 %v1360_v20, %v1357_v2 }
 0x145   :  { %v1353_v7 = vsel %vm967_vm4, %v1343_v11, %v1352_v47  ;;  %v1901_v11 = vrot.slane %v31856_v10, 3  ;;  %v1902_v4 = vrot.slane %v31857_v19, 4 }
 0x146   :  { %v1362_v58 = vsel %vm967_vm4, %v1352_v47, %v1361_v36  ;;  %v31858_v47 = vshrl.u32 %v23533_v12, 16 }
 0x148   :  { %v1905_v0 = vrot.slane %v31858_v47, 3 }
 0x149   :  { %20201 = vmatmul.mubr.msk.bf16.gmra.mrb[76].mxu0 %vm440_vm3, %v1335_v46  ;;  %v1898_v46 = vrot.slane %v31855_v30, 4 }
 0x14a   :  { %20204 = vmatprep.mubr.msk.bf16.mxu0 %vm440_vm3, %v1344_v42  ;;  %v1896_v42 = vor.u32 %v1895_v62, %v1892_v17  ;;  %v1903_v17 = vor.u32 %v1902_v4, %v1901_v11  ;;  %v31865_v4 = vshll.u32 %v23559_v23, 16 }
 0x14b   :  { %v1899_v2 = vor.u32 %v1898_v46, %v1897_v32  ;;  %v1910_v32 = vrot.slane %v31861_v40, 4  ;;  %v31862_v46 = vshrl.u32 %v23547_v18, 16 }
 0x14d   :  { %v1900_v20 = vsel %vm1888_vm5, %v1896_v42, %v1899_v2  ;;  %v1904_v62 = vsel %vm1888_vm5, %v1899_v2, %v1903_v17  ;;  %v1913_v12 = vrot.slane %v31862_v46, 3  ;;  %v31863_v42 = vshll.u32 %v23547_v18, 16 }
 0x14e   :  { %v31866_v18 = vshrl.u32 %v23565_v25, 16 }
 0x151   :  { %20205 = vmatmul.mubr.msk.bf16.gmra.mrb[80].mxu0 %vm440_vm3, %v1353_v7  ;;  %v31860_v7 = vshrl.u32 %v23541_v16, 16  ;;  %v31864_v16 = vshrl.u32 %v23559_v23, 16 }
 0x152   :  { %20208 = vmatprep.mubr.msk.bf16.mxu0 %vm440_vm3, %v1362_v58  ;;  %v1907_v58 = vor.u32 %v1906_v52, %v1905_v0  ;;  %v1921_v0 = vrot.slane %v31866_v18, 3  ;;  %v1922_v52 = vrot.slane %v31867_v1, 4  ;;  %v31876_v1 = vshrl.u32 %v23611_v43, 16 }
 0x153   :  { %v1909_v9 = vrot.slane %v31860_v7, 3  ;;  %v1917_v19 = vrot.slane %v31864_v16, 3  ;;  %v31869_v7 = vshll.u32 %v23575_v29, 16 }
 0x154   :  { %v1908_v30 = vsel %vm1888_vm5, %v1903_v17, %v1907_v58  ;;  %v1923_v17 = vor.u32 %v1922_v52, %v1921_v0  ;;  %v31877_v52 = vshll.u32 %v23611_v43, 16 }
 0x155   :  { %v1911_v10 = vor.u32 %v1910_v32, %v1909_v9  ;;  %v1926_v9 = vrot.slane %v31869_v7, 4  ;;  %v31870_v32 = vshrl.u32 %v23581_v31, 16 }
 0x157   :  { %v1912_v11 = vsel %vm1888_vm5, %v1907_v58, %v1911_v10  ;;  %v1929_v25 = vrot.slane %v31870_v32, 3  ;;  %v31880_v32 = vshrl.u32 %v23627_v49, 16 }
 0x159   :  { %20209 = vmatmul.mubr.msk.bf16.gmra.mrb[84].mxu0 %vm440_vm3, %v1361_v36  ;;  %v1914_v36 = vrot.slane %v31863_v42, 4  ;;  %v1949_v43 = vrot.slane %v31880_v32, 3 }
 0x15a   :  { %20214 = vmatprep.mubr.msk.bf16.mxu0 %vm440_vm3, %v1900_v20  ;;  %v1918_v20 = vrot.slane %v31865_v4, 4  ;;  %v31875_v4 = vshll.u32 %v23601_v39, 16 }
 0x15b   :  { %v1915_v2 = vor.u32 %v1914_v36, %v1913_v12 }
 0x15d   :  { %v1916_v47 = vsel %vm1888_vm5, %v1911_v10, %v1915_v2  ;;  %v31872_v10 = vshrl.u32 %v23595_v37, 16 }
 0x161   :  { %20215 = vmatmul.mubr.msk.bf16.vlgmr.msra.gmra.mrb[0].mxu0 %vm440_vm3, %v1904_v62  ;;  %v31868_v62 = vshrl.u32 %v23575_v29, 16  ;;  %v1933_v29 = vrot.slane %v31872_v10, 3  ;;  %v24321_v10 = vld [vmem:[%s31292_s0 + $0x14] sm:$0xf] }
 0x162   :  { %20218 = vmatprep.mubr.msk.bf16.mxu0 %vm440_vm3, %v1908_v30  ;;  %20303 = vmatpush3.bf16.msra.mxu0 %v3518_v48  ;;  %v1919_v48 = vor.u32 %v1918_v20, %v1917_v19  ;;  %v31871_v30 = vshll.u32 %v23581_v31, 16  ;;  %v31874_v19 = vshrl.u32 %v23601_v39, 16  ;;  %v1938_v20 = vrot.slane %v31875_v4, 4 }
 0x163   :  { %v1925_v23 = vrot.slane %v31868_v62, 3  ;;  %v31879_v62 = vshll.u32 %v23617_v45, 16 }
 0x164   :  { %v1920_v58 = vsel %vm1888_vm5, %v1915_v2, %v1919_v48  ;;  %v1924_v40 = vsel %vm1888_vm5, %v1919_v48, %v1923_v17  ;;  %v1930_v46 = vrot.slane %v31871_v30, 4  ;;  %v31873_v2 = vshll.u32 %v23595_v37, 16 }
 0x165   :  { %v1927_v12 = vor.u32 %v1926_v9, %v1925_v23  ;;  %v1937_v31 = vrot.slane %v31874_v19, 3  ;;  %v1941_v37 = vrot.slane %v31876_v1, 3  ;;  %v1942_v48 = vrot.slane %v31877_v52, 4 }
 0x166   :  { %v1931_v42 = vor.u32 %v1930_v46, %v1929_v25  ;;  %v1946_v23 = vrot.slane %v31879_v62, 4  ;;  %v31881_v25 = vshll.u32 %v23627_v49, 16  ;;  %v24326_v49 = vld [vmem:[%s31292_s0 + $0x18] sm:$0xf] }
 0x167   :  { %v1928_v36 = vsel %vm1888_vm5, %v1923_v17, %v1927_v12  ;;  %v1939_v18 = vor.u32 %v1938_v20, %v1937_v31  ;;  %v1943_v7 = vor.u32 %v1942_v48, %v1941_v37  ;;  %v31885_v31 = vshll.u32 %v23642_v54, 16 }
 0x168   :  { %v1932_v16 = vsel %vm1888_vm5, %v1927_v12, %v1931_v42  ;;  %v1950_v30 = vrot.slane %v31881_v25, 4  ;;  %v31882_v12 = vshrl.u32 %v23633_v51, 16  ;;  %v31892_v25 = vshrl.u32 %v23674_v3, 16 }
 0x169   :  { %20219 = vmatmul.mubr.msk.bf16.gmra.mrb[4].mxu0 %vm440_vm3, %v1912_v11  ;;  %v1934_v11 = vrot.slane %v31873_v2, 4  ;;  %v24331_v2 = vcombine.low %v24321_v10, %v24326_v49  ;;  %v1958_v4 = vrot.slane %v31885_v31, 4 }
 0x16a   :  { %20222 = vmatprep.mubr.msk.bf16.mxu0 %vm440_vm3, %v1916_v47 }
 0x16b   :  { %v1935_v47 = vor.u32 %v1934_v11, %v1933_v29  ;;  %v1951_v29 = vor.u32 %v1950_v30, %v1949_v43  ;;  %v31893_v30 = vshll.u32 %v23674_v3, 16 }
 0x16d   :  { %v1936_v0 = vsel %vm1888_vm5, %v1931_v42, %v1935_v47  ;;  %v1940_v17 = vsel %vm1888_vm5, %v1935_v47, %v1939_v18  ;;  %v31883_v42 = vshll.u32 %v23633_v51, 16  ;;  %v31886_v47 = vshrl.u32 %v23647_v55, 16 }
 0x171   :  { %20223 = vmatmul.mubr.msk.bf16.gmra.mrb[8].mxu0 %vm440_vm3, %v1920_v58  ;;  %v31878_v58 = vshrl.u32 %v23617_v45, 16  ;;  %v1953_v45 = vrot.slane %v31882_v12, 3 }
 0x172   :  { %20226 = vmatprep.mubr.msk.bf16.mxu0 %vm440_vm3, %v1924_v40  ;;  %v1944_v40 = vsel %vm1888_vm5, %v1939_v18, %v1943_v7  ;;  %v1961_v18 = vrot.slane %v31886_v47, 3  ;;  %v31899_v47 = vshll.u32 %v23695_v15, 16 }
 0x173   :  { %v1945_v39 = vrot.slane %v31878_v58, 3  ;;  %v31889_v58 = vshll.u32 %v23658_v60, 16 }
 0x175   :  { %v1947_v9 = vor.u32 %v1946_v23, %v1945_v39  ;;  %v1966_v39 = vrot.slane %v31889_v58, 4  ;;  %v31890_v23 = vshrl.u32 %v23663_v61, 16 }
 0x177   :  { %v1948_v46 = vsel %vm1888_vm5, %v1943_v7, %v1947_v9  ;;  %v1952_v11 = vsel %vm1888_vm5, %v1947_v9, %v1951_v29  ;;  %v31891_v7 = vshll.u32 %v23663_v61, 16 }
 0x179   :  { %20227 = vmatmul.mubr.msk.bf16.gmra.mrb[12].mxu0 %vm440_vm3, %v1928_v36  ;;  %v1954_v36 = vrot.slane %v31883_v42, 4  ;;  %v1970_v9 = vrot.slane %v31891_v7, 4  ;;  %v31895_v42 = vshll.u32 %v23679_v6, 16 }
 0x17a   :  { %20230 = vmatprep.mubr.msk.bf16.mxu0 %vm440_vm3, %v1932_v16  ;;  %v31884_v16 = vshrl.u32 %v23642_v54, 16 }
 0x17b   :  { %v1955_v51 = vor.u32 %v1954_v36, %v1953_v45  ;;  %v31894_v45 = vshrl.u32 %v23679_v6, 16  ;;  %v1978_v36 = vrot.slane %v31895_v42, 4 }
 0x17c   :  { %v1957_v19 = vrot.slane %v31884_v16, 3  ;;  %v31896_v16 = vshrl.u32 %v23690_v14, 16 }
 0x17d   :  { %v1956_v20 = vsel %vm1888_vm5, %v1951_v29, %v1955_v51  ;;  %v1977_v61 = vrot.slane %v31894_v45, 3  ;;  %v31907_v45 = vshll.u32 %v23729_v35, 16 }
 0x17e   :  { %v1959_v37 = vor.u32 %v1958_v4, %v1957_v19  ;;  %v1981_v3 = vrot.slane %v31896_v16, 3  ;;  %v31897_v19 = vshll.u32 %v23690_v14, 16 }
 0x180   :  { %v1960_v48 = vsel %vm1888_vm5, %v1955_v51, %v1959_v37  ;;  %v1979_v51 = vor.u32 %v1978_v36, %v1977_v61  ;;  %v1982_v31 = vrot.slane %v31897_v19, 4  ;;  %v2002_v61 = vrot.slane %v31907_v45, 4 }
 0x181   :  { %20231 = vmatmul.mubr.msk.bf16.gmra.mrb[16].mxu0 %vm440_vm3, %v1936_v0  ;;  %v31887_v0 = vshll.u32 %v23647_v55, 16  ;;  %v1969_v55 = vrot.slane %v31890_v23, 3  ;;  %v31910_v19 = vshrl.u32 %v23745_v44, 16  ;;  %v31922_v45 = vshrl.u32 %v23793_v13, 16 }
 0x182   :  { %20234 = vmatprep.mubr.msk.bf16.mxu0 %vm440_vm3, %v1940_v17  ;;  %v31888_v17 = vshrl.u32 %v23658_v60, 16  ;;  %v1973_v60 = vrot.slane %v31892_v25, 3 }
 0x183   :  { %v1962_v1 = vrot.slane %v31887_v0, 4  ;;  %v1971_v32 = vor.u32 %v1970_v9, %v1969_v55  ;;  %v31903_v55 = vshll.u32 %v23711_v24, 16 }
 0x184   :  { %v1965_v54 = vrot.slane %v31888_v17, 3 }
 0x185   :  { %v1963_v52 = vor.u32 %v1962_v1, %v1961_v18  ;;  %v1986_v18 = vrot.slane %v31899_v47, 4  ;;  %v1983_v1 = vor.u32 %v1982_v31, %v1981_v3  ;;  %v1994_v7 = vrot.slane %v31903_v55, 4 }
 0x186   :  { %v31911_v31 = vshll.u32 %v23745_v44, 16 }
 0x187   :  { %v1964_v62 = vsel %vm1888_vm5, %v1959_v37, %v1963_v52  ;;  %v1984_v14 = vsel %vm1888_vm5, %v1979_v51, %v1983_v1 }
 0x189   :  { %20235 = vmatmul.mubr.msk.bf16.gmra.mrb[20].mxu0 %vm440_vm3, %v1944_v40  ;;  %v1967_v40 = vor.u32 %v1966_v39, %v1965_v54  ;;  %v31901_v54 = vshll.u32 %v23706_v22, 16 }
 0x18a   :  { %20238 = vmatprep.mubr.msk.bf16.mxu0 %vm440_vm3, %v1948_v46  ;;  %v1974_v46 = vrot.slane %v31893_v30, 4 }
 0x18b   :  { %v1968_v43 = vsel %vm1888_vm5, %v1963_v52, %v1967_v40  ;;  %v1972_v12 = vsel %vm1888_vm5, %v1967_v40, %v1971_v32  ;;  %v1990_v58 = vrot.slane %v31901_v54, 4 }
 0x18c   :  { %v1975_v29 = vor.u32 %v1974_v46, %v1973_v60  ;;  %v31905_v60 = vshll.u32 %v23723_v33, 16 }
 0x18e   :  { %v1980_v4 = vsel %vm1888_vm5, %v1975_v29, %v1979_v51  ;;  %v1998_v30 = vrot.slane %v31905_v60, 4  ;;  %v31908_v51 = vshrl.u32 %v23739_v41, 16 }
 0x191   :  { %20239 = vmatmul.mubr.msk.bf16.gmra.mrb[24].mxu0 %vm440_vm3, %v1952_v11  ;;  %v1976_v11 = vsel %vm1888_vm5, %v1971_v32, %v1975_v29 }
 0x192   :  { %20242 = vmatprep.mubr.msk.bf16.mxu0 %vm440_vm3, %v1956_v20  ;;  %v31898_v20 = vshrl.u32 %v23695_v15, 16 }
 0x194   :  { %v1985_v6 = vrot.slane %v31898_v20, 3 }
 0x196   :  { %v1987_v37 = vor.u32 %v1986_v18, %v1985_v6  ;;  %v31912_v18 = vshrl.u32 %v23755_v50, 16 }
 0x198   :  { %v1988_v39 = vsel %vm1888_vm5, %v1983_v1, %v1987_v37  ;;  %v31913_v1 = vshll.u32 %v23755_v50, 16 }
 0x199   :  { %20243 = vmatmul.mubr.msk.bf16.gmra.mrb[28].mxu0 %vm440_vm3, %v1960_v48  ;;  %v31900_v48 = vshrl.u32 %v23706_v22, 16 }
 0x19a   :  { %20246 = vmatprep.mubr.msk.bf16.mxu0 %vm440_vm3, %v1964_v62  ;;  %v31902_v62 = vshrl.u32 %v23711_v24, 16  ;;  %v31906_v24 = vshrl.u32 %v23729_v35, 16  ;;  %v2009_v35 = vrot.slane %v31910_v19, 3  ;;  %v31926_v19 = vshrl.u32 %v23809_v27, 16 }
 0x19b   :  { %v1989_v17 = vrot.slane %v31900_v48, 3  ;;  %v31914_v48 = vshrl.u32 %v23761_v53, 16 }
 0x19c   :  { %v1993_v23 = vrot.slane %v31902_v62, 3  ;;  %v31916_v62 = vshrl.u32 %v23771_v59, 16 }
 0x19d   :  { %v1991_v40 = vor.u32 %v1990_v58, %v1989_v17  ;;  %v2017_v44 = vrot.slane %v31914_v48, 3  ;;  %v31915_v17 = vshll.u32 %v23761_v53, 16 }
 0x19e   :  { %v1995_v32 = vor.u32 %v1994_v7, %v1993_v23  ;;  %v2021_v50 = vrot.slane %v31916_v62, 3  ;;  %v31917_v23 = vshll.u32 %v23771_v59, 16 }
 0x19f   :  { %v1992_v22 = vsel %vm1888_vm5, %v1987_v37, %v1991_v40  ;;  %v2014_v37 = vrot.slane %v31913_v1, 4  ;;  %v2018_v54 = vrot.slane %v31915_v17, 4  ;;  %v1882_v17 = vld [vmem:[%s31292_s0 + $0x15c] sm:$0x3] }
 0x1a0   :  { %v24380_v0 = vpop.f32.mrb[0].mxu1  ;;  %v1996_v46 = vsel %vm1888_vm5, %v1991_v40, %v1995_v32  ;;  %v2022_v55 = vrot.slane %v31917_v23, 4  ;;  %v31918_v40 = vshrl.u32 %v23777_v63, 16  ;;  %v18258_v62 = vcombine.low %v23965_v28, %v1882_v17 }
 0x1a1   :  { %20247 = vmatmul.mubr.msk.bf16.gmra.mrb[32].mxu0 %vm440_vm3, %v1968_v43  ;;  %v24383_v52 = vpop.f32.mrb[1].mxu1  ;;  %v31904_v43 = vshrl.u32 %v23723_v33, 16  ;;  %v2005_v33 = vrot.slane %v31908_v51, 3  ;;  %v31934_v23 = vshrl.u32 %v23847_v57, 16 }
 0x1a2   :  { %20250 = vmatprep.mubr.msk.bf16.mxu0 %vm440_vm3, %v1972_v12  ;;  %v20121_v15 = vpop.f32.mrb[2].mxu1  ;;  %v2001_v12 = vrot.slane %v31906_v24, 3  ;;  %v2025_v53 = vrot.slane %v31918_v40, 3  ;;  %v2066_v28 = vshrl.u32 %v18258_v62, 16 }
 0x1a3   :  { %v24395_v9 = vpop.f32.mrb[3].mxu1  ;;  %v1997_v25 = vrot.slane %v31904_v43, 3  ;;  %v2019_v15 = vor.u32 %v2018_v54, %v2017_v44  ;;  %v2023_v43 = vor.u32 %v2022_v55, %v2021_v50  ;;  %v2057_v55 = vrot.slane %v31934_v23, 3 }
 0x1a4   :  { %v2003_v36 = vor.u32 %v2002_v61, %v2001_v12  ;;  %v31923_v61 = vshll.u32 %v23793_v13, 16  ;;  %v2041_v13 = vrot.slane %v31926_v19, 3 }
 0x1a5   :  { %v1999_v42 = vor.u32 %v1998_v30, %v1997_v25  ;;  %v2024_v60 = vsel %vm1888_vm5, %v2019_v15, %v2023_v43  ;;  %v31920_v30 = vshrl.u32 %v23787_v8, 16 }
 0x1a7   :  { %v2000_v29 = vsel %vm1888_vm5, %v1995_v32, %v1999_v42  ;;  %v2004_v3 = vsel %vm1888_vm5, %v1999_v42, %v2003_v36  ;;  %v31919_v32 = vshll.u32 %v23777_v63, 16  ;;  %v2029_v59 = vrot.slane %v31920_v30, 3 }
 0x1a8   :  { %v2033_v63 = vrot.slane %v31922_v45, 3  ;;  %v2034_v42 = vrot.slane %v31923_v61, 4  ;;  %v2068_v45 = vrot.slane %v2066_v28, 3  ;;  %v24593_v28 = vld [vmem:[%s31292_s0 + $0x40] sm:$0xf] }
 0x1a9   :  { %20251 = vmatmul.mubr.msk.bf16.gmra.mrb[36].mxu0 %vm440_vm3, %v1976_v11  ;;  %v31909_v11 = vshll.u32 %v23739_v41, 16  ;;  %v2013_v41 = vrot.slane %v31912_v18, 3  ;;  %v31929_v18 = vshll.u32 %v23819_v34, 16 }
 0x1aa   :  { %20254 = vmatprep.mubr.msk.bf16.mxu0 %vm440_vm3, %v1980_v4  ;;  %v2010_v4 = vrot.slane %v31911_v31, 4 }
 0x1ab   :  { %v2006_v16 = vrot.slane %v31909_v11, 4  ;;  %v2015_v58 = vor.u32 %v2014_v37, %v2013_v41  ;;  %v31925_v11 = vshll.u32 %v23803_v21, 16  ;;  %v2046_v41 = vrot.slane %v31929_v18, 4 }
 0x1ac   :  { %v2011_v6 = vor.u32 %v2010_v4, %v2009_v35  ;;  %v31927_v35 = vshll.u32 %v23809_v27, 16  ;;  %v31930_v37 = vshrl.u32 %v23825_v38, 16 }
 0x1ad   :  { %v2007_v20 = vor.u32 %v2006_v16, %v2005_v33  ;;  %v2020_v7 = vsel %vm1888_vm5, %v2015_v58, %v2019_v15  ;;  %v31924_v33 = vshrl.u32 %v23803_v21, 16  ;;  %v2038_v16 = vrot.slane %v31925_v11, 4 }
 0x1ae   :  { %v2042_v31 = vrot.slane %v31927_v35, 4  ;;  %v2049_v27 = vrot.slane %v31930_v37, 3  ;;  %v31933_v15 = vshll.u32 %v23842_v56, 16 }
 0x1af   :  { %v2008_v47 = vsel %vm1888_vm5, %v2003_v36, %v2007_v20 }
 0x1b1   :  { %20255 = vmatmul.mubr.msk.bf16.gmra.mrb[40].mxu0 %vm440_vm3, %v1984_v14  ;;  %v2012_v14 = vsel %vm1888_vm5, %v2007_v20, %v2011_v6  ;;  %v2043_v20 = vor.u32 %v2042_v31, %v2041_v13 }
 0x1b2   :  { %20258 = vmatprep.mubr.msk.bf16.mxu0 %vm440_vm3, %v1988_v39  ;;  %v2016_v39 = vsel %vm1888_vm5, %v2011_v6, %v2015_v58 }
 0x1b9   :  { %20259 = vmatmul.mubr.msk.bf16.gmra.mrb[44].mxu0 %vm440_vm3, %v1992_v22  ;;  %v2026_v22 = vrot.slane %v31919_v32, 4  ;;  %v2069_v32 = vshll.u32 %v18258_v62, 16 }
 0x1ba   :  { %20262 = vmatprep.mubr.msk.bf16.mxu0 %vm440_vm3, %v1996_v46  ;;  %v31921_v46 = vshll.u32 %v23787_v8, 16  ;;  %v2037_v8 = vrot.slane %v31924_v33, 3 }
 0x1bb   :  { %v2027_v25 = vor.u32 %v2026_v22, %v2025_v53 }
 0x1bc   :  { %v2030_v24 = vrot.slane %v31921_v46, 4  ;;  %v2039_v4 = vor.u32 %v2038_v16, %v2037_v8 }
 0x1bd   :  { %v2028_v12 = vsel %vm1888_vm5, %v2023_v43, %v2027_v25 }
 0x1be   :  { %v2031_v36 = vor.u32 %v2030_v24, %v2029_v59  ;;  %v2044_v1 = vsel %vm1888_vm5, %v2039_v4, %v2043_v20  ;;  %v31936_v59 = vshrl.u32 %v23862_v26, 16  ;;  %v31937_v24 = vshll.u32 %v23862_v26, 16  ;;  %v24533_v26 = vld [vmem:[%s31292_s0 + $0x1c] sm:$0xf] }
 0x1bf   :  { %v18306_v35 = vcombine.low %v24326_v49, %v24533_v26  ;;  %v24556_v49 = vld [vmem:[%s31292_s0 + $0x28] sm:$0xf] }
 0x1c0   :  { %v2032_v51 = vsel %vm1888_vm5, %v2027_v25, %v2031_v36  ;;  %v24511_v25 = vld [vmem:[%s31292_s0 + $0xc] sm:$0xf]  ;;  %v2061_v46 = vrot.slane %v31936_v59, 3 }
 0x1c1   :  { %20263 = vmatmul.mubr.msk.bf16.gmra.mrb[48].mxu0 %vm440_vm3, %v2000_v29  ;;  %v2035_v29 = vor.u32 %v2034_v42, %v2033_v63  ;;  %v2071_v63 = vrot.slane %v2069_v32, 4  ;;  %v3011_v18 = vshll.u32 %v18306_v35, 16  ;;  %v24598_v32 = vld [vmem:[%s31292_s0 + $0x44] sm:$0xf] }
 0x1c2   :  { %20266 = vmatprep.mubr.msk.bf16.mxu0 %vm440_vm3, %v2004_v3 }
 0x1c3   :  { %v2036_v3 = vsel %vm1888_vm5, %v2031_v36, %v2035_v29  ;;  %v2040_v6 = vsel %vm1888_vm5, %v2035_v29, %v2039_v4 }
 0x1c9   :  { %20267 = vmatmul.mubr.msk.bf16.gmra.mrb[52].mxu0 %vm440_vm3, %v2008_v47  ;;  %v31928_v47 = vshrl.u32 %v23819_v34, 16  ;;  %v31932_v34 = vshrl.u32 %v23842_v56, 16  ;;  %v18392_v56 = vld [vmem:[%s31295_s3 + $0x8] sm:$0x3] }
 0x1ca   :  { %20270 = vmatprep.mubr.msk.bf16.mxu0 %vm440_vm3, %v2012_v14  ;;  %v31931_v14 = vshll.u32 %v23825_v38, 16  ;;  %v24503_v22 = vand.u32 %v18392_v56, %v23514_v5  ;;  %v24588_v56 = vld [vmem:[%s31292_s0 + $0x3c] sm:$0xf] }
 0x1cb   :  { %v2045_v21 = vrot.slane %v31928_v47, 3  ;;  %v2053_v58 = vrot.slane %v31932_v34, 3 }
 0x1cc   :  { %v2050_v48 = vrot.slane %v31931_v14, 4  ;;  %20392 = vmatprep.subr.bf16.mxu0 %v24503_v22  ;;  %v24561_v14 = vld [vmem:[%s31292_s0 + $0x2c] sm:$0xf] }
 0x1cd   :  { %v2047_v44 = vor.u32 %v2046_v41, %v2045_v21  ;;  %v3008_v21 = vshrl.u32 %v18306_v35, 16  ;;  %v18308_v34 = vcombine.low %v24556_v49, %v24561_v14 }
 0x1ce   :  { %v2051_v54 = vor.u32 %v2050_v48, %v2049_v27  ;;  %v24566_v48 = vld [vmem:[%s31292_s0 + $0x30] sm:$0xf] }
 0x1cf   :  { %v2048_v38 = vsel %vm1888_vm5, %v2043_v20, %v2047_v44  ;;  %v3010_v17 = vrot.slane %v3008_v21, 3  ;;  %v3029_v23 = vshll.u32 %v18308_v34, 16 }
 0x1d0   :  { %v2052_v50 = vsel %vm1888_vm5, %v2047_v44, %v2051_v54  ;;  %v24571_v44 = vld [vmem:[%s31292_s0 + $0x34] sm:$0xf] }
 0x1d1   :  { %20271 = vmatmul.mubr.msk.bf16.gmra.mrb[56].mxu0 %vm440_vm3, %v2016_v39  ;;  %v2054_v39 = vrot.slane %v31933_v15, 4  ;;  %v18309_v62 = vcombine.low %v24566_v48, %v24571_v44 }
 0x1d2   :  { %20274 = vmatprep.mubr.msk.bf16.mxu0 %vm440_vm3, %v2020_v7  ;;  %v31935_v7 = vshll.u32 %v23847_v57, 16  ;;  %v2680_v57 = vld [vmem:[%s31292_s0 + $0x8] sm:$0x8] }
 0x1d3   :  { %v2055_v53 = vor.u32 %v2054_v39, %v2053_v58  ;;  %v18304_v61 = vcombine.low %v2680_v57, %v24511_v25 }
 0x1d4   :  { %v2058_v40 = vrot.slane %v31935_v7, 4  ;;  %v3035_v7 = vshrl.u32 %v18309_v62, 16 }
 0x1d5   :  { %v2056_v30 = vsel %vm1888_vm5, %v2051_v54, %v2055_v53  ;;  %v2991_v33 = vshrl.u32 %v18304_v61, 16  ;;  %v2994_v8 = vshll.u32 %v18304_v61, 16  ;;  %v3013_v54 = vrot.slane %v3011_v18, 4 }
 0x1d6   :  { %v2059_v43 = vor.u32 %v2058_v40, %v2057_v55  ;;  %v3038_v40 = vshll.u32 %v18309_v62, 16 }
 0x1d7   :  { %v2993_v31 = vrot.slane %v2991_v33, 3  ;;  %v2996_v4 = vrot.slane %v2994_v8, 4  ;;  %v24612_v33 = vld [vmem:[%s31292_s0 + $0x48] sm:$0xf]  ;;  %v24617_v8 = vld [vmem:[%s31292_s0 + $0x4c] sm:$0xf] }
 0x1d8   :  { %v2060_v42 = vsel %vm1888_vm5, %v2055_v53, %v2059_v43  ;;  %v24583_v53 = vld [vmem:[%s31292_s0 + $0x38] sm:$0xf]  ;;  %v18312_v35 = vcombine.low %v24612_v33, %v24617_v8 }
 0x1d9   :  { %20275 = vmatmul.mubr.msk.bf16.gmra.mrb[60].mxu0 %vm440_vm3, %v2024_v60  ;;  %v24516_v60 = vld [vmem:[%s31292_s0 + $0x10] sm:$0xf]  ;;  %v2997_v41 = vor.u32 %v2996_v4, %v2993_v31  ;;  %v18310_v59 = vcombine.low %v24583_v53, %v24588_v56 }
 0x1da   :  { %20278 = vmatprep.mubr.msk.bf16.mxu0 %vm440_vm3, %v2028_v12  ;;  %v2062_v12 = vrot.slane %v31937_v24, 4  ;;  %v18305_v36 = vcombine.low %v24516_v60, %v24321_v10  ;;  %v24543_v10 = vld [vmem:[%s31292_s0 + $0x24] sm:$0xf]  ;;  %v3037_v24 = vrot.slane %v3035_v7, 3  ;;  %v3062_v21 = vshrl.u32 %v18312_v35, 16 }
 0x1db   :  { %v3044_v61 = vshrl.u32 %v18310_v59, 16  ;;  %v3065_v18 = vshll.u32 %v18312_v35, 16 }
 0x1dc   :  { %v2063_v29 = vor.u32 %v2062_v12, %v2061_v46  ;;  %v2999_v11 = vshrl.u32 %v18305_v36, 16  ;;  %v3002_v16 = vshll.u32 %v18305_v36, 16  ;;  %v3040_v12 = vrot.slane %v3038_v40, 4 }
 0x1dd   :  { %v3067_v62 = vrot.slane %v3065_v18, 4 }
 0x1de   :  { %v2064_v19 = vsel %vm1888_vm5, %v2059_v43, %v2063_v29  ;;  %v3001_v20 = vrot.slane %v2999_v11, 3  ;;  %v3041_v36 = vor.u32 %v3040_v12, %v3037_v24  ;;  %v24622_v11 = vld [vmem:[%s31292_s0 + $0x50] sm:$0xf]  ;;  %v24673_v24 = vld [vmem:[%s31292_s0 + $0x6c] sm:$0xf] }
 0x1df   :  { %v24678_v12 = vld [vmem:[%s31292_s0 + $0x70] sm:$0xf] }
 0x1e1   :  { %20279 = vmatmul.mubr.msk.bf16.gmra.mrb[64].mxu0 %vm440_vm3, %v2032_v51  ;;  %v2072_v51 = vor.u32 %v2071_v63, %v2068_v45  ;;  %v18311_v45 = vcombine.low %v24593_v28, %v24598_v32 }
 0x1e2   :  { %20282 = vmatprep.mubr.msk.bf16.mxu0 %vm440_vm3, %v2036_v3  ;;  %v24538_v3 = vld [vmem:[%s31292_s0 + $0x20] sm:$0xf] }
 0x1e3   :  { %v2073_v13 = vsel %vm1888_vm5, %v2063_v29, %v2072_v51  ;;  %v18307_v47 = vcombine.low %v24538_v3, %v24543_v10  ;;  %v3053_v29 = vshrl.u32 %v18311_v45, 16 }
 0x1e5   :  { %v3017_v37 = vshrl.u32 %v18307_v47, 16  ;;  %v3020_v27 = vshll.u32 %v18307_v47, 16  ;;  %v3055_v4 = vrot.slane %v3053_v29, 3 }
 0x1e7   :  { %v3019_v15 = vrot.slane %v3017_v37, 3  ;;  %v3022_v39 = vrot.slane %v3020_v27, 4 }
 0x1e9   :  { %20283 = vmatmul.mubr.msk.bf16.gmra.mrb[68].mxu0 %vm440_vm3, %v2040_v6  ;;  %v3004_v6 = vrot.slane %v3002_v16, 4  ;;  %v3023_v55 = vor.u32 %v3022_v39, %v3019_v15  ;;  %v3064_v39 = vrot.slane %v3062_v21, 3  ;;  %v24701_v21 = vld [vmem:[%s31292_s0 + $0x7c] sm:$0xf] }
 0x1ea   :  { %20286 = vmatprep.mubr.msk.bf16.mxu0 %vm440_vm3, %v2044_v1 }
 0x1eb   :  { %v3005_v1 = vor.u32 %v3004_v6, %v3001_v20 }
 0x1ed   :  { %v3006_v58 = vsel %vm1888_vm5, %v2997_v41, %v3005_v1  ;;  %v24640_v41 = vld [vmem:[%s31292_s0 + $0x58] sm:$0xf] }
 0x1f1   :  { %20287 = vmatmul.mubr.msk.bf16.gmra.mrb[72].mxu0 %vm440_vm3, %v2048_v38  ;;  %v3014_v38 = vor.u32 %v3013_v54, %v3010_v17  ;;  %v24650_v54 = vld [vmem:[%s31292_s0 + $0x60] sm:$0xf] }
 0x1f2   :  { %20290 = vmatprep.mubr.msk.bf16.mxu0 %vm440_vm3, %v2052_v50  ;;  %v3026_v50 = vshrl.u32 %v18308_v34, 16  ;;  %v24655_v34 = vld [vmem:[%s31292_s0 + $0x64] sm:$0xf] }
 0x1f3   :  { %v3015_v43 = vsel %vm1888_vm5, %v3005_v1, %v3014_v38  ;;  %v3024_v46 = vsel %vm1888_vm5, %v3014_v38, %v3023_v55  ;;  %v24645_v1 = vld [vmem:[%s31292_s0 + $0x5c] sm:$0xf] }
 0x1f4   :  { %v3028_v57 = vrot.slane %v3026_v50, 3 }
 0x1f9   :  { %20291 = vmatmul.mubr.msk.bf16.gmra.mrb[76].mxu0 %vm440_vm3, %v2056_v30  ;;  %v3031_v30 = vrot.slane %v3029_v23, 4 }
 0x1fa   :  { %20294 = vmatprep.mubr.msk.bf16.mxu0 %vm440_vm3, %v2060_v42  ;;  %v3047_v42 = vshll.u32 %v18310_v59, 16 }
 0x1fb   :  { %v3032_v63 = vor.u32 %v3031_v30, %v3028_v57 }
 0x1fd   :  { %v3033_v16 = vsel %vm1888_vm5, %v3023_v55, %v3032_v63  ;;  %v3042_v31 = vsel %vm1888_vm5, %v3032_v63, %v3041_v36  ;;  %v18315_v55 = vcombine.low %v24650_v54, %v24655_v34 }
 0x1ff   :  { %v3089_v30 = vshrl.u32 %v18315_v55, 16  ;;  %v3092_v59 = vshll.u32 %v18315_v55, 16 }
 0x201   :  { %20295 = vmatmul.mubr.msk.bf16.gmra.mrb[80].mxu0 %vm440_vm3, %v2064_v19  ;;  %v3046_v19 = vrot.slane %v3044_v61, 3 }
 0x202   :  { %20298 = vmatprep.mubr.msk.bf16.mxu0 %vm440_vm3, %v2073_v13  ;;  %v3049_v13 = vrot.slane %v3047_v42, 4 }
 0x204   :  { %v3050_v47 = vor.u32 %v3049_v13, %v3046_v19 }
 0x206   :  { %v3051_v15 = vsel %vm1888_vm5, %v3041_v36, %v3050_v47 }
 0x209   :  { %20299 = vmatmul.mubr.msk.bf16.gmra.mrb[88].mxu0 %vm440_vm3, %v2072_v51  ;;  %v3056_v51 = vshll.u32 %v18311_v45, 16  ;;  %v24683_v45 = vld [vmem:[%s31292_s0 + $0x74] sm:$0xf] }
 0x20a   :  { %20304 = vmatprep.mubr.msk.bf16.mxu0 %vm440_vm3, %v3006_v58  ;;  %v18314_v58 = vcombine.low %v24640_v41, %v24645_v1  ;;  %v18317_v19 = vcombine.low %v24678_v12, %v24683_v45 }
 0x20b   :  { %v3058_v20 = vrot.slane %v3056_v51, 4  ;;  %v3091_v51 = vrot.slane %v3089_v30, 3 }
 0x20c   :  { %v3080_v7 = vshrl.u32 %v18314_v58, 16  ;;  %v3083_v40 = vshll.u32 %v18314_v58, 16 }
 0x20d   :  { %v3059_v37 = vor.u32 %v3058_v20, %v3055_v4  ;;  %v3107_v20 = vshrl.u32 %v18317_v19, 16 }
 0x20e   :  { %v3082_v63 = vrot.slane %v3080_v7, 3  ;;  %v3085_v61 = vrot.slane %v3083_v40, 4 }
 0x20f   :  { %v3060_v38 = vsel %vm1888_vm5, %v3050_v47, %v3059_v37  ;;  %v24696_v47 = vld [vmem:[%s31292_s0 + $0x78] sm:$0xf]  ;;  %v3109_v40 = vrot.slane %v3107_v20, 3 }
 0x210   :  { %v3086_v13 = vor.u32 %v3085_v61, %v3082_v63 }
 0x211   :  { %20305 = vmatmul.mubr.msk.bf16.vlgmr.msra.gmra.mrb[0].mxu0 %vm440_vm3, %v3015_v43  ;;  %v3068_v43 = vor.u32 %v3067_v62, %v3064_v39 }
 0x212   :  { %20308 = vmatprep.mubr.msk.bf16.mxu0 %vm440_vm3, %v3024_v46  ;;  %20393 = vmatpush3.bf16.msra.mxu0 %v24503_v22  ;;  %v24627_v22 = vld [vmem:[%s31292_s0 + $0x54] sm:$0xf]  ;;  %v24668_v46 = vld [vmem:[%s31292_s0 + $0x68] sm:$0xf] }
 0x213   :  { %v18313_v6 = vcombine.low %v24622_v11, %v24627_v22  ;;  %v3069_v42 = vsel %vm1888_vm5, %v3059_v37, %v3068_v43  ;;  %v18316_v36 = vcombine.low %v24668_v46, %v24673_v24  ;;  %v24706_v37 = vld [vmem:[%s31292_s0 + $0x80] sm:$0xf] }
 0x215   :  { %v3071_v27 = vshrl.u32 %v18313_v6, 16  ;;  %v3074_v17 = vshll.u32 %v18313_v6, 16  ;;  %v3098_v35 = vshrl.u32 %v18316_v36, 16  ;;  %v3110_v6 = vshll.u32 %v18317_v19, 16 }
 0x217   :  { %v3073_v50 = vrot.slane %v3071_v27, 3  ;;  %v3076_v23 = vrot.slane %v3074_v17, 4  ;;  %v24711_v27 = vld [vmem:[%s31292_s0 + $0x84] sm:$0xf] }
 0x219   :  { %20309 = vmatmul.mubr.msk.bf16.gmra.mrb[4].mxu0 %vm440_vm3, %v3033_v16  ;;  %v3077_v57 = vor.u32 %v3076_v23, %v3073_v50  ;;  %v3094_v16 = vrot.slane %v3092_v59, 4  ;;  %v18318_v23 = vcombine.low %v24696_v47, %v24701_v21 }
 0x21a   :  { %20312 = vmatprep.mubr.msk.bf16.mxu0 %vm440_vm3, %v3042_v31  ;;  %v3101_v31 = vshll.u32 %v18316_v36, 16  ;;  %v24733_v36 = vld [vmem:[%s31292_s0 + $0x88] sm:$0xf] }
 0x21b   :  { %v3078_v29 = vsel %vm1888_vm5, %v3068_v43, %v3077_v57  ;;  %v3095_v4 = vor.u32 %v3094_v16, %v3091_v51  ;;  %v3112_v43 = vrot.slane %v3110_v6, 4  ;;  %v3119_v59 = vshll.u32 %v18318_v23, 16  ;;  %v24748_v51 = vld [vmem:[%s31292_s0 + $0x94] sm:$0xf] }
 0x21c   :  { %v3103_v50 = vrot.slane %v3101_v31, 4 }
 0x21d   :  { %v3096_v7 = vsel %vm1888_vm5, %v3086_v13, %v3095_v4  ;;  %v3113_v63 = vor.u32 %v3112_v43, %v3109_v40  ;;  %v24776_v40 = vld [vmem:[%s31292_s0 + $0xa4] sm:$0xf] }
 0x21e   :  { %31938 = vst [vmem:[#allocation8_spill] sm:$0xff] %v24776_v40 }
 0x221   :  { %20313 = vmatmul.mubr.msk.bf16.gmra.mrb[8].mxu0 %vm440_vm3, %v3051_v15  ;;  %v3087_v15 = vsel %vm1888_vm5, %v3077_v57, %v3086_v13  ;;  %v3116_v57 = vshrl.u32 %v18318_v23, 16  ;;  %v3121_v13 = vrot.slane %v3119_v59, 4  ;;  %v24761_v23 = vld [vmem:[%s31292_s0 + $0x98] sm:$0xf] }
 0x222   :  { %20316 = vmatprep.mubr.msk.bf16.mxu0 %vm440_vm3, %v3060_v38  ;;  %v3100_v38 = vrot.slane %v3098_v35, 3 }
 0x223   :  { %v3118_v19 = vrot.slane %v3116_v57, 3 }
 0x229   :  { %20317 = vmatmul.mubr.msk.bf16.gmra.mrb[12].mxu0 %vm440_vm3, %v3069_v42 }
 0x22a   :  { %20320 = vmatprep.mubr.msk.bf16.mxu0 %vm440_vm3, %v3078_v29  ;;  %v24743_v29 = vld [vmem:[%s31292_s0 + $0x90] sm:$0xf] }
 0x22c   :  { %v20210_v18 = vpop.f32.mrb[84].mxu0 }
 0x22d   :  { %v24714_v17 = vadd.f32 %v20210_v18, %v24380_v0  ;;  %v1868_v58 = vpop.f32.mrb[85].mxu0  ;;  %v18319_v0 = vcombine.low %v24706_v37, %v24711_v27  ;;  %v18321_v18 = vcombine.low %v24743_v29, %v24748_v51 }
 0x22e   :  { %v24718_v39 = vadd.f32 %v1868_v58, %v24383_v52  ;;  %v20211_v62 = vpop.f32.mrb[86].mxu0  ;;  %v3104_v52 = vor.u32 %v3103_v50, %v3100_v38  ;;  %v3122_v58 = vor.u32 %v3121_v13, %v3118_v19 }
 0x22f   :  { %v1871_v55 = vpop.f32.mrb[87].mxu0  ;;  %v3125_v61 = vshrl.u32 %v18319_v0, 16  ;;  %v3128_v42 = vshll.u32 %v18319_v0, 16  ;;  %v3143_v38 = vshrl.u32 %v18321_v18, 16  ;;  %v3146_v50 = vshll.u32 %v18321_v18, 16 }
 0x230   :  { %v24726_v30 = vadd.f32 %v1871_v55, %v24395_v9  ;;  %v24738_v9 = vld [vmem:[%s31292_s0 + $0x8c] sm:$0xf]  ;;  %v3105_v16 = vsel %vm1888_vm5, %v3095_v4, %v3104_v52  ;;  %v3114_v31 = vsel %vm1888_vm5, %v3104_v52, %v3113_v63  ;;  %v24766_v55 = vld [vmem:[%s31292_s0 + $0x9c] sm:$0xf]  ;;  %v3123_v43 = vsel %vm1888_vm5, %v3113_v63, %v3122_v58 }
 0x231   :  { %20321 = vmatmul.mubr.msk.bf16.gmra.mrb[16].mxu0 %vm440_vm3, %v3087_v15  ;;  %v18320_v35 = vcombine.low %v24733_v36, %v24738_v9  ;;  %v3127_v20 = vrot.slane %v3125_v61, 3  ;;  %v3130_v6 = vrot.slane %v3128_v42, 4  ;;  %v18322_v57 = vcombine.low %v24761_v23, %v24766_v55  ;;  %v24794_v18 = vld [vmem:[%s31292_s0 + $0xac] sm:$0xf] }
 0x232   :  { %20324 = vmatprep.mubr.msk.bf16.mxu0 %vm440_vm3, %v3096_v7  ;;  %v24771_v7 = vld [vmem:[%s31292_s0 + $0xa0] sm:$0xf]  ;;  %v3145_v61 = vrot.slane %v3143_v38, 3  ;;  %v3148_v42 = vrot.slane %v3146_v50, 4  ;;  %31939 = vst [vmem:[#allocation9_spill] sm:$0xff] %v24794_v18 }
 0x233   :  { %v3134_v15 = vshrl.u32 %v18320_v35, 16  ;;  %v3137_v62 = vshll.u32 %v18320_v35, 16  ;;  %v3131_v4 = vor.u32 %v3130_v6, %v3127_v20  ;;  %v3152_v13 = vshrl.u32 %v18322_v57, 16  ;;  %v24789_v6 = vld [vmem:[%s31292_s0 + $0xa8] sm:$0xf] }
 0x234   :  { %v3155_v35 = vshll.u32 %v18322_v57, 16  ;;  %v3149_v63 = vor.u32 %v3148_v42, %v3145_v61 }
 0x235   :  { %v3136_v0 = vrot.slane %v3134_v15, 3  ;;  %v3139_v52 = vrot.slane %v3137_v62, 4  ;;  %v3132_v59 = vsel %vm1888_vm5, %v3122_v58, %v3131_v4  ;;  %v24799_v58 = vld [vmem:[%s31292_s0 + $0xb0] sm:$0xf]  ;;  %v24804_v15 = vld [vmem:[%s31292_s0 + $0xb4] sm:$0xf] }
 0x236   :  { %31940 = vst [vmem:[#allocation10_spill] sm:$0xff] %v24799_v58  ;;  %31941 = vst [vmem:[#allocation11_spill] sm:$0xff] %v24804_v15  ;;  %v3154_v38 = vrot.slane %v3152_v13, 3  ;;  %v3157_v50 = vrot.slane %v3155_v35, 4 }
 0x237   :  { %v3140_v19 = vor.u32 %v3139_v52, %v3136_v0 }
 0x238   :  { %v3158_v61 = vor.u32 %v3157_v50, %v3154_v38 }
 0x239   :  { %20325 = vmatmul.mubr.msk.bf16.gmra.mrb[20].mxu0 %vm440_vm3, %v3105_v16  ;;  %v18323_v16 = vcombine.low %v24771_v7, %v24776_v40  ;;  %v3141_v62 = vsel %vm1888_vm5, %v3131_v4, %v3140_v19  ;;  %v3150_v0 = vsel %vm1888_vm5, %v3140_v19, %v3149_v63  ;;  %v24822_v19 = vld [vmem:[%s31292_s0 + $0xbc] sm:$0xf] }
 0x23a   :  { %20328 = vmatprep.mubr.msk.bf16.mxu0 %vm440_vm3, %v3114_v31  ;;  %31943 = vst [vmem:[#allocation13_spill] sm:$0xff] %v24822_v19 }
 0x23b   :  { %v3161_v31 = vshrl.u32 %v18323_v16, 16  ;;  %v3164_v20 = vshll.u32 %v18323_v16, 16 }
 0x23d   :  { %v3163_v52 = vrot.slane %v3161_v31, 3  ;;  %v3166_v57 = vrot.slane %v3164_v20, 4  ;;  %v24827_v31 = vld [vmem:[%s31292_s0 + $0xc0] sm:$0xf]  ;;  %v24832_v20 = vld [vmem:[%s31292_s0 + $0xc4] sm:$0xf] }
 0x23e   :  { %31944 = vst [vmem:[#allocation14_spill] sm:$0xff] %v24827_v31  ;;  %31945 = vst [vmem:[#allocation15_spill] sm:$0xff] %v24832_v20 }
 0x23f   :  { %v3167_v4 = vor.u32 %v3166_v57, %v3163_v52 }
 0x241   :  { %20329 = vmatmul.mubr.msk.bf16.gmra.mrb[24].mxu0 %vm440_vm3, %v3123_v43  ;;  %v18324_v43 = vcombine.low %v24789_v6, %v24794_v18  ;;  %v24817_v18 = vld [vmem:[%s31292_s0 + $0xb8] sm:$0xf] }
 0x242   :  { %20332 = vmatprep.mubr.msk.bf16.mxu0 %vm440_vm3, %v3132_v59  ;;  %v18325_v59 = vcombine.low %v24799_v58, %v24804_v15  ;;  %31942 = vst [vmem:[#allocation12_spill] sm:$0xff] %v24817_v18 }
 0x243   :  { %v3170_v42 = vshrl.u32 %v18324_v43, 16  ;;  %v3173_v16 = vshll.u32 %v18324_v43, 16  ;;  %v18326_v43 = vcombine.low %v24817_v18, %v24822_v19  ;;  %v24845_v19 = vld [vmem:[%s31292_s0 + $0xc8] sm:$0xf] }
 0x244   :  { %v3179_v13 = vshrl.u32 %v18325_v59, 16  ;;  %v3182_v35 = vshll.u32 %v18325_v59, 16  ;;  %v18327_v59 = vcombine.low %v24827_v31, %v24832_v20  ;;  %31946 = vst [vmem:[#allocation16_spill] sm:$0xff] %v24845_v19 }
 0x245   :  { %v3172_v38 = vrot.slane %v3170_v42, 3  ;;  %v3175_v50 = vrot.slane %v3173_v16, 4  ;;  %v3188_v58 = vshrl.u32 %v18326_v43, 16  ;;  %v3191_v40 = vshll.u32 %v18326_v43, 16 }
 0x246   :  { %v3181_v52 = vrot.slane %v3179_v13, 3  ;;  %v3184_v57 = vrot.slane %v3182_v35, 4  ;;  %v3197_v42 = vshrl.u32 %v18327_v59, 16  ;;  %v3200_v16 = vshll.u32 %v18327_v59, 16  ;;  %v24855_v13 = vld [vmem:[%s31292_s0 + $0xd0] sm:$0xf] }
 0x247   :  { %v3176_v15 = vor.u32 %v3175_v50, %v3172_v38  ;;  %31948 = vst [vmem:[#allocation18_spill] sm:$0xff] %v24855_v13  ;;  %v24860_v35 = vld [vmem:[%s31292_s0 + $0xd4] sm:$0xf]  ;;  %v3190_v38 = vrot.slane %v3188_v58, 3  ;;  %v3193_v50 = vrot.slane %v3191_v40, 4 }
 0x248   :  { %31949 = vst [vmem:[#allocation19_spill] sm:$0xff] %v24860_v35  ;;  %v18329_v59 = vcombine.low %v24855_v13, %v24860_v35 }
 0x249   :  { %20333 = vmatmul.mubr.msk.bf16.gmra.mrb[28].mxu0 %vm440_vm3, %v3141_v62  ;;  %v3159_v62 = vsel %vm1888_vm5, %v3149_v63, %v3158_v61  ;;  %v3185_v63 = vor.u32 %v3184_v57, %v3181_v52  ;;  %v3199_v52 = vrot.slane %v3197_v42, 3  ;;  %v3202_v57 = vrot.slane %v3200_v16, 4  ;;  %v24883_v42 = vld [vmem:[%s31292_s0 + $0xe0] sm:$0xf]  ;;  %v24888_v16 = vld [vmem:[%s31292_s0 + $0xe4] sm:$0xf] }
 0x24a   :  { %20336 = vmatprep.mubr.msk.bf16.mxu0 %vm440_vm3, %v3150_v0  ;;  %v3168_v0 = vsel %vm1888_vm5, %v3158_v61, %v3167_v4  ;;  %v24850_v61 = vld [vmem:[%s31292_s0 + $0xcc] sm:$0xf]  ;;  %v3194_v20 = vor.u32 %v3193_v50, %v3190_v38  ;;  %v3215_v58 = vshrl.u32 %v18329_v59, 16  ;;  %v3218_v40 = vshll.u32 %v18329_v59, 16  ;;  %31952 = vst [vmem:[#allocation22_spill] sm:$0xff] %v24883_v42  ;;  %31953 = vst [vmem:[#allocation23_spill] sm:$0xff] %v24888_v16 }
 0x24b   :  { %31947 = vst [vmem:[#allocation17_spill] sm:$0xff] %v24850_v61  ;;  %v18328_v43 = vcombine.low %v24845_v19, %v24850_v61  ;;  %v24873_v61 = vld [vmem:[%s31292_s0 + $0xd8] sm:$0xf]  ;;  %v18331_v59 = vcombine.low %v24883_v42, %v24888_v16 }
 0x24c   :  { %31950 = vst [vmem:[#allocation20_spill] sm:$0xff] %v24873_v61 }
 0x24d   :  { %v3206_v31 = vshrl.u32 %v18328_v43, 16  ;;  %v3209_v18 = vshll.u32 %v18328_v43, 16 }
 0x24f   :  { %v3208_v38 = vrot.slane %v3206_v31, 3  ;;  %v3211_v50 = vrot.slane %v3209_v18, 4  ;;  %v3233_v31 = vshrl.u32 %v18331_v59, 16  ;;  %v3236_v18 = vshll.u32 %v18331_v59, 16 }
 0x251   :  { %20337 = vmatmul.mubr.msk.bf16.gmra.mrb[32].mxu0 %vm440_vm3, %v3159_v62  ;;  %v3177_v62 = vsel %vm1888_vm5, %v3167_v4, %v3176_v15  ;;  %v3203_v4 = vor.u32 %v3202_v57, %v3199_v52  ;;  %v3217_v52 = vrot.slane %v3215_v58, 3  ;;  %v3220_v57 = vrot.slane %v3218_v40, 4  ;;  %v24911_v58 = vld [vmem:[%s31292_s0 + $0xf0] sm:$0xf]  ;;  %v24916_v40 = vld [vmem:[%s31292_s0 + $0xf4] sm:$0xf] }
 0x252   :  { %20340 = vmatprep.mubr.msk.bf16.mxu0 %vm440_vm3, %v3168_v0  ;;  %v3186_v0 = vsel %vm1888_vm5, %v3176_v15, %v3185_v63  ;;  %v24878_v15 = vld [vmem:[%s31292_s0 + $0xdc] sm:$0xf]  ;;  %v3212_v35 = vor.u32 %v3211_v50, %v3208_v38  ;;  %31956 = vst [vmem:[#allocation26_spill] sm:$0xff] %v24911_v58  ;;  %31957 = vst [vmem:[#allocation27_spill] sm:$0xff] %v24916_v40  ;;  %v18333_v59 = vcombine.low %v24911_v58, %v24916_v40 }
 0x253   :  { %31951 = vst [vmem:[#allocation21_spill] sm:$0xff] %v24878_v15  ;;  %v18330_v43 = vcombine.low %v24873_v61, %v24878_v15  ;;  %v24901_v15 = vld [vmem:[%s31292_s0 + $0xe8] sm:$0xf] }
 0x254   :  { %31954 = vst [vmem:[#allocation24_spill] sm:$0xff] %v24901_v15 }
 0x255   :  { %v3224_v13 = vshrl.u32 %v18330_v43, 16  ;;  %v3227_v19 = vshll.u32 %v18330_v43, 16 }
 0x257   :  { %v3226_v38 = vrot.slane %v3224_v13, 3  ;;  %v3229_v50 = vrot.slane %v3227_v19, 4  ;;  %v3251_v13 = vshrl.u32 %v18333_v59, 16  ;;  %v3254_v19 = vshll.u32 %v18333_v59, 16 }
 0x259   :  { %20341 = vmatmul.mubr.msk.bf16.gmra.mrb[36].mxu0 %vm440_vm3, %v3177_v62  ;;  %v3195_v62 = vsel %vm1888_vm5, %v3185_v63, %v3194_v20  ;;  %v3221_v63 = vor.u32 %v3220_v57, %v3217_v52  ;;  %v3235_v52 = vrot.slane %v3233_v31, 3  ;;  %v3238_v57 = vrot.slane %v3236_v18, 4  ;;  %v24939_v31 = vld [vmem:[%s31292_s0 + $0x100] sm:$0xf]  ;;  %v24944_v18 = vld [vmem:[%s31292_s0 + $0x104] sm:$0xf] }
 0x25a   :  { %20344 = vmatprep.mubr.msk.bf16.mxu0 %vm440_vm3, %v3186_v0  ;;  %v3204_v0 = vsel %vm1888_vm5, %v3194_v20, %v3203_v4  ;;  %v24906_v20 = vld [vmem:[%s31292_s0 + $0xec] sm:$0xf]  ;;  %v3230_v16 = vor.u32 %v3229_v50, %v3226_v38  ;;  %31960 = vst [vmem:[#allocation30_spill] sm:$0xff] %v24939_v31  ;;  %31961 = vst [vmem:[#allocation31_spill] sm:$0xff] %v24944_v18  ;;  %v18335_v59 = vcombine.low %v24939_v31, %v24944_v18 }
 0x25b   :  { %31955 = vst [vmem:[#allocation25_spill] sm:$0xff] %v24906_v20  ;;  %v18332_v43 = vcombine.low %v24901_v15, %v24906_v20  ;;  %v24929_v20 = vld [vmem:[%s31292_s0 + $0xf8] sm:$0xf] }
 0x25c   :  { %31958 = vst [vmem:[#allocation28_spill] sm:$0xff] %v24929_v20 }
 0x25d   :  { %v3242_v42 = vshrl.u32 %v18332_v43, 16  ;;  %v3245_v61 = vshll.u32 %v18332_v43, 16 }
 0x25f   :  { %v3244_v38 = vrot.slane %v3242_v42, 3  ;;  %v3247_v50 = vrot.slane %v3245_v61, 4  ;;  %v3269_v42 = vshrl.u32 %v18335_v59, 16  ;;  %v3272_v61 = vshll.u32 %v18335_v59, 16 }
 0x261   :  { %20345 = vmatmul.mubr.msk.bf16.gmra.mrb[40].mxu0 %vm440_vm3, %v3195_v62  ;;  %v3213_v62 = vsel %vm1888_vm5, %v3203_v4, %v3212_v35  ;;  %v3239_v4 = vor.u32 %v3238_v57, %v3235_v52  ;;  %v3253_v52 = vrot.slane %v3251_v13, 3  ;;  %v3256_v57 = vrot.slane %v3254_v19, 4  ;;  %v24967_v13 = vld [vmem:[%s31292_s0 + $0x110] sm:$0xf]  ;;  %v24972_v19 = vld [vmem:[%s31292_s0 + $0x114] sm:$0xf] }
 0x262   :  { %20348 = vmatprep.mubr.msk.bf16.mxu0 %vm440_vm3, %v3204_v0  ;;  %v3222_v0 = vsel %vm1888_vm5, %v3212_v35, %v3221_v63  ;;  %v24934_v35 = vld [vmem:[%s31292_s0 + $0xfc] sm:$0xf]  ;;  %v3248_v40 = vor.u32 %v3247_v50, %v3244_v38  ;;  %31964 = vst [vmem:[#allocation34_spill] sm:$0xff] %v24967_v13  ;;  %31965 = vst [vmem:[#allocation35_spill] sm:$0xff] %v24972_v19  ;;  %v18337_v59 = vcombine.low %v24967_v13, %v24972_v19 }
 0x263   :  { %31959 = vst [vmem:[#allocation29_spill] sm:$0xff] %v24934_v35  ;;  %v18334_v43 = vcombine.low %v24929_v20, %v24934_v35  ;;  %v24957_v35 = vld [vmem:[%s31292_s0 + $0x108] sm:$0xf] }
 0x264   :  { %31962 = vst [vmem:[#allocation32_spill] sm:$0xff] %v24957_v35 }
 0x265   :  { %v3260_v58 = vshrl.u32 %v18334_v43, 16  ;;  %v3263_v15 = vshll.u32 %v18334_v43, 16 }
 0x267   :  { %v3262_v38 = vrot.slane %v3260_v58, 3  ;;  %v3265_v50 = vrot.slane %v3263_v15, 4  ;;  %v3287_v58 = vshrl.u32 %v18337_v59, 16  ;;  %v3290_v15 = vshll.u32 %v18337_v59, 16 }
 0x269   :  { %20349 = vmatmul.mubr.msk.bf16.gmra.mrb[44].mxu0 %vm440_vm3, %v3213_v62  ;;  %v3231_v62 = vsel %vm1888_vm5, %v3221_v63, %v3230_v16  ;;  %v3257_v63 = vor.u32 %v3256_v57, %v3253_v52  ;;  %v3271_v52 = vrot.slane %v3269_v42, 3  ;;  %v3274_v57 = vrot.slane %v3272_v61, 4  ;;  %v24995_v42 = vld [vmem:[%s31292_s0 + $0x120] sm:$0xf]  ;;  %v25000_v61 = vld [vmem:[%s31292_s0 + $0x124] sm:$0xf] }
 0x26a   :  { %20352 = vmatprep.mubr.msk.bf16.mxu0 %vm440_vm3, %v3222_v0  ;;  %v3240_v0 = vsel %vm1888_vm5, %v3230_v16, %v3239_v4  ;;  %v24962_v16 = vld [vmem:[%s31292_s0 + $0x10c] sm:$0xf]  ;;  %v3266_v18 = vor.u32 %v3265_v50, %v3262_v38  ;;  %31968 = vst [vmem:[#allocation38_spill] sm:$0xff] %v24995_v42  ;;  %31969 = vst [vmem:[#allocation39_spill] sm:$0xff] %v25000_v61  ;;  %v18339_v59 = vcombine.low %v24995_v42, %v25000_v61 }
 0x26b   :  { %31963 = vst [vmem:[#allocation33_spill] sm:$0xff] %v24962_v16  ;;  %v18336_v43 = vcombine.low %v24957_v35, %v24962_v16  ;;  %v24985_v16 = vld [vmem:[%s31292_s0 + $0x118] sm:$0xf] }
 0x26c   :  { %31966 = vst [vmem:[#allocation36_spill] sm:$0xff] %v24985_v16 }
 0x26d   :  { %v3278_v31 = vshrl.u32 %v18336_v43, 16  ;;  %v3281_v20 = vshll.u32 %v18336_v43, 16 }
 0x26f   :  { %v3280_v38 = vrot.slane %v3278_v31, 3  ;;  %v3283_v50 = vrot.slane %v3281_v20, 4  ;;  %v3305_v31 = vshrl.u32 %v18339_v59, 16  ;;  %v3308_v20 = vshll.u32 %v18339_v59, 16 }
 0x271   :  { %20353 = vmatmul.mubr.msk.bf16.gmra.mrb[48].mxu0 %vm440_vm3, %v3231_v62  ;;  %v3249_v62 = vsel %vm1888_vm5, %v3239_v4, %v3248_v40  ;;  %v3275_v4 = vor.u32 %v3274_v57, %v3271_v52  ;;  %v3289_v52 = vrot.slane %v3287_v58, 3  ;;  %v3292_v57 = vrot.slane %v3290_v15, 4  ;;  %v25023_v58 = vld [vmem:[%s31292_s0 + $0x130] sm:$0xf]  ;;  %v25028_v15 = vld [vmem:[%s31292_s0 + $0x134] sm:$0xf] }
 0x272   :  { %20356 = vmatprep.mubr.msk.bf16.mxu0 %vm440_vm3, %v3240_v0  ;;  %v3258_v0 = vsel %vm1888_vm5, %v3248_v40, %v3257_v63  ;;  %v24990_v40 = vld [vmem:[%s31292_s0 + $0x11c] sm:$0xf]  ;;  %v3284_v19 = vor.u32 %v3283_v50, %v3280_v38  ;;  %31972 = vst [vmem:[#allocation42_spill] sm:$0xff] %v25023_v58  ;;  %31973 = vst [vmem:[#allocation43_spill] sm:$0xff] %v25028_v15  ;;  %v18341_v59 = vcombine.low %v25023_v58, %v25028_v15 }
 0x273   :  { %31967 = vst [vmem:[#allocation37_spill] sm:$0xff] %v24990_v40  ;;  %v18338_v43 = vcombine.low %v24985_v16, %v24990_v40  ;;  %v25013_v40 = vld [vmem:[%s31292_s0 + $0x128] sm:$0xf] }
 0x274   :  { %31970 = vst [vmem:[#allocation40_spill] sm:$0xff] %v25013_v40 }
 0x275   :  { %v3296_v13 = vshrl.u32 %v18338_v43, 16  ;;  %v3299_v35 = vshll.u32 %v18338_v43, 16 }
 0x277   :  { %v3298_v38 = vrot.slane %v3296_v13, 3  ;;  %v3301_v50 = vrot.slane %v3299_v35, 4  ;;  %v3323_v13 = vshrl.u32 %v18341_v59, 16  ;;  %v3326_v35 = vshll.u32 %v18341_v59, 16 }
 0x279   :  { %20357 = vmatmul.mubr.msk.bf16.gmra.mrb[52].mxu0 %vm440_vm3, %v3249_v62  ;;  %v3267_v62 = vsel %vm1888_vm5, %v3257_v63, %v3266_v18  ;;  %v3293_v63 = vor.u32 %v3292_v57, %v3289_v52  ;;  %v3307_v52 = vrot.slane %v3305_v31, 3  ;;  %v3310_v57 = vrot.slane %v3308_v20, 4  ;;  %v25051_v31 = vld [vmem:[%s31292_s0 + $0x140] sm:$0xf]  ;;  %v25056_v20 = vld [vmem:[%s31292_s0 + $0x144] sm:$0xf] }
 0x27a   :  { %20360 = vmatprep.mubr.msk.bf16.mxu0 %vm440_vm3, %v3258_v0  ;;  %v3276_v0 = vsel %vm1888_vm5, %v3266_v18, %v3275_v4  ;;  %v25018_v18 = vld [vmem:[%s31292_s0 + $0x12c] sm:$0xf]  ;;  %v3302_v61 = vor.u32 %v3301_v50, %v3298_v38  ;;  %31976 = vst [vmem:[#allocation46_spill] sm:$0xff] %v25051_v31  ;;  %31977 = vst [vmem:[#allocation47_spill] sm:$0xff] %v25056_v20  ;;  %v18343_v59 = vcombine.low %v25051_v31, %v25056_v20 }
 0x27b   :  { %31971 = vst [vmem:[#allocation41_spill] sm:$0xff] %v25018_v18  ;;  %v18340_v43 = vcombine.low %v25013_v40, %v25018_v18  ;;  %v25041_v18 = vld [vmem:[%s31292_s0 + $0x138] sm:$0xf] }
 0x27c   :  { %31974 = vst [vmem:[#allocation44_spill] sm:$0xff] %v25041_v18 }
 0x27d   :  { %v3314_v42 = vshrl.u32 %v18340_v43, 16  ;;  %v3317_v16 = vshll.u32 %v18340_v43, 16 }
 0x27f   :  { %v3316_v38 = vrot.slane %v3314_v42, 3  ;;  %v3319_v50 = vrot.slane %v3317_v16, 4  ;;  %v3341_v42 = vshrl.u32 %v18343_v59, 16  ;;  %v3344_v16 = vshll.u32 %v18343_v59, 16 }
 0x281   :  { %20361 = vmatmul.mubr.msk.bf16.gmra.mrb[56].mxu0 %vm440_vm3, %v3267_v62  ;;  %v3285_v62 = vsel %vm1888_vm5, %v3275_v4, %v3284_v19  ;;  %v3311_v4 = vor.u32 %v3310_v57, %v3307_v52  ;;  %v3325_v52 = vrot.slane %v3323_v13, 3  ;;  %v3328_v57 = vrot.slane %v3326_v35, 4  ;;  %v25079_v13 = vld [vmem:[%s31292_s0 + $0x150] sm:$0xf]  ;;  %v25084_v35 = vld [vmem:[%s31292_s0 + $0x154] sm:$0xf] }
 0x282   :  { %20364 = vmatprep.mubr.msk.bf16.mxu0 %vm440_vm3, %v3276_v0  ;;  %v3294_v0 = vsel %vm1888_vm5, %v3284_v19, %v3293_v63  ;;  %v25046_v19 = vld [vmem:[%s31292_s0 + $0x13c] sm:$0xf]  ;;  %v3320_v15 = vor.u32 %v3319_v50, %v3316_v38  ;;  %31980 = vst [vmem:[#allocation50_spill] sm:$0xff] %v25079_v13  ;;  %31981 = vst [vmem:[#allocation51_spill] sm:$0xff] %v25084_v35  ;;  %v18345_v59 = vcombine.low %v25079_v13, %v25084_v35  ;;  %v18481_v35 = vld [vmem:[%s31295_s3 + $0xa] sm:$0x3] }
 0x283   :  { %31975 = vst [vmem:[#allocation45_spill] sm:$0xff] %v25046_v19  ;;  %v18342_v43 = vcombine.low %v25041_v18, %v25046_v19  ;;  %v25069_v19 = vld [vmem:[%s31292_s0 + $0x148] sm:$0xf] }
 0x284   :  { %31978 = vst [vmem:[#allocation48_spill] sm:$0xff] %v25069_v19 }
 0x285   :  { %v3332_v58 = vshrl.u32 %v18342_v43, 16  ;;  %v3335_v40 = vshll.u32 %v18342_v43, 16 }
 0x287   :  { %v3334_v38 = vrot.slane %v3332_v58, 3  ;;  %v3337_v50 = vrot.slane %v3335_v40, 4  ;;  %v3359_v58 = vshrl.u32 %v18345_v59, 16  ;;  %v3362_v40 = vshll.u32 %v18345_v59, 16 }
 0x289   :  { %20365 = vmatmul.mubr.msk.bf16.gmra.mrb[60].mxu0 %vm440_vm3, %v3285_v62  ;;  %v3303_v62 = vsel %vm1888_vm5, %v3293_v63, %v3302_v61  ;;  %v3329_v63 = vor.u32 %v3328_v57, %v3325_v52  ;;  %v3343_v52 = vrot.slane %v3341_v42, 3  ;;  %v3346_v57 = vrot.slane %v3344_v16, 4  ;;  %v25107_v42 = vld [vmem:[%s31292_s0 + $0x160] sm:$0xf]  ;;  %v25112_v16 = vld [vmem:[%s31292_s0 + $0x164] sm:$0x3] }
 0x28a   :  { %20368 = vmatprep.mubr.msk.bf16.mxu0 %vm440_vm3, %v3294_v0  ;;  %v3312_v0 = vsel %vm1888_vm5, %v3302_v61, %v3311_v4  ;;  %v25074_v61 = vld [vmem:[%s31292_s0 + $0x14c] sm:$0xf]  ;;  %v3338_v20 = vor.u32 %v3337_v50, %v3334_v38  ;;  %31984 = vst [vmem:[#allocation54_spill] sm:$0xff] %v25107_v42  ;;  %31985 = vst [vmem:[#allocation55_spill] sm:$0xff] %v25112_v16  ;;  %v18347_v59 = vcombine.low %v25107_v42, %v25112_v16 }
 0x28b   :  { %31979 = vst [vmem:[#allocation49_spill] sm:$0xff] %v25074_v61  ;;  %v18344_v43 = vcombine.low %v25069_v19, %v25074_v61  ;;  %v25097_v61 = vld [vmem:[%s31292_s0 + $0x158] sm:$0xf] }
 0x28c   :  { %31982 = vst [vmem:[#allocation52_spill] sm:$0xff] %v25097_v61 }
 0x28d   :  { %v3350_v31 = vshrl.u32 %v18344_v43, 16  ;;  %v3353_v18 = vshll.u32 %v18344_v43, 16 }
 0x28f   :  { %v3352_v38 = vrot.slane %v3350_v31, 3  ;;  %v3355_v50 = vrot.slane %v3353_v18, 4 }
 0x291   :  { %20369 = vmatmul.mubr.msk.bf16.gmra.mrb[64].mxu0 %vm440_vm3, %v3303_v62  ;;  %v3321_v62 = vsel %vm1888_vm5, %v3311_v4, %v3320_v15  ;;  %v3347_v4 = vor.u32 %v3346_v57, %v3343_v52  ;;  %v3361_v52 = vrot.slane %v3359_v58, 3  ;;  %v3364_v57 = vrot.slane %v3362_v40, 4 }
 0x292   :  { %20372 = vmatprep.mubr.msk.bf16.mxu0 %vm440_vm3, %v3312_v0  ;;  %v3330_v0 = vsel %vm1888_vm5, %v3320_v15, %v3329_v63  ;;  %v25102_v15 = vld [vmem:[%s31292_s0 + $0x15c] sm:$0xf]  ;;  %v3356_v31 = vor.u32 %v3355_v50, %v3352_v38  ;;  %v3380_v58 = vshll.u32 %v18347_v59, 16 }
 0x293   :  { %31983 = vst [vmem:[#allocation53_spill] sm:$0xff] %v25102_v15  ;;  %v18346_v43 = vcombine.low %v25097_v61, %v25102_v15  ;;  %v5091_v15 = vand.u32 %v18481_v35, %v23514_v5  ;;  %v3365_v61 = vor.u32 %v3364_v57, %v3361_v52 }
 0x294   :  { %v3357_v40 = vsel %vm1888_vm5, %v3347_v4, %v3356_v31  ;;  %v3382_v19 = vrot.slane %v3380_v58, 4 }
 0x295   :  { %v3368_v18 = vshrl.u32 %v18346_v43, 16  ;;  %20482 = vmatprep.subr.bf16.mxu0 %v5091_v15 }
 0x297   :  { %v3370_v16 = vrot.slane %v3368_v18, 3  ;;  %v25253_v18 = vcombine.low %v24766_v55, %v24771_v7 }
 0x299   :  { %20373 = vmatmul.mubr.msk.bf16.gmra.mrb[68].mxu0 %vm440_vm3, %v3321_v62  ;;  %v3339_v62 = vsel %vm1888_vm5, %v3329_v63, %v3338_v20  ;;  %v3371_v63 = vshll.u32 %v18346_v43, 16 }
 0x29a   :  { %20376 = vmatprep.mubr.msk.bf16.mxu0 %vm440_vm3, %v3330_v0  ;;  %v3348_v0 = vsel %vm1888_vm5, %v3338_v20, %v3347_v4  ;;  %v3377_v20 = vshrl.u32 %v18347_v59, 16  ;;  %v18393_v4 = vcombine.low %v24511_v25, %v24516_v60  ;;  %v18397_v25 = vcombine.low %v24561_v14, %v24566_v48 }
 0x29b   :  { %v3373_v42 = vrot.slane %v3371_v63, 4  ;;  %v18398_v60 = vcombine.low %v24571_v44, %v24583_v53  ;;  %v25178_v44 = vcombine.low %v24627_v22, %v24640_v41 }
 0x29c   :  { %v3379_v13 = vrot.slane %v3377_v20, 3  ;;  %v4650_v22 = vshrl.u32 %v18393_v4, 16  ;;  %v4652_v41 = vshll.u32 %v18393_v4, 16 }
 0x29d   :  { %v3374_v38 = vor.u32 %v3373_v42, %v3370_v16  ;;  %v4681_v42 = vshrl.u32 %v18397_v25, 16  ;;  %v4684_v16 = vshll.u32 %v18398_v60, 16  ;;  %v4688_v52 = vshrl.u32 %v18398_v60, 16 }
 0x29e   :  { %v3383_v50 = vor.u32 %v3382_v19, %v3379_v13  ;;  %v18396_v19 = vcombine.low %v24543_v10, %v24556_v49  ;;  %v25167_v10 = vcombine.low %v24617_v8, %v24622_v11  ;;  %v25196_v8 = vcombine.low %v24655_v34, %v24668_v46 }
 0x29f   :  { %v3375_v35 = vsel %vm1888_vm5, %v3365_v61, %v3374_v38  ;;  %v25200_v11 = vcombine.low %v24673_v24, %v24678_v12  ;;  %v25211_v34 = vcombine.low %v24683_v45, %v24696_v47  ;;  %v25215_v24 = vcombine.low %v24701_v21, %v24706_v37 }
 0x2a0   :  { %v3384_v43 = vsel %vm1888_vm5, %v3374_v38, %v3383_v50  ;;  %v25229_v21 = vcombine.low %v24711_v27, %v24733_v36  ;;  %v25234_v13 = vcombine.low %v24738_v9, %v24743_v29  ;;  %v4686_v57 = vrot.slane %v4684_v16, 1 }
 0x2a1   :  { %20377 = vmatmul.mubr.msk.bf16.gmra.mrb[72].mxu0 %vm440_vm3, %v3339_v62  ;;  %v3366_v62 = vsel %vm1888_vm5, %v3356_v31, %v3365_v61  ;;  %v4677_v61 = vshll.u32 %v18397_v25, 16  ;;  %v25246_v9 = vcombine.low %v24748_v51, %v24761_v23  ;;  %v4705_v23 = vshll.u32 %v25167_v10, 16 }
 0x2a2   :  { %20380 = vmatprep.mubr.msk.bf16.mxu0 %vm440_vm3, %v3348_v0  ;;  %v25140_v0 = vcombine.low %v24533_v26, %v24538_v3  ;;  %v25156_v26 = vcombine.low %v24588_v56, %v24593_v28  ;;  %v25163_v3 = vcombine.low %v24598_v32, %v24612_v33  ;;  %v25185_v28 = vcombine.low %v24645_v1, %v24650_v54 }
 0x2a3   :  { %v4656_v1 = vshll.u32 %v24331_v2, 16  ;;  %v4654_v54 = vrot.slane %v4652_v41, 1  ;;  %v4679_v47 = vrot.slane %v4677_v61, 1  ;;  %v4690_v31 = vor.u32 %v4688_v52, %v4686_v57  ;;  %v31991_v41 = vld [vmem:[#allocation14_spill] sm:$0xff] }
 0x2a4   :  { %v4691_v27 = vshll.u32 %v25156_v26, 16  ;;  %v4695_v20 = vshrl.u32 %v25156_v26, 16  ;;  %v4698_v58 = vshll.u32 %v25163_v3, 16  ;;  %v4702_v51 = vshrl.u32 %v25163_v3, 16 }
 0x2a5   :  { %v4655_v46 = vor.u32 %v4654_v54, %v4650_v22  ;;  %v4683_v36 = vor.u32 %v4681_v42, %v4679_v47  ;;  %v4707_v7 = vrot.slane %v4705_v23, 1  ;;  %v4726_v61 = vshll.u32 %v25196_v8, 16 }
 0x2a6   :  { %v4693_v59 = vrot.slane %v4691_v27, 1  ;;  %v4700_v55 = vrot.slane %v4698_v58, 1  ;;  %v31993_v27 = vld [vmem:[#allocation16_spill] sm:$0xff]  ;;  %v4740_v23 = vshll.u32 %v25211_v34, 16 }
 0x2a7   :  { %v25249_v29 = vsel %vm4649_vm6, %v4683_v36, %v4686_v57  ;;  %v4728_v16 = vrot.slane %v4726_v61, 1  ;;  %v31994_v36 = vld [vmem:[#allocation15_spill] sm:$0xff] }
 0x2a8   :  { %v25256_v63 = vsel %vm4649_vm6, %v4690_v31, %v4693_v59  ;;  %v25312_v57 = vcombine.low %v31994_v36, %v31993_v27  ;;  %v31995_v31 = vld [vmem:[#allocation18_spill] sm:$0xff]  ;;  %v32002_v61 = vld [vmem:[#allocation23_spill] sm:$0xff]  ;;  %v4768_v36 = vshll.u32 %v25246_v9, 16 }
 0x2a9   :  { %20381 = vmatmul.mubr.msk.bf16.gmra.mrb[76].mxu0 %vm440_vm3, %v3357_v40  ;;  %v4697_v40 = vor.u32 %v4695_v20, %v4693_v59  ;;  %v31996_v20 = vld [vmem:[#allocation17_spill] sm:$0xff] }
 0x2aa   :  { %20384 = vmatprep.mubr.msk.bf16.mxu0 %vm440_vm3, %v3366_v62  ;;  %v31986_v62 = vld [vmem:[#allocation8_spill] sm:$0xff]  ;;  %v25319_v58 = vcombine.low %v31996_v20, %v31995_v31  ;;  %v4775_v31 = vshll.u32 %v25253_v18, 16 }
 0x2ab   :  { %v25268_v38 = vcombine.low %v31986_v62, %v24789_v6  ;;  %v4712_v6 = vshll.u32 %v25178_v44, 16  ;;  %v4742_v62 = vrot.slane %v4740_v23, 1 }
 0x2ac   :  { %v4777_v23 = vrot.slane %v4775_v31, 1 }
 0x2b1   :  { %20385 = vmatmul.mubr.msk.bf16.gmra.mrb[80].mxu0 %vm440_vm3, %v3375_v35  ;;  %v4704_v35 = vor.u32 %v4702_v51, %v4700_v55 }
 0x2b2   :  { %20388 = vmatprep.mubr.msk.bf16.mxu0 %vm440_vm3, %v3384_v43  ;;  %v31987_v43 = vld [vmem:[#allocation10_spill] sm:$0xff] }
 0x2b9   :  { %20389 = vmatmul.mubr.msk.bf16.gmra.mrb[92].mxu0 %vm440_vm3, %v3383_v50  ;;  %v25271_v50 = vsel %vm4649_vm6, %v4697_v40, %v4700_v55  ;;  %v4744_v40 = vshrl.u32 %v25211_v34, 16  ;;  %v4747_v55 = vshll.u32 %v25215_v24, 16 }
 0x2ba   :  { %20394 = vmatprep.mubr.msk.bf16.mxu0 %vm440_vm3, %v18393_v4  ;;  %v31988_v4 = vld [vmem:[#allocation9_spill] sm:$0xff] }
 0x2c1   :  { %20395 = vmatmul.mubr.msk.bf16.vlgmr.msra.gmra.mrb[0].mxu0 %vm440_vm3, %v24331_v2 }
 0x2c2   :  { %20398 = vmatprep.mubr.msk.bf16.mxu0 %vm440_vm3, %v25140_v0  ;;  %20483 = vmatpush3.bf16.msra.mxu0 %v5091_v15 }
 0x2c9   :  { %20399 = vmatmul.mubr.msk.bf16.gmra.mrb[4].mxu0 %vm440_vm3, %v18396_v19 }
 0x2ca   :  { %20402 = vmatprep.mubr.msk.bf16.mxu0 %vm440_vm3, %v18397_v25  ;;  %v25278_v25 = vsel %vm4649_vm6, %v4704_v35, %v4707_v7  ;;  %v4749_v35 = vrot.slane %v4747_v55, 1  ;;  %v32006_v55 = vld [vmem:[#allocation27_spill] sm:$0xff] }
 0x2d1   :  { %20403 = vmatmul.mubr.msk.bf16.gmra.mrb[8].mxu0 %vm440_vm3, %v18398_v60  ;;  %v4709_v60 = vshrl.u32 %v25167_v10, 16 }
 0x2d2   :  { %20406 = vmatprep.mubr.msk.bf16.mxu0 %vm440_vm3, %v25156_v26  ;;  %v4714_v26 = vrot.slane %v4712_v6, 1 }
 0x2d3   :  { %v4711_v22 = vor.u32 %v4709_v60, %v4707_v7 }
 0x2d9   :  { %20407 = vmatmul.mubr.msk.bf16.gmra.mrb[12].mxu0 %vm440_vm3, %v25163_v3  ;;  %v4716_v3 = vshrl.u32 %v25178_v44, 16 }
 0x2da   :  { %20410 = vmatprep.mubr.msk.bf16.mxu0 %vm440_vm3, %v25167_v10 }
 0x2dc   :  { %v20300_v49 = vpop.f32.mrb[88].mxu0 }
 0x2dd   :  { %v25174_v14 = vadd.f32 %v20300_v49, %v24714_v17  ;;  %v2579_v48 = vpop.f32.mrb[89].mxu0  ;;  %v25207_v17 = vrot.slane %v4656_v1, 1  ;;  %v4719_v49 = vshll.u32 %v25185_v28, 16  ;;  %v31992_v1 = vld [vmem:[#allocation13_spill] sm:$0xff] }
 0x2de   :  { %v25181_v53 = vadd.f32 %v2579_v48, %v24718_v39  ;;  %v20301_v56 = vpop.f32.mrb[90].mxu0  ;;  %v4670_v39 = vshll.u32 %v18396_v19, 16  ;;  %v31989_v48 = vld [vmem:[#allocation12_spill] sm:$0xff]  ;;  %v25294_v54 = vcombine.low %v31992_v1, %v31991_v41  ;;  %v4761_v41 = vshll.u32 %v25234_v13, 16 }
 0x2df   :  { %v2582_v32 = vpop.f32.mrb[91].mxu0  ;;  %v25219_v12 = vsel %vm4649_vm6, %v4655_v46, %v25207_v17  ;;  %v31990_v56 = vld [vmem:[#allocation11_spill] sm:$0xff]  ;;  %v4718_v46 = vor.u32 %v4716_v3, %v4714_v26  ;;  %v32000_v3 = vld [vmem:[#allocation21_spill] sm:$0xff] }
 0x2e0   :  { %v25188_v33 = vadd.f32 %v2582_v32, %v24726_v30  ;;  %v4674_v30 = vshrl.u32 %v18396_v19, 16  ;;  %v25225_v45 = vrot.slane %v4670_v39, 1  ;;  %v25275_v19 = vcombine.low %v31988_v4, %v31987_v43  ;;  %v31997_v43 = vld [vmem:[#allocation20_spill] sm:$0xff]  ;;  %v31998_v4 = vld [vmem:[#allocation19_spill] sm:$0xff] }
 0x2e1   :  { %20411 = vmatmul.mubr.msk.bf16.gmra.mrb[16].mxu0 %vm440_vm3, %v25178_v44  ;;  %v25290_v32 = vcombine.low %v31990_v56, %v31989_v48  ;;  %v4721_v39 = vrot.slane %v4719_v49, 1  ;;  %v4723_v44 = vshrl.u32 %v25185_v28, 16  ;;  %v25334_v6 = vcombine.low %v31998_v4, %v31997_v43  ;;  %v32008_v43 = vld [vmem:[#allocation29_spill] sm:$0xff] }
 0x2e2   :  { %20414 = vmatprep.mubr.msk.bf16.mxu0 %vm440_vm3, %v25185_v28  ;;  %v4676_v37 = vor.u32 %v4674_v30, %v25225_v45  ;;  %v25297_v30 = vsel %vm4649_vm6, %v4711_v22, %v4714_v26  ;;  %v31999_v26 = vld [vmem:[#allocation22_spill] sm:$0xff]  ;;  %v4754_v56 = vshll.u32 %v25229_v21, 16  ;;  %v4758_v22 = vshrl.u32 %v25229_v21, 16 }
 0x2e3   :  { %v25300_v10 = vsel %vm4649_vm6, %v4718_v46, %v4721_v39  ;;  %v4725_v42 = vor.u32 %v4723_v44, %v4721_v39  ;;  %v25341_v49 = vcombine.low %v32000_v3, %v31999_v26  ;;  %v4763_v39 = vrot.slane %v4761_v41, 1  ;;  %v32001_v44 = vld [vmem:[#allocation24_spill] sm:$0xff] }
 0x2e4   :  { %v25237_v15 = vsel %vm4649_vm6, %v4676_v37, %v4679_v47  ;;  %v4730_v47 = vshrl.u32 %v25196_v8, 16  ;;  %v4733_v37 = vshll.u32 %v25200_v11, 16  ;;  %v4756_v46 = vrot.slane %v4754_v56, 1 }
 0x2e5   :  { %v25315_v59 = vsel %vm4649_vm6, %v4725_v42, %v4728_v16  ;;  %v32003_v42 = vld [vmem:[#allocation26_spill] sm:$0xff]  ;;  %v4782_v26 = vshll.u32 %v25268_v38, 16  ;;  %v4786_v3 = vshrl.u32 %v25268_v38, 16 }
 0x2e6   :  { %v4735_v52 = vrot.slane %v4733_v37, 1  ;;  %v4732_v28 = vor.u32 %v4730_v47, %v4728_v16  ;;  %v25356_v47 = vcombine.low %v32002_v61, %v32001_v44  ;;  %v32004_v16 = vld [vmem:[#allocation25_spill] sm:$0xff]  ;;  %v32011_v61 = vld [vmem:[#allocation34_spill] sm:$0xff] }
 0x2e8   :  { %v25322_v51 = vsel %vm4649_vm6, %v4732_v28, %v4735_v52  ;;  %v4772_v28 = vshrl.u32 %v25246_v9, 16 }
 0x2e9   :  { %20415 = vmatmul.mubr.msk.bf16.gmra.mrb[20].mxu0 %vm440_vm3, %v25196_v8  ;;  %v4737_v8 = vshrl.u32 %v25200_v11, 16 }
 0x2ea   :  { %20418 = vmatprep.mubr.msk.bf16.mxu0 %vm440_vm3, %v25200_v11  ;;  %v4746_v11 = vor.u32 %v4744_v40, %v4742_v62  ;;  %v32005_v40 = vld [vmem:[#allocation28_spill] sm:$0xff] }
 0x2eb   :  { %v4739_v7 = vor.u32 %v4737_v8, %v4735_v52  ;;  %v25363_v52 = vcombine.low %v32004_v16, %v32003_v42  ;;  %v4770_v8 = vrot.slane %v4768_v36, 1  ;;  %v4800_v36 = vshrl.u32 %v25290_v32, 16 }
 0x2ec   :  { %v25344_v48 = vsel %vm4649_vm6, %v4746_v11, %v4749_v35 }
 0x2ed   :  { %v25337_v60 = vsel %vm4649_vm6, %v4739_v7, %v4742_v62  ;;  %v25378_v7 = vcombine.low %v32006_v55, %v32005_v40  ;;  %v32014_v40 = vld [vmem:[#allocation35_spill] sm:$0xff] }
 0x2f1   :  { %20419 = vmatmul.mubr.msk.bf16.gmra.mrb[24].mxu0 %vm440_vm3, %v25211_v34  ;;  %v4751_v34 = vshrl.u32 %v25215_v24, 16 }
 0x2f2   :  { %20422 = vmatprep.mubr.msk.bf16.mxu0 %vm440_vm3, %v25215_v24  ;;  %v4760_v24 = vor.u32 %v4758_v22, %v4756_v46  ;;  %v4784_v22 = vrot.slane %v4782_v26, 1 }
 0x2f3   :  { %v4753_v1 = vor.u32 %v4751_v34, %v4749_v35  ;;  %v32007_v35 = vld [vmem:[#allocation30_spill] sm:$0xff]  ;;  %v4789_v34 = vshll.u32 %v25275_v19, 16 }
 0x2f4   :  { %v25366_v27 = vsel %vm4649_vm6, %v4760_v24, %v4763_v39  ;;  %v25385_v4 = vcombine.low %v32008_v43, %v32007_v35  ;;  %v32012_v24 = vld [vmem:[#allocation33_spill] sm:$0xff]  ;;  %v32015_v35 = vld [vmem:[#allocation38_spill] sm:$0xff] }
 0x2f5   :  { %v25359_v37 = vsel %vm4649_vm6, %v4753_v1, %v4756_v46  ;;  %v4791_v41 = vrot.slane %v4789_v34, 1  ;;  %v32009_v1 = vld [vmem:[#allocation32_spill] sm:$0xff]  ;;  %v32010_v46 = vld [vmem:[#allocation31_spill] sm:$0xff]  ;;  %v25407_v42 = vcombine.low %v32012_v24, %v32011_v61  ;;  %v32016_v43 = vld [vmem:[#allocation37_spill] sm:$0xff]  ;;  %v4814_v34 = vshrl.u32 %v25312_v57, 16 }
 0x2f9   :  { %20423 = vmatmul.mubr.msk.bf16.gmra.mrb[28].mxu0 %vm440_vm3, %v25229_v21  ;;  %v4765_v21 = vshrl.u32 %v25234_v13, 16 }
 0x2fa   :  { %20426 = vmatprep.mubr.msk.bf16.mxu0 %vm440_vm3, %v25234_v13  ;;  %v4774_v13 = vor.u32 %v4772_v28, %v4770_v8  ;;  %v4803_v28 = vshll.u32 %v25294_v54, 16 }
 0x2fb   :  { %v4767_v20 = vor.u32 %v4765_v21, %v4763_v39  ;;  %v25400_v39 = vcombine.low %v32010_v46, %v32009_v1  ;;  %v4796_v21 = vshll.u32 %v25290_v32, 16  ;;  %v32017_v46 = vld [vmem:[#allocation40_spill] sm:$0xff] }
 0x2fc   :  { %v25388_v11 = vsel %vm4649_vm6, %v4774_v13, %v4777_v23 }
 0x2fd   :  { %v25381_v62 = vsel %vm4649_vm6, %v4767_v20, %v4770_v8  ;;  %v4798_v20 = vrot.slane %v4796_v21, 1  ;;  %v4805_v8 = vrot.slane %v4803_v28, 1  ;;  %v32020_v21 = vld [vmem:[#allocation41_spill] sm:$0xff] }
 0x301   :  { %20427 = vmatmul.mubr.msk.bf16.gmra.mrb[32].mxu0 %vm440_vm3, %v25246_v9  ;;  %v4779_v9 = vshrl.u32 %v25253_v18, 16 }
 0x302   :  { %20430 = vmatprep.mubr.msk.bf16.mxu0 %vm440_vm3, %v25253_v18  ;;  %v4788_v18 = vor.u32 %v4786_v3, %v4784_v22  ;;  %v4810_v3 = vshll.u32 %v25312_v57, 16 }
 0x303   :  { %v4781_v56 = vor.u32 %v4779_v9, %v4777_v23  ;;  %v32013_v23 = vld [vmem:[#allocation36_spill] sm:$0xff]  ;;  %v25429_v9 = vcombine.low %v32016_v43, %v32015_v35  ;;  %v32022_v43 = vld [vmem:[#allocation43_spill] sm:$0xff] }
 0x304   :  { %v25410_v16 = vsel %vm4649_vm6, %v4788_v18, %v4791_v41  ;;  %v25422_v55 = vcombine.low %v32014_v40, %v32013_v23  ;;  %v32018_v18 = vld [vmem:[#allocation39_spill] sm:$0xff]  ;;  %v32021_v35 = vld [vmem:[#allocation44_spill] sm:$0xff] }
 0x305   :  { %v25403_v44 = vsel %vm4649_vm6, %v4781_v56, %v4784_v22  ;;  %v4817_v56 = vshll.u32 %v25319_v58, 16  ;;  %v25444_v61 = vcombine.low %v32018_v18, %v32017_v46  ;;  %v4838_v46 = vshll.u32 %v25356_v47, 16 }
 0x307   :  { %v4819_v1 = vrot.slane %v4817_v56, 1  ;;  %v32024_v56 = vld [vmem:[#allocation45_spill] sm:$0xff] }
 0x309   :  { %20431 = vmatmul.mubr.msk.bf16.gmra.mrb[36].mxu0 %vm440_vm3, %v25268_v38  ;;  %v4793_v38 = vshrl.u32 %v25275_v19, 16 }
 0x30a   :  { %20434 = vmatprep.mubr.msk.bf16.mxu0 %vm440_vm3, %v25275_v19  ;;  %v4802_v19 = vor.u32 %v4800_v36, %v4798_v20 }
 0x30b   :  { %v4795_v31 = vor.u32 %v4793_v38, %v4791_v41  ;;  %v4812_v41 = vrot.slane %v4810_v3, 1  ;;  %v32019_v38 = vld [vmem:[#allocation42_spill] sm:$0xff] }
 0x30c   :  { %v25432_v26 = vsel %vm4649_vm6, %v4802_v19, %v4805_v8  ;;  %v25451_v36 = vcombine.low %v32020_v21, %v32019_v38  ;;  %v4845_v38 = vshll.u32 %v25363_v52, 16 }
 0x30d   :  { %v25425_v13 = vsel %vm4649_vm6, %v4795_v31, %v4798_v20  ;;  %v4824_v31 = vshll.u32 %v25334_v6, 16  ;;  %v4828_v20 = vshrl.u32 %v25334_v6, 16 }
 0x30f   :  { %v4826_v40 = vrot.slane %v4824_v31, 1  ;;  %v4847_v31 = vrot.slane %v4845_v38, 1  ;;  %v32029_v38 = vld [vmem:[#allocation52_spill] sm:$0xff] }
 0x311   :  { %20435 = vmatmul.mubr.msk.bf16.gmra.mrb[40].mxu0 %vm440_vm3, %v25290_v32  ;;  %v4807_v32 = vshrl.u32 %v25294_v54, 16 }
 0x312   :  { %20438 = vmatprep.mubr.msk.bf16.mxu0 %vm440_vm3, %v25294_v54  ;;  %v4816_v54 = vor.u32 %v4814_v34, %v4812_v41  ;;  %v32023_v34 = vld [vmem:[#allocation46_spill] sm:$0xff] }
 0x313   :  { %v4809_v22 = vor.u32 %v4807_v32, %v4805_v8  ;;  %v4831_v8 = vshll.u32 %v25341_v49, 16  ;;  %v25466_v32 = vcombine.low %v32022_v43, %v32021_v35  ;;  %v32027_v35 = vld [vmem:[#allocation50_spill] sm:$0xff]  ;;  %v32028_v43 = vld [vmem:[#allocation49_spill] sm:$0xff] }
 0x314   :  { %v25454_v28 = vsel %vm4649_vm6, %v4816_v54, %v4819_v1  ;;  %v4842_v54 = vshrl.u32 %v25356_v47, 16 }
 0x315   :  { %v25447_v24 = vsel %vm4649_vm6, %v4809_v22, %v4812_v41  ;;  %v4833_v19 = vrot.slane %v4831_v8, 1  ;;  %v25473_v22 = vcombine.low %v32024_v56, %v32023_v34  ;;  %v32026_v8 = vld [vmem:[#allocation47_spill] sm:$0xff]  ;;  %v4852_v34 = vshll.u32 %v25378_v7, 16 }
 0x316   :  { %v4856_v56 = vshrl.u32 %v25378_v7, 16 }
 0x319   :  { %20439 = vmatmul.mubr.msk.bf16.gmra.mrb[44].mxu0 %vm440_vm3, %v25312_v57  ;;  %v4821_v57 = vshrl.u32 %v25319_v58, 16 }
 0x31a   :  { %20442 = vmatprep.mubr.msk.bf16.mxu0 %vm440_vm3, %v25319_v58  ;;  %v4830_v58 = vor.u32 %v4828_v20, %v4826_v40  ;;  %v32025_v20 = vld [vmem:[#allocation48_spill] sm:$0xff] }
 0x31b   :  { %v4823_v23 = vor.u32 %v4821_v57, %v4819_v1  ;;  %v4835_v1 = vshrl.u32 %v25341_v49, 16  ;;  %v4840_v57 = vrot.slane %v4838_v46, 1  ;;  %v4854_v46 = vrot.slane %v4852_v34, 1 }
 0x31c   :  { %v25476_v41 = vsel %vm4649_vm6, %v4830_v58, %v4833_v19  ;;  %v25502_v58 = vcombine.low %v32028_v43, %v32027_v35  ;;  %v4873_v34 = vshll.u32 %v25407_v42, 16 }
 0x31d   :  { %v25469_v3 = vsel %vm4649_vm6, %v4823_v23, %v4826_v40  ;;  %v4837_v21 = vor.u32 %v4835_v1, %v4833_v19  ;;  %v4844_v40 = vor.u32 %v4842_v54, %v4840_v57  ;;  %v4849_v19 = vshrl.u32 %v25363_v52, 16 }
 0x31f   :  { %v25498_v23 = vsel %vm4649_vm6, %v4837_v21, %v4840_v57  ;;  %v4851_v1 = vor.u32 %v4849_v19, %v4847_v31  ;;  %v32030_v21 = vld [vmem:[#allocation51_spill] sm:$0xff]  ;;  %v4870_v19 = vshrl.u32 %v25400_v39, 16 }
 0x320   :  { %v25517_v57 = vcombine.low %v32030_v21, %v32029_v38  ;;  %v32033_v38 = vld [vmem:[#allocation55_spill] sm:$0xff] }
 0x321   :  { %20443 = vmatmul.mubr.msk.bf16.gmra.mrb[48].mxu0 %vm440_vm3, %v25334_v6  ;;  %v18527_v6 = vld [vmem:[%s31295_s3 + $0xc] sm:$0x3]  ;;  %v18436_v21 = vcombine.low %v32033_v38, %v32033_v38 }
 0x322   :  { %20446 = vmatprep.mubr.msk.bf16.mxu0 %vm440_vm3, %v25341_v49  ;;  %v25488_v18 = vand.u32 %v18527_v6, %v23514_v5  ;;  %v25495_v49 = vcombine.low %v32026_v8, %v32025_v20  ;;  %v4859_v6 = vshll.u32 %v25385_v4, 16  ;;  %v25520_v20 = vsel %vm4649_vm6, %v4851_v1, %v4854_v46  ;;  %v32031_v8 = vld [vmem:[#allocation54_spill] sm:$0xff] }
 0x323   :  { %v4875_v1 = vrot.slane %v4873_v34, 1 }
 0x324   :  { %20572 = vmatprep.subr.bf16.mxu0 %v25488_v18  ;;  %v4861_v54 = vrot.slane %v4859_v6, 1 }
 0x329   :  { %20447 = vmatmul.mubr.msk.bf16.gmra.mrb[52].mxu0 %vm440_vm3, %v25356_v47  ;;  %v25505_v47 = vsel %vm4649_vm6, %v4844_v40, %v4847_v31  ;;  %v32032_v40 = vld [vmem:[#allocation53_spill] sm:$0xff]  ;;  %v4866_v31 = vshll.u32 %v25400_v39, 16 }
 0x32a   :  { %20450 = vmatprep.mubr.msk.bf16.mxu0 %vm440_vm3, %v25363_v52  ;;  %v4858_v52 = vor.u32 %v4856_v56, %v4854_v46  ;;  %v25524_v35 = vcombine.low %v32032_v40, %v32031_v8  ;;  %v4663_v46 = vshll.u32 %v25140_v0, 16  ;;  %v4660_v8 = vshrl.u32 %v24331_v2, 16 }
 0x32b   :  { %v4868_v6 = vrot.slane %v4866_v31, 1  ;;  %v4667_v40 = vshrl.u32 %v25140_v0, 16  ;;  %v4887_v2 = vshll.u32 %v25429_v9, 16 }
 0x32c   :  { %v25527_v43 = vsel %vm4649_vm6, %v4858_v52, %v4861_v54  ;;  %v4665_v5 = vrot.slane %v4663_v46, 1  ;;  %v4662_v31 = vor.u32 %v4660_v8, %v25207_v17 }
 0x32e   :  { %v4669_v0 = vor.u32 %v4667_v40, %v4665_v5 }
 0x330   :  { %v4673_v17 = vsel %vm4649_vm6, %v4669_v0, %v25225_v45 }
 0x331   :  { %20451 = vmatmul.mubr.msk.bf16.gmra.mrb[56].mxu0 %vm440_vm3, %v25378_v7  ;;  %v4863_v7 = vshrl.u32 %v25385_v4, 16 }
 0x332   :  { %20454 = vmatprep.mubr.msk.bf16.mxu0 %vm440_vm3, %v25385_v4  ;;  %v4872_v4 = vor.u32 %v4870_v19, %v4868_v6  ;;  %v4884_v19 = vshrl.u32 %v25422_v55, 16 }
 0x333   :  { %v4865_v56 = vor.u32 %v4863_v7, %v4861_v54  ;;  %v4877_v54 = vshrl.u32 %v25407_v42, 16  ;;  %v4880_v7 = vshll.u32 %v25422_v55, 16 }
 0x335   :  { %v25541_v52 = vsel %vm4649_vm6, %v4865_v56, %v4868_v6  ;;  %v4879_v34 = vor.u32 %v4877_v54, %v4875_v1  ;;  %v4882_v56 = vrot.slane %v4880_v7, 1  ;;  %v4889_v6 = vrot.slane %v4887_v2, 1 }
 0x337   :  { %v25557_v46 = vsel %vm4649_vm6, %v4879_v34, %v4882_v56  ;;  %v4886_v38 = vor.u32 %v4884_v19, %v4882_v56 }
 0x339   :  { %20455 = vmatmul.mubr.msk.bf16.gmra.mrb[60].mxu0 %vm440_vm3, %v25400_v39  ;;  %v25546_v39 = vsel %vm4649_vm6, %v4872_v4, %v4875_v1  ;;  %v4898_v1 = vshrl.u32 %v25444_v61, 16 }
 0x33a   :  { %20458 = vmatprep.mubr.msk.bf16.mxu0 %vm440_vm3, %v25407_v42  ;;  %v4666_v42 = vsel %vm4649_vm6, %v4662_v31, %v4665_v5  ;;  %v4901_v5 = vshll.u32 %v25451_v36, 16  ;;  %v4915_v31 = vshll.u32 %v25473_v22, 16 }
 0x33c   :  { %v4903_v45 = vrot.slane %v4901_v5, 1  ;;  %v4917_v0 = vrot.slane %v4915_v31, 1 }
 0x341   :  { %20459 = vmatmul.mubr.msk.bf16.gmra.mrb[64].mxu0 %vm440_vm3, %v25422_v55  ;;  %v4894_v55 = vshll.u32 %v25444_v61, 16 }
 0x342   :  { %20462 = vmatprep.mubr.msk.bf16.mxu0 %vm440_vm3, %v25429_v9 }
 0x343   :  { %v4896_v8 = vrot.slane %v4894_v55, 1 }
 0x345   :  { %v4900_v54 = vor.u32 %v4898_v1, %v4896_v8 }
 0x347   :  { %v25576_v7 = vsel %vm4649_vm6, %v4900_v54, %v4903_v45 }
 0x349   :  { %20463 = vmatmul.mubr.msk.bf16.gmra.mrb[68].mxu0 %vm440_vm3, %v25444_v61  ;;  %v4912_v61 = vshrl.u32 %v25466_v32, 16 }
 0x34a   :  { %20466 = vmatprep.mubr.msk.bf16.mxu0 %vm440_vm3, %v25451_v36 }
 0x351   :  { %20467 = vmatmul.mubr.msk.bf16.gmra.mrb[72].mxu0 %vm440_vm3, %v25466_v32 }
 0x352   :  { %20470 = vmatprep.mubr.msk.bf16.mxu0 %vm440_vm3, %v25473_v22 }
 0x359   :  { %20471 = vmatmul.mubr.msk.bf16.gmra.mrb[76].mxu0 %vm440_vm3, %v25495_v49 }
 0x35a   :  { %20474 = vmatprep.mubr.msk.bf16.mxu0 %vm440_vm3, %v25502_v58 }
 0x361   :  { %20475 = vmatmul.mubr.msk.bf16.gmra.mrb[80].mxu0 %vm440_vm3, %v25517_v57 }
 0x362   :  { %20478 = vmatprep.mubr.msk.bf16.mxu0 %vm440_vm3, %v25524_v35 }
 0x369   :  { %20479 = vmatmul.mubr.msk.bf16.gmra.mrb[96].mxu0 %vm440_vm3, %v18436_v21  ;;  %v25563_v21 = vsel %vm4649_vm6, %v4886_v38, %v4889_v6 }
 0x36a   :  { %20484 = vmatprep.mubr.msk.bf16.mxu0 %vm440_vm3, %v25219_v12  ;;  %v4891_v12 = vshrl.u32 %v25429_v9, 16  ;;  %v4905_v9 = vshrl.u32 %v25451_v36, 16  ;;  %v4922_v36 = vshll.u32 %v25495_v49, 16 }
 0x36c   :  { %v4893_v4 = vor.u32 %v4891_v12, %v4889_v6  ;;  %v4907_v19 = vor.u32 %v4905_v9, %v4903_v45 }
 0x36e   :  { %v25573_v40 = vsel %vm4649_vm6, %v4893_v4, %v4896_v8 }
 0x371   :  { %20485 = vmatmul.mubr.msk.bf16.vlgmr.msra.gmra.mrb[0].mxu0 %vm440_vm3, %v4666_v42  ;;  %v4924_v42 = vrot.slane %v4922_v36, 1 }
 0x372   :  { %20488 = vmatprep.mubr.msk.bf16.mxu0 %vm440_vm3, %v4673_v17  ;;  %20573 = vmatpush3.bf16.msra.mxu0 %v25488_v18  ;;  %v4908_v18 = vshll.u32 %v25466_v32, 16  ;;  %v4929_v32 = vshll.u32 %v25502_v58, 16 }
 0x374   :  { %v4910_v2 = vrot.slane %v4908_v18, 1  ;;  %v4931_v17 = vrot.slane %v4929_v32, 1 }
 0x376   :  { %v4911_v34 = vsel %vm4649_vm6, %v4907_v19, %v4910_v2  ;;  %v4914_v56 = vor.u32 %v4912_v61, %v4910_v2 }
 0x378   :  { %v4918_v6 = vsel %vm4649_vm6, %v4914_v56, %v4917_v0 }
 0x379   :  { %20489 = vmatmul.mubr.msk.bf16.gmra.mrb[4].mxu0 %vm440_vm3, %v25237_v15  ;;  %v4919_v15 = vshrl.u32 %v25473_v22, 16  ;;  %v4936_v22 = vshll.u32 %v25517_v57, 16 }
 0x37a   :  { %20492 = vmatprep.mubr.msk.bf16.mxu0 %vm440_vm3, %v25249_v29  ;;  %v4926_v29 = vshrl.u32 %v25495_v49, 16  ;;  %v4943_v49 = vshll.u32 %v25524_v35, 16 }
 0x37b   :  { %v4921_v38 = vor.u32 %v4919_v15, %v4917_v0  ;;  %v4938_v4 = vrot.slane %v4936_v22, 1  ;;  %v25737_v0 = vld [vmem:[%s31292_s0 + $0x3c] sm:$0xff]  }
 0x37c   :  { %v4928_v55 = vor.u32 %v4926_v29, %v4924_v42  ;;  %v4945_v45 = vrot.slane %v4943_v49, 1  ;;  %v31497_v29 = vshll.u32 %v25737_v0, 16  ;;  %v31499_v22 = vshrl.u32 %v25737_v0, 16 }
 0x37d   :  { %v4925_v12 = vsel %vm4649_vm6, %v4921_v38, %v4924_v42  ;;  %v25751_v38 = vld [vmem:[%s31292_s0 + $0x44] sm:$0xff]  }
 0x37e   :  { %v4932_v1 = vsel %vm4649_vm6, %v4928_v55, %v4931_v17  ;;  %v25763_v55 = vld [vmem:[%s31292_s0 + $0x4c] sm:$0xff]   ;;  %v31493_v49 = vshrl.u32 %v25751_v38, 16 }
 0x381   :  { %20493 = vmatmul.mubr.msk.bf16.gmra.mrb[8].mxu0 %vm440_vm3, %v25256_v63  ;;  %v4933_v63 = vshrl.u32 %v25502_v58, 16 }
 0x382   :  { %20496 = vmatprep.mubr.msk.bf16.mxu0 %vm440_vm3, %v25271_v50  ;;  %v4940_v50 = vshrl.u32 %v25517_v57, 16 }
 0x383   :  { %v4935_v5 = vor.u32 %v4933_v63, %v4931_v17 }
 0x384   :  { %v4942_v58 = vor.u32 %v4940_v50, %v4938_v4 }
 0x386   :  { %v4946_v57 = vsel %vm4649_vm6, %v4942_v58, %v4945_v45  ;;  %v25789_v58 = vld [vmem:[%s31292_s0 + $0x5c] sm:$0xff]  }
 0x389   :  { %20497 = vmatmul.mubr.msk.bf16.gmra.mrb[12].mxu0 %vm440_vm3, %v25278_v25  ;;  %v4939_v25 = vsel %vm4649_vm6, %v4935_v5, %v4938_v4  ;;  %v31486_v5 = vshll.u32 %v25763_v55, 16 }
 0x38a   :  { %20500 = vmatprep.mubr.msk.bf16.mxu0 %vm440_vm3, %v25297_v30 }
 0x38c   :  { %v20390_v8 = vpop.f32.mrb[92].mxu0 }
 0x38d   :  { %v25607_v54 = vadd.f32 %v20390_v8, %v25174_v14  ;;  %v3890_v9 = vpop.f32.mrb[93].mxu0  ;;  %v18616_v14 = vld [vmem:[%s31295_s3 + $0xe] sm:$0x3]  ;;  %v25777_v8 = vld [vmem:[%s31292_s0 + $0x54] sm:$0xff]  }
 0x38e   :  { %v25611_v18 = vadd.f32 %v3890_v9, %v25181_v53  ;;  %v20391_v61 = vpop.f32.mrb[94].mxu0  ;;  %v32034_v53 = vld [vmem:[#allocation7_spill] sm:$0xff] }
 0x38f   :  { %v3893_v30 = vpop.f32.mrb[95].mxu0  ;;  %v31480_v61 = vshll.u32 %v25777_v8, 16 }
 0x390   :  { %v25615_v31 = vadd.f32 %v3893_v30, %v25188_v33  ;;  %v7055_v33 = vand.u32 %v18616_v14, %v32034_v53 }
 0x391   :  { %20501 = vmatmul.mubr.msk.bf16.gmra.mrb[16].mxu0 %vm440_vm3, %v25300_v10  ;;  %v23258_v10 = vld [vmem:[%s31292_s0 + $0x164] ss:$0 sps:$4 sm:$0x77]  }
 0x392   :  { %20504 = vmatprep.mubr.msk.bf16.mxu0 %vm440_vm3, %v25315_v59  ;;  %v5564_v59 = vld [vmem:[%s31292_s0 + $0x14] sm:$0xf]  ;;  %20662 = vmatprep.subr.bf16.mxu0 %v7055_v33 }
 0x399   :  { %20505 = vmatmul.mubr.msk.bf16.gmra.mrb[20].mxu0 %vm440_vm3, %v25322_v51  ;;  %v25687_v51 = vld [vmem:[%s31292_s0 + $0x18] sm:$0xf] }
 0x39a   :  { %20508 = vmatprep.mubr.msk.bf16.mxu0 %vm440_vm3, %v25337_v60  ;;  %v4947_v60 = vshrl.u32 %v25524_v35, 16 }
 0x3a1   :  { %20509 = vmatmul.mubr.msk.bf16.gmra.mrb[24].mxu0 %vm440_vm3, %v25344_v48  ;;  %v4951_v48 = vshll.u32 %v23258_v10, 16 }
 0x3a2   :  { %20512 = vmatprep.mubr.msk.bf16.mxu0 %vm440_vm3, %v25359_v37  ;;  %v18528_v37 = vcombine.low %v5564_v59, %v25687_v51  ;;  %v5937_v59 = vrot.slane %v31480_v61, 1 }
 0x3a9   :  { %20513 = vmatmul.mubr.msk.bf16.gmra.mrb[28].mxu0 %vm440_vm3, %v25366_v27  ;;  %v4949_v27 = vor.u32 %v4947_v60, %v4945_v45  ;;  %v25803_v60 = vld [vmem:[%s31292_s0 + $0x64] sm:$0xff]  }
 0x3aa   :  { %20516 = vmatprep.mubr.msk.bf16.mxu0 %vm440_vm3, %v25381_v62  ;;  %v4953_v62 = vrot.slane %v4951_v48, 1 }
 0x3b1   :  { %20517 = vmatmul.mubr.msk.bf16.gmra.mrb[32].mxu0 %vm440_vm3, %v25388_v11  ;;  %v25696_v11 = vld [vmem:[%s31292_s0 + $0x1c] sm:$0xff]  }
 0x3b2   :  { %20520 = vmatprep.mubr.msk.bf16.mxu0 %vm440_vm3, %v25403_v44  ;;  %v5874_v44 = vshll.u32 %v18528_v37, 16 }
 0x3b9   :  { %20521 = vmatmul.mubr.msk.bf16.gmra.mrb[36].mxu0 %vm440_vm3, %v25410_v16  ;;  %v4954_v16 = vsel %vm4649_vm6, %v4949_v27, %v4953_v62 }
 0x3ba   :  { %20524 = vmatprep.mubr.msk.bf16.mxu0 %vm440_vm3, %v25425_v13  ;;  %v5872_v13 = vshrl.u32 %v18528_v37, 16 }
 0x3c1   :  { %20525 = vmatmul.mubr.msk.bf16.gmra.mrb[40].mxu0 %vm440_vm3, %v25432_v26  ;;  %v5876_v26 = vrot.slane %v5874_v44, 1  ;;  %v31468_v44 = vshll.u32 %v25803_v60, 16 }
 0x3c2   :  { %20528 = vmatprep.mubr.msk.bf16.mxu0 %vm440_vm3, %v25447_v24  ;;  %v5879_v24 = vshll.u32 %v25696_v11, 16 }
 0x3c9   :  { %20529 = vmatmul.mubr.msk.bf16.gmra.mrb[44].mxu0 %vm440_vm3, %v25454_v28  ;;  %v4955_v28 = vshrl.u32 %v23258_v10, 16  ;;  %v31474_v10 = vshll.u32 %v25789_v58, 16 }
 0x3ca   :  { %20532 = vmatprep.mubr.msk.bf16.mxu0 %vm440_vm3, %v25469_v3  ;;  %v25704_v3 = vld [vmem:[%s31292_s0 + $0x24] sm:$0xff]  }
 0x3cb   :  { %v31512_v35 = vshll.u32 %v25704_v3, 16  ;;  %v5945_v27 = vrot.slane %v31474_v10, 1 }
 0x3d1   :  { %20533 = vmatmul.mubr.msk.bf16.gmra.mrb[48].mxu0 %vm440_vm3, %v25476_v41  ;;  %v5877_v41 = vor.u32 %v5876_v26, %v5872_v13  ;;  %v31475_v13 = vshrl.u32 %v25789_v58, 16 }
 0x3d2   :  { %20536 = vmatprep.mubr.msk.bf16.mxu0 %vm440_vm3, %v25498_v23  ;;  %v5881_v23 = vrot.slane %v5879_v24, 1 }
 0x3d9   :  { %20537 = vmatmul.mubr.msk.bf16.gmra.mrb[52].mxu0 %vm440_vm3, %v25505_v47  ;;  %v25712_v47 = vld [vmem:[%s31292_s0 + $0x2c] sm:$0xff]  }
 0x3da   :  { %20540 = vmatprep.mubr.msk.bf16.mxu0 %vm440_vm3, %v25520_v20  ;;  %v4957_v20 = vor.u32 %v4955_v28, %v4953_v62  ;;  %v25815_v62 = vld [vmem:[%s31292_s0 + $0x6c] sm:$0xff]   ;;  %v31469_v28 = vshrl.u32 %v25803_v60, 16 }
 0x3e1   :  { %20541 = vmatmul.mubr.msk.bf16.gmra.mrb[56].mxu0 %vm440_vm3, %v25527_v43  ;;  %v5883_v43 = vshrl.u32 %v25696_v11, 16 }
 0x3e2   :  { %20544 = vmatprep.mubr.msk.bf16.mxu0 %vm440_vm3, %v25541_v52  ;;  %v5882_v52 = vsel %vm4649_vm6, %v5877_v41, %v5881_v23  ;;  %v31462_v41 = vshll.u32 %v25815_v62, 16 }
 0x3e9   :  { %20545 = vmatmul.mubr.msk.bf16.gmra.mrb[60].mxu0 %vm440_vm3, %v25546_v39  ;;  %v31516_v39 = vshrl.u32 %v25704_v3, 16 }
 0x3ea   :  { %20548 = vmatprep.mubr.msk.bf16.mxu0 %vm440_vm3, %v25557_v46  ;;  %v31509_v46 = vshll.u32 %v25712_v47, 16 }
 0x3ec   :  { %v5897_v2 = vrot.slane %v31509_v46, 1 }
 0x3f1   :  { %20549 = vmatmul.mubr.msk.bf16.gmra.mrb[64].mxu0 %vm440_vm3, %v25563_v21  ;;  %v5889_v21 = vrot.slane %v31512_v35, 1  ;;  %v26263_v35 = vld [vmem:[%s31292_s0 + $0x16c] ss:$0 sps:$4 sm:$0x77]  }
 0x3f2   :  { %20552 = vmatprep.mubr.msk.bf16.mxu0 %vm440_vm3, %v25573_v40  ;;  %v25725_v40 = vld [vmem:[%s31292_s0 + $0x34] sm:$0xff]  }
 0x3f3   :  { %v5893_v19 = vor.u32 %v31516_v39, %v5889_v21  ;;  %v31506_v36 = vshrl.u32 %v25725_v40, 16  ;;  %v8427_v39 = vld [vmem:[%s31293_s1 + $0x38] sm:$0xff] }
 0x3f5   :  { %v5898_v15 = vsel %vm4649_vm6, %v5893_v19, %v5897_v2  ;;  %v25841_v19 = vld [vmem:[%s31292_s0 + $0x7c] sm:$0xff]  }
 0x3f9   :  { %20553 = vmatmul.mubr.msk.bf16.gmra.mrb[68].mxu0 %vm440_vm3, %v25576_v7  ;;  %v5885_v7 = vor.u32 %v5883_v43, %v5881_v23  ;;  %v5953_v23 = vrot.slane %v31468_v44, 1 }
 0x3fa   :  { %20556 = vmatprep.mubr.msk.bf16.mxu0 %vm440_vm3, %v4911_v34  ;;  %v31505_v34 = vshll.u32 %v25725_v40, 16 }
 0x3fb   :  { %v5890_v56 = vsel %vm4649_vm6, %v5885_v7, %v5889_v21  ;;  %v5957_v21 = vor.u32 %v31469_v28, %v5953_v23  ;;  %v5961_v7 = vrot.slane %v31462_v41, 1 }
 0x3fc   :  { %v5905_v32 = vrot.slane %v31505_v34, 1 }
 0x3fe   :  { %v5909_v17 = vor.u32 %v31506_v36, %v5905_v32 }
 0x401   :  { %20557 = vmatmul.mubr.msk.bf16.gmra.mrb[72].mxu0 %vm440_vm3, %v4918_v6  ;;  %v31510_v6 = vshrl.u32 %v25712_v47, 16 }
 0x402   :  { %20560 = vmatprep.mubr.msk.bf16.mxu0 %vm440_vm3, %v4925_v12  ;;  %v5913_v12 = vrot.slane %v31497_v29, 1  ;;  %v26188_v29 = vld [vmem:[%s31292_s0 + $0x14c] sm:$0xff]  }
 0x403   :  { %v5901_v42 = vor.u32 %v31510_v6, %v5897_v2 }
 0x404   :  { %v5914_v50 = vsel %vm4649_vm6, %v5909_v17, %v5913_v12  ;;  %v5917_v45 = vor.u32 %v31499_v22, %v5913_v12 }
 0x405   :  { %v5906_v63 = vsel %vm4649_vm6, %v5901_v42, %v5905_v32 }
 0x409   :  { %20561 = vmatmul.mubr.msk.bf16.gmra.mrb[76].mxu0 %vm440_vm3, %v4932_v1  ;;  %v31492_v1 = vshll.u32 %v25751_v38, 16 }
 0x40a   :  { %20564 = vmatprep.mubr.msk.bf16.mxu0 %vm440_vm3, %v4939_v25  ;;  %v5929_v25 = vrot.slane %v31486_v5, 1 }
 0x40b   :  { %v5921_v4 = vrot.slane %v31492_v1, 1 }
 0x40d   :  { %v5925_v9 = vor.u32 %v31493_v49, %v5921_v4  ;;  %v5922_v30 = vsel %vm4649_vm6, %v5917_v45, %v5921_v4  ;;  %v5962_v4 = vsel %vm4649_vm6, %v5957_v21, %v5961_v7  ;;  %v25890_v21 = vld [vmem:[%s31292_s0 + $0x94] sm:$0xff]  }
 0x40f   :  { %v5930_v14 = vsel %vm4649_vm6, %v5925_v9, %v5929_v25  ;;  %v31450_v9 = vshll.u32 %v25841_v19, 16 }
 0x411   :  { %20565 = vmatmul.mubr.msk.bf16.gmra.mrb[80].mxu0 %vm440_vm3, %v4946_v57  ;;  %v31487_v57 = vshrl.u32 %v25763_v55, 16 }
 0x412   :  { %20568 = vmatprep.mubr.msk.bf16.mxu0 %vm440_vm3, %v4954_v16 }
 0x413   :  { %v5933_v48 = vor.u32 %v31487_v57, %v5929_v25  ;;  %v25864_v25 = vld [vmem:[%s31292_s0 + $0x84] sm:$0xff]  }
 0x415   :  { %v5938_v16 = vsel %vm4649_vm6, %v5933_v48, %v5937_v59  ;;  %v31444_v48 = vshll.u32 %v25864_v25, 16 }
 0x419   :  { %20569 = vmatmul.mubr.msk.bf16.gmra.mrb[100].mxu0 %vm440_vm3, %v4957_v20  ;;  %v25829_v20 = vld [vmem:[%s31292_s0 + $0x74] sm:$0xff]  }
 0x41a   :  { %20574 = vmatprep.mubr.msk.bf16.mxu0 %vm440_vm3, %v5882_v52  ;;  %v5949_v52 = vor.u32 %v31475_v13, %v5945_v27  ;;  %v31456_v32 = vshll.u32 %v25829_v20, 16  ;;  %v31457_v45 = vshrl.u32 %v25829_v20, 16 }
 0x41c   :  { %v5954_v12 = vsel %vm4649_vm6, %v5949_v52, %v5953_v23  ;;  %v5985_v52 = vrot.slane %v31444_v48, 1 }
 0x421   :  { %20575 = vmatmul.mubr.msk.bf16.vlgmr.msra.gmra.mrb[0].mxu0 %vm440_vm3, %v5890_v56 }
 0x422   :  { %20578 = vmatprep.mubr.msk.bf16.mxu0 %vm440_vm3, %v5898_v15  ;;  %20663 = vmatpush3.bf16.msra.mxu0 %v7055_v33  ;;  %v31481_v33 = vshrl.u32 %v25777_v8, 16 }
 0x424   :  { %v5941_v37 = vor.u32 %v31481_v33, %v5937_v59  ;;  %v25876_v59 = vld [vmem:[%s31292_s0 + $0x8c] sm:$0xff]  }
 0x425   :  { %v31439_v23 = vshll.u32 %v25876_v59, 16 }
 0x426   :  { %v5946_v26 = vsel %vm4649_vm6, %v5941_v37, %v5945_v27  ;;  %v31451_v27 = vshrl.u32 %v25841_v19, 16 }
 0x429   :  { %20579 = vmatmul.mubr.msk.bf16.gmra.mrb[4].mxu0 %vm440_vm3, %v5906_v63  ;;  %v31463_v63 = vshrl.u32 %v25815_v62, 16 }
 0x42a   :  { %20582 = vmatprep.mubr.msk.bf16.mxu0 %vm440_vm3, %v5914_v50 }
 0x431   :  { %20583 = vmatmul.mubr.msk.bf16.gmra.mrb[8].mxu0 %vm440_vm3, %v5922_v30  ;;  %v5965_v30 = vor.u32 %v31463_v63, %v5961_v7 }
 0x432   :  { %20586 = vmatprep.mubr.msk.bf16.mxu0 %vm440_vm3, %v5930_v14 }
 0x439   :  { %20587 = vmatmul.mubr.msk.bf16.gmra.mrb[12].mxu0 %vm440_vm3, %v5938_v16 }
 0x43a   :  { %20590 = vmatprep.mubr.msk.bf16.mxu0 %vm440_vm3, %v5946_v26  ;;  %v31445_v26 = vshrl.u32 %v25864_v25, 16 }
 0x43c   :  { %v20480_v2 = vpop.f32.mrb[96].mxu0 }
 0x43d   :  { %v25844_v56 = vadd.f32 %v20480_v2, %v25607_v54  ;;  %v4542_v15 = vpop.f32.mrb[97].mxu0  ;;  %v5989_v2 = vor.u32 %v31445_v26, %v5985_v52 }
 0x43e   :  { %v25848_v42 = vadd.f32 %v4542_v15, %v25611_v18  ;;  %v20481_v17 = vpop.f32.mrb[98].mxu0  ;;  %v5969_v18 = vrot.slane %v31456_v32, 1  ;;  %v5993_v15 = vrot.slane %v31439_v23, 1 }
 0x43f   :  { %v4545_v50 = vpop.f32.mrb[99].mxu0  ;;  %v25902_v17 = vld [vmem:[%s31292_s0 + $0x9c] sm:$0xff]  }
 0x440   :  { %v25856_v54 = vadd.f32 %v4545_v50, %v25615_v31  ;;  %v5973_v14 = vor.u32 %v31457_v45, %v5969_v18  ;;  %v5977_v31 = vrot.slane %v31450_v9, 1  ;;  %v5970_v37 = vsel %vm4649_vm6, %v5965_v30, %v5969_v18 }
 0x441   :  { %20591 = vmatmul.mubr.msk.bf16.gmra.mrb[16].mxu0 %vm440_vm3, %v5954_v12  ;;  %v31438_v12 = vshll.u32 %v25890_v21, 16  ;;  %v5994_v18 = vsel %vm4649_vm6, %v5989_v2, %v5993_v15  ;;  %v31440_v30 = vshrl.u32 %v25890_v21, 16  ;;  %v25928_v2 = vld [vmem:[%s31292_s0 + $0xac] sm:$0xff]  }
 0x442   :  { %20594 = vmatprep.mubr.msk.bf16.mxu0 %vm440_vm3, %v5962_v4  ;;  %v5978_v16 = vsel %vm4649_vm6, %v5973_v14, %v5977_v31  ;;  %v5981_v7 = vor.u32 %v31451_v27, %v5977_v31  ;;  %v31442_v4 = vshrl.u32 %v25876_v59, 16  ;;  %v31441_v14 = vshll.u32 %v25902_v17, 16 }
 0x443   :  { %v6001_v31 = vrot.slane %v31438_v12, 1 }
 0x444   :  { %v5986_v50 = vsel %vm4649_vm6, %v5981_v7, %v5985_v52  ;;  %v6009_v7 = vrot.slane %v31441_v14, 1 }
 0x445   :  { %v6005_v52 = vor.u32 %v31440_v30, %v6001_v31  ;;  %v31447_v30 = vshll.u32 %v25928_v2, 16 }
 0x447   :  { %v6010_v23 = vsel %vm4649_vm6, %v6005_v52, %v6009_v7  ;;  %v6025_v52 = vrot.slane %v31447_v30, 1 }
 0x449   :  { %20595 = vmatmul.mubr.msk.bf16.gmra.mrb[20].mxu0 %vm440_vm3, %v5970_v37  ;;  %v25916_v37 = vld [vmem:[%s31292_s0 + $0xa4] sm:$0xff]  }
 0x44a   :  { %20598 = vmatprep.mubr.msk.bf16.mxu0 %vm440_vm3, %v5978_v16  ;;  %v5997_v16 = vor.u32 %v31442_v4, %v5993_v15  ;;  %v31446_v15 = vshrl.u32 %v25916_v37, 16  ;;  %v25942_v4 = vld [vmem:[%s31292_s0 + $0xb4] sm:$0xff]  }
 0x44c   :  { %v6002_v12 = vsel %vm4649_vm6, %v5997_v16, %v6001_v31 }
 0x451   :  { %20599 = vmatmul.mubr.msk.bf16.gmra.mrb[24].mxu0 %vm440_vm3, %v5986_v50  ;;  %v31443_v50 = vshll.u32 %v25916_v37, 16 }
 0x452   :  { %20602 = vmatprep.mubr.msk.bf16.mxu0 %vm440_vm3, %v5994_v18  ;;  %v31448_v18 = vshrl.u32 %v25902_v17, 16 }
 0x453   :  { %v6017_v14 = vrot.slane %v31443_v50, 1  ;;  %v31449_v50 = vshll.u32 %v25942_v4, 16 }
 0x454   :  { %v6013_v31 = vor.u32 %v31448_v18, %v6009_v7  ;;  %v31452_v7 = vshrl.u32 %v25942_v4, 16  ;;  %v25968_v18 = vld [vmem:[%s31292_s0 + $0xc4] sm:$0xff]  }
 0x455   :  { %v6021_v16 = vor.u32 %v31446_v15, %v6017_v14  ;;  %v6033_v30 = vrot.slane %v31449_v50, 1  ;;  %v31455_v50 = vshll.u32 %v25968_v18, 16 }
 0x456   :  { %v6018_v48 = vsel %vm4649_vm6, %v6013_v31, %v6017_v14 }
 0x457   :  { %v6026_v26 = vsel %vm4649_vm6, %v6021_v16, %v6025_v52  ;;  %v6037_v31 = vor.u32 %v31452_v7, %v6033_v30 }
 0x459   :  { %20603 = vmatmul.mubr.msk.bf16.gmra.mrb[28].mxu0 %vm440_vm3, %v6002_v12  ;;  %v25954_v12 = vld [vmem:[%s31292_s0 + $0xbc] sm:$0xff]  }
 0x45a   :  { %20606 = vmatprep.mubr.msk.bf16.mxu0 %vm440_vm3, %v6010_v23  ;;  %v31454_v23 = vshrl.u32 %v25928_v2, 16  ;;  %v31453_v15 = vshll.u32 %v25954_v12, 16 }
 0x45c   :  { %v6029_v14 = vor.u32 %v31454_v23, %v6025_v52  ;;  %v6041_v16 = vrot.slane %v31453_v15, 1  ;;  %v31458_v52 = vshrl.u32 %v25968_v18, 16  ;;  %v6049_v15 = vrot.slane %v31455_v50, 1  ;;  %v25994_v23 = vld [vmem:[%s31292_s0 + $0xd4] sm:$0xff]  }
 0x45d   :  { %v31461_v50 = vshll.u32 %v25994_v23, 16 }
 0x45e   :  { %v6034_v9 = vsel %vm4649_vm6, %v6029_v14, %v6033_v30  ;;  %v6042_v27 = vsel %vm4649_vm6, %v6037_v31, %v6041_v16  ;;  %v6053_v14 = vor.u32 %v31458_v52, %v6049_v15 }
 0x461   :  { %20607 = vmatmul.mubr.msk.bf16.gmra.mrb[32].mxu0 %vm440_vm3, %v6018_v48  ;;  %v25980_v48 = vld [vmem:[%s31292_s0 + $0xcc] sm:$0xff]  }
 0x462   :  { %20610 = vmatprep.mubr.msk.bf16.mxu0 %vm440_vm3, %v6026_v26  ;;  %v31460_v26 = vshrl.u32 %v25954_v12, 16  ;;  %v31459_v7 = vshll.u32 %v25980_v48, 16 }
 0x464   :  { %v6045_v30 = vor.u32 %v31460_v26, %v6041_v16  ;;  %v6057_v31 = vrot.slane %v31459_v7, 1  ;;  %v31464_v16 = vshrl.u32 %v25994_v23, 16  ;;  %v6065_v7 = vrot.slane %v31461_v50, 1  ;;  %v26020_v26 = vld [vmem:[%s31292_s0 + $0xe4] sm:$0xff]  }
 0x465   :  { %v31467_v50 = vshll.u32 %v26020_v26, 16 }
 0x466   :  { %v6050_v32 = vsel %vm4649_vm6, %v6045_v30, %v6049_v15  ;;  %v6058_v45 = vsel %vm4649_vm6, %v6053_v14, %v6057_v31  ;;  %v6069_v30 = vor.u32 %v31464_v16, %v6065_v7 }
 0x469   :  { %20611 = vmatmul.mubr.msk.bf16.gmra.mrb[36].mxu0 %vm440_vm3, %v6034_v9  ;;  %v26006_v9 = vld [vmem:[%s31292_s0 + $0xdc] sm:$0xff]  }
 0x46a   :  { %20614 = vmatprep.mubr.msk.bf16.mxu0 %vm440_vm3, %v6042_v27  ;;  %v31466_v27 = vshrl.u32 %v25980_v48, 16  ;;  %v31465_v52 = vshll.u32 %v26006_v9, 16 }
 0x46c   :  { %v6061_v15 = vor.u32 %v31466_v27, %v6057_v31  ;;  %v6073_v14 = vrot.slane %v31465_v52, 1  ;;  %v31470_v31 = vshrl.u32 %v26020_v26, 16  ;;  %v6081_v52 = vrot.slane %v31467_v50, 1  ;;  %v26046_v27 = vld [vmem:[%s31292_s0 + $0xf4] sm:$0xff]  }
 0x46d   :  { %v31473_v50 = vshll.u32 %v26046_v27, 16 }
 0x46e   :  { %v6066_v41 = vsel %vm4649_vm6, %v6061_v15, %v6065_v7  ;;  %v6074_v63 = vsel %vm4649_vm6, %v6069_v30, %v6073_v14  ;;  %v6085_v15 = vor.u32 %v31470_v31, %v6081_v52 }
 0x471   :  { %20615 = vmatmul.mubr.msk.bf16.gmra.mrb[40].mxu0 %vm440_vm3, %v6050_v32  ;;  %v26032_v32 = vld [vmem:[%s31292_s0 + $0xec] sm:$0xff]  }
 0x472   :  { %20618 = vmatprep.mubr.msk.bf16.mxu0 %vm440_vm3, %v6058_v45  ;;  %v31472_v45 = vshrl.u32 %v26006_v9, 16  ;;  %v31471_v16 = vshll.u32 %v26032_v32, 16 }
 0x474   :  { %v6077_v7 = vor.u32 %v31472_v45, %v6073_v14  ;;  %v6089_v30 = vrot.slane %v31471_v16, 1  ;;  %v31476_v14 = vshrl.u32 %v26046_v27, 16  ;;  %v6097_v16 = vrot.slane %v31473_v50, 1  ;;  %v26072_v45 = vld [vmem:[%s31292_s0 + $0x104] sm:$0xff]  }
 0x475   :  { %v31479_v50 = vshll.u32 %v26072_v45, 16 }
 0x476   :  { %v6082_v44 = vsel %vm4649_vm6, %v6077_v7, %v6081_v52  ;;  %v6090_v28 = vsel %vm4649_vm6, %v6085_v15, %v6089_v30  ;;  %v6101_v7 = vor.u32 %v31476_v14, %v6097_v16 }
 0x479   :  { %20619 = vmatmul.mubr.msk.bf16.gmra.mrb[44].mxu0 %vm440_vm3, %v6066_v41  ;;  %v26058_v41 = vld [vmem:[%s31292_s0 + $0xfc] sm:$0xff]  }
 0x47a   :  { %20622 = vmatprep.mubr.msk.bf16.mxu0 %vm440_vm3, %v6074_v63  ;;  %v31478_v63 = vshrl.u32 %v26032_v32, 16  ;;  %v31477_v31 = vshll.u32 %v26058_v41, 16 }
 0x47c   :  { %v6093_v52 = vor.u32 %v31478_v63, %v6089_v30  ;;  %v6105_v15 = vrot.slane %v31477_v31, 1  ;;  %v31482_v30 = vshrl.u32 %v26072_v45, 16  ;;  %v6113_v31 = vrot.slane %v31479_v50, 1  ;;  %v26098_v63 = vld [vmem:[%s31292_s0 + $0x114] sm:$0xff]  }
 0x47d   :  { %v31485_v50 = vshll.u32 %v26098_v63, 16 }
 0x47e   :  { %v6098_v10 = vsel %vm4649_vm6, %v6093_v52, %v6097_v16  ;;  %v6106_v13 = vsel %vm4649_vm6, %v6101_v7, %v6105_v15  ;;  %v6117_v52 = vor.u32 %v31482_v30, %v6113_v31 }
 0x481   :  { %20623 = vmatmul.mubr.msk.bf16.gmra.mrb[48].mxu0 %vm440_vm3, %v6082_v44  ;;  %v26084_v44 = vld [vmem:[%s31292_s0 + $0x10c] sm:$0xff]  }
 0x482   :  { %20626 = vmatprep.mubr.msk.bf16.mxu0 %vm440_vm3, %v6090_v28  ;;  %v31484_v28 = vshrl.u32 %v26058_v41, 16  ;;  %v31483_v14 = vshll.u32 %v26084_v44, 16 }
 0x484   :  { %v6109_v16 = vor.u32 %v31484_v28, %v6105_v15  ;;  %v6121_v7 = vrot.slane %v31483_v14, 1  ;;  %v31488_v15 = vshrl.u32 %v26098_v63, 16  ;;  %v6129_v14 = vrot.slane %v31485_v50, 1  ;;  %v26124_v28 = vld [vmem:[%s31292_s0 + $0x124] sm:$0xff]  }
 0x485   :  { %v31491_v50 = vshll.u32 %v26124_v28, 16 }
 0x486   :  { %v6114_v61 = vsel %vm4649_vm6, %v6109_v16, %v6113_v31  ;;  %v6122_v33 = vsel %vm4649_vm6, %v6117_v52, %v6121_v7  ;;  %v6133_v16 = vor.u32 %v31488_v15, %v6129_v14 }
 0x489   :  { %20627 = vmatmul.mubr.msk.bf16.gmra.mrb[52].mxu0 %vm440_vm3, %v6098_v10  ;;  %v26110_v10 = vld [vmem:[%s31292_s0 + $0x11c] sm:$0xff]  }
 0x48a   :  { %20630 = vmatprep.mubr.msk.bf16.mxu0 %vm440_vm3, %v6106_v13  ;;  %v31490_v13 = vshrl.u32 %v26084_v44, 16  ;;  %v31489_v30 = vshll.u32 %v26110_v10, 16 }
 0x48c   :  { %v6125_v31 = vor.u32 %v31490_v13, %v6121_v7  ;;  %v6137_v52 = vrot.slane %v31489_v30, 1  ;;  %v31494_v7 = vshrl.u32 %v26124_v28, 16  ;;  %v6145_v30 = vrot.slane %v31491_v50, 1  ;;  %v26150_v13 = vld [vmem:[%s31292_s0 + $0x134] sm:$0xff]  }
 0x48d   :  { %v31498_v50 = vshll.u32 %v26150_v13, 16 }
 0x48e   :  { %v6130_v5 = vsel %vm4649_vm6, %v6125_v31, %v6129_v14  ;;  %v6138_v57 = vsel %vm4649_vm6, %v6133_v16, %v6137_v52  ;;  %v6149_v31 = vor.u32 %v31494_v7, %v6145_v30 }
 0x491   :  { %20631 = vmatmul.mubr.msk.bf16.gmra.mrb[56].mxu0 %vm440_vm3, %v6114_v61  ;;  %v26136_v61 = vld [vmem:[%s31292_s0 + $0x12c] sm:$0xff]  }
 0x492   :  { %20634 = vmatprep.mubr.msk.bf16.mxu0 %vm440_vm3, %v6122_v33  ;;  %v31496_v33 = vshrl.u32 %v26110_v10, 16  ;;  %v31495_v15 = vshll.u32 %v26136_v61, 16 }
 0x494   :  { %v6141_v14 = vor.u32 %v31496_v33, %v6137_v52  ;;  %v6153_v16 = vrot.slane %v31495_v15, 1  ;;  %v31500_v52 = vshrl.u32 %v26150_v13, 16  ;;  %v26173_v15 = vld [vmem:[%s31292_s0 + $0x144] sm:$0xff]   ;;  %v6161_v33 = vrot.slane %v31498_v50, 1 }
 0x496   :  { %v6146_v1 = vsel %vm4649_vm6, %v6141_v14, %v6145_v30  ;;  %v6154_v49 = vsel %vm4649_vm6, %v6149_v31, %v6153_v16  ;;  %v6165_v14 = vor.u32 %v31500_v52, %v6161_v33  ;;  %v31508_v52 = vshll.u32 %v26188_v29, 16 }
 0x499   :  { %20635 = vmatmul.mubr.msk.bf16.gmra.mrb[60].mxu0 %vm440_vm3, %v6130_v5  ;;  %v26162_v5 = vld [vmem:[%s31292_s0 + $0x13c] sm:$0xff]  }
 0x49a   :  { %20638 = vmatprep.mubr.msk.bf16.mxu0 %vm440_vm3, %v6138_v57  ;;  %v31502_v57 = vshrl.u32 %v26136_v61, 16  ;;  %v31501_v7 = vshll.u32 %v26162_v5, 16 }
 0x49c   :  { %v6157_v30 = vor.u32 %v31502_v57, %v6153_v16  ;;  %v6169_v31 = vrot.slane %v31501_v7, 1  ;;  %v31507_v16 = vshrl.u32 %v26173_v15, 16  ;;  %v26202_v57 = vld [vmem:[%s31292_s0 + $0x154] sm:$0xff]  }
 0x49d   :  { %v31511_v34 = vshll.u32 %v26202_v57, 16  ;;  %v31514_v46 = vshrl.u32 %v26202_v57, 16 }
 0x49e   :  { %v6162_v50 = vsel %vm4649_vm6, %v6157_v30, %v6161_v33  ;;  %v6170_v22 = vsel %vm4649_vm6, %v6165_v14, %v6169_v31  ;;  %v8420_v33 = vld [vmem:[%s31293_s1] sm:$0xff]  ;;  %v23435_v14 = vmov 0  }
 0x49f   :  { %23122 = vset.pattern.permute.xlu0 %v23435_v14  ;;  %9030 = vst.msk [vmem:[#allocation2] sm:$0xff] %vm9029_vm7, %v23435_v14  ;;  %9301 = vst.msk [vmem:[#allocation2 + $0x168] sm:$0xff] %vm9029_vm7, %v23435_v14  ;;  %23123 = vset.pattern.permute.xlu1 %v23435_v14 }
 0x4a0   :  { %9032 = vst.msk [vmem:[#allocation2 + $0x8] sm:$0xf] %vm9031_vm8, %v23435_v14  ;;  %8509 = vperm.xlu0 %23122, %v8420_v33   ;;  %v26236_v33 = vld [vmem:[%s31292_s0 + $0x164] sm:$0xff]  }
 0x4a1   :  { %20639 = vmatmul.mubr.msk.bf16.gmra.mrb[64].mxu0 %vm440_vm3, %v6146_v1  ;;  %v31503_v1 = vshll.u32 %v26173_v15, 16  ;;  %9300 = vst.msk [vmem:[#allocation2 + $0x160] sm:$0xc0] %vm9299_vm9, %v23435_v14  ;;  %v6193_v14 = vrot.slane %v31511_v34, 1 }
 0x4a2   :  { %20642 = vmatprep.mubr.msk.bf16.mxu0 %vm440_vm3, %v6154_v49  ;;  %v31504_v49 = vshrl.u32 %v26162_v5, 16 }
 0x4a3   :  { %v6177_v7 = vrot.slane %v31503_v1, 1 }
 0x4a4   :  { %v6173_v30 = vor.u32 %v31504_v49, %v6169_v31  ;;  %v26222_v31 = vld [vmem:[%s31292_s0 + $0x15c] sm:$0xff]   ;;  %v8421_v49 = vld [vmem:[%s31293_s1 + $0x8] sm:$0xff] }
 0x4a5   :  { %v6181_v1 = vor.u32 %v31507_v16, %v6177_v7  ;;  %v31515_v16 = vshrl.u32 %v26188_v29, 16  ;;  %v31513_v6 = vshll.u32 %v26222_v31, 16  ;;  %8514 = vperm.xlu0 %23122, %v8421_v49   ;;  %v18662_v49 = vld [vmem:[%s31295_s3 + $0x10] sm:$0x3] }
 0x4a6   :  { %v6178_v36 = vsel %vm4649_vm6, %v6173_v30, %v6177_v7  ;;  %v8423_v7 = vld [vmem:[%s31293_s1 + $0x18] sm:$0xff]  ;;  %v26254_v30 = vand.u32 %v18662_v49, %v32034_v53  ;;  %v8426_v53 = vld [vmem:[%s31293_s1 + $0x30] sm:$0xff]  ;;  %v6203_v49 = vshrl.u32 %v26222_v31, 16 }
 0x4a7   :  { %v6201_v34 = vrot.slane %v31513_v6, 1 }
 0x4a8   :  { %20752 = vmatprep.subr.bf16.mxu0 %v26254_v30 }
 0x4a9   :  { %20643 = vmatmul.mubr.msk.bf16.gmra.mrb[68].mxu0 %vm440_vm3, %v6162_v50  ;;  %v8422_v50 = vld [vmem:[%s31293_s1 + $0x10] sm:$0xff] }
 0x4aa   :  { %20646 = vmatprep.mubr.msk.bf16.mxu0 %vm440_vm3, %v6170_v22  ;;  %v6185_v22 = vrot.slane %v31508_v52, 1  ;;  %8519 = vperm.xlu1 %23123, %v8422_v50   ;;  %v6197_v50 = vor.u32 %v31514_v46, %v6193_v14  ;;  %v6215_v46 = vshll.u32 %v26263_v35, 16 }
 0x4ac   :  { %v6186_v52 = vsel %vm4649_vm6, %v6181_v1, %v6185_v22  ;;  %v8424_v1 = vld [vmem:[%s31293_s1 + $0x20] sm:$0xff]  ;;  %v6202_v6 = vsel %vm4649_vm6, %v6197_v50, %v6201_v34 }
 0x4ad   :  { %8529 = vperm.xlu0 %23122, %v8424_v1   ;;  %v31518_v1 = vshrl.u32 %v26236_v33, 16 }
 0x4ae   :  { %8524 = vperm.xlu1 %23123, %v8423_v7  }
 0x4b1   :  { %20647 = vmatmul.mubr.msk.bf16.gmra.mrb[72].mxu0 %vm440_vm3, %v6178_v36  ;;  %v6189_v36 = vor.u32 %v31515_v16, %v6185_v22  ;;  %v31517_v22 = vshll.u32 %v26236_v33, 16  ;;  %8539 = vperm.xlu0 %23122, %v8426_v53   ;;  %v8429_v53 = vld [vmem:[%s31293_s1 + $0x48] sm:$0xff] }
 0x4b2   :  { %20650 = vmatprep.mubr.msk.bf16.mxu0 %vm440_vm3, %v6186_v52  ;;  %v8425_v52 = vld [vmem:[%s31293_s1 + $0x28] sm:$0xff] }
 0x4b3   :  { %v6194_v7 = vsel %vm4649_vm6, %v6189_v36, %v6193_v14  ;;  %8534 = vperm.xlu1 %23123, %v8425_v52   ;;  %v6209_v16 = vrot.slane %v31517_v22, 1  ;;  %v8428_v14 = vld [vmem:[%s31293_s1 + $0x40] sm:$0xff]  ;;  %v6205_v36 = vor.u32 %v6203_v49, %v6201_v34  ;;  %v6217_v52 = vrot.slane %v6215_v46, 1  ;;  %v8431_v22 = vld [vmem:[%s31293_s1 + $0x58] sm:$0xff] }
 0x4b5   :  { %v6213_v50 = vor.u32 %v31518_v1, %v6209_v16  ;;  %8549 = vperm.xlu0 %23122, %v8428_v14   ;;  %v6210_v34 = vsel %vm4649_vm6, %v6205_v36, %v6209_v16  ;;  %v6219_v14 = vshrl.u32 %v26263_v35, 16  ;;  %v8432_v1 = vld [vmem:[%s31293_s1 + $0x60] sm:$0xff]  ;;  %v8433_v36 = vld [vmem:[%s31293_s1 + $0x68] sm:$0xff] }
 0x4b7   :  { %8544 = vperm.xlu1 %23123, %v8427_v39   ;;  %v6218_v39 = vsel %vm4649_vm6, %v6213_v50, %v6217_v52  ;;  %v8434_v50 = vld [vmem:[%s31293_s1 + $0x70] sm:$0xff]  ;;  %vm18063_vm6 = vcmask 523264  }
 0x4b9   :  { %20651 = vmatmul.mubr.msk.bf16.gmra.mrb[76].mxu0 %vm440_vm3, %v6194_v7  ;;  %v6828_v7 = vld [vmem:[%s31292_s0 + $0x14] sm:$0xe] }
 0x4ba   :  { %20654 = vmatprep.mubr.msk.bf16.mxu0 %vm440_vm3, %v6202_v6  ;;  %v8430_v6 = vld [vmem:[%s31293_s1 + $0x50] sm:$0xff]  ;;  %v26304_v46 = vcombine.low %v6828_v7, %v25687_v51  ;;  %v6836_v51 = vrot.slane %v25696_v11, 1  ;;  %v32038_v11 = vshll.u32 %v25712_v47, 16 }
 0x4bb   :  { %8554 = vperm.xlu1 %23123, %v8429_v53   ;;  %8559 = vperm.xlu0 %23122, %v8430_v6   ;;  %v6221_v53 = vor.u32 %v6219_v14, %v6217_v52  ;;  %v6838_v6 = vrot.slane %v25704_v3, 1  ;;  %v6840_v52 = vrot.slane %v25712_v47, 1 }
 0x4bc   :  { %v6835_v16 = vrot.slane %v26304_v46, 1 }
 0x4bd   :  { %v6839_v14 = vsel %vm6834_vm10, %v6836_v51, %v6838_v6 }
 0x4be   :  { %v6837_v7 = vsel %vm6834_vm10, %v6835_v16, %v6836_v51  ;;  %v6841_v16 = vsel %vm6834_vm10, %v6838_v6, %v6840_v52  ;;  %v6844_v51 = vrot.slane %v25737_v0, 1 }
 0x4bf   :  { %8564 = vperm.xlu1 %23123, %v8431_v22   ;;  %8569 = vperm.xlu0 %23122, %v8432_v1   ;;  %v8435_v22 = vld [vmem:[%s31293_s1 + $0x78] sm:$0xff]  ;;  %v8436_v1 = vld [vmem:[%s31293_s1 + $0x80] sm:$0xff] }
 0x4c1   :  { %20655 = vmatmul.mubr.msk.bf16.gmra.mrb[80].mxu0 %vm440_vm3, %v6210_v34  ;;  %v8437_v34 = vld [vmem:[%s31293_s1 + $0x88] sm:$0xff] }
 0x4c2   :  { %20658 = vmatprep.mubr.msk.bf16.mxu0 %vm440_vm3, %v6218_v39  ;;  %v8438_v39 = vld [vmem:[%s31293_s1 + $0x90] sm:$0xff] }
 0x4c3   :  { %8574 = vperm.xlu1 %23123, %v8433_v36   ;;  %8579 = vperm.xlu0 %23122, %v8434_v50   ;;  %v8439_v36 = vld [vmem:[%s31293_s1 + $0x98] sm:$0xff]  ;;  %v8440_v50 = vld [vmem:[%s31293_s1 + $0xa0] sm:$0xff] }
 0x4c7   :  { %8584 = vperm.xlu1 %23123, %v8435_v22   ;;  %8589 = vperm.xlu0 %23122, %v8436_v1   ;;  %v8442_v22 = vld [vmem:[%s31293_s1 + $0xb0] sm:$0xff] }
 0x4c9   :  { %20659 = vmatmul.mubr.msk.bf16.gmra.mrb[104].mxu0 %vm440_vm3, %v6221_v53  ;;  %v6842_v53 = vrot.slane %v25725_v40, 1 }
 0x4ca   :  { %20664 = vmatprep.mubr.msk.bf16.mxu0 %vm440_vm3, %v6837_v7  ;;  %v8441_v7 = vld [vmem:[%s31293_s1 + $0xa8] sm:$0xff] }
 0x4cb   :  { %8594 = vperm.xlu1 %23123, %v8437_v34   ;;  %8599 = vperm.xlu0 %23122, %v8438_v39   ;;  %v6843_v1 = vsel %vm6834_vm10, %v6840_v52, %v6842_v53  ;;  %v6845_v6 = vsel %vm6834_vm10, %v6842_v53, %v6844_v51  ;;  %v8444_v34 = vld [vmem:[%s31293_s1 + $0xc0] sm:$0xff]  ;;  %v6846_v39 = vrot.slane %v25751_v38, 1  ;;  %v6848_v52 = vrot.slane %v25763_v55, 1  ;;  %v8447_v53 = vld [vmem:[%s31293_s1 + $0xd8] sm:$0xff] }
 0x4cf   :  { %8604 = vperm.xlu1 %23123, %v8439_v36   ;;  %8609 = vperm.xlu0 %23122, %v8440_v50   ;;  %v6847_v36 = vsel %vm6834_vm10, %v6844_v51, %v6846_v39  ;;  %v6849_v50 = vsel %vm6834_vm10, %v6846_v39, %v6848_v52  ;;  %v6852_v51 = vrot.slane %v25789_v58, 1  ;;  %v8451_v39 = vld [vmem:[%s31293_s1 + $0xf8] sm:$0xff] }
 0x4d1   :  { %20665 = vmatmul.mubr.msk.bf16.vlgmr.msra.gmra.mrb[0].mxu0 %vm440_vm3, %v6839_v14  ;;  %v8445_v14 = vld [vmem:[%s31293_s1 + $0xc8] sm:$0xff] }
 0x4d2   :  { %20668 = vmatprep.mubr.msk.bf16.mxu0 %vm440_vm3, %v6841_v16  ;;  %20753 = vmatpush3.bf16.msra.mxu0 %v26254_v30  ;;  %v8443_v30 = vld [vmem:[%s31293_s1 + $0xb8] sm:$0xff]  ;;  %v8446_v16 = vld [vmem:[%s31293_s1 + $0xd0] sm:$0xff] }
 0x4d3   :  { %8614 = vperm.xlu1 %23123, %v8441_v7   ;;  %8619 = vperm.xlu0 %23122, %v8442_v22   ;;  %v8448_v7 = vld [vmem:[%s31293_s1 + $0xe0] sm:$0xff]  ;;  %v6850_v22 = vrot.slane %v25777_v8, 1 }
 0x4d7   :  { %8624 = vperm.xlu1 %23123, %v8443_v30   ;;  %8629 = vperm.xlu0 %23122, %v8444_v34   ;;  %v6851_v30 = vsel %vm6834_vm10, %v6848_v52, %v6850_v22  ;;  %v6853_v34 = vsel %vm6834_vm10, %v6850_v22, %v6852_v51  ;;  %v6856_v52 = vrot.slane %v25815_v62, 1 }
 0x4d9   :  { %20669 = vmatmul.mubr.msk.bf16.gmra.mrb[4].mxu0 %vm440_vm3, %v6843_v1  ;;  %v8449_v1 = vld [vmem:[%s31293_s1 + $0xe8] sm:$0xff] }
 0x4da   :  { %20672 = vmatprep.mubr.msk.bf16.mxu0 %vm440_vm3, %v6845_v6  ;;  %v8450_v6 = vld [vmem:[%s31293_s1 + $0xf0] sm:$0xff] }
 0x4db   :  { %8634 = vperm.xlu1 %23123, %v8445_v14   ;;  %8639 = vperm.xlu0 %23122, %v8446_v16   ;;  %v8452_v14 = vld [vmem:[%s31293_s1 + $0x100] sm:$0xff]  ;;  %v6854_v16 = vrot.slane %v25803_v60, 1 }
 0x4df   :  { %8644 = vperm.xlu1 %23123, %v8447_v53   ;;  %8649 = vperm.xlu0 %23122, %v8448_v7   ;;  %v8454_v53 = vld [vmem:[%s31293_s1 + $0x110] sm:$0xff] }
 0x4e1   :  { %20673 = vmatmul.mubr.msk.bf16.gmra.mrb[8].mxu0 %vm440_vm3, %v6847_v36 }
 0x4e2   :  { %20676 = vmatprep.mubr.msk.bf16.mxu0 %vm440_vm3, %v6849_v50  ;;  %v8453_v50 = vld [vmem:[%s31293_s1 + $0x108] sm:$0xff] }
 0x4e3   :  { %8654 = vperm.xlu1 %23123, %v8449_v1   ;;  %8659 = vperm.xlu0 %23122, %v8450_v6  }
 0x4e7   :  { %8664 = vperm.xlu1 %23123, %v8451_v39   ;;  %8669 = vperm.xlu0 %23122, %v8452_v14   ;;  %v6857_v39 = vsel %vm6834_vm10, %v6854_v16, %v6856_v52 }
 0x4e9   :  { %20677 = vmatmul.mubr.msk.bf16.gmra.mrb[12].mxu0 %vm440_vm3, %v6851_v30  ;;  %v6855_v30 = vsel %vm6834_vm10, %v6852_v51, %v6854_v16  ;;  %v6858_v51 = vrot.slane %v25829_v20, 1  ;;  %v6860_v16 = vrot.slane %v25841_v19, 1 }
 0x4ea   :  { %20680 = vmatprep.mubr.msk.bf16.mxu0 %vm440_vm3, %v6853_v34 }
 0x4eb   :  { %8674 = vperm.xlu1 %23123, %v8453_v50   ;;  %8679 = vperm.xlu0 %23122, %v8454_v53   ;;  %v6859_v50 = vsel %vm6834_vm10, %v6856_v52, %v6858_v51  ;;  %v6861_v53 = vsel %vm6834_vm10, %v6858_v51, %v6860_v16  ;;  %v6864_v52 = vrot.slane %v25876_v59, 1  ;;  %v8463_v51 = vld [vmem:[%s31293_s1 + $0x158] sm:$0xff] }
 0x4ec   :  { %v20570_v36 = vpop.f32.mrb[100].mxu0 }
 0x4ed   :  { %v26414_v7 = vadd.f32 %v20570_v36, %v25844_v56  ;;  %v5463_v22 = vpop.f32.mrb[101].mxu0  ;;  %v8455_v56 = vld [vmem:[%s31293_s1 + $0x118] sm:$0xff]  ;;  %v8458_v36 = vld [vmem:[%s31293_s1 + $0x130] sm:$0xff] }
 0x4ee   :  { %v26417_v1 = vadd.f32 %v5463_v22, %v25848_v42  ;;  %v20571_v6 = vpop.f32.mrb[102].mxu0  ;;  %v8456_v42 = vld [vmem:[%s31293_s1 + $0x120] sm:$0xff]  ;;  %v8459_v22 = vld [vmem:[%s31293_s1 + $0x138] sm:$0xff] }
 0x4ef   :  { %v5466_v34 = vpop.f32.mrb[103].mxu0  ;;  %8684 = vperm.xlu1 %23123, %v8455_v56   ;;  %8689 = vperm.xlu0 %23122, %v8456_v42   ;;  %v8460_v6 = vld [vmem:[%s31293_s1 + $0x140] sm:$0xff] }
 0x4f0   :  { %v26422_v14 = vadd.f32 %v5466_v34, %v25856_v54  ;;  %v8457_v54 = vld [vmem:[%s31293_s1 + $0x128] sm:$0xff] }
 0x4f1   :  { %20681 = vmatmul.mubr.msk.bf16.gmra.mrb[16].mxu0 %vm440_vm3, %v6855_v30  ;;  %v6862_v30 = vrot.slane %v25864_v25, 1  ;;  %v8461_v34 = vld [vmem:[%s31293_s1 + $0x148] sm:$0xff] }
 0x4f2   :  { %20684 = vmatprep.mubr.msk.bf16.mxu0 %vm440_vm3, %v6857_v39  ;;  %v8462_v39 = vld [vmem:[%s31293_s1 + $0x150] sm:$0xff] }
 0x4f3   :  { %8694 = vperm.xlu1 %23123, %v8457_v54   ;;  %8699 = vperm.xlu0 %23122, %v8458_v36   ;;  %v6863_v56 = vsel %vm6834_vm10, %v6860_v16, %v6862_v30  ;;  %v6865_v42 = vsel %vm6834_vm10, %v6862_v30, %v6864_v52  ;;  %v8464_v54 = vld [vmem:[%s31293_s1 + $0x160] sm:$0xff]  ;;  %v6866_v36 = vrot.slane %v25890_v21, 1  ;;  %v6868_v16 = vrot.slane %v25902_v17, 1  ;;  %v8467_v30 = vld [vmem:[%s31293_s1 + $0x178] sm:$0xff] }
 0x4f7   :  { %8704 = vperm.xlu1 %23123, %v8459_v22   ;;  %8709 = vperm.xlu0 %23122, %v8460_v6   ;;  %v6867_v22 = vsel %vm6834_vm10, %v6864_v52, %v6866_v36  ;;  %v6869_v6 = vsel %vm6834_vm10, %v6866_v36, %v6868_v16  ;;  %v6872_v52 = vrot.slane %v25928_v2, 1  ;;  %v8471_v36 = vld [vmem:[%s31293_s1 + $0x198] sm:$0xff] }
 0x4f9   :  { %20685 = vmatmul.mubr.msk.bf16.gmra.mrb[20].mxu0 %vm440_vm3, %v6859_v50  ;;  %v8465_v50 = vld [vmem:[%s31293_s1 + $0x168] sm:$0xff] }
 0x4fa   :  { %20688 = vmatprep.mubr.msk.bf16.mxu0 %vm440_vm3, %v6861_v53  ;;  %v8466_v53 = vld [vmem:[%s31293_s1 + $0x170] sm:$0xff] }
 0x4fb   :  { %8714 = vperm.xlu1 %23123, %v8461_v34   ;;  %8719 = vperm.xlu0 %23122, %v8462_v39   ;;  %v8468_v34 = vld [vmem:[%s31293_s1 + $0x180] sm:$0xff]  ;;  %v6870_v39 = vrot.slane %v25916_v37, 1 }
 0x4ff   :  { %8724 = vperm.xlu1 %23123, %v8463_v51   ;;  %8729 = vperm.xlu0 %23122, %v8464_v54   ;;  %v6871_v51 = vsel %vm6834_vm10, %v6868_v16, %v6870_v39  ;;  %v6873_v54 = vsel %vm6834_vm10, %v6870_v39, %v6872_v52  ;;  %v6876_v16 = vrot.slane %v25954_v12, 1  ;;  %v6878_v39 = vrot.slane %v25968_v18, 1 }
 0x501   :  { %20689 = vmatmul.mubr.msk.bf16.gmra.mrb[24].mxu0 %vm440_vm3, %v6863_v56  ;;  %v8469_v56 = vld [vmem:[%s31293_s1 + $0x188] sm:$0xff] }
 0x502   :  { %20692 = vmatprep.mubr.msk.bf16.mxu0 %vm440_vm3, %v6865_v42  ;;  %v8470_v42 = vld [vmem:[%s31293_s1 + $0x190] sm:$0xff] }
 0x503   :  { %8734 = vperm.xlu1 %23123, %v8465_v50   ;;  %8739 = vperm.xlu0 %23122, %v8466_v53   ;;  %v8472_v50 = vld [vmem:[%s31293_s1 + $0x1a0] sm:$0xff]  ;;  %v6874_v53 = vrot.slane %v25942_v4, 1 }
 0x507   :  { %8744 = vperm.xlu1 %23123, %v8467_v30   ;;  %8749 = vperm.xlu0 %23122, %v8468_v34   ;;  %v6875_v30 = vsel %vm6834_vm10, %v6872_v52, %v6874_v53  ;;  %v6877_v34 = vsel %vm6834_vm10, %v6874_v53, %v6876_v16  ;;  %v8476_v52 = vld [vmem:[%s31293_s1 + $0x1c0] sm:$0xff]  ;;  %v6882_v53 = vrot.slane %v25994_v23, 1 }
 0x509   :  { %20693 = vmatmul.mubr.msk.bf16.gmra.mrb[28].mxu0 %vm440_vm3, %v6867_v22  ;;  %v8473_v22 = vld [vmem:[%s31293_s1 + $0x1a8] sm:$0xff] }
 0x50a   :  { %20696 = vmatprep.mubr.msk.bf16.mxu0 %vm440_vm3, %v6869_v6  ;;  %v8474_v6 = vld [vmem:[%s31293_s1 + $0x1b0] sm:$0xff] }
 0x50b   :  { %8754 = vperm.xlu1 %23123, %v8469_v56   ;;  %8759 = vperm.xlu0 %23122, %v8470_v42   ;;  %v6880_v56 = vrot.slane %v25980_v48, 1  ;;  %v8475_v42 = vld [vmem:[%s31293_s1 + $0x1b8] sm:$0xff] }
 0x50f   :  { %8764 = vperm.xlu1 %23123, %v8471_v36   ;;  %8769 = vperm.xlu0 %23122, %v8472_v50   ;;  %v8477_v36 = vld [vmem:[%s31293_s1 + $0x1c8] sm:$0xff]  ;;  %v8478_v50 = vld [vmem:[%s31293_s1 + $0x1d0] sm:$0xff] }
 0x511   :  { %20697 = vmatmul.mubr.msk.bf16.gmra.mrb[32].mxu0 %vm440_vm3, %v6871_v51  ;;  %v6879_v51 = vsel %vm6834_vm10, %v6876_v16, %v6878_v39  ;;  %v8479_v16 = vld [vmem:[%s31293_s1 + $0x1d8] sm:$0xff] }
 0x512   :  { %20700 = vmatprep.mubr.msk.bf16.mxu0 %vm440_vm3, %v6873_v54  ;;  %v6881_v54 = vsel %vm6834_vm10, %v6878_v39, %v6880_v56 }
 0x513   :  { %8774 = vperm.xlu1 %23123, %v8473_v22   ;;  %8779 = vperm.xlu0 %23122, %v8474_v6   ;;  %v6884_v22 = vrot.slane %v26006_v9, 1  ;;  %v8480_v6 = vld [vmem:[%s31293_s1 + $0x1e0] sm:$0xff] }
 0x515   :  { %v6885_v39 = vsel %vm6834_vm10, %v6882_v53, %v6884_v22 }
 0x517   :  { %8784 = vperm.xlu1 %23123, %v8475_v42   ;;  %8789 = vperm.xlu0 %23122, %v8476_v52   ;;  %v8482_v42 = vld [vmem:[%s31293_s1 + $0x1f0] sm:$0xff]  ;;  %v6886_v52 = vrot.slane %v26020_v26, 1 }
 0x519   :  { %20701 = vmatmul.mubr.msk.bf16.gmra.mrb[36].mxu0 %vm440_vm3, %v6875_v30  ;;  %v6883_v30 = vsel %vm6834_vm10, %v6880_v56, %v6882_v53  ;;  %v8483_v56 = vld [vmem:[%s31293_s1 + $0x1f8] sm:$0xff] }
 0x51a   :  { %20704 = vmatprep.mubr.msk.bf16.mxu0 %vm440_vm3, %v6877_v34  ;;  %v8481_v34 = vld [vmem:[%s31293_s1 + $0x1e8] sm:$0xff] }
 0x51b   :  { %8794 = vperm.xlu1 %23123, %v8477_v36   ;;  %8799 = vperm.xlu0 %23122, %v8478_v50   ;;  %v6887_v36 = vsel %vm6834_vm10, %v6884_v22, %v6886_v52  ;;  %v8485_v50 = vld [vmem:[%s31293_s1 + $0x208] sm:$0xff]  ;;  %v8487_v22 = vld [vmem:[%s31293_s1 + $0x218] sm:$0xff] }
 0x51f   :  { %8804 = vperm.xlu1 %23123, %v8479_v16   ;;  %8809 = vperm.xlu0 %23122, %v8480_v6   ;;  %v8486_v16 = vld [vmem:[%s31293_s1 + $0x210] sm:$0xff]  ;;  %v6890_v6 = vrot.slane %v26046_v27, 1 }
 0x521   :  { %20705 = vmatmul.mubr.msk.bf16.gmra.mrb[40].mxu0 %vm440_vm3, %v6879_v51  ;;  %v6888_v51 = vrot.slane %v26032_v32, 1 }
 0x522   :  { %20708 = vmatprep.mubr.msk.bf16.mxu0 %vm440_vm3, %v6881_v54  ;;  %v8484_v54 = vld [vmem:[%s31293_s1 + $0x200] sm:$0xff] }
 0x523   :  { %8814 = vperm.xlu1 %23123, %v8481_v34   ;;  %8819 = vperm.xlu0 %23122, %v8482_v42   ;;  %v6889_v53 = vsel %vm6834_vm10, %v6886_v52, %v6888_v51  ;;  %v8488_v34 = vld [vmem:[%s31293_s1 + $0x220] sm:$0xff]  ;;  %v8489_v42 = vld [vmem:[%s31293_s1 + $0x228] sm:$0xff] }
 0x527   :  { %8824 = vperm.xlu1 %23123, %v8483_v56   ;;  %8829 = vperm.xlu0 %23122, %v8484_v54   ;;  %v8490_v56 = vld [vmem:[%s31293_s1 + $0x230] sm:$0xff]  ;;  %v6894_v54 = vrot.slane %v26072_v45, 1 }
 0x529   :  { %20709 = vmatmul.mubr.msk.bf16.gmra.mrb[44].mxu0 %vm440_vm3, %v6883_v30  ;;  %v6892_v30 = vrot.slane %v26058_v41, 1 }
 0x52a   :  { %20712 = vmatprep.mubr.msk.bf16.mxu0 %vm440_vm3, %v6885_v39  ;;  %v6891_v39 = vsel %vm6834_vm10, %v6888_v51, %v6890_v6  ;;  %v8491_v51 = vld [vmem:[%s31293_s1 + $0x238] sm:$0xff] }
 0x52b   :  { %8834 = vperm.xlu1 %23123, %v8485_v50   ;;  %8839 = vperm.xlu0 %23122, %v8486_v16   ;;  %v6893_v52 = vsel %vm6834_vm10, %v6890_v6, %v6892_v30  ;;  %v8492_v50 = vld [vmem:[%s31293_s1 + $0x240] sm:$0xff]  ;;  %v8493_v16 = vld [vmem:[%s31293_s1 + $0x248] sm:$0xff] }
 0x52f   :  { %8844 = vperm.xlu1 %23123, %v8487_v22   ;;  %8849 = vperm.xlu0 %23122, %v8488_v34   ;;  %v8494_v22 = vld [vmem:[%s31293_s1 + $0x250] sm:$0xff]  ;;  %v6898_v34 = vrot.slane %v26098_v63, 1 }
 0x531   :  { %20713 = vmatmul.mubr.msk.bf16.gmra.mrb[48].mxu0 %vm440_vm3, %v6887_v36  ;;  %v6896_v36 = vrot.slane %v26084_v44, 1 }
 0x532   :  { %20716 = vmatprep.mubr.msk.bf16.mxu0 %vm440_vm3, %v6889_v53  ;;  %v6895_v53 = vsel %vm6834_vm10, %v6892_v30, %v6894_v54  ;;  %v8495_v30 = vld [vmem:[%s31293_s1 + $0x258] sm:$0xff] }
 0x533   :  { %8854 = vperm.xlu1 %23123, %v8489_v42   ;;  %8859 = vperm.xlu0 %23122, %v8490_v56   ;;  %v6897_v6 = vsel %vm6834_vm10, %v6894_v54, %v6896_v36  ;;  %v8496_v42 = vld [vmem:[%s31293_s1 + $0x260] sm:$0xff]  ;;  %v8497_v56 = vld [vmem:[%s31293_s1 + $0x268] sm:$0xff] }
 0x537   :  { %8864 = vperm.xlu1 %23123, %v8491_v51   ;;  %8869 = vperm.xlu0 %23122, %v8492_v50   ;;  %v8498_v51 = vld [vmem:[%s31293_s1 + $0x270] sm:$0xff]  ;;  %v6902_v50 = vrot.slane %v26124_v28, 1 }
 0x539   :  { %20717 = vmatmul.mubr.msk.bf16.gmra.mrb[52].mxu0 %vm440_vm3, %v6891_v39  ;;  %v6900_v39 = vrot.slane %v26110_v10, 1 }
 0x53a   :  { %20720 = vmatprep.mubr.msk.bf16.mxu0 %vm440_vm3, %v6893_v52  ;;  %v6899_v52 = vsel %vm6834_vm10, %v6896_v36, %v6898_v34  ;;  %v8499_v36 = vld [vmem:[%s31293_s1 + $0x278] sm:$0xff] }
 0x53b   :  { %8874 = vperm.xlu1 %23123, %v8493_v16   ;;  %8879 = vperm.xlu0 %23122, %v8494_v22   ;;  %v6901_v54 = vsel %vm6834_vm10, %v6898_v34, %v6900_v39  ;;  %v8500_v16 = vld [vmem:[%s31293_s1 + $0x280] sm:$0xff]  ;;  %v8501_v22 = vld [vmem:[%s31293_s1 + $0x288] sm:$0xff] }
 0x53f   :  { %8884 = vperm.xlu1 %23123, %v8495_v30   ;;  %8889 = vperm.xlu0 %23122, %v8496_v42   ;;  %v8502_v30 = vld [vmem:[%s31293_s1 + $0x290] sm:$0xff]  ;;  %v6906_v42 = vrot.slane %v26150_v13, 1 }
 0x541   :  { %20721 = vmatmul.mubr.msk.bf16.gmra.mrb[56].mxu0 %vm440_vm3, %v6895_v53  ;;  %v6904_v53 = vrot.slane %v26136_v61, 1 }
 0x542   :  { %20724 = vmatprep.mubr.msk.bf16.mxu0 %vm440_vm3, %v6897_v6  ;;  %v6903_v6 = vsel %vm6834_vm10, %v6900_v39, %v6902_v50  ;;  %v8503_v39 = vld [vmem:[%s31293_s1 + $0x298] sm:$0xff] }
 0x543   :  { %8894 = vperm.xlu1 %23123, %v8497_v56   ;;  %8899 = vperm.xlu0 %23122, %v8498_v51   ;;  %v6905_v34 = vsel %vm6834_vm10, %v6902_v50, %v6904_v53  ;;  %v8504_v56 = vld [vmem:[%s31293_s1 + $0x2a0] sm:$0xff]  ;;  %v8505_v51 = vld [vmem:[%s31293_s1 + $0x2a8] sm:$0xff] }
 0x547   :  { %8904 = vperm.xlu1 %23123, %v8499_v36   ;;  %8909 = vperm.xlu0 %23122, %v8500_v16   ;;  %v8506_v36 = vld [vmem:[%s31293_s1 + $0x2b0] sm:$0xf]  ;;  %v6910_v16 = vrot.slane %v26173_v15, 1 }
 0x549   :  { %20725 = vmatmul.mubr.msk.bf16.gmra.mrb[60].mxu0 %vm440_vm3, %v6899_v52  ;;  %v6908_v52 = vrot.slane %v26162_v5, 1 }
 0x54a   :  { %20728 = vmatprep.mubr.msk.bf16.mxu0 %vm440_vm3, %v6901_v54  ;;  %v6907_v54 = vsel %vm6834_vm10, %v6904_v53, %v6906_v42  ;;  %v6912_v53 = vrot.slane %v26188_v29, 1 }
 0x54b   :  { %8914 = vperm.xlu1 %23123, %v8501_v22   ;;  %8919 = vperm.xlu0 %23122, %v8502_v30   ;;  %v6909_v50 = vsel %vm6834_vm10, %v6906_v42, %v6908_v52  ;;  %v6916_v30 = vrot.slane %v26222_v31, 1 }
 0x54c   :  { %v6913_v22 = vsel %vm6834_vm10, %v6910_v16, %v6912_v53 }
 0x54f   :  { %8924 = vperm.xlu1 %23123, %v8503_v39   ;;  %8929 = vperm.xlu0 %23122, %v8504_v56   ;;  %v6920_v56 = vrot.slane %v26263_v35, 1 }
 0x551   :  { %20729 = vmatmul.mubr.msk.bf16.gmra.mrb[64].mxu0 %vm440_vm3, %v6903_v6  ;;  %v6911_v6 = vsel %vm6834_vm10, %v6908_v52, %v6910_v16  ;;  %v6918_v52 = vrot.slane %v26236_v33, 1 }
 0x552   :  { %20732 = vmatprep.mubr.msk.bf16.mxu0 %vm440_vm3, %v6905_v34  ;;  %v6914_v34 = vrot.slane %v26202_v57, 1 }
 0x553   :  { %8934 = vperm.xlu1 %23123, %v8505_v51   ;;  %8939 = vperm.xlu0 %23122, %v8506_v36   ;;  %v7539_v51 = vshll.u32 %v26304_v46, 16  ;;  %v6921_v36 = vsel %vm6834_vm10, %v6918_v52, %v6920_v56 }
 0x554   :  { %v6915_v42 = vsel %vm6834_vm10, %v6912_v53, %v6914_v34  ;;  %v6917_v39 = vsel %vm6834_vm10, %v6914_v34, %v6916_v30 }
 0x555   :  { %v7541_v53 = vrot.slane %v7539_v51, 2 }
 0x559   :  { %20733 = vmatmul.mubr.msk.bf16.gmra.mrb[68].mxu0 %vm440_vm3, %v6907_v54  ;;  %v7536_v54 = vshrl.u32 %v26304_v46, 16  ;;  %v32035_v46 = vshrl.u32 %v25704_v3, 16 }
 0x55a   :  { %20736 = vmatprep.mubr.msk.bf16.mxu0 %vm440_vm3, %v6909_v50  ;;  %v6919_v50 = vsel %vm6834_vm10, %v6916_v30, %v6918_v52 }
 0x55b   :  { %v7538_v16 = vrot.slane %v7536_v54, 1  ;;  %v7547_v30 = vrot.slane %v32035_v46, 1  ;;  %v32042_v46 = vshll.u32 %v25737_v0, 16 }
 0x55d   :  { %v7542_v35 = vor.u32 %v7541_v53, %v7538_v16  ;;  %v32039_v16 = vshrl.u32 %v25725_v40, 16  ;;  %v32040_v53 = vshll.u32 %v25725_v40, 16 }
 0x561   :  { %20737 = vmatmul.mubr.msk.bf16.gmra.mrb[72].mxu0 %vm440_vm3, %v6911_v6  ;;  %v7543_v6 = vrot.slane %v5883_v43, 1  ;;  %v32037_v43 = vshrl.u32 %v25712_v47, 16 }
 0x562   :  { %20740 = vmatprep.mubr.msk.bf16.mxu0 %vm440_vm3, %v6913_v22  ;;  %v7544_v22 = vrot.slane %v5879_v24, 2  ;;  %v7552_v24 = vrot.slane %v32038_v11, 2  ;;  %v32045_v11 = vshrl.u32 %v25763_v55, 16 }
 0x563   :  { %v7551_v54 = vrot.slane %v32037_v43, 1 }
 0x564   :  { %v7545_v34 = vor.u32 %v7544_v22, %v7543_v6  ;;  %v7556_v6 = vrot.slane %v32040_v53, 2  ;;  %v32048_v53 = vshll.u32 %v25777_v8, 16 }
 0x566   :  { %v7546_v52 = vsel %vm7534_vm11, %v7542_v35, %v7545_v34  ;;  %v32041_v35 = vshrl.u32 %v25737_v0, 16  ;;  %v7567_v0 = vrot.slane %v32045_v11, 1 }
 0x568   :  { %v7559_v47 = vrot.slane %v32041_v35, 1  ;;  %v32049_v35 = vshrl.u32 %v25789_v58, 16 }
 0x569   :  { %20741 = vmatmul.mubr.msk.bf16.gmra.mrb[76].mxu0 %vm440_vm3, %v6915_v42  ;;  %v32036_v42 = vshll.u32 %v25704_v3, 16  ;;  %v7555_v3 = vrot.slane %v32039_v16, 1 }
 0x56a   :  { %20744 = vmatprep.mubr.msk.bf16.mxu0 %vm440_vm3, %v6917_v39 }
 0x56b   :  { %v7548_v39 = vrot.slane %v32036_v42, 2 }
 0x56d   :  { %v7549_v51 = vor.u32 %v7548_v39, %v7547_v30  ;;  %v7557_v30 = vor.u32 %v7556_v6, %v7555_v3  ;;  %v32043_v39 = vshrl.u32 %v25751_v38, 16  ;;  %v32047_v3 = vshrl.u32 %v25777_v8, 16 }
 0x56e   :  { %v7572_v6 = vrot.slane %v32048_v53, 2  ;;  %v32056_v53 = vshll.u32 %v25829_v20, 16 }
 0x56f   :  { %v7563_v40 = vrot.slane %v32043_v39, 1  ;;  %v32052_v39 = vshll.u32 %v25803_v60, 16 }
 0x571   :  { %20745 = vmatmul.mubr.msk.bf16.gmra.mrb[80].mxu0 %vm440_vm3, %v6919_v50  ;;  %v7553_v50 = vor.u32 %v7552_v24, %v7551_v54  ;;  %v32046_v24 = vshll.u32 %v25763_v55, 16  ;;  %v7575_v55 = vrot.slane %v32049_v35, 1 }
 0x572   :  { %20748 = vmatprep.mubr.msk.bf16.mxu0 %vm440_vm3, %v6921_v36  ;;  %v7550_v36 = vsel %vm7534_vm11, %v7545_v34, %v7549_v51 }
 0x573   :  { %v7554_v22 = vsel %vm7534_vm11, %v7549_v51, %v7553_v50  ;;  %v7558_v42 = vsel %vm7534_vm11, %v7553_v50, %v7557_v30  ;;  %v7568_v51 = vrot.slane %v32046_v24, 2 }
 0x575   :  { %v7569_v50 = vor.u32 %v7568_v51, %v7567_v0 }
 0x579   :  { %20749 = vmatmul.mubr.msk.bf16.gmra.mrb[108].mxu0 %vm440_vm3, %v6920_v56  ;;  %v7560_v56 = vrot.slane %v32042_v46, 2 }
 0x57a   :  { %20754 = vmatprep.mubr.msk.bf16.mxu0 %vm440_vm3, %v7546_v52  ;;  %v32044_v52 = vshll.u32 %v25751_v38, 16  ;;  %v7571_v38 = vrot.slane %v32047_v3, 1 }
 0x57b   :  { %v7561_v34 = vor.u32 %v7560_v56, %v7559_v47  ;;  %v32050_v47 = vshll.u32 %v25789_v58, 16 }
 0x57c   :  { %v7564_v43 = vrot.slane %v32044_v52, 2  ;;  %v7573_v56 = vor.u32 %v7572_v6, %v7571_v38  ;;  %v7588_v6 = vrot.slane %v32056_v53, 2 }
 0x57d   :  { %v7562_v54 = vsel %vm7534_vm11, %v7557_v30, %v7561_v34  ;;  %v7576_v46 = vrot.slane %v32050_v47, 2  ;;  %v32058_v47 = vshll.u32 %v25841_v19, 16 }
 0x57f   :  { %v7577_v30 = vor.u32 %v7576_v46, %v7575_v55  ;;  %v32057_v55 = vshrl.u32 %v25841_v19, 16  ;;  %v7592_v46 = vrot.slane %v32058_v47, 2  ;;  %v32069_v47 = vshrl.u32 %v25928_v2, 16 }
 0x581   :  { %20755 = vmatmul.mubr.msk.bf16.vlgmr.msra.gmra.mrb[0].mxu0 %vm440_vm3, %v7550_v36  ;;  %v7565_v36 = vor.u32 %v7564_v43, %v7563_v40  ;;  %v7580_v40 = vrot.slane %v32052_v39, 2  ;;  %v7578_v52 = vsel %vm7534_vm11, %v7573_v56, %v7577_v30  ;;  %v32053_v43 = vshrl.u32 %v25815_v62, 16 }
 0x582   :  { %20758 = vmatprep.mubr.msk.bf16.mxu0 %vm440_vm3, %v7554_v22 }
 0x583   :  { %v7566_v16 = vsel %vm7534_vm11, %v7561_v34, %v7565_v36  ;;  %v7570_v22 = vsel %vm7534_vm11, %v7565_v36, %v7569_v50  ;;  %v7574_v34 = vsel %vm7534_vm11, %v7569_v50, %v7573_v56  ;;  %v7583_v58 = vrot.slane %v32053_v43, 1 }
 0x589   :  { %20759 = vmatmul.mubr.msk.bf16.gmra.mrb[4].mxu0 %vm440_vm3, %v7558_v42  ;;  %v32051_v42 = vshrl.u32 %v25803_v60, 16 }
 0x58a   :  { %20762 = vmatprep.mubr.msk.bf16.mxu0 %vm440_vm3, %v7562_v54  ;;  %v32054_v54 = vshll.u32 %v25815_v62, 16  ;;  %v32055_v62 = vshrl.u32 %v25829_v20, 16 }
 0x58b   :  { %v7579_v8 = vrot.slane %v32051_v42, 1 }
 0x58c   :  { %v7584_v11 = vrot.slane %v32054_v54, 2  ;;  %v7587_v38 = vrot.slane %v32055_v62, 1 }
 0x58d   :  { %v7581_v0 = vor.u32 %v7580_v40, %v7579_v8  ;;  %v32060_v8 = vshll.u32 %v25864_v25, 16  ;;  %v32061_v40 = vshrl.u32 %v25876_v59, 16 }
 0x58e   :  { %v7585_v24 = vor.u32 %v7584_v11, %v7583_v58  ;;  %v7589_v56 = vor.u32 %v7588_v6, %v7587_v38 }
 0x58f   :  { %v7582_v3 = vsel %vm7534_vm11, %v7577_v30, %v7581_v0  ;;  %v7596_v39 = vrot.slane %v32060_v8, 2  ;;  %v32072_v8 = vshll.u32 %v25942_v4, 16 }
 0x590   :  { %v7586_v35 = vsel %vm7534_vm11, %v7581_v0, %v7585_v24  ;;  %v7590_v20 = vsel %vm7534_vm11, %v7585_v24, %v7589_v56  ;;  %v32063_v0 = vshrl.u32 %v25890_v21, 16  ;;  %v32064_v24 = vshll.u32 %v25890_v21, 16 }
 0x591   :  { %20763 = vmatmul.mubr.msk.bf16.gmra.mrb[8].mxu0 %vm440_vm3, %v7566_v16 }
 0x592   :  { %20766 = vmatprep.mubr.msk.bf16.mxu0 %vm440_vm3, %v7570_v22 }
 0x599   :  { %20767 = vmatmul.mubr.msk.bf16.gmra.mrb[12].mxu0 %vm440_vm3, %v7574_v34  ;;  %v32059_v34 = vshrl.u32 %v25864_v25, 16  ;;  %v7603_v25 = vrot.slane %v32063_v0, 1  ;;  %v32076_v0 = vshll.u32 %v25968_v18, 16 }
 0x59a   :  { %20770 = vmatprep.mubr.msk.bf16.mxu0 %vm440_vm3, %v7578_v52  ;;  %v32062_v52 = vshll.u32 %v25876_v59, 16 }
 0x59b   :  { %v7595_v42 = vrot.slane %v32059_v34, 1 }
 0x59c   :  { %v20660_v51 = vpop.f32.mrb[104].mxu0  ;;  %v7600_v43 = vrot.slane %v32062_v52, 2 }
 0x59d   :  { %v26744_v36 = vadd.f32 %v20660_v51, %v26414_v7  ;;  %v6727_v60 = vpop.f32.mrb[105].mxu0  ;;  %v7591_v7 = vrot.slane %v32057_v55, 1  ;;  %v7597_v58 = vor.u32 %v7596_v39, %v7595_v42  ;;  %v7604_v51 = vrot.slane %v32064_v24, 2 }
 0x59e   :  { %v26747_v50 = vadd.f32 %v6727_v60, %v26417_v1  ;;  %v20661_v16 = vpop.f32.mrb[106].mxu0  ;;  %v32071_v42 = vshrl.u32 %v25942_v4, 16  ;;  %v7620_v39 = vrot.slane %v32072_v8, 2 }
 0x59f   :  { %v6730_v22 = vpop.f32.mrb[107].mxu0  ;;  %v7593_v30 = vor.u32 %v7592_v46, %v7591_v7  ;;  %v32065_v16 = vshrl.u32 %v25902_v17, 16  ;;  %v7605_v38 = vor.u32 %v7604_v51, %v7603_v25  ;;  %v32070_v46 = vshll.u32 %v25928_v2, 16 }
 0x5a0   :  { %v26760_v1 = vadd.f32 %v6730_v22, %v26422_v14  ;;  %v7599_v14 = vrot.slane %v32061_v40, 1  ;;  %v32067_v22 = vshrl.u32 %v25916_v37, 16  ;;  %v32073_v40 = vshrl.u32 %v25954_v12, 16 }
 0x5a1   :  { %20771 = vmatmul.mubr.msk.bf16.gmra.mrb[16].mxu0 %vm440_vm3, %v7582_v3  ;;  %v7594_v19 = vsel %vm7534_vm11, %v7589_v56, %v7593_v30  ;;  %v7598_v11 = vsel %vm7534_vm11, %v7593_v30, %v7597_v58  ;;  %v7607_v59 = vrot.slane %v32065_v16, 1  ;;  %v32066_v3 = vshll.u32 %v25902_v17, 16 }
 0x5a2   :  { %20774 = vmatprep.mubr.msk.bf16.mxu0 %vm440_vm3, %v7586_v35  ;;  %v7601_v54 = vor.u32 %v7600_v43, %v7599_v14  ;;  %v7611_v21 = vrot.slane %v32067_v22, 1  ;;  %v32068_v35 = vshll.u32 %v25916_v37, 16  ;;  %v7615_v17 = vrot.slane %v32069_v47, 1 }
 0x5a3   :  { %v7608_v62 = vrot.slane %v32066_v3, 2  ;;  %v7616_v56 = vrot.slane %v32070_v46, 2  ;;  %v7619_v37 = vrot.slane %v32071_v42, 1  ;;  %v7623_v2 = vrot.slane %v32073_v40, 1 }
 0x5a4   :  { %v7602_v60 = vsel %vm7534_vm11, %v7597_v58, %v7601_v54  ;;  %v7606_v6 = vsel %vm7534_vm11, %v7601_v54, %v7605_v38  ;;  %v7612_v55 = vrot.slane %v32068_v35, 2  ;;  %v32074_v14 = vshll.u32 %v25954_v12, 16 }
 0x5a5   :  { %v7609_v53 = vor.u32 %v7608_v62, %v7607_v59  ;;  %v7621_v43 = vor.u32 %v7620_v39, %v7619_v37  ;;  %v7628_v25 = vrot.slane %v32076_v0, 2  ;;  %v32077_v51 = vshrl.u32 %v25980_v48, 16 }
 0x5a6   :  { %v7613_v30 = vor.u32 %v7612_v55, %v7611_v21  ;;  %v7624_v52 = vrot.slane %v32074_v14, 2  ;;  %v32081_v21 = vshrl.u32 %v26006_v9, 16  ;;  %v32082_v35 = vshll.u32 %v26006_v9, 16 }
 0x5a7   :  { %v7610_v7 = vsel %vm7534_vm11, %v7605_v38, %v7609_v53  ;;  %v7631_v12 = vrot.slane %v32077_v51, 1  ;;  %v32079_v38 = vshrl.u32 %v25994_v23, 16  ;;  %v32083_v46 = vshrl.u32 %v26020_v26, 16 }
 0x5a8   :  { %v7614_v34 = vsel %vm7534_vm11, %v7609_v53, %v7613_v30  ;;  %v7625_v58 = vor.u32 %v7624_v52, %v7623_v2  ;;  %v32080_v53 = vshll.u32 %v25994_v23, 16  ;;  %v7640_v55 = vrot.slane %v32082_v35, 2 }
 0x5a9   :  { %20775 = vmatmul.mubr.msk.bf16.gmra.mrb[20].mxu0 %vm440_vm3, %v7590_v20  ;;  %v7617_v20 = vor.u32 %v7616_v56, %v7615_v17  ;;  %v7643_v23 = vrot.slane %v32083_v46, 1  ;;  %v32084_v56 = vshll.u32 %v26020_v26, 16  ;;  %v32086_v42 = vshll.u32 %v26032_v32, 16 }
 0x5aa   :  { %20778 = vmatprep.mubr.msk.bf16.mxu0 %vm440_vm3, %v7594_v19  ;;  %v7626_v24 = vsel %vm7534_vm11, %v7621_v43, %v7625_v58  ;;  %v32087_v40 = vshrl.u32 %v26046_v27, 16  ;;  %v32088_v2 = vshll.u32 %v26046_v27, 16  ;;  %v32098_v35 = vshll.u32 %v26110_v10, 16 }
 0x5ab   :  { %v7618_v19 = vsel %vm7534_vm11, %v7613_v30, %v7617_v20  ;;  %v7622_v54 = vsel %vm7534_vm11, %v7617_v20, %v7621_v43  ;;  %v7644_v30 = vrot.slane %v32084_v56, 2  ;;  %v7648_v37 = vrot.slane %v32086_v42, 2 }
 0x5ac   :  { %v7651_v26 = vrot.slane %v32087_v40, 1  ;;  %v7652_v14 = vrot.slane %v32088_v2, 2  ;;  %v32089_v43 = vshrl.u32 %v26058_v41, 16  ;;  %v32099_v46 = vshrl.u32 %v26124_v28, 16 }
 0x5ad   :  { %v7645_v8 = vor.u32 %v7644_v30, %v7643_v23  ;;  %v32100_v23 = vshll.u32 %v26124_v28, 16  ;;  %v32103_v28 = vshrl.u32 %v26150_v13, 16  ;;  %v32104_v40 = vshll.u32 %v26150_v13, 16 }
 0x5af   :  { %v7676_v56 = vrot.slane %v32100_v23, 2 }
 0x5b1   :  { %20779 = vmatmul.mubr.msk.bf16.gmra.mrb[24].mxu0 %vm440_vm3, %v7598_v11  ;;  %v32075_v11 = vshrl.u32 %v25968_v18, 16  ;;  %v7635_v18 = vrot.slane %v32079_v38, 1 }
 0x5b2   :  { %20782 = vmatprep.mubr.msk.bf16.mxu0 %vm440_vm3, %v7602_v60  ;;  %v32078_v60 = vshll.u32 %v25980_v48, 16  ;;  %v7639_v48 = vrot.slane %v32081_v21, 1 }
 0x5b3   :  { %v7627_v4 = vrot.slane %v32075_v11, 1  ;;  %v7653_v11 = vor.u32 %v7652_v14, %v7651_v26  ;;  %v7684_v26 = vrot.slane %v32104_v40, 2 }
 0x5b4   :  { %v7632_v16 = vrot.slane %v32078_v60, 2  ;;  %v7641_v47 = vor.u32 %v7640_v55, %v7639_v48  ;;  %v32093_v60 = vshrl.u32 %v26084_v44, 16  ;;  %v7672_v55 = vrot.slane %v32098_v35, 2 }
 0x5b5   :  { %v7629_v59 = vor.u32 %v7628_v25, %v7627_v4  ;;  %v32091_v25 = vshrl.u32 %v26072_v45, 16 }
 0x5b6   :  { %v7633_v3 = vor.u32 %v7632_v16, %v7631_v12  ;;  %v23305_v12 = vld [vmem:[%s31297_s5 + $0x8] sm:$0xff]   ;;  %v7663_v16 = vrot.slane %v32093_v60, 1 }
 0x5b7   :  { %v7630_v62 = vsel %vm7534_vm11, %v7625_v58, %v7629_v59  ;;  %v32090_v58 = vshll.u32 %v26058_v41, 16  ;;  %v7659_v27 = vrot.slane %v32091_v25, 1  ;;  %20842 = vmatprep.subr.bf16.mxu1 %v23305_v12  ;;  %v32108_v25 = vshll.u32 %v26173_v15, 16 }
 0x5b8   :  { %v7634_v22 = vsel %vm7534_vm11, %v7629_v59, %v7633_v3  ;;  %v32094_v59 = vshll.u32 %v26084_v44, 16  ;;  %20843 = vmatpush3.bf16.msra.mxu1 %v23305_v12  ;;  %v32097_v44 = vshrl.u32 %v26110_v10, 16  ;;  %v32110_v12 = vshll.u32 %v26188_v29, 16 }
 0x5b9   :  { %20783 = vmatmul.mubr.msk.bf16.gmra.mrb[28].mxu0 %vm440_vm3, %v7606_v6  ;;  %v7636_v6 = vrot.slane %v32080_v53, 2 }
 0x5ba   :  { %20786 = vmatprep.mubr.msk.bf16.mxu0 %vm440_vm3, %v7610_v7  ;;  %v7671_v48 = vrot.slane %v32097_v44, 1  ;;  %v23304_v44 = vld [vmem:[%s31292_s0 + $0x16c] ss:$0 sps:$4 sm:$0xff]  }
 0x5bb   :  { %v7637_v7 = vor.u32 %v7636_v6, %v7635_v18  ;;  %v32095_v18 = vshrl.u32 %v26098_v63, 16  ;;  %v32096_v6 = vshll.u32 %v26098_v63, 16  ;;  %v7675_v63 = vrot.slane %v32099_v46, 1 }
 0x5bd   :  { %v7638_v17 = vsel %vm7534_vm11, %v7633_v3, %v7637_v7  ;;  %v7642_v20 = vsel %vm7534_vm11, %v7637_v7, %v7641_v47  ;;  %v7664_v3 = vrot.slane %v32094_v59, 2  ;;  %v7667_v53 = vrot.slane %v32095_v18, 1 }
 0x5be   :  { %v7677_v42 = vor.u32 %v7676_v56, %v7675_v63  ;;  %v32115_v63 = vshll.u32 %v26236_v33, 16 }
 0x5c0   :  { %v7708_v23 = vrot.slane %v32115_v63, 2 }
 0x5c1   :  { %20787 = vmatmul.mubr.msk.bf16.gmra.mrb[32].mxu0 %vm440_vm3, %v7614_v34  ;;  %v32085_v34 = vshrl.u32 %v26032_v32, 16  ;;  %v7655_v32 = vrot.slane %v32089_v43, 1 }
 0x5c2   :  { %20790 = vmatprep.mubr.msk.bf16.mxu0 %vm440_vm3, %v7618_v19  ;;  %v7646_v19 = vsel %vm7534_vm11, %v7641_v47, %v7645_v8  ;;  %v7673_v47 = vor.u32 %v7672_v55, %v7671_v48  ;;  %v7712_v55 = vshrl.u32 %v23304_v44, 16 }
 0x5c3   :  { %v7647_v9 = vrot.slane %v32085_v34, 1  ;;  %v32102_v34 = vshll.u32 %v26136_v61, 16 }
 0x5c5   :  { %v7649_v39 = vor.u32 %v7648_v37, %v7647_v9  ;;  %v7680_v9 = vrot.slane %v32102_v34, 2 }
 0x5c7   :  { %v7650_v52 = vsel %vm7534_vm11, %v7645_v8, %v7649_v39  ;;  %v7654_v0 = vsel %vm7534_vm11, %v7649_v39, %v7653_v11  ;;  %v26899_v8 = vpop.permute.xlu0 %8509  ;;  %v7678_v39 = vsel %vm7534_vm11, %v7673_v47, %v7677_v42 }
 0x5c9   :  { %20791 = vmatmul.mubr.msk.bf16.gmra.mrb[36].mxu0 %vm440_vm3, %v7622_v54  ;;  %v7656_v54 = vrot.slane %v32090_v58, 2 }
 0x5ca   :  { %20794 = vmatprep.mubr.msk.bf16.mxu0 %vm440_vm3, %v7626_v24  ;;  %v32092_v24 = vshll.u32 %v26072_v45, 16 }
 0x5cb   :  { %v7657_v4 = vor.u32 %v7656_v54, %v7655_v32  ;;  %v26912_v32 = vpop.permute.xlu1 %8519 }
 0x5cc   :  { %v7660_v51 = vrot.slane %v32092_v24, 2  ;;  %v32109_v24 = vshrl.u32 %v26188_v29, 16  ;;  %v32112_v29 = vshll.u32 %v26202_v57, 16 }
 0x5cd   :  { %v7658_v41 = vsel %vm7534_vm11, %v7653_v11, %v7657_v4  ;;  %v26915_v11 = vpop.permute.xlu0 %8514 }
 0x5ce   :  { %v7661_v45 = vor.u32 %v7660_v51, %v7659_v27  ;;  %v7692_v27 = vrot.slane %v32108_v25, 2  ;;  %v7695_v51 = vrot.slane %v32109_v24, 1  ;;  %v7700_v18 = vrot.slane %v32112_v29, 2 }
 0x5cf   :  { %v26927_v60 = vpop.permute.xlu1 %8524 }
 0x5d0   :  { %v7662_v38 = vsel %vm7534_vm11, %v7657_v4, %v7661_v45  ;;  %v32107_v4 = vshrl.u32 %v26173_v15, 16 }
 0x5d1   :  { %20795 = vmatmul.mubr.msk.bf16.gmra.mrb[40].mxu0 %vm440_vm3, %v7630_v62  ;;  %v7665_v62 = vor.u32 %v7664_v3, %v7663_v16  ;;  %v26930_v16 = vpop.permute.xlu0 %8529 }
 0x5d2   :  { %20798 = vmatprep.mubr.msk.bf16.mxu0 %vm440_vm3, %v7634_v22  ;;  %v7668_v22 = vrot.slane %v32096_v6, 2  ;;  %v7703_v6 = vrot.slane %v6203_v49, 1 }
 0x5d3   :  { %v7666_v21 = vsel %vm7534_vm11, %v7661_v45, %v7665_v62  ;;  %v26933_v15 = vpop.permute.xlu1 %8534 }
 0x5d4   :  { %v7669_v7 = vor.u32 %v7668_v22, %v7667_v53  ;;  %v32113_v22 = vshll.u32 %v26222_v31, 16 }
 0x5d5   :  { %v26948_v48 = vpop.permute.xlu0 %8539 }
 0x5d6   :  { %v7674_v30 = vsel %vm7534_vm11, %v7669_v7, %v7673_v47 }
 0x5d7   :  { %v26952_v47 = vpop.permute.xlu1 %8544 }
 0x5d9   :  { %20799 = vmatmul.mubr.msk.bf16.gmra.mrb[44].mxu0 %vm440_vm3, %v7638_v17  ;;  %v7670_v17 = vsel %vm7534_vm11, %v7665_v62, %v7669_v7  ;;  %v32111_v62 = vshrl.u32 %v26202_v57, 16  ;;  %v7715_v7 = vshll.u32 %v23304_v44, 16  ;;  %v26954_v49 = vpop.permute.xlu0 %8549 }
 0x5da   :  { %20802 = vmatprep.mubr.msk.bf16.mxu0 %vm440_vm3, %v7642_v20  ;;  %v32101_v20 = vshrl.u32 %v26136_v61, 16  ;;  %v32105_v61 = vshrl.u32 %v26162_v5, 16 }
 0x5dc   :  { %v7679_v10 = vrot.slane %v32101_v20, 1  ;;  %v7687_v14 = vrot.slane %v32105_v61, 1  ;;  %v7717_v20 = vrot.slane %v7715_v7, 2 }
 0x5de   :  { %v7681_v37 = vor.u32 %v7680_v9, %v7679_v10  ;;  %v26963_v10 = vpop.permute.xlu1 %8554 }
 0x5e0   :  { %v7682_v2 = vsel %vm7534_vm11, %v7677_v42, %v7681_v37  ;;  %v26966_v42 = vpop.permute.xlu0 %8559 }
 0x5e1   :  { %20803 = vmatmul.mubr.msk.bf16.gmra.mrb[48].mxu0 %vm440_vm3, %v7646_v19  ;;  %v7683_v19 = vrot.slane %v32103_v28, 1 }
 0x5e2   :  { %20806 = vmatprep.mubr.msk.bf16.mxu0 %vm440_vm3, %v7650_v52  ;;  %v32106_v52 = vshll.u32 %v26162_v5, 16 }
 0x5e3   :  { %v7685_v58 = vor.u32 %v7684_v26, %v7683_v19 }
 0x5e4   :  { %v7688_v43 = vrot.slane %v32106_v52, 2  ;;  %v26973_v28 = vpop.permute.xlu0 %8569 }
 0x5e5   :  { %v7686_v13 = vsel %vm7534_vm11, %v7681_v37, %v7685_v58 }
 0x5e6   :  { %v7689_v54 = vor.u32 %v7688_v43, %v7687_v14 }
 0x5e8   :  { %v7690_v5 = vsel %vm7534_vm11, %v7685_v58, %v7689_v54  ;;  %v26978_v40 = vpop.permute.xlu0 %8579 }
 0x5e9   :  { %20807 = vmatmul.mubr.msk.bf16.gmra.mrb[52].mxu0 %vm440_vm3, %v7654_v0  ;;  %v7691_v0 = vrot.slane %v32107_v4, 1 }
 0x5ea   :  { %20810 = vmatprep.mubr.msk.bf16.mxu0 %vm440_vm3, %v7658_v41  ;;  %v7696_v41 = vrot.slane %v32110_v12, 2 }
 0x5eb   :  { %v7693_v59 = vor.u32 %v7692_v27, %v7691_v0 }
 0x5ec   :  { %v7697_v3 = vor.u32 %v7696_v41, %v7695_v51 }
 0x5ed   :  { %v7694_v45 = vsel %vm7534_vm11, %v7689_v54, %v7693_v59 }
 0x5ee   :  { %v7698_v53 = vsel %vm7534_vm11, %v7693_v59, %v7697_v3 }
 0x5f1   :  { %20811 = vmatmul.mubr.msk.bf16.gmra.mrb[56].mxu0 %vm440_vm3, %v7662_v38  ;;  %v7699_v38 = vrot.slane %v32111_v62, 1  ;;  %v27021_v62 = vld [vmem:[%s31296_s4] ss:$0 sm:$0xff] }
 0x5f2   :  { %20814 = vmatprep.mubr.msk.bf16.mxu0 %vm440_vm3, %v7666_v21  ;;  %v7704_v21 = vrot.slane %v32113_v22, 2 }
 0x5f3   :  { %v7701_v57 = vor.u32 %v7700_v18, %v7699_v38 }
 0x5f4   :  { %v7705_v35 = vor.u32 %v7704_v21, %v7703_v6 }
 0x5f5   :  { %v7702_v31 = vsel %vm7534_vm11, %v7697_v3, %v7701_v57 }
 0x5f6   :  { %v7706_v56 = vsel %vm7534_vm11, %v7701_v57, %v7705_v35 }
 0x5f9   :  { %20815 = vmatmul.mubr.msk.bf16.gmra.mrb[60].mxu0 %vm440_vm3, %v7670_v17  ;;  %v32114_v17 = vshrl.u32 %v26236_v33, 16  ;;  %v26970_v33 = vpop.permute.xlu1 %8564 }
 0x5fa   :  { %20818 = vmatprep.mubr.msk.bf16.mxu0 %vm440_vm3, %v7674_v30  ;;  %v7714_v30 = vrot.slane %v7712_v55, 1 }
 0x5fb   :  { %v7707_v46 = vrot.slane %v32114_v17, 1 }
 0x5fc   :  { %v7718_v9 = vor.u32 %v7717_v20, %v7714_v30 }
 0x5fd   :  { %v7709_v34 = vor.u32 %v7708_v23, %v7707_v46  ;;  %v26976_v19 = vpop.permute.xlu1 %8574 }
 0x5ff   :  { %v7710_v37 = vsel %vm7534_vm11, %v7705_v35, %v7709_v34  ;;  %v27036_v35 = vld [vmem:[%s31297_s5] sm:$0xff]  }
 0x600   :  { %20932 = vmatprep.subr.bf16.mxu1 %v27036_v35 }
 0x601   :  { %20819 = vmatmul.mubr.msk.bf16.gmra.mrb[64].mxu0 %vm440_vm3, %v7678_v39  ;;  %v7719_v39 = vsel %vm7534_vm11, %v7709_v34, %v7718_v9  ;;  %v26981_v26 = vpop.permute.xlu1 %8584 }
 0x602   :  { %20822 = vmatprep.mubr.msk.bf16.mxu0 %vm440_vm3, %v7682_v2  ;;  %v26983_v2 = vpop.permute.xlu0 %8589 }
 0x605   :  { %v26985_v61 = vpop.permute.xlu1 %8594 }
 0x606   :  { %v26987_v14 = vpop.permute.xlu0 %8599 }
 0x609   :  { %20823 = vmatmul.mubr.msk.bf16.gmra.mrb[68].mxu0 %vm440_vm3, %v7686_v13  ;;  %v26989_v52 = vpop.permute.xlu1 %8604 }
 0x60a   :  { %20826 = vmatprep.mubr.msk.bf16.mxu0 %vm440_vm3, %v7690_v5  ;;  %v26991_v43 = vpop.permute.xlu0 %8609 }
 0x60d   :  { %v26993_v58 = vpop.permute.xlu1 %8614 }
 0x60e   :  { %v26995_v54 = vpop.permute.xlu0 %8619 }
 0x611   :  { %20827 = vmatmul.mubr.msk.bf16.gmra.mrb[72].mxu0 %vm440_vm3, %v7694_v45  ;;  %v26997_v13 = vpop.permute.xlu1 %8624 }
 0x612   :  { %20830 = vmatprep.mubr.msk.bf16.mxu0 %vm440_vm3, %v7698_v53  ;;  %v26999_v4 = vpop.permute.xlu0 %8629 }
 0x615   :  { %v27001_v0 = vpop.permute.xlu1 %8634 }
 0x616   :  { %v27003_v25 = vpop.permute.xlu0 %8639 }
 0x619   :  { %20831 = vmatmul.mubr.msk.bf16.gmra.mrb[76].mxu0 %vm440_vm3, %v7702_v31  ;;  %v27011_v59 = vpop.permute.xlu1 %8644 }
 0x61a   :  { %20834 = vmatprep.mubr.msk.bf16.mxu0 %vm440_vm3, %v7706_v56  ;;  %v27016_v45 = vpop.permute.xlu0 %8649 }
 0x61e   :  { %v27028_v22 = vpop.permute.xlu0 %8659 }
 0x621   :  { %20835 = vmatmul.mubr.msk.bf16.gmra.mrb[80].mxu0 %vm440_vm3, %v7710_v37 }
 0x622   :  { %20838 = vmatprep.mubr.msk.bf16.mxu0 %vm440_vm3, %v7719_v39  ;;  %v27044_v56 = vpop.permute.xlu0 %8669  ;;  %v9348_v39 = vld [vmem:[#allocation2] sm:$0xf8] }
 0x629   :  { %20839 = vmatmul.mubr.msk.bf16.gmra.mrb[112].mxu0 %vm440_vm3, %v7718_v9  ;;  %vm17738_vm3 = vcmask 424960  }
 0x64c   :  { %v20750_v27 = vpop.f32.mrb[108].mxu0 }
 0x64d   :  { %v27006_v5 = vadd.f32 %v20750_v27, %v26744_v36  ;;  %v7427_v24 = vpop.f32.mrb[109].mxu0 }
 0x64e   :  { %v27009_v51 = vadd.f32 %v7427_v24, %v26747_v50  ;;  %v20751_v12 = vpop.f32.mrb[110].mxu0  ;;  %v27024_v50 = vpop.permute.xlu1 %8654 }
 0x64f   :  { %v7430_v41 = vpop.f32.mrb[111].mxu0 }
 0x650   :  { %v27014_v3 = vadd.f32 %v7430_v41, %v26760_v1 }
 0x652   :  { %v27041_v17 = vpop.permute.xlu1 %8664 }
 0x654   :  { %v20756_v36 = vpop.f32.mrb[0].mxu0 }
 0x655   :  { %v8335_v38 = vadd.f32 %v20756_v36, %v27021_v62  ;;  %v7889_v29 = vpop.f32.mrb[1].mxu0 }
 0x656   :  { %v8333_v18 = vadd.f32 %v27021_v62, %v7889_v29  ;;  %v20757_v53 = vpop.f32.mrb[2].mxu0  ;;  %v27053_v12 = vpop.permute.xlu1 %8674  ;;  %v10927_v29 = vshrl.u32 %v9348_v39, 16 }
 0x657   :  { %v8336_v6 = vadd.f32 %v20757_v53, %v27021_v62  ;;  %v7892_v1 = vpop.f32.mrb[3].mxu0  ;;  %v8944_v44 = vmul.f32 %v26912_v32, %v8335_v38  ;;  %v27057_v53 = vpop.permute.xlu0 %8679 }
 0x658   :  { %v8334_v21 = vadd.f32 %v27021_v62, %v7892_v1  ;;  %v8942_v55 = vmul.f32 %v26899_v8, %v8333_v18  ;;  %v10930_v18 = vshll.u32 %v9348_v39, 16 }
 0x659   :  { %v8945_v57 = vmul.f32 %v26927_v60, %v8336_v6 }
 0x65a   :  { %v8943_v7 = vmul.f32 %v26915_v11, %v8334_v21 }
 0x65b   :  { %v9034_v31 = vpack.c.bf16 %v8945_v57, %v8944_v44 }
 0x65c   :  { %v9033_v46 = vpack.c.bf16 %v8943_v7, %v8942_v55  ;;  %v20760_v63 = vpop.f32.mrb[4].mxu0  ;;  %v9396_v7 = vrot.slane %v9348_v39, 3 }
 0x65d   :  { %v9123_v23 = vrot.slane %v9034_v31, 4  ;;  %v8339_v32 = vadd.f32 %v20760_v63, %v27021_v62  ;;  %v7905_v60 = vpop.f32.mrb[5].mxu0  ;;  %v27063_v63 = vrot.slane %v10927_v29, 3 }
 0x65e   :  { %v9122_v30 = vrot.slane %v9033_v46, 4  ;;  %v8337_v8 = vadd.f32 %v27021_v62, %v7905_v60  ;;  %v20761_v20 = vpop.f32.mrb[6].mxu0  ;;  %v27067_v60 = vpop.permute.xlu1 %8684 }
 0x65f   :  { %v8340_v11 = vadd.f32 %v20761_v20, %v27021_v62  ;;  %v7908_v34 = vpop.f32.mrb[7].mxu0  ;;  %v8948_v27 = vmul.f32 %v26948_v48, %v8339_v32  ;;  %v27065_v32 = vrot.slane %v10930_v18, 4 }
 0x660   :  { %v9124_v9 = vsel %vm9121_vm12, %v9122_v30, %v9123_v23  ;;  %9254 = vst.msk [vmem:[#allocation2 + $0x8] sm:$0xf0] %vm9253_vm13, %v9122_v30  ;;  %v8338_v37 = vadd.f32 %v27021_v62, %v7908_v34  ;;  %v8946_v41 = vmul.f32 %v26930_v16, %v8337_v8 }
 0x661   :  { %9255 = vst.msk [vmem:[#allocation2 + $0x10] sm:$0xff] %vm9029_vm7, %v9124_v9  ;;  %v8949_v24 = vmul.f32 %v26952_v47, %v8340_v11 }
 0x662   :  { %v8947_v36 = vmul.f32 %v26933_v15, %v8338_v37 }
 0x663   :  { %v9036_v38 = vpack.c.bf16 %v8949_v24, %v8948_v27 }
 0x664   :  { %v9035_v6 = vpack.c.bf16 %v8947_v36, %v8946_v41  ;;  %v20764_v1 = vpop.f32.mrb[8].mxu0 }
 0x665   :  { %v9127_v21 = vrot.slane %v9036_v38, 4  ;;  %v8343_v44 = vadd.f32 %v20764_v1, %v27021_v62  ;;  %v7921_v57 = vpop.f32.mrb[9].mxu0 }
 0x666   :  { %v9125_v48 = vrot.slane %v9035_v6, 4  ;;  %v8341_v47 = vadd.f32 %v27021_v62, %v7921_v57  ;;  %v20765_v55 = vpop.f32.mrb[10].mxu0 }
 0x667   :  { %v8952_v16 = vmul.f32 %v26966_v42, %v8343_v44  ;;  %v8344_v15 = vadd.f32 %v20765_v55, %v27021_v62  ;;  %v7924_v31 = vpop.f32.mrb[11].mxu0  ;;  %v9303_v46 = vld [vmem:[#allocation2 + $0x8] sm:$0xff] }
 0x668   :  { %v9126_v30 = vsel %vm9121_vm12, %v9123_v23, %v9125_v48  ;;  %v9128_v8 = vsel %vm9121_vm12, %v9125_v48, %v9127_v21  ;;  %v8950_v20 = vmul.f32 %v26954_v49, %v8341_v47  ;;  %v8342_v11 = vadd.f32 %v27021_v62, %v7924_v31  ;;  %v27073_v34 = vld [vmem:[#allocation2 + $0x10] sm:$0xff]  ;;  %v27080_v23 = vpop.permute.xlu0 %8689 }
 0x669   :  { %9256 = vst.msk [vmem:[#allocation2 + $0x18] sm:$0xff] %vm9029_vm7, %v9126_v30  ;;  %9257 = vst.msk [vmem:[#allocation2 + $0x20] sm:$0xff] %vm9029_vm7, %v9128_v8  ;;  %v8953_v42 = vmul.f32 %v26970_v33, %v8344_v15  ;;  %v9397_v9 = vrot.slane %v9303_v46, 3  ;;  %v9399_v37 = vrot.slane %v27073_v34, 3  ;;  %v10023_v39 = vshrl.u32 %v27073_v34, 16 }
 0x66a   :  { %v8951_v27 = vmul.f32 %v26963_v10, %v8342_v11  ;;  %v10026_v49 = vshll.u32 %v27073_v34, 16  ;;  %v10014_v24 = vshrl.u32 %v9303_v46, 16  ;;  %v10017_v41 = vshll.u32 %v9303_v46, 16 }
 0x66b   :  { %v9038_v36 = vpack.c.bf16 %v8953_v42, %v8952_v16  ;;  %v9398_v38 = vsel %vm352_vm2, %v9396_v7, %v9397_v9  ;;  %v9400_v29 = vsel %vm352_vm2, %v9397_v9, %v9399_v37  ;;  %v10025_v33 = vrot.slane %v10023_v39, 2  ;;  %v27095_v16 = vpop.permute.xlu1 %8694 }
 0x66c   :  { %v9037_v18 = vpack.c.bf16 %v8951_v27, %v8950_v20  ;;  %20844 = vmatprep.mubr.msk.bf16.mxu1 %vm9029_vm7, %v9398_v38  ;;  %v20768_v6 = vpop.f32.mrb[12].mxu0  ;;  %v10016_v1 = vrot.slane %v10014_v24, 2  ;;  %v10019_v44 = vrot.slane %v10017_v41, 3  ;;  %v10028_v10 = vrot.slane %v10026_v49, 3  ;;  %v27106_v27 = vpop.permute.xlu0 %8699 }
 0x66d   :  { %v27091_v57 = vrot.slane %v9038_v36, 4  ;;  %v8347_v48 = vadd.f32 %v20768_v6, %v27021_v62  ;;  %20845 = vmatmul.mubr.msk.bf16.vlgmr.msra.gmra.mrb[4].mxu1 %vm9029_vm7, %v9400_v29  ;;  %v7937_v47 = vpop.f32.mrb[13].mxu0  ;;  %v10934_v55 = vrot.slane %v10014_v24, 3  ;;  %v10935_v7 = vrot.slane %v10017_v41, 4 }
 0x66e   :  { %v9129_v15 = vrot.slane %v9037_v18, 4  ;;  %v8345_v31 = vadd.f32 %v27021_v62, %v7937_v47  ;;  %v20769_v46 = vpop.f32.mrb[14].mxu0  ;;  %20933 = vmatpush3.bf16.msra.mxu1 %v27036_v35  ;;  %v27099_v30 = vor.u32 %v10019_v44, %v10016_v1  ;;  %v10029_v8 = vor.u32 %v10028_v10, %v10025_v33 }
 0x66f   :  { %v8348_v20 = vadd.f32 %v20769_v46, %v27021_v62  ;;  %v7940_v11 = vpop.f32.mrb[15].mxu0  ;;  %v10933_v42 = vor.u32 %v27065_v32, %v27063_v63  ;;  %v27104_v9 = vor.u32 %v10935_v7, %v10934_v55  ;;  %v8956_v35 = vmul.f32 %v26978_v40, %v8347_v48  ;;  %v27133_v48 = vpop.permute.xlu1 %8704 }
 0x670   :  { %v9130_v24 = vsel %vm9121_vm12, %v9127_v21, %v9129_v15  ;;  %v9132_v41 = vsel %vm9121_vm12, %v9129_v15, %v27091_v57  ;;  %v8346_v36 = vadd.f32 %v27021_v62, %v7940_v11  ;;  %v27113_v38 = vld [vmem:[#allocation2 + $0x18] sm:$0xff]  ;;  %v27115_v29 = vld [vmem:[#allocation2 + $0x20] sm:$0xff]  ;;  %v8954_v63 = vmul.f32 %v26973_v28, %v8345_v31 }
 0x671   :  { %9258 = vst.msk [vmem:[#allocation2 + $0x28] sm:$0xff] %vm9029_vm7, %v9130_v24  ;;  %9259 = vst.msk [vmem:[#allocation2 + $0x30] sm:$0xff] %vm9029_vm7, %v9132_v41  ;;  %v8957_v32 = vmul.f32 %v26981_v26, %v8348_v20  ;;  %v9401_v21 = vrot.slane %v27113_v38, 3  ;;  %v9403_v33 = vrot.slane %v27115_v29, 3  ;;  %v27126_v18 = vsel %vm967_vm4, %v27099_v30, %v10029_v8  ;;  %v27151_v24 = vpop.permute.xlu0 %8709 }
 0x672   :  { %v8955_v40 = vmul.f32 %v26976_v19, %v8346_v36  ;;  %v10032_v6 = vshrl.u32 %v27113_v38, 16  ;;  %v10035_v1 = vshll.u32 %v27113_v38, 16  ;;  %v10041_v26 = vshrl.u32 %v27115_v29, 16 }
 0x673   :  { %v9040_v44 = vpack.c.bf16 %v8957_v32, %v8956_v35  ;;  %v9402_v10 = vsel %vm352_vm2, %v9399_v37, %v9401_v21  ;;  %v9404_v28 = vsel %vm352_vm2, %v9401_v21, %v9403_v33  ;;  %v31522_v15 = vshll.u32 %v27115_v29, 16 }
 0x674   :  { %v9039_v47 = vpack.c.bf16 %v8955_v40, %v8954_v63  ;;  %v20772_v55 = vpop.f32.mrb[16].mxu0  ;;  %20848 = vmatprep.mubr.msk.bf16.mxu1 %vm9029_vm7, %v9402_v10  ;;  %v10034_v19 = vrot.slane %v10032_v6, 2  ;;  %v10037_v7 = vrot.slane %v10035_v1, 3  ;;  %v10043_v20 = vrot.slane %v10041_v26, 2 }
 0x675   :  { %v27141_v31 = vrot.slane %v9040_v44, 4  ;;  %v8351_v37 = vadd.f32 %v20772_v55, %v27021_v62  ;;  %v7953_v46 = vpop.f32.mrb[17].mxu0  ;;  %20849 = vmatmul.mubr.msk.bf16.gmra.mrb[8].mxu1 %vm9029_vm7, %v9404_v28  ;;  %v27149_v11 = vsel %vm1888_vm5, %v10933_v42, %v27104_v9  ;;  %v10046_v32 = vrot.slane %v31522_v15, 3 }
 0x676   :  { %v9133_v41 = vrot.slane %v9039_v47, 4  ;;  %v8349_v35 = vadd.f32 %v27021_v62, %v7953_v46  ;;  %v20773_v36 = vpop.f32.mrb[18].mxu0  ;;  %v10038_v63 = vor.u32 %v10037_v7, %v10034_v19  ;;  %v10938_v10 = vrot.slane %v10023_v39, 3 }
 0x677   :  { %v8960_v21 = vmul.f32 %v26987_v14, %v8351_v37  ;;  %v8352_v40 = vadd.f32 %v20773_v36, %v27021_v62  ;;  %v7956_v44 = vpop.f32.mrb[19].mxu0  ;;  %v10939_v42 = vrot.slane %v10026_v49, 4  ;;  %v10047_v46 = vor.u32 %v10046_v32, %v10043_v20 }
 0x678   :  { %v9134_v28 = vsel %vm9121_vm12, %v27091_v57, %v9133_v41  ;;  %v9136_v47 = vsel %vm9121_vm12, %v9133_v41, %v27141_v31  ;;  %v8958_v55 = vmul.f32 %v26983_v2, %v8349_v35  ;;  %v8350_v19 = vadd.f32 %v27021_v62, %v7956_v44  ;;  %v27168_v14 = vld [vmem:[#allocation2 + $0x28] sm:$0xff]  ;;  %v27170_v7 = vld [vmem:[#allocation2 + $0x30] sm:$0xff]  ;;  %v27180_v2 = vpop.permute.xlu1 %8714 }
 0x679   :  { %9260 = vst.msk [vmem:[#allocation2 + $0x38] sm:$0xff] %vm9029_vm7, %v9134_v28  ;;  %9261 = vst.msk [vmem:[#allocation2 + $0x40] sm:$0xff] %vm9029_vm7, %v9136_v47  ;;  %v8961_v34 = vmul.f32 %v26989_v52, %v8352_v40  ;;  %v9405_v39 = vrot.slane %v27168_v14, 3  ;;  %v9407_v49 = vrot.slane %v27170_v7, 3  ;;  %v27178_v57 = vsel %vm967_vm4, %v10029_v8, %v10038_v63  ;;  %v27188_v28 = vpop.permute.xlu0 %8719 }
 0x67a   :  { %v8959_v37 = vmul.f32 %v26985_v61, %v8350_v19  ;;  %v31519_v41 = vshrl.u32 %v27168_v14, 16  ;;  %v31520_v35 = vshll.u32 %v27168_v14, 16  ;;  %v31521_v40 = vshrl.u32 %v27170_v7, 16 }
 0x67b   :  { %v9042_v36 = vpack.c.bf16 %v8961_v34, %v8960_v21  ;;  %v9406_v44 = vsel %vm352_vm2, %v9403_v33, %v9405_v39  ;;  %v9408_v52 = vsel %vm352_vm2, %v9405_v39, %v9407_v49  ;;  %v27192_v61 = vsel %vm967_vm4, %v10038_v63, %v10047_v46 }
 0x67c   :  { %v9041_v8 = vpack.c.bf16 %v8959_v37, %v8958_v55  ;;  %v20776_v47 = vpop.f32.mrb[20].mxu0  ;;  %20852 = vmatprep.mubr.msk.bf16.mxu1 %vm9029_vm7, %v9406_v44  ;;  %v10052_v20 = vrot.slane %v31519_v41, 2  ;;  %v10055_v32 = vrot.slane %v31520_v35, 3  ;;  %v10061_v55 = vrot.slane %v31521_v40, 2  ;;  %v27212_v15 = vpop.permute.xlu1 %8724 }
 0x67d   :  { %v9139_v33 = vrot.slane %v9042_v36, 4  ;;  %v8355_v21 = vadd.f32 %v20776_v47, %v27021_v62  ;;  %v7969_v19 = vpop.f32.mrb[21].mxu0  ;;  %20853 = vmatmul.mubr.msk.bf16.gmra.mrb[12].mxu1 %vm9029_vm7, %v9408_v52  ;;  %v31523_v34 = vshll.u32 %v27170_v7, 16  ;;  %v27204_v41 = vor.u32 %v10939_v42, %v10938_v10 }
 0x67e   :  { %v9137_v39 = vrot.slane %v9041_v8, 4  ;;  %v8353_v63 = vadd.f32 %v27021_v62, %v7969_v19  ;;  %v20777_v37 = vpop.f32.mrb[22].mxu0  ;;  %v10056_v44 = vor.u32 %v10055_v32, %v10052_v20  ;;  %v10942_v40 = vrot.slane %v10032_v6, 3 }
 0x67f   :  { %v8964_v35 = vmul.f32 %v26995_v54, %v8355_v21  ;;  %v8356_v36 = vadd.f32 %v20777_v37, %v27021_v62  ;;  %v7972_v47 = vpop.f32.mrb[23].mxu0  ;;  %v10064_v52 = vrot.slane %v31523_v34, 3 }
 0x680   :  { %v9138_v8 = vsel %vm9121_vm12, %v27141_v31, %v9137_v39  ;;  %v9140_v20 = vsel %vm9121_vm12, %v9137_v39, %v9139_v33  ;;  %v8962_v10 = vmul.f32 %v26991_v43, %v8353_v63  ;;  %v8354_v54 = vadd.f32 %v27021_v62, %v7972_v47  ;;  %v27219_v42 = vld [vmem:[#allocation2 + $0x38] sm:$0xff]  ;;  %v9310_v32 = vld [vmem:[#allocation2 + $0x40] sm:$0xff]  ;;  %v27228_v39 = vpop.permute.xlu0 %8729  ;;  %v27247_v38 = vpop.permute.xlu1 %8734 }
 0x681   :  { %9262 = vst.msk [vmem:[#allocation2 + $0x48] sm:$0xff] %vm9029_vm7, %v9138_v8  ;;  %9263 = vst.msk [vmem:[#allocation2 + $0x50] sm:$0xff] %vm9029_vm7, %v9140_v20  ;;  %v8965_v6 = vmul.f32 %v26997_v13, %v8356_v36  ;;  %v9409_v21 = vrot.slane %v27219_v42, 3  ;;  %v9411_v19 = vrot.slane %v9310_v32, 3  ;;  %v27226_v31 = vsel %vm967_vm4, %v10047_v46, %v10056_v44 }
 0x682   :  { %v8963_v43 = vmul.f32 %v26993_v58, %v8354_v54  ;;  %v10065_v63 = vor.u32 %v10064_v52, %v10061_v55  ;;  %v10068_v37 = vshrl.u32 %v27219_v42, 16  ;;  %v31524_v47 = vshll.u32 %v27219_v42, 16 }
 0x683   :  { %v9044_v8 = vpack.c.bf16 %v8965_v6, %v8964_v35  ;;  %v9410_v20 = vsel %vm352_vm2, %v9407_v49, %v9409_v21  ;;  %v9412_v13 = vsel %vm352_vm2, %v9409_v21, %v9411_v19  ;;  %v10943_v36 = vrot.slane %v10035_v1, 4 }
 0x684   :  { %v9043_v32 = vpack.c.bf16 %v8963_v43, %v8962_v10  ;;  %v20780_v46 = vpop.f32.mrb[24].mxu0  ;;  %20856 = vmatprep.mubr.msk.bf16.mxu1 %vm9029_vm7, %v9410_v20  ;;  %v27239_v34 = vsel %vm967_vm4, %v10056_v44, %v10065_v63  ;;  %v10070_v58 = vrot.slane %v10068_v37, 2  ;;  %v10073_v35 = vrot.slane %v31524_v47, 3  ;;  %v27260_v20 = vpop.permute.xlu0 %8739 }
 0x685   :  { %v9143_v55 = vrot.slane %v9044_v8, 4  ;;  %v8359_v49 = vadd.f32 %v20780_v46, %v27021_v62  ;;  %v7985_v52 = vpop.f32.mrb[25].mxu0  ;;  %20857 = vmatmul.mubr.msk.bf16.gmra.mrb[16].mxu1 %vm9029_vm7, %v9412_v13  ;;  %v27255_v6 = vsel %vm1888_vm5, %v27104_v9, %v27204_v41  ;;  %v27258_v8 = vor.u32 %v10943_v36, %v10942_v40 }
 0x686   :  { %v9141_v1 = vrot.slane %v9043_v32, 4  ;;  %v8357_v10 = vadd.f32 %v27021_v62, %v7985_v52  ;;  %v20781_v54 = vpop.f32.mrb[26].mxu0  ;;  %v27250_v44 = vor.u32 %v10073_v35, %v10070_v58 }
 0x687   :  { %v8360_v21 = vadd.f32 %v20781_v54, %v27021_v62  ;;  %v7988_v43 = vpop.f32.mrb[27].mxu0  ;;  %v8968_v46 = vmul.f32 %v27003_v25, %v8359_v49 }
 0x688   :  { %v9142_v13 = vsel %vm9121_vm12, %v9139_v33, %v9141_v1  ;;  %v9144_v32 = vsel %vm9121_vm12, %v9141_v1, %v9143_v55  ;;  %v8358_v58 = vadd.f32 %v27021_v62, %v7988_v43  ;;  %v9311_v35 = vld [vmem:[#allocation2 + $0x48] sm:$0xff]  ;;  %v9312_v52 = vld [vmem:[#allocation2 + $0x50] sm:$0xff]  ;;  %v27271_v54 = vsel %vm967_vm4, %v10065_v63, %v27250_v44 }
 0x689   :  { %9264 = vst.msk [vmem:[#allocation2 + $0x58] sm:$0xff] %vm9029_vm7, %v9142_v13  ;;  %9265 = vst.msk [vmem:[#allocation2 + $0x60] sm:$0xff] %vm9029_vm7, %v9144_v32  ;;  %v8969_v9 = vmul.f32 %v27011_v59, %v8360_v21  ;;  %v9413_v40 = vrot.slane %v9311_v35, 3  ;;  %v9415_v36 = vrot.slane %v9312_v52, 3  ;;  %v8966_v33 = vmul.f32 %v26999_v4, %v8357_v10  ;;  %v27277_v13 = vpop.permute.xlu1 %8744  ;;  %v27282_v4 = vpop.permute.xlu0 %8749 }
 0x68a   :  { %v8967_v25 = vmul.f32 %v27001_v0, %v8358_v58 }
 0x68b   :  { %v9046_v49 = vpack.c.bf16 %v8969_v9, %v8968_v46  ;;  %v9414_v1 = vsel %vm352_vm2, %v9411_v19, %v9413_v40  ;;  %v9416_v43 = vsel %vm352_vm2, %v9413_v40, %v9415_v36  ;;  %v27288_v46 = vsel %vm1888_vm5, %v27204_v41, %v27258_v8 }
 0x68c   :  { %v9045_v32 = vpack.c.bf16 %v8967_v25, %v8966_v33  ;;  %v20784_v47 = vpop.f32.mrb[28].mxu0  ;;  %20860 = vmatprep.mubr.msk.bf16.mxu1 %vm9029_vm7, %v9414_v1 }
 0x68d   :  { %v9147_v59 = vrot.slane %v9046_v49, 4  ;;  %v8363_v21 = vadd.f32 %v20784_v47, %v27021_v62  ;;  %v8001_v63 = vpop.f32.mrb[29].mxu0  ;;  %20861 = vmatmul.mubr.msk.bf16.gmra.mrb[20].mxu1 %vm9029_vm7, %v9416_v43  ;;  %v27298_v43 = vpop.permute.xlu1 %8754 }
 0x68e   :  { %v9145_v0 = vrot.slane %v9045_v32, 4  ;;  %v8361_v10 = vadd.f32 %v27021_v62, %v8001_v63  ;;  %v20785_v19 = vpop.f32.mrb[30].mxu0 }
 0x68f   :  { %v8364_v58 = vadd.f32 %v20785_v19, %v27021_v62  ;;  %v8004_v35 = vpop.f32.mrb[31].mxu0  ;;  %v8972_v25 = vmul.f32 %v27028_v22, %v8363_v21 }
 0x690   :  { %v9146_v52 = vsel %vm9121_vm12, %v9143_v55, %v9145_v0  ;;  %v9148_v47 = vsel %vm9121_vm12, %v9145_v0, %v9147_v59  ;;  %v8362_v9 = vadd.f32 %v27021_v62, %v8004_v35  ;;  %v9313_v40 = vld [vmem:[#allocation2 + $0x58] sm:$0xff]  ;;  %v9314_v33 = vld [vmem:[#allocation2 + $0x60] sm:$0xff]  ;;  %v8970_v55 = vmul.f32 %v27016_v45, %v8361_v10  ;;  %v27304_v35 = vpop.permute.xlu0 %8759 }
 0x691   :  { %9266 = vst.msk [vmem:[#allocation2 + $0x68] sm:$0xff] %vm9029_vm7, %v9146_v52  ;;  %9267 = vst.msk [vmem:[#allocation2 + $0x70] sm:$0xff] %vm9029_vm7, %v9148_v47  ;;  %v8973_v41 = vmul.f32 %v27041_v17, %v8364_v58  ;;  %v9417_v49 = vrot.slane %v9313_v40, 3  ;;  %v9419_v1 = vrot.slane %v9314_v33, 3 }
 0x692   :  { %v8971_v32 = vmul.f32 %v27024_v50, %v8362_v9  ;;  %v27311_v9 = vpop.permute.xlu1 %8764 }
 0x693   :  { %v9048_v63 = vpack.c.bf16 %v8973_v41, %v8972_v25  ;;  %v9418_v0 = vsel %vm352_vm2, %v9415_v36, %v9417_v49  ;;  %v9420_v19 = vsel %vm352_vm2, %v9417_v49, %v9419_v1 }
 0x694   :  { %v9047_v52 = vpack.c.bf16 %v8971_v32, %v8970_v55  ;;  %v20788_v47 = vpop.f32.mrb[32].mxu0  ;;  %20864 = vmatprep.mubr.msk.bf16.mxu1 %vm9029_vm7, %v9418_v0 }
 0x695   :  { %v9151_v22 = vrot.slane %v9048_v63, 4  ;;  %v8367_v17 = vadd.f32 %v20788_v47, %v27021_v62  ;;  %v8017_v21 = vpop.f32.mrb[33].mxu0  ;;  %20865 = vmatmul.mubr.msk.bf16.gmra.mrb[24].mxu1 %vm9029_vm7, %v9420_v19  ;;  %v27320_v19 = vpop.permute.xlu0 %8769  ;;  %v10946_v47 = vrot.slane %v10041_v26, 3 }
 0x696   :  { %v9149_v45 = vrot.slane %v9047_v52, 4  ;;  %v8365_v50 = vadd.f32 %v27021_v62, %v8017_v21  ;;  %v20789_v10 = vpop.f32.mrb[34].mxu0  ;;  %v32116_v21 = vshll.u32 %v27115_v29, 16 }
 0x697   :  { %v8368_v36 = vadd.f32 %v20789_v10, %v27021_v62  ;;  %v8020_v58 = vpop.f32.mrb[35].mxu0  ;;  %v8976_v55 = vmul.f32 %v27057_v53, %v8367_v17 }
 0x698   :  { %v9150_v40 = vsel %vm9121_vm12, %v9147_v59, %v9149_v45  ;;  %v9152_v33 = vsel %vm9121_vm12, %v9149_v45, %v9151_v22  ;;  %v8366_v25 = vadd.f32 %v27021_v62, %v8020_v58  ;;  %v9315_v41 = vld [vmem:[#allocation2 + $0x68] sm:$0xff]  ;;  %v9316_v49 = vld [vmem:[#allocation2 + $0x70] sm:$0xff]  ;;  %v8974_v59 = vmul.f32 %v27044_v56, %v8365_v50 }
 0x699   :  { %9268 = vst.msk [vmem:[#allocation2 + $0x78] sm:$0xff] %vm9029_vm7, %v9150_v40  ;;  %9269 = vst.msk [vmem:[#allocation2 + $0x80] sm:$0xff] %vm9029_vm7, %v9152_v33  ;;  %v8977_v32 = vmul.f32 %v27067_v60, %v8368_v36  ;;  %v9421_v63 = vrot.slane %v9315_v41, 3  ;;  %v9423_v0 = vrot.slane %v9316_v49, 3  ;;  %v10947_v45 = vrot.slane %v32116_v21, 4  ;;  %v27339_v41 = vpop.permute.xlu0 %8779 }
 0x69a   :  { %v8975_v52 = vmul.f32 %v27053_v12, %v8366_v25  ;;  %v27333_v12 = vpop.permute.xlu1 %8774 }
 0x69b   :  { %v9050_v10 = vpack.c.bf16 %v8977_v32, %v8976_v55  ;;  %v9422_v58 = vsel %vm352_vm2, %v9419_v1, %v9421_v63  ;;  %v9424_v53 = vsel %vm352_vm2, %v9421_v63, %v9423_v0  ;;  %v27336_v33 = vor.u32 %v10947_v45, %v10946_v47 }
 0x69c   :  { %v9049_v60 = vpack.c.bf16 %v8975_v52, %v8974_v59  ;;  %v20792_v17 = vpop.f32.mrb[36].mxu0  ;;  %20868 = vmatprep.mubr.msk.bf16.mxu1 %vm9029_vm7, %v9422_v58 }
 0x69d   :  { %v9155_v36 = vrot.slane %v9050_v10, 4  ;;  %v8371_v56 = vadd.f32 %v20792_v17, %v27021_v62  ;;  %v8033_v50 = vpop.f32.mrb[37].mxu0  ;;  %20869 = vmatmul.mubr.msk.bf16.gmra.mrb[28].mxu1 %vm9029_vm7, %v9424_v53 }
 0x69e   :  { %v9153_v26 = vrot.slane %v9049_v60, 4  ;;  %v8369_v29 = vadd.f32 %v27021_v62, %v8033_v50  ;;  %v20793_v40 = vpop.f32.mrb[38].mxu0  ;;  %v27352_v17 = vpop.permute.xlu1 %8784 }
 0x69f   :  { %v8372_v1 = vadd.f32 %v20793_v40, %v27021_v62  ;;  %v8036_v25 = vpop.f32.mrb[39].mxu0  ;;  %v8980_v52 = vmul.f32 %v27106_v27, %v8371_v56  ;;  %v27363_v40 = vsel %vm1888_vm5, %v27258_v8, %v27336_v33 }
 0x6a0   :  { %v9154_v49 = vsel %vm9121_vm12, %v9151_v22, %v9153_v26  ;;  %v9156_v55 = vsel %vm9121_vm12, %v9153_v26, %v9155_v36  ;;  %v8370_v32 = vadd.f32 %v27021_v62, %v8036_v25  ;;  %v9317_v63 = vld [vmem:[#allocation2 + $0x78] sm:$0xff]  ;;  %v9318_v59 = vld [vmem:[#allocation2 + $0x80] sm:$0xff]  ;;  %v8978_v10 = vmul.f32 %v27080_v23, %v8369_v29  ;;  %v27357_v23 = vpop.permute.xlu0 %8789 }
 0x6a1   :  { %9270 = vst.msk [vmem:[#allocation2 + $0x88] sm:$0xff] %vm9029_vm7, %v9154_v49  ;;  %9271 = vst.msk [vmem:[#allocation2 + $0x90] sm:$0xff] %vm9029_vm7, %v9156_v55  ;;  %v8981_v47 = vmul.f32 %v27133_v48, %v8372_v1  ;;  %v9425_v21 = vrot.slane %v9317_v63, 3  ;;  %v9427_v45 = vrot.slane %v9318_v59, 3 }
 0x6a2   :  { %v8979_v22 = vmul.f32 %v27095_v16, %v8370_v32 }
 0x6a3   :  { %v9052_v58 = vpack.c.bf16 %v8981_v47, %v8980_v52  ;;  %v9426_v53 = vsel %vm352_vm2, %v9423_v0, %v9425_v21  ;;  %v9428_v60 = vsel %vm352_vm2, %v9425_v21, %v9427_v45 }
 0x6a4   :  { %v9051_v50 = vpack.c.bf16 %v8979_v22, %v8978_v10  ;;  %v20796_v26 = vpop.f32.mrb[40].mxu0  ;;  %20872 = vmatprep.mubr.msk.bf16.mxu1 %vm9029_vm7, %v9426_v53  ;;  %v27373_v10 = vpop.permute.xlu1 %8794 }
 0x6a5   :  { %v9159_v27 = vrot.slane %v9052_v58, 4  ;;  %v8375_v48 = vadd.f32 %v20796_v26, %v27021_v62  ;;  %v8049_v56 = vpop.f32.mrb[41].mxu0  ;;  %20873 = vmatmul.mubr.msk.bf16.gmra.mrb[32].mxu1 %vm9029_vm7, %v9428_v60  ;;  %v32117_v58 = vshrl.u32 %v27168_v14, 16  ;;  %v32118_v60 = vshll.u32 %v27168_v14, 16 }
 0x6a6   :  { %v9157_v16 = vrot.slane %v9051_v50, 4  ;;  %v8373_v29 = vadd.f32 %v27021_v62, %v8049_v56  ;;  %v20797_v0 = vpop.f32.mrb[42].mxu0 }
 0x6a7   :  { %v8376_v1 = vadd.f32 %v20797_v0, %v27021_v62  ;;  %v8052_v25 = vpop.f32.mrb[43].mxu0  ;;  %v8984_v52 = vmul.f32 %v27188_v28, %v8375_v48  ;;  %v10950_v53 = vrot.slane %v32117_v58, 3  ;;  %v10951_v50 = vrot.slane %v32118_v60, 4 }
 0x6a8   :  { %v9158_v49 = vsel %vm9121_vm12, %v9155_v36, %v9157_v16  ;;  %v9160_v55 = vsel %vm9121_vm12, %v9157_v16, %v9159_v27  ;;  %v8374_v32 = vadd.f32 %v27021_v62, %v8052_v25  ;;  %v9319_v63 = vld [vmem:[#allocation2 + $0x88] sm:$0xff]  ;;  %v9320_v59 = vld [vmem:[#allocation2 + $0x90] sm:$0xff]  ;;  %v8982_v36 = vmul.f32 %v27151_v24, %v8373_v29 }
 0x6a9   :  { %9272 = vst.msk [vmem:[#allocation2 + $0x98] sm:$0xff] %vm9029_vm7, %v9158_v49  ;;  %9273 = vst.msk [vmem:[#allocation2 + $0xa0] sm:$0xff] %vm9029_vm7, %v9160_v55  ;;  %v8985_v8 = vmul.f32 %v27212_v15, %v8376_v1  ;;  %v9429_v47 = vrot.slane %v9319_v63, 3  ;;  %v9431_v21 = vrot.slane %v9320_v59, 3  ;;  %v27383_v15 = vpop.permute.xlu0 %8799  ;;  %v27389_v25 = vor.u32 %v10951_v50, %v10950_v53  ;;  %v27392_v55 = vpop.permute.xlu1 %8804 }
 0x6aa   :  { %v8983_v22 = vmul.f32 %v27180_v2, %v8374_v32 }
 0x6ab   :  { %v9054_v26 = vpack.c.bf16 %v8985_v8, %v8984_v52  ;;  %v9430_v56 = vsel %vm352_vm2, %v9427_v45, %v9429_v47  ;;  %v9432_v28 = vsel %vm352_vm2, %v9429_v47, %v9431_v21 }
 0x6ac   :  { %v9053_v48 = vpack.c.bf16 %v8983_v22, %v8982_v36  ;;  %v20800_v16 = vpop.f32.mrb[44].mxu0  ;;  %20876 = vmatprep.mubr.msk.bf16.mxu1 %vm9029_vm7, %v9430_v56 }
 0x6ad   :  { %v9163_v24 = vrot.slane %v9054_v26, 4  ;;  %v8379_v2 = vadd.f32 %v20800_v16, %v27021_v62  ;;  %v8065_v29 = vpop.f32.mrb[45].mxu0  ;;  %20877 = vmatmul.mubr.msk.bf16.gmra.mrb[36].mxu1 %vm9029_vm7, %v9432_v28  ;;  %v27401_v53 = vpop.permute.xlu0 %8809 }
 0x6ae   :  { %v9161_v0 = vrot.slane %v9053_v48, 4  ;;  %v8377_v14 = vadd.f32 %v27021_v62, %v8065_v29  ;;  %v20801_v1 = vpop.f32.mrb[46].mxu0 }
 0x6af   :  { %v8380_v45 = vadd.f32 %v20801_v1, %v27021_v62  ;;  %v8068_v49 = vpop.f32.mrb[47].mxu0  ;;  %v8988_v47 = vmul.f32 %v27260_v20, %v8379_v2  ;;  %v27410_v2 = vpop.permute.xlu1 %8814 }
 0x6b0   :  { %v9162_v32 = vsel %vm9121_vm12, %v9159_v27, %v9161_v0  ;;  %v9164_v63 = vsel %vm9121_vm12, %v9161_v0, %v9163_v24  ;;  %v8378_v59 = vadd.f32 %v27021_v62, %v8068_v49  ;;  %v9321_v52 = vld [vmem:[#allocation2 + $0x98] sm:$0xff]  ;;  %v9322_v8 = vld [vmem:[#allocation2 + $0xa0] sm:$0xff]  ;;  %v8986_v27 = vmul.f32 %v27228_v39, %v8377_v14 }
 0x6b1   :  { %9274 = vst.msk [vmem:[#allocation2 + $0xa8] sm:$0xff] %vm9029_vm7, %v9162_v32  ;;  %9275 = vst.msk [vmem:[#allocation2 + $0xb0] sm:$0xff] %vm9029_vm7, %v9164_v63  ;;  %v8989_v36 = vmul.f32 %v27277_v13, %v8380_v45  ;;  %v9433_v22 = vrot.slane %v9321_v52, 3  ;;  %v9435_v58 = vrot.slane %v9322_v8, 3  ;;  %v27419_v1 = vpop.permute.xlu0 %8819 }
 0x6b2   :  { %v8987_v60 = vmul.f32 %v27247_v38, %v8378_v59 }
 0x6b3   :  { %v9056_v50 = vpack.c.bf16 %v8989_v36, %v8988_v47  ;;  %v9434_v26 = vsel %vm352_vm2, %v9431_v21, %v9433_v22  ;;  %v9436_v56 = vsel %vm352_vm2, %v9433_v22, %v9435_v58  ;;  %v27416_v21 = vsel %vm1888_vm5, %v27336_v33, %v27389_v25 }
 0x6b4   :  { %v9055_v28 = vpack.c.bf16 %v8987_v60, %v8986_v27  ;;  %v20804_v48 = vpop.f32.mrb[48].mxu0  ;;  %20880 = vmatprep.mubr.msk.bf16.mxu1 %vm9029_vm7, %v9434_v26  ;;  %v32119_v22 = vshrl.u32 %v27170_v7, 16  ;;  %v32120_v60 = vshll.u32 %v27170_v7, 16 }
 0x6b5   :  { %v9167_v20 = vrot.slane %v9056_v50, 4  ;;  %v8383_v13 = vadd.f32 %v20804_v48, %v27021_v62  ;;  %v8081_v16 = vpop.f32.mrb[49].mxu0  ;;  %20881 = vmatmul.mubr.msk.bf16.gmra.mrb[40].mxu1 %vm9029_vm7, %v9436_v56 }
 0x6b6   :  { %v9165_v39 = vrot.slane %v9055_v28, 4  ;;  %v8381_v38 = vadd.f32 %v27021_v62, %v8081_v16  ;;  %v20805_v29 = vpop.f32.mrb[50].mxu0  ;;  %v10954_v27 = vrot.slane %v32119_v22, 3  ;;  %v10955_v50 = vrot.slane %v32120_v60, 4  ;;  %v27441_v16 = vpop.permute.xlu0 %8829 }
 0x6b7   :  { %v8384_v0 = vadd.f32 %v20805_v29, %v27021_v62  ;;  %v8084_v14 = vpop.f32.mrb[51].mxu0  ;;  %v8992_v33 = vmul.f32 %v27304_v35, %v8383_v13  ;;  %v27436_v35 = vpop.permute.xlu1 %8824 }
 0x6b8   :  { %v9166_v45 = vsel %vm9121_vm12, %v9163_v24, %v9165_v39  ;;  %v9168_v49 = vsel %vm9121_vm12, %v9165_v39, %v9167_v20  ;;  %v8382_v32 = vadd.f32 %v27021_v62, %v8084_v14  ;;  %v9323_v63 = vld [vmem:[#allocation2 + $0xa8] sm:$0xff]  ;;  %v9324_v59 = vld [vmem:[#allocation2 + $0xb0] sm:$0xff]  ;;  %v8990_v36 = vmul.f32 %v27282_v4, %v8381_v38 }
 0x6b9   :  { %9276 = vst.msk [vmem:[#allocation2 + $0xb8] sm:$0xff] %vm9029_vm7, %v9166_v45  ;;  %9277 = vst.msk [vmem:[#allocation2 + $0xc0] sm:$0xff] %vm9029_vm7, %v9168_v49  ;;  %v8993_v52 = vmul.f32 %v27311_v9, %v8384_v0  ;;  %v9437_v8 = vrot.slane %v9323_v63, 3  ;;  %v9439_v47 = vrot.slane %v9324_v59, 3  ;;  %v27444_v38 = vor.u32 %v10955_v50, %v10954_v27 }
 0x6ba   :  { %v8991_v24 = vmul.f32 %v27298_v43, %v8382_v32  ;;  %v27460_v50 = vpop.permute.xlu0 %8839 }
 0x6bb   :  { %v9058_v26 = vpack.c.bf16 %v8993_v52, %v8992_v33  ;;  %v9438_v56 = vsel %vm352_vm2, %v9435_v58, %v9437_v8  ;;  %v9440_v28 = vsel %vm352_vm2, %v9437_v8, %v9439_v47 }
 0x6bc   :  { %v9057_v9 = vpack.c.bf16 %v8991_v24, %v8990_v36  ;;  %v20808_v48 = vpop.f32.mrb[52].mxu0  ;;  %20884 = vmatprep.mubr.msk.bf16.mxu1 %vm9029_vm7, %v9438_v56  ;;  %v27454_v36 = vpop.permute.xlu1 %8834 }
 0x6bd   :  { %v9171_v4 = vrot.slane %v9058_v26, 4  ;;  %v8387_v43 = vadd.f32 %v20808_v48, %v27021_v62  ;;  %v8097_v13 = vpop.f32.mrb[53].mxu0  ;;  %20885 = vmatmul.mubr.msk.bf16.gmra.mrb[44].mxu1 %vm9029_vm7, %v9440_v28 }
 0x6be   :  { %v9169_v7 = vrot.slane %v9057_v9, 4  ;;  %v8385_v39 = vadd.f32 %v27021_v62, %v8097_v13  ;;  %v20809_v58 = vpop.f32.mrb[54].mxu0 }
 0x6bf   :  { %v8388_v29 = vadd.f32 %v20809_v58, %v27021_v62  ;;  %v8100_v0 = vpop.f32.mrb[55].mxu0  ;;  %v8996_v59 = vmul.f32 %v27339_v41, %v8387_v43 }
 0x6c0   :  { %v9170_v14 = vsel %vm9121_vm12, %v9167_v20, %v9169_v7  ;;  %v9172_v45 = vsel %vm9121_vm12, %v9169_v7, %v9171_v4  ;;  %v8386_v49 = vadd.f32 %v27021_v62, %v8100_v0  ;;  %v9325_v32 = vld [vmem:[#allocation2 + $0xb8] sm:$0xff]  ;;  %v9326_v63 = vld [vmem:[#allocation2 + $0xc0] sm:$0xff]  ;;  %v8994_v20 = vmul.f32 %v27320_v19, %v8385_v39  ;;  %v27472_v13 = vpop.permute.xlu1 %8844 }
 0x6c1   :  { %9278 = vst.msk [vmem:[#allocation2 + $0xc8] sm:$0xff] %vm9029_vm7, %v9170_v14  ;;  %9279 = vst.msk [vmem:[#allocation2 + $0xd0] sm:$0xff] %vm9029_vm7, %v9172_v45  ;;  %v8997_v33 = vmul.f32 %v27352_v17, %v8388_v29  ;;  %v9441_v52 = vrot.slane %v9325_v32, 3  ;;  %v9443_v8 = vrot.slane %v9326_v63, 3 }
 0x6c2   :  { %v8995_v24 = vmul.f32 %v27333_v12, %v8386_v49  ;;  %v27487_v49 = vpop.permute.xlu0 %8849 }
 0x6c3   :  { %v9060_v22 = vpack.c.bf16 %v8997_v33, %v8996_v59  ;;  %v9442_v27 = vsel %vm352_vm2, %v9439_v47, %v9441_v52  ;;  %v9444_v60 = vsel %vm352_vm2, %v9441_v52, %v9443_v8  ;;  %v27469_v47 = vsel %vm1888_vm5, %v27389_v25, %v27444_v38 }
 0x6c4   :  { %v9059_v26 = vpack.c.bf16 %v8995_v24, %v8994_v20  ;;  %v20812_v56 = vpop.f32.mrb[56].mxu0  ;;  %20888 = vmatprep.mubr.msk.bf16.mxu1 %vm9029_vm7, %v9442_v27 }
 0x6c5   :  { %v9175_v41 = vrot.slane %v9060_v22, 4  ;;  %v8391_v17 = vadd.f32 %v20812_v56, %v27021_v62  ;;  %v8113_v28 = vpop.f32.mrb[57].mxu0  ;;  %20889 = vmatmul.mubr.msk.bf16.gmra.mrb[48].mxu1 %vm9029_vm7, %v9444_v60  ;;  %v10958_v60 = vrot.slane %v10068_v37, 3 }
 0x6c6   :  { %v9173_v19 = vrot.slane %v9059_v26, 4  ;;  %v8389_v12 = vadd.f32 %v27021_v62, %v8113_v28  ;;  %v20813_v9 = vpop.f32.mrb[58].mxu0  ;;  %v32123_v26 = vshll.u32 %v27219_v42, 16 }
 0x6c7   :  { %v8392_v48 = vadd.f32 %v20813_v9, %v27021_v62  ;;  %v8116_v43 = vpop.f32.mrb[59].mxu0  ;;  %v9000_v25 = vmul.f32 %v27383_v15, %v8391_v17 }
 0x6c8   :  { %v9174_v7 = vsel %vm9121_vm12, %v9171_v4, %v9173_v19  ;;  %v9176_v39 = vsel %vm9121_vm12, %v9173_v19, %v9175_v41  ;;  %v8390_v58 = vadd.f32 %v27021_v62, %v8116_v43  ;;  %v27477_v29 = vld [vmem:[#allocation2 + $0xc8] sm:$0xff]  ;;  %v27479_v0 = vld [vmem:[#allocation2 + $0xd0] sm:$0xff]  ;;  %v8998_v62 = vmul.f32 %v27357_v23, %v8389_v12  ;;  %v27509_v19 = vpop.permute.xlu0 %8859 }
 0x6c9   :  { %32121 = vst [vmem:[#allocation8_spill] sm:$0xff] %v27477_v29  ;;  %32122 = vst [vmem:[#allocation10_spill] sm:$0xff] %v27479_v0  ;;  %v9001_v14 = vmul.f32 %v27392_v55, %v8392_v48  ;;  %v9445_v45 = vrot.slane %v27477_v29, 3  ;;  %v9447_v4 = vrot.slane %v27479_v0, 3  ;;  %v27497_v55 = vld [vmem:[%s31296_s4] ss:$0 sm:$0xff] }
 0x6ca   :  { %9280 = vst.msk [vmem:[#allocation2 + $0xd8] sm:$0xff] %vm9029_vm7, %v9174_v7  ;;  %9281 = vst.msk [vmem:[#allocation2 + $0xe0] sm:$0xff] %vm9029_vm7, %v9176_v39  ;;  %v8999_v32 = vmul.f32 %v27373_v10, %v8390_v58  ;;  %v27501_v10 = vpop.permute.xlu1 %8854  ;;  %v10959_v56 = vrot.slane %v32123_v26, 4 }
 0x6cb   :  { %v9062_v63 = vpack.c.bf16 %v9001_v14, %v9000_v25  ;;  %v9446_v59 = vsel %vm352_vm2, %v9443_v8, %v9445_v45  ;;  %v9448_v33 = vsel %vm352_vm2, %v9445_v45, %v9447_v4 }
 0x6cc   :  { %v9061_v52 = vpack.c.bf16 %v8999_v32, %v8998_v62  ;;  %v20816_v20 = vpop.f32.mrb[60].mxu0  ;;  %20892 = vmatprep.mubr.msk.bf16.mxu1 %vm9029_vm7, %v9446_v59  ;;  %v27526_v14 = vor.u32 %v10959_v56, %v10958_v60 }
 0x6cd   :  { %v9179_v15 = vrot.slane %v9062_v63, 4  ;;  %v8395_v24 = vadd.f32 %v27497_v55, %v20816_v20  ;;  %v8129_v23 = vpop.f32.mrb[61].mxu0  ;;  %20893 = vmatmul.mubr.msk.bf16.gmra.mrb[52].mxu1 %vm9029_vm7, %v9448_v33 }
 0x6ce   :  { %v9177_v8 = vrot.slane %v9061_v52, 4  ;;  %v8393_v22 = vadd.f32 %v27497_v55, %v8129_v23  ;;  %v20817_v27 = vpop.f32.mrb[62].mxu0  ;;  %32126 = vst [vmem:[#allocation11_spill] sm:$0xff] %v27526_v14  ;;  %v8865_v63 = vpop.permute.xlu1 %8864 }
 0x6cf   :  { %v8396_v17 = vadd.f32 %v27497_v55, %v20817_v27  ;;  %v8132_v28 = vpop.f32.mrb[63].mxu0  ;;  %v9004_v42 = vmul.f32 %v27419_v1, %v8395_v24 }
 0x6d0   :  { %v9178_v12 = vsel %vm9121_vm12, %v9175_v41, %v9177_v8  ;;  %v9180_v9 = vsel %vm9121_vm12, %v9177_v8, %v9179_v15  ;;  %v8394_v48 = vadd.f32 %v27497_v55, %v8132_v28  ;;  %v9002_v58 = vmul.f32 %v27401_v53, %v8393_v22  ;;  %v27533_v53 = vpop.permute.xlu0 %8869 }
 0x6d1   :  { %v27514_v43 = vld [vmem:[#allocation2 + $0xd8] sm:$0xff]  ;;  %v27516_v7 = vld [vmem:[#allocation2 + $0xe0] sm:$0xff]  ;;  %9282 = vst.msk [vmem:[#allocation2 + $0xe8] sm:$0xff] %vm9029_vm7, %v9178_v12  ;;  %9283 = vst.msk [vmem:[#allocation2 + $0xf0] sm:$0xff] %vm9029_vm7, %v9180_v9  ;;  %v9005_v37 = vmul.f32 %v27436_v35, %v8396_v17 }
 0x6d2   :  { %32124 = vst [vmem:[#allocation9_spill] sm:$0xff] %v27514_v43  ;;  %32125 = vst [vmem:[#allocation12_spill] sm:$0xff] %v27516_v7  ;;  %v9449_v39 = vrot.slane %v27514_v43, 3  ;;  %v9451_v41 = vrot.slane %v27516_v7, 3  ;;  %v9003_v25 = vmul.f32 %v27410_v2, %v8394_v48  ;;  %v27555_v12 = vpop.permute.xlu1 %8874 }
 0x6d3   :  { %v9064_v45 = vpack.c.bf16 %v9005_v37, %v9004_v42 }
 0x6d4   :  { %v9450_v62 = vsel %vm352_vm2, %v9447_v4, %v9449_v39  ;;  %v9452_v32 = vsel %vm352_vm2, %v9449_v39, %v9451_v41  ;;  %v9063_v59 = vpack.c.bf16 %v9003_v25, %v9002_v58  ;;  %v20820_v1 = vpop.f32.mrb[64].mxu0  ;;  %v27539_v4 = vsel %vm1888_vm5, %v27444_v38, %v27526_v14  ;;  %v8880_v58 = vpop.permute.xlu0 %8879 }
 0x6d5   :  { %20896 = vmatprep.mubr.msk.bf16.mxu1 %vm9029_vm7, %v9450_v62  ;;  %v9183_v35 = vrot.slane %v9064_v45, 4  ;;  %v8399_v33 = vadd.f32 %v27497_v55, %v20820_v1  ;;  %v8145_v52 = vpop.f32.mrb[65].mxu0  ;;  %32127 = vst [vmem:[#allocation14_spill] sm:$0xff] %v27539_v4 }
 0x6d6   :  { %20897 = vmatmul.mubr.msk.bf16.gmra.mrb[56].mxu1 %vm9029_vm7, %v9452_v32  ;;  %v9181_v2 = vrot.slane %v9063_v59, 4  ;;  %v8397_v20 = vadd.f32 %v27497_v55, %v8145_v52  ;;  %v20821_v24 = vpop.f32.mrb[66].mxu0  ;;  %v8885_v1 = vpop.permute.xlu1 %8884 }
 0x6d7   :  { %v8400_v23 = vadd.f32 %v27497_v55, %v20821_v24  ;;  %v8148_v8 = vpop.f32.mrb[67].mxu0  ;;  %v9008_v38 = vmul.f32 %v27460_v50, %v8399_v33 }
 0x6d8   :  { %v9182_v22 = vsel %vm9121_vm12, %v9179_v15, %v9181_v2  ;;  %v9184_v27 = vsel %vm9121_vm12, %v9181_v2, %v9183_v35  ;;  %v8398_v60 = vadd.f32 %v27497_v55, %v8148_v8  ;;  %v27545_v26 = vld [vmem:[#allocation2 + $0xe8] sm:$0xff]  ;;  %v27547_v56 = vld [vmem:[#allocation2 + $0xf0] sm:$0xff]  ;;  %v9006_v9 = vmul.f32 %v27441_v16, %v8397_v20 }
 0x6d9   :  { %32128 = vst [vmem:[#allocation13_spill] sm:$0xff] %v27545_v26  ;;  %9284 = vst.msk [vmem:[#allocation2 + $0xf8] sm:$0xff] %vm9029_vm7, %v9182_v22  ;;  %v9009_v17 = vmul.f32 %v27472_v13, %v8400_v23  ;;  %v9453_v28 = vrot.slane %v27545_v26, 3  ;;  %v9455_v15 = vrot.slane %v27547_v56, 3 }
 0x6da   :  { %9285 = vst.msk [vmem:[#allocation2 + $0x100] sm:$0xff] %vm9029_vm7, %v9184_v27  ;;  %v9007_v48 = vmul.f32 %v27454_v36, %v8398_v60 }
 0x6db   :  { %v9066_v42 = vpack.c.bf16 %v9009_v17, %v9008_v38  ;;  %v9454_v37 = vsel %vm352_vm2, %v9451_v41, %v9453_v28  ;;  %v9456_v39 = vsel %vm352_vm2, %v9453_v28, %v9455_v15 }
 0x6dc   :  { %v9065_v25 = vpack.c.bf16 %v9007_v48, %v9006_v9  ;;  %v20824_v50 = vpop.f32.mrb[68].mxu0  ;;  %20900 = vmatprep.mubr.msk.bf16.mxu1 %vm9029_vm7, %v9454_v37 }
 0x6dd   :  { %v9187_v13 = vrot.slane %v9066_v42, 4  ;;  %v8403_v45 = vadd.f32 %v27497_v55, %v20824_v50  ;;  %v8161_v62 = vpop.f32.mrb[69].mxu0 }
 0x6de   :  { %20901 = vmatmul.mubr.msk.bf16.gmra.mrb[60].mxu1 %vm9029_vm7, %v9456_v39  ;;  %v9185_v32 = vrot.slane %v9065_v25, 4  ;;  %v8401_v16 = vadd.f32 %v27497_v55, %v8161_v62  ;;  %v20825_v36 = vpop.f32.mrb[70].mxu0 }
 0x6df   :  { %v8404_v59 = vadd.f32 %v27497_v55, %v20825_v36  ;;  %v8164_v41 = vpop.f32.mrb[71].mxu0  ;;  %v9012_v23 = vmul.f32 %v27509_v19, %v8403_v45  ;;  %v27595_v45 = vpop.permute.xlu1 %8894 }
 0x6e0   :  { %v9186_v33 = vsel %vm9121_vm12, %v9183_v35, %v9185_v32  ;;  %v9188_v52 = vsel %vm9121_vm12, %v9185_v32, %v9187_v13  ;;  %v8402_v2 = vadd.f32 %v27497_v55, %v8164_v41  ;;  %v27569_v20 = vld [vmem:[#allocation2 + $0xf8] sm:$0xff]  ;;  %v27578_v35 = vpop.permute.xlu0 %8889  ;;  %v9010_v60 = vmul.f32 %v27487_v49, %v8401_v16 }
 0x6e1   :  { %v27571_v24 = vld [vmem:[#allocation2 + $0x100] sm:$0xff]  ;;  %9286 = vst.msk [vmem:[#allocation2 + $0x108] sm:$0xff] %vm9029_vm7, %v9186_v33  ;;  %9287 = vst.msk [vmem:[#allocation2 + $0x110] sm:$0xff] %vm9029_vm7, %v9188_v52  ;;  %v9013_v8 = vmul.f32 %v8865_v63, %v8404_v59  ;;  %v9457_v22 = vrot.slane %v27569_v20, 3  ;;  %v31544_v17 = vshrl.u32 %v27569_v20, 16  ;;  %v31533_v28 = vshll.u32 %v27569_v20, 16 }
 0x6e2   :  { %v9459_v27 = vrot.slane %v27571_v24, 3  ;;  %v9011_v38 = vmul.f32 %v27501_v10, %v8402_v2  ;;  %v31532_v63 = vshrl.u32 %v27571_v24, 16 }
 0x6e3   :  { %v9068_v9 = vpack.c.bf16 %v9013_v8, %v9012_v23  ;;  %v9458_v48 = vsel %vm352_vm2, %v9455_v15, %v9457_v22  ;;  %v10286_v49 = vrot.slane %v31544_v17, 2  ;;  %v10289_v10 = vrot.slane %v31533_v28, 3 }
 0x6e4   :  { %v9460_v19 = vsel %vm352_vm2, %v9457_v22, %v9459_v27  ;;  %v9067_v42 = vpack.c.bf16 %v9011_v38, %v9010_v60  ;;  %v20828_v37 = vpop.f32.mrb[72].mxu0  ;;  %20904 = vmatprep.mubr.msk.bf16.mxu1 %vm9029_vm7, %v9458_v48  ;;  %v31529_v15 = vshll.u32 %v27571_v24, 16  ;;  %v10295_v36 = vrot.slane %v31532_v63, 2  ;;  %v8900_v2 = vpop.permute.xlu0 %8899 }
 0x6e5   :  { %v9191_v39 = vrot.slane %v9068_v9, 4  ;;  %v8407_v25 = vadd.f32 %v27497_v55, %v20828_v37  ;;  %v8177_v50 = vpop.f32.mrb[73].mxu0  ;;  %v27601_v33 = vor.u32 %v10289_v10, %v10286_v49 }
 0x6e6   :  { %20905 = vmatmul.mubr.msk.bf16.gmra.mrb[64].mxu1 %vm9029_vm7, %v9460_v19  ;;  %v9189_v62 = vrot.slane %v9067_v42, 4  ;;  %v8405_v32 = vadd.f32 %v27497_v55, %v8177_v50  ;;  %v20829_v16 = vpop.f32.mrb[74].mxu0  ;;  %v10298_v52 = vrot.slane %v31529_v15, 3 }
 0x6e7   :  { %v8408_v59 = vadd.f32 %v27497_v55, %v20829_v16  ;;  %v8180_v41 = vpop.f32.mrb[75].mxu0  ;;  %v9016_v22 = vmul.f32 %v8880_v58, %v8407_v25 }
 0x6e8   :  { %v9190_v23 = vsel %vm9121_vm12, %v9187_v13, %v9189_v62  ;;  %v9192_v8 = vsel %vm9121_vm12, %v9189_v62, %v9191_v39  ;;  %v8406_v60 = vadd.f32 %v27497_v55, %v8180_v41  ;;  %v27608_v38 = vld [vmem:[#allocation2 + $0x108] sm:$0xff]  ;;  %v27610_v9 = vld [vmem:[#allocation2 + $0x110] sm:$0xff]  ;;  %v9014_v48 = vmul.f32 %v27533_v53, %v8405_v32  ;;  %v8905_v53 = vpop.permute.xlu1 %8904 }
 0x6e9   :  { %9288 = vst.msk [vmem:[#allocation2 + $0x118] sm:$0xff] %vm9029_vm7, %v9190_v23  ;;  %9289 = vst.msk [vmem:[#allocation2 + $0x120] sm:$0xff] %vm9029_vm7, %v9192_v8  ;;  %v9017_v19 = vmul.f32 %v8885_v1, %v8408_v59  ;;  %v9461_v42 = vrot.slane %v27608_v38, 3  ;;  %v9463_v13 = vrot.slane %v27610_v9, 3  ;;  %v10299_v58 = vor.u32 %v10298_v52, %v10295_v36  ;;  %v8910_v8 = vpop.permute.xlu0 %8909 }
 0x6ea   :  { %v9015_v37 = vmul.f32 %v27555_v12, %v8406_v60  ;;  %v31526_v49 = vshrl.u32 %v27608_v38, 16  ;;  %v31525_v10 = vshll.u32 %v27608_v38, 16  ;;  %v31528_v16 = vshrl.u32 %v27610_v9, 16 }
 0x6eb   :  { %v9070_v25 = vpack.c.bf16 %v9017_v19, %v9016_v22  ;;  %v9462_v50 = vsel %vm352_vm2, %v9459_v27, %v9461_v42  ;;  %v9464_v62 = vsel %vm352_vm2, %v9461_v42, %v9463_v13  ;;  %v27626_v12 = vsel %vm967_vm4, %v27601_v33, %v10299_v58 }
 0x6ec   :  { %v9069_v1 = vpack.c.bf16 %v9015_v37, %v9014_v48  ;;  %v20832_v32 = vpop.f32.mrb[76].mxu0  ;;  %20908 = vmatprep.mubr.msk.bf16.mxu1 %vm9029_vm7, %v9462_v50  ;;  %v10304_v36 = vrot.slane %v31526_v49, 2  ;;  %v10307_v59 = vrot.slane %v31525_v10, 3  ;;  %v31527_v23 = vshll.u32 %v27610_v9, 16 }
 0x6ed   :  { %v9195_v27 = vrot.slane %v9070_v25, 4  ;;  %v8411_v41 = vadd.f32 %v27497_v55, %v20832_v32  ;;  %v8193_v52 = vpop.f32.mrb[77].mxu0  ;;  %v10313_v42 = vrot.slane %v31528_v16, 2 }
 0x6ee   :  { %20909 = vmatmul.mubr.msk.bf16.gmra.mrb[68].mxu1 %vm9029_vm7, %v9464_v62  ;;  %v9193_v22 = vrot.slane %v9069_v1, 4  ;;  %v8409_v60 = vadd.f32 %v27497_v55, %v8193_v52  ;;  %v20833_v48 = vpop.f32.mrb[78].mxu0  ;;  %v10308_v19 = vor.u32 %v10307_v59, %v10304_v36  ;;  %v10316_v32 = vrot.slane %v31527_v23, 3 }
 0x6ef   :  { %v9020_v37 = vmul.f32 %v8900_v2, %v8411_v41  ;;  %v8412_v50 = vadd.f32 %v27497_v55, %v20833_v48  ;;  %v8196_v25 = vpop.f32.mrb[79].mxu0 }
 0x6f0   :  { %v9194_v62 = vsel %vm9121_vm12, %v9191_v39, %v9193_v22  ;;  %v9196_v10 = vsel %vm9121_vm12, %v9193_v22, %v9195_v27  ;;  %v9018_v1 = vmul.f32 %v27578_v35, %v8409_v60  ;;  %v8410_v52 = vadd.f32 %v27497_v55, %v8196_v25  ;;  %v27645_v49 = vld [vmem:[#allocation2 + $0x118] sm:$0xff]  ;;  %v27647_v36 = vld [vmem:[#allocation2 + $0x120] sm:$0xff]  ;;  %v8915_v22 = vpop.permute.xlu1 %8914 }
 0x6f1   :  { %9290 = vst.msk [vmem:[#allocation2 + $0x128] sm:$0xff] %vm9029_vm7, %v9194_v62  ;;  %9291 = vst.msk [vmem:[#allocation2 + $0x130] sm:$0xff] %vm9029_vm7, %v9196_v10  ;;  %v9021_v2 = vmul.f32 %v8905_v53, %v8412_v50  ;;  %v9465_v59 = vrot.slane %v27645_v49, 3  ;;  %v9467_v41 = vrot.slane %v27647_v36, 3  ;;  %v27654_v39 = vsel %vm967_vm4, %v10299_v58, %v10308_v19  ;;  %v8920_v50 = vpop.permute.xlu0 %8919 }
 0x6f2   :  { %v9019_v35 = vmul.f32 %v27595_v45, %v8410_v52  ;;  %v10317_v60 = vor.u32 %v10316_v32, %v10313_v42  ;;  %v31530_v48 = vshrl.u32 %v27645_v49, 16  ;;  %v31531_v25 = vshll.u32 %v27645_v49, 16 }
 0x6f3   :  { %v9072_v23 = vpack.c.bf16 %v9021_v2, %v9020_v37  ;;  %v9466_v62 = vsel %vm352_vm2, %v9463_v13, %v9465_v59  ;;  %v9468_v10 = vsel %vm352_vm2, %v9465_v59, %v9467_v41  ;;  %v31535_v53 = vshrl.u32 %v27647_v36, 16 }
 0x6f4   :  { %v9071_v16 = vpack.c.bf16 %v9019_v35, %v9018_v1  ;;  %v20836_v15 = vpop.f32.mrb[80].mxu0  ;;  %20912 = vmatprep.mubr.msk.bf16.mxu1 %vm9029_vm7, %v9466_v62  ;;  %v27664_v58 = vsel %vm967_vm4, %v10308_v19, %v10317_v60  ;;  %v10322_v45 = vrot.slane %v31530_v48, 2  ;;  %v10325_v42 = vrot.slane %v31531_v25, 3 }
 0x6f5   :  { %v9199_v37 = vrot.slane %v9072_v23, 4  ;;  %v8415_v13 = vadd.f32 %v27497_v55, %v20836_v15  ;;  %v8209_v32 = vpop.f32.mrb[81].mxu0  ;;  %v31534_v1 = vshll.u32 %v27647_v36, 16  ;;  %v10331_v35 = vrot.slane %v31535_v53, 2  ;;  %v8925_v23 = vpop.permute.xlu1 %8924 }
 0x6f6   :  { %20913 = vmatmul.mubr.msk.bf16.gmra.mrb[72].mxu1 %vm9029_vm7, %v9468_v10  ;;  %v9197_v52 = vrot.slane %v9071_v16, 4  ;;  %v8413_v2 = vadd.f32 %v27497_v55, %v8209_v32  ;;  %v20837_v59 = vpop.f32.mrb[82].mxu0  ;;  %v10326_v19 = vor.u32 %v10325_v42, %v10322_v45 }
 0x6f7   :  { %v9024_v62 = vmul.f32 %v8920_v50, %v8415_v13  ;;  %v8416_v48 = vadd.f32 %v27497_v55, %v20837_v59  ;;  %v8212_v25 = vpop.f32.mrb[83].mxu0  ;;  %v10334_v15 = vrot.slane %v31534_v1, 3 }
 0x6f8   :  { %v9198_v10 = vsel %vm9121_vm12, %v9195_v27, %v9197_v52  ;;  %v9200_v63 = vsel %vm9121_vm12, %v9197_v52, %v9199_v37  ;;  %v9022_v16 = vmul.f32 %v8910_v8, %v8413_v2  ;;  %v8414_v32 = vadd.f32 %v27497_v55, %v8212_v25  ;;  %v27682_v28 = vld [vmem:[#allocation2 + $0x128] sm:$0xff]  ;;  %v27684_v45 = vld [vmem:[#allocation2 + $0x130] sm:$0xff]  ;;  %v8930_v52 = vpop.permute.xlu0 %8929 }
 0x6f9   :  { %9292 = vst.msk [vmem:[#allocation2 + $0x138] sm:$0xff] %vm9029_vm7, %v9198_v10  ;;  %9293 = vst.msk [vmem:[#allocation2 + $0x140] sm:$0xff] %vm9029_vm7, %v9200_v63  ;;  %v9025_v50 = vmul.f32 %v8925_v23, %v8416_v48  ;;  %v9469_v42 = vrot.slane %v27682_v28, 3  ;;  %v9471_v13 = vrot.slane %v27684_v45, 3  ;;  %v27691_v27 = vsel %vm967_vm4, %v10317_v60, %v10326_v19 }
 0x6fa   :  { %v9023_v8 = vmul.f32 %v8915_v22, %v8414_v32  ;;  %v10335_v2 = vor.u32 %v10334_v15, %v10331_v35  ;;  %v31536_v25 = vshrl.u32 %v27682_v28, 16  ;;  %v31539_v59 = vshll.u32 %v27682_v28, 16 }
 0x6fb   :  { %v9074_v1 = vpack.c.bf16 %v9025_v50, %v9024_v62  ;;  %v9470_v10 = vsel %vm352_vm2, %v9467_v41, %v9469_v42  ;;  %v9472_v63 = vsel %vm352_vm2, %v9469_v42, %v9471_v13  ;;  %v31538_v48 = vshrl.u32 %v27684_v45, 16 }
 0x6fc   :  { %v9073_v23 = vpack.c.bf16 %v9023_v8, %v9022_v16  ;;  %v20840_v53 = vpop.f32.mrb[112].mxu0  ;;  %20916 = vmatprep.mubr.msk.bf16.mxu1 %vm9029_vm7, %v9470_v10  ;;  %v27700_v60 = vsel %vm967_vm4, %v10326_v19, %v10335_v2  ;;  %v10340_v22 = vrot.slane %v31536_v25, 2  ;;  %v10343_v35 = vrot.slane %v31539_v59, 3 }
 0x6fd   :  { %v9203_v62 = vrot.slane %v9074_v1, 4  ;;  %v8325_v41 = vadd.f32 %v20840_v53, %v27006_v5  ;;  %v8225_v15 = vpop.f32.mrb[113].mxu0  ;;  %v31537_v16 = vshll.u32 %v27684_v45, 16  ;;  %v10349_v8 = vrot.slane %v31538_v48, 2  ;;  %v8940_v5 = vpop.permute.xlu0 %8939 }
 0x6fe   :  { %20917 = vmatmul.mubr.msk.bf16.gmra.mrb[76].mxu1 %vm9029_vm7, %v9472_v63  ;;  %v9201_v32 = vrot.slane %v9073_v23, 4  ;;  %v8323_v50 = vadd.f32 %v8225_v15, %v27009_v51  ;;  %v20841_v42 = vpop.f32.mrb[114].mxu0  ;;  %v10344_v19 = vor.u32 %v10343_v35, %v10340_v22  ;;  %v27726_v35 = vld [vmem:[%s31297_s5 + $0x10] sm:$0xff]   ;;  %v8935_v48 = vpop.permute.xlu1 %8934 }
 0x6ff   :  { %v8419_v10 = vadd.f32 %v27497_v55, %v8325_v41  ;;  %v8228_v25 = vpop.f32.mrb[115].mxu0  ;;  %v10352_v1 = vrot.slane %v31537_v16, 3  ;;  %21022 = vmatprep.subr.bf16.mxu1 %v27726_v35 }
 0x700   :  { %v9202_v53 = vsel %vm9121_vm12, %v9199_v37, %v9201_v32  ;;  %v9204_v63 = vsel %vm9121_vm12, %v9201_v32, %v9203_v62  ;;  %v8417_v23 = vadd.f32 %v27497_v55, %v8323_v50  ;;  %v8324_v51 = vadd.f32 %v8228_v25, %v27014_v3  ;;  %v27719_v15 = vld [vmem:[#allocation2 + $0x138] sm:$0xff]  ;;  %v27721_v22 = vld [vmem:[#allocation2 + $0x140] sm:$0xff] }
 0x701   :  { %9294 = vst.msk [vmem:[#allocation2 + $0x148] sm:$0xff] %vm9029_vm7, %v9202_v53  ;;  %9295 = vst.msk [vmem:[#allocation2 + $0x150] sm:$0xff] %vm9029_vm7, %v9204_v63  ;;  %v9028_v37 = vmul.f32 %v8940_v5, %v8419_v10  ;;  %v9473_v41 = vrot.slane %v27719_v15, 3  ;;  %v9475_v32 = vrot.slane %v27721_v22, 3  ;;  %v27733_v3 = vsel %vm967_vm4, %v10335_v2, %v10344_v19  ;;  %v9302_v2 = vld [vmem:[#allocation2] sm:$0xfc] }
 0x702   :  { %v9026_v25 = vmul.f32 %v8930_v52, %v8417_v23  ;;  %v8418_v50 = vadd.f32 %v27497_v55, %v8324_v51  ;;  %v10353_v42 = vor.u32 %v10352_v1, %v10349_v8  ;;  %v31540_v16 = vshrl.u32 %v27719_v15, 16 }
 0x703   :  { %v9076_v53 = vpack.c.bf16 %v9028_v37, %v9028_v37  ;;  %v9474_v63 = vsel %vm352_vm2, %v9471_v13, %v9473_v41  ;;  %v9476_v10 = vsel %vm352_vm2, %v9473_v41, %v9475_v32  ;;  %v31541_v5 = vshll.u32 %v27719_v15, 16 }
 0x704   :  { %v9027_v59 = vmul.f32 %v8935_v48, %v8418_v50  ;;  %20920 = vmatprep.mubr.msk.bf16.mxu1 %vm9029_vm7, %v9474_v63  ;;  %v27743_v52 = vsel %vm967_vm4, %v10344_v19, %v10353_v42  ;;  %v10358_v55 = vrot.slane %v31540_v16, 2  ;;  %v31542_v8 = vshrl.u32 %v27721_v22, 16 }
 0x705   :  { %v10361_v13 = vrot.slane %v31541_v5, 3  ;;  %v31543_v1 = vshll.u32 %v27721_v22, 16  ;;  %v10006_v51 = vshrl.u32 %v9302_v2, 16  ;;  %v9207_v41 = vrot.slane %v9076_v53, 4 }
 0x706   :  { %20921 = vmatmul.mubr.msk.bf16.gmra.mrb[80].mxu1 %vm9029_vm7, %v9476_v10  ;;  %v9075_v23 = vpack.c.bf16 %v9027_v59, %v9026_v25  ;;  %v10367_v48 = vrot.slane %v31542_v8, 2  ;;  %v10009_v16 = vshll.u32 %v9302_v2, 16 }
 0x707   :  { %v10362_v37 = vor.u32 %v10361_v13, %v10358_v55  ;;  %v10370_v19 = vrot.slane %v31543_v1, 3 }
 0x708   :  { %v9205_v50 = vrot.slane %v9075_v23, 4  ;;  %v27756_v63 = vld [vmem:[#allocation2 + $0x148] sm:$0xff]  ;;  %v27758_v10 = vld [vmem:[#allocation2 + $0x150] sm:$0xff] }
 0x709   :  { %v9477_v5 = vrot.slane %v27756_v63, 3  ;;  %v9479_v59 = vrot.slane %v27758_v10, 3  ;;  %v27763_v25 = vsel %vm967_vm4, %v10353_v42, %v10362_v37  ;;  %v10371_v8 = vor.u32 %v10370_v19, %v10367_v48 }
 0x70a   :  { %v9206_v55 = vsel %vm9121_vm12, %v9203_v62, %v9205_v50  ;;  %v9208_v13 = vsel %vm9121_vm12, %v9205_v50, %v9207_v41  ;;  %v31546_v53 = vshrl.u32 %v27756_v63, 16  ;;  %v31545_v23 = vshll.u32 %v27756_v63, 16 }
 0x70b   :  { %9296 = vst.msk [vmem:[#allocation2 + $0x158] sm:$0xff] %vm9029_vm7, %v9206_v55  ;;  %v9478_v2 = vsel %vm352_vm2, %v9475_v32, %v9477_v5  ;;  %v9480_v1 = vsel %vm352_vm2, %v9477_v5, %v9479_v59  ;;  %v27773_v17 = vsel %vm967_vm4, %v10362_v37, %v10371_v8  ;;  %v31548_v42 = vshrl.u32 %v27758_v10, 16 }
 0x70c   :  { %9298 = vst.msk [vmem:[#allocation2 + $0x160] sm:$0x3f] %vm9297_vm14, %v9208_v13  ;;  %20924 = vmatprep.mubr.msk.bf16.mxu1 %vm9029_vm7, %v9478_v2  ;;  %v10376_v62 = vrot.slane %v31546_v53, 2  ;;  %v10379_v48 = vrot.slane %v31545_v23, 3  ;;  %v10386_v19 = vshll.u32 %v27758_v10, 16  ;;  %v10008_v41 = vrot.slane %v10006_v51, 2 }
 0x70d   :  { %v10385_v32 = vrot.slane %v31548_v42, 2  ;;  %v10011_v50 = vrot.slane %v10009_v16, 3 }
 0x70e   :  { %20925 = vmatmul.mubr.msk.bf16.gmra.mrb[84].mxu1 %vm9029_vm7, %v9480_v1  ;;  %v10380_v5 = vor.u32 %v10379_v48, %v10376_v62  ;;  %v10388_v37 = vrot.slane %v10386_v19, 3 }
 0x70f   :  { %v10012_v14 = vor.u32 %v10011_v50, %v10008_v41 }
 0x710   :  { %v27788_v55 = vsel %vm967_vm4, %v10371_v8, %v10380_v5  ;;  %v10389_v13 = vor.u32 %v10388_v37, %v10385_v32  ;;  %v32132_v32 = vshll.u32 %v27571_v24, 16  ;;  %v27818_v37 = vld [vmem:[#allocation2 + $0x40] sm:$0xff] }
 0x711   :  { %v10021_v16 = vsel %vm967_vm4, %v10012_v14, %v27099_v30  ;;  %v32130_v30 = vshll.u32 %v27569_v20, 16 }
 0x712   :  { %v9345_v2 = vld [vmem:[#allocation2 + $0x158] sm:$0x1f]  ;;  %v27791_v23 = vsel %vm967_vm4, %v10380_v5, %v10389_v13  ;;  %v11059_v5 = vrot.slane %v32132_v32, 4 }
 0x713   :  { %v9481_v53 = vrot.slane %v9345_v2, 3  ;;  %v10392_v1 = vshrl.u32 %v9345_v2, 16  ;;  %v10395_v4 = vshll.u32 %v9345_v2, 16  ;;  %v11055_v14 = vrot.slane %v32130_v30, 4 }
 0x714   :  { %v32138_v30 = vshrl.u32 %v27645_v49, 16 }
 0x715   :  { %v9482_v42 = vsel %vm352_vm2, %v9479_v59, %v9481_v53  ;;  %v10394_v62 = vrot.slane %v10392_v1, 2  ;;  %v10397_v48 = vrot.slane %v10395_v4, 3  ;;  %v32129_v4 = vshrl.u32 %v27569_v20, 16 }
 0x716   :  { %20928 = vmatprep.mubr.msk.bf16.mxu1 %vm9029_vm7, %v9482_v42  ;;  %v32135_v20 = vshll.u32 %v27608_v38, 16  ;;  %v32136_v1 = vshrl.u32 %v27610_v9, 16  ;;  %vm17090_vm2 = vcmask 261120  }
 0x717   :  { %20929 = vmatmul.mubr.msk.bf16.gmra.mrb[88].mxu1 %vm9029_vm7, %v9481_v53  ;;  %v27798_v8 = vor.u32 %v10397_v48, %v10394_v62  ;;  %v11054_v59 = vrot.slane %v32129_v4, 3  ;;  %v32131_v53 = vshrl.u32 %v27571_v24, 16  ;;  %v27830_v24 = vld [vmem:[#allocation2 + $0x48] sm:$0xff] }
 0x718   :  { %20934 = vmatprep.mubr.msk.bf16.mxu1 %vm9029_vm7, %v10021_v16  ;;  %v11063_v2 = vrot.slane %v32135_v20, 4  ;;  %v11066_v62 = vrot.slane %v32136_v1, 3  ;;  %v32137_v16 = vshll.u32 %v27610_v9, 16  ;;  %v32142_v9 = vshll.u32 %v27647_v36, 16 }
 0x719   :  { %v27803_v51 = vsel %vm967_vm4, %v10389_v13, %v27798_v8  ;;  %v11058_v42 = vrot.slane %v32131_v53, 3  ;;  %v27824_v50 = vor.u32 %v11055_v14, %v11054_v59  ;;  %v11070_v53 = vrot.slane %v32138_v30, 3 }
 0x71a   :  { %v11067_v4 = vrot.slane %v32137_v16, 4  ;;  %v32139_v59 = vshll.u32 %v27645_v49, 16  ;;  %v11075_v16 = vrot.slane %v32142_v9, 4  ;;  %v32143_v30 = vshrl.u32 %v27682_v28, 16 }
 0x71b   :  { %32134 = vst [vmem:[#allocation16_spill] sm:$0xff] %v27824_v50  ;;  %v11060_v13 = vor.u32 %v11059_v5, %v11058_v42  ;;  %v31558_v42 = vshll.u32 %v27830_v24, 16  ;;  %v32141_v5 = vshrl.u32 %v27647_v36, 16 }
 0x71c   :  { %v11071_v14 = vrot.slane %v32139_v59, 4  ;;  %v11068_v20 = vor.u32 %v11067_v4, %v11066_v62  ;;  %v11078_v48 = vrot.slane %v32143_v30, 3  ;;  %v32145_v59 = vshll.u32 %v27682_v28, 16 }
 0x71d   :  { %v32147_v62 = vshll.u32 %v27684_v45, 16  ;;  %v32151_v30 = vshll.u32 %v27719_v15, 16 }
 0x71e   :  { %v11072_v1 = vor.u32 %v11071_v14, %v11070_v53  ;;  %v32150_v53 = vshrl.u32 %v27719_v15, 16 }
 0x71f   :  { %20935 = vmatmul.mubr.msk.bf16.vlgmr.msra.gmra.mrb[4].mxu1 %vm9029_vm7, %v27126_v18  ;;  %v31564_v18 = vshrl.u32 %v27818_v37, 16  ;;  %v11083_v4 = vrot.slane %v32147_v62, 4 }
 0x720   :  { %20938 = vmatprep.mubr.msk.bf16.mxu1 %vm9029_vm7, %v27178_v57  ;;  %21023 = vmatpush3.bf16.msra.mxu1 %v27726_v35  ;;  %v31560_v57 = vshll.u32 %v27818_v37, 16  ;;  %v32133_v35 = vshrl.u32 %v27608_v38, 16  ;;  %v27842_v38 = vsel %vm1888_vm5, %v27824_v50, %v11060_v13  ;;  %v11086_v28 = vrot.slane %v32150_v53, 3 }
 0x721   :  { %32140 = vst [vmem:[#allocation15_spill] sm:$0xff] %v27842_v38 }
 0x722   :  { %v11062_v41 = vrot.slane %v32133_v35, 3  ;;  %v11074_v35 = vrot.slane %v32141_v5, 3 }
 0x724   :  { %v11064_v32 = vor.u32 %v11063_v2, %v11062_v41  ;;  %v11079_v41 = vrot.slane %v32145_v59, 4  ;;  %v32146_v2 = vshrl.u32 %v27684_v45, 16  ;;  %v11087_v59 = vrot.slane %v32151_v30, 4 }
 0x725   :  { %v32152_v45 = vshrl.u32 %v27721_v22, 16 }
 0x726   :  { %v27853_v49 = vsel %vm1888_vm5, %v11060_v13, %v11064_v32  ;;  %v11082_v5 = vrot.slane %v32146_v2, 3  ;;  %v27864_v36 = vsel %vm1888_vm5, %v11064_v32, %v11068_v20  ;;  %v11076_v13 = vor.u32 %v11075_v16, %v11074_v35 }
 0x727   :  { %20939 = vmatmul.mubr.msk.bf16.gmra.mrb[8].mxu1 %vm9029_vm7, %v27192_v61  ;;  %32144 = vst [vmem:[#allocation18_spill] sm:$0xff] %v27853_v49  ;;  %32148 = vst [vmem:[#allocation17_spill] sm:$0xff] %v27864_v36  ;;  %v27867_v61 = vsel %vm1888_vm5, %v11068_v20, %v11072_v1  ;;  %v11080_v14 = vor.u32 %v11079_v41, %v11078_v48  ;;  %v11090_v2 = vrot.slane %v32152_v45, 3  ;;  %v32154_v32 = vshll.u32 %v27721_v22, 16 }
 0x728   :  { %20942 = vmatprep.mubr.msk.bf16.mxu1 %vm9029_vm7, %v27226_v31  ;;  %32149 = vst [vmem:[#allocation20_spill] sm:$0xff] %v27867_v61  ;;  %v11084_v9 = vor.u32 %v11083_v4, %v11082_v5  ;;  %v27876_v31 = vsel %vm1888_vm5, %v11072_v1, %v11076_v13  ;;  %v32155_v20 = vshrl.u32 %v27756_v63, 16  ;;  %v32156_v16 = vshll.u32 %v27756_v63, 16 }
 0x729   :  { %32153 = vst [vmem:[#allocation19_spill] sm:$0xff] %v27876_v31  ;;  %v11091_v62 = vrot.slane %v32154_v32, 4  ;;  %v27885_v48 = vsel %vm1888_vm5, %v11076_v13, %v11080_v14  ;;  %v11088_v41 = vor.u32 %v11087_v59, %v11086_v28  ;;  %v32159_v5 = vshrl.u32 %v27758_v10, 16 }
 0x72a   :  { %v11094_v35 = vrot.slane %v32155_v20, 3  ;;  %v11095_v53 = vrot.slane %v32156_v16, 4  ;;  %32157 = vst [vmem:[#allocation22_spill] sm:$0xff] %v27885_v48  ;;  %v27888_v15 = vsel %vm1888_vm5, %v11080_v14, %v11084_v9  ;;  %v11099_v22 = vrot.slane %v10386_v19, 4  ;;  %v27925_v16 = vld [vmem:[#allocation2 + $0x58] sm:$0xff] }
 0x72b   :  { %32158 = vst [vmem:[#allocation21_spill] sm:$0xff] %v27888_v15  ;;  %v11098_v1 = vrot.slane %v32159_v5, 3  ;;  %v11092_v4 = vor.u32 %v11091_v62, %v11090_v2  ;;  %v10079_v45 = vrot.slane %v31564_v18, 2  ;;  %v27897_v63 = vsel %vm1888_vm5, %v11084_v9, %v11088_v41  ;;  %v27921_v62 = vld [vmem:[#allocation2 + $0x50] sm:$0xff]  ;;  %v28050_v15 = vld [vmem:[#allocation2 + $0xc0] sm:$0xff] }
 0x72c   :  { %v11096_v30 = vor.u32 %v11095_v53, %v11094_v35  ;;  %32160 = vst [vmem:[#allocation24_spill] sm:$0xff] %v27897_v63  ;;  %v10082_v13 = vrot.slane %v31560_v57, 3  ;;  %v32164_v10 = vshrl.u32 %v27830_v24, 16  ;;  %v10091_v9 = vrot.slane %v31558_v42, 3  ;;  %v27986_v57 = vld [vmem:[#allocation2 + $0x88] sm:$0xff]  ;;  %v28046_v63 = vld [vmem:[#allocation2 + $0xb8] sm:$0xff] }
 0x72d   :  { %v27902_v14 = vsel %vm1888_vm5, %v11088_v41, %v11092_v4  ;;  %v27907_v59 = vor.u32 %v11099_v22, %v11098_v1  ;;  %v31554_v20 = vshrl.u32 %v27921_v62, 16  ;;  %v31549_v53 = vshrl.u32 %v27925_v16, 16  ;;  %32170 = vst [vmem:[#allocation31_spill] sm:$0xff] %v28046_v63  ;;  %32171 = vst [vmem:[#allocation34_spill] sm:$0xff] %v28050_v15 }
 0x72e   :  { %32161 = vst [vmem:[#allocation23_spill] sm:$0xff] %v27902_v14  ;;  %v27905_v28 = vsel %vm1888_vm5, %v11092_v4, %v11096_v30  ;;  %v10088_v19 = vrot.slane %v32164_v10, 2  ;;  %v10083_v32 = vor.u32 %v10082_v13, %v10079_v45  ;;  %v31550_v41 = vshll.u32 %v27925_v16, 16 }
 0x72f   :  { %32162 = vst [vmem:[#allocation26_spill] sm:$0xff] %v27905_v28  ;;  %32163 = vst [vmem:[#allocation25_spill] sm:$0xff] %v27907_v59  ;;  %20943 = vmatmul.mubr.msk.bf16.gmra.mrb[12].mxu1 %vm9029_vm7, %v27239_v34  ;;  %v27919_v2 = vsel %vm1888_vm5, %v11096_v30, %v27907_v59  ;;  %v31552_v34 = vshll.u32 %v27921_v62, 16  ;;  %v10097_v5 = vrot.slane %v31554_v20, 2  ;;  %v10106_v30 = vrot.slane %v31549_v53, 2  ;;  %v27966_v20 = vld [vmem:[#allocation2 + $0x78] sm:$0xff] }
 0x730   :  { %20946 = vmatprep.mubr.msk.bf16.mxu1 %vm9029_vm7, %v27271_v54  ;;  %32165 = vst [vmem:[#allocation28_spill] sm:$0xff] %v27919_v2  ;;  %v10092_v35 = vor.u32 %v10091_v9, %v10088_v19  ;;  %v10084_v54 = vsel %vm967_vm4, %v27250_v44, %v10083_v32  ;;  %v10109_v22 = vrot.slane %v31550_v41, 3  ;;  %v27942_v44 = vld [vmem:[#allocation2 + $0x60] sm:$0xff]  ;;  %v27946_v9 = vld [vmem:[#allocation2 + $0x68] sm:$0xff]  ;;  %v28006_v59 = vld [vmem:[#allocation2 + $0x98] sm:$0xff]  ;;  %v32180_v61 = vshrl.u32 %v27479_v0, 16 }
 0x731   :  { %v10100_v1 = vrot.slane %v31552_v34, 3  ;;  %v31551_v13 = vshrl.u32 %v27942_v44, 16  ;;  %v31553_v10 = vshll.u32 %v27942_v44, 16  ;;  %32166 = vst [vmem:[#allocation27_spill] sm:$0xff] %v28006_v59  ;;  %v32181_v36 = vshll.u32 %v27479_v0, 16 }
 0x732   :  { %v10093_v4 = vsel %vm967_vm4, %v10083_v32, %v10092_v35  ;;  %v10110_v19 = vor.u32 %v10109_v22, %v10106_v30  ;;  %v31555_v32 = vshrl.u32 %v27946_v9, 16 }
 0x733   :  { %v10101_v45 = vor.u32 %v10100_v1, %v10097_v5  ;;  %v10115_v41 = vrot.slane %v31551_v13, 2  ;;  %v10118_v5 = vrot.slane %v31553_v10, 3 }
 0x735   :  { %v10102_v53 = vsel %vm967_vm4, %v10092_v35, %v10101_v45  ;;  %v10111_v1 = vsel %vm967_vm4, %v10101_v45, %v10110_v19  ;;  %v10119_v22 = vor.u32 %v10118_v5, %v10115_v41  ;;  %v27962_v35 = vld [vmem:[#allocation2 + $0x70] sm:$0xff]  ;;  %v31562_v45 = vshll.u32 %v27966_v20, 16 }
 0x736   :  { %v31557_v13 = vshrl.u32 %v27962_v35, 16  ;;  %v31559_v34 = vshll.u32 %v27962_v35, 16 }
 0x737   :  { %20947 = vmatmul.mubr.msk.bf16.gmra.mrb[16].mxu1 %vm9029_vm7, %v10084_v54  ;;  %v31556_v54 = vshll.u32 %v27946_v9, 16 }
 0x738   :  { %20950 = vmatprep.mubr.msk.bf16.mxu1 %vm9029_vm7, %v10093_v4  ;;  %v10124_v4 = vrot.slane %v31555_v32, 2  ;;  %v10120_v32 = vsel %vm967_vm4, %v10110_v19, %v10119_v22  ;;  %v10136_v41 = vrot.slane %v31559_v34, 3  ;;  %v27982_v19 = vld [vmem:[#allocation2 + $0x80] sm:$0xff] }
 0x739   :  { %v10127_v30 = vrot.slane %v31556_v54, 3  ;;  %v10133_v54 = vrot.slane %v31557_v13, 2  ;;  %v31563_v13 = vshrl.u32 %v27982_v19, 16  ;;  %v31565_v42 = vshll.u32 %v27982_v19, 16 }
 0x73b   :  { %v10128_v10 = vor.u32 %v10127_v30, %v10124_v4  ;;  %v10145_v4 = vrot.slane %v31562_v45, 3  ;;  %v10137_v30 = vor.u32 %v10136_v41, %v10133_v54  ;;  %v10151_v45 = vrot.slane %v31563_v13, 2 }
 0x73c   :  { %v10154_v54 = vrot.slane %v31565_v42, 3 }
 0x73d   :  { %v10129_v5 = vsel %vm967_vm4, %v10119_v22, %v10128_v10  ;;  %v31568_v22 = vshll.u32 %v27986_v57, 16 }
 0x73e   :  { %v10155_v18 = vor.u32 %v10154_v54, %v10151_v45 }
 0x73f   :  { %20951 = vmatmul.mubr.msk.bf16.gmra.mrb[20].mxu1 %vm9029_vm7, %v10102_v53  ;;  %v31561_v53 = vshrl.u32 %v27966_v20, 16 }
 0x740   :  { %20954 = vmatprep.mubr.msk.bf16.mxu1 %vm9029_vm7, %v10111_v1 }
 0x741   :  { %v10142_v1 = vrot.slane %v31561_v53, 2  ;;  %v10138_v53 = vsel %vm967_vm4, %v10128_v10, %v10137_v30 }
 0x743   :  { %v10146_v34 = vor.u32 %v10145_v4, %v10142_v1  ;;  %v10163_v1 = vrot.slane %v31568_v22, 3  ;;  %v28002_v4 = vld [vmem:[#allocation2 + $0x90] sm:$0xff] }
 0x744   :  { %v31569_v10 = vshrl.u32 %v28002_v4, 16  ;;  %v31570_v13 = vshll.u32 %v28002_v4, 16 }
 0x745   :  { %v10147_v41 = vsel %vm967_vm4, %v10137_v30, %v10146_v34  ;;  %v31572_v30 = vshll.u32 %v28006_v59, 16  ;;  %v10156_v22 = vsel %vm967_vm4, %v10146_v34, %v10155_v18  ;;  %v28026_v34 = vld [vmem:[#allocation2 + $0xa8] sm:$0xff] }
 0x746   :  { %32168 = vst [vmem:[#allocation29_spill] sm:$0xff] %v28026_v34 }
 0x747   :  { %20955 = vmatmul.mubr.msk.bf16.gmra.mrb[24].mxu1 %vm9029_vm7, %v10120_v32  ;;  %v31567_v32 = vshrl.u32 %v27986_v57, 16  ;;  %v10181_v54 = vrot.slane %v31572_v30, 3 }
 0x748   :  { %20958 = vmatprep.mubr.msk.bf16.mxu1 %vm9029_vm7, %v10129_v5 }
 0x749   :  { %v10160_v5 = vrot.slane %v31567_v32, 2  ;;  %v10169_v32 = vrot.slane %v31569_v10, 2 }
 0x74b   :  { %v10164_v42 = vor.u32 %v10163_v1, %v10160_v5  ;;  %v28022_v1 = vld [vmem:[#allocation2 + $0xa0] sm:$0xff] }
 0x74c   :  { %32167 = vst [vmem:[#allocation30_spill] sm:$0xff] %v28022_v1  ;;  %v31573_v10 = vshrl.u32 %v28022_v1, 16 }
 0x74d   :  { %v10165_v2 = vsel %vm967_vm4, %v10155_v18, %v10164_v42  ;;  %v31576_v18 = vshll.u32 %v28026_v34, 16 }
 0x74e   :  { %v10187_v30 = vrot.slane %v31573_v10, 2 }
 0x74f   :  { %20959 = vmatmul.mubr.msk.bf16.gmra.mrb[28].mxu1 %vm9029_vm7, %v10138_v53  ;;  %v31571_v53 = vshrl.u32 %v28006_v59, 16 }
 0x750   :  { %20962 = vmatprep.mubr.msk.bf16.mxu1 %vm9029_vm7, %v10147_v41  ;;  %v10172_v41 = vrot.slane %v31570_v13, 3  ;;  %v31574_v13 = vshll.u32 %v28022_v1, 16 }
 0x751   :  { %v10178_v45 = vrot.slane %v31571_v53, 2 }
 0x752   :  { %v10173_v5 = vor.u32 %v10172_v41, %v10169_v32  ;;  %v10199_v41 = vrot.slane %v31576_v18, 3 }
 0x753   :  { %v10182_v28 = vor.u32 %v10181_v54, %v10178_v45  ;;  %v28042_v45 = vld [vmem:[#allocation2 + $0xb0] sm:$0xff]  ;;  %v32174_v54 = vshrl.u32 %v28046_v63, 16 }
 0x754   :  { %v10174_v53 = vsel %vm967_vm4, %v10164_v42, %v10173_v5  ;;  %32169 = vst [vmem:[#allocation32_spill] sm:$0xff] %v28042_v45 }
 0x755   :  { %v10183_v14 = vsel %vm967_vm4, %v10173_v5, %v10182_v28  ;;  %v10214_v42 = vrot.slane %v32174_v54, 2  ;;  %v10241_v54 = vrot.slane %v32180_v61, 2 }
 0x757   :  { %20963 = vmatmul.mubr.msk.bf16.gmra.mrb[32].mxu1 %vm9029_vm7, %v10156_v22  ;;  %v31575_v22 = vshrl.u32 %v28026_v34, 16  ;;  %v11739_v34 = vld [vmem:[#allocation2 + $0xa0] sm:$0xff] }
 0x758   :  { %20966 = vmatprep.mubr.msk.bf16.mxu1 %vm9029_vm7, %v10165_v2  ;;  %v10190_v2 = vrot.slane %v31574_v13, 3 }
 0x759   :  { %v10196_v32 = vrot.slane %v31575_v22, 2 }
 0x75a   :  { %v10191_v10 = vor.u32 %v10190_v2, %v10187_v30  ;;  %v32172_v2 = vshrl.u32 %v28042_v45, 16  ;;  %v32175_v30 = vshll.u32 %v28046_v63, 16 }
 0x75b   :  { %v10200_v13 = vor.u32 %v10199_v41, %v10196_v32  ;;  %v32173_v41 = vshll.u32 %v28042_v45, 16 }
 0x75c   :  { %v10205_v32 = vrot.slane %v32172_v2, 2  ;;  %v10217_v48 = vrot.slane %v32175_v30, 3  ;;  %v32176_v2 = vshrl.u32 %v28050_v15, 16  ;;  %v10244_v30 = vrot.slane %v32181_v36, 3  ;;  %v28093_v36 = vld [vmem:[#allocation2 + $0x18] sm:$0xff] }
 0x75d   :  { %v10208_v18 = vrot.slane %v32173_v41, 3  ;;  %v10201_v5 = vsel %vm967_vm4, %v10191_v10, %v10200_v13  ;;  %v32177_v41 = vshll.u32 %v28050_v15, 16  ;;  %32184 = vst [vmem:[#allocation33_spill] sm:$0xff] %v28093_v36 }
 0x75e   :  { %v10223_v31 = vrot.slane %v32176_v2, 2  ;;  %v32182_v2 = vshrl.u32 %v27514_v43, 16  ;;  %v10218_v15 = vor.u32 %v10217_v48, %v10214_v42  ;;  %v10245_v63 = vor.u32 %v10244_v30, %v10241_v54  ;;  %v28103_v48 = vld [vmem:[#allocation2 + $0x28] sm:$0xff]  ;;  %v28122_v30 = vld [vmem:[#allocation2 + $0x40] sm:$0xff] }
 0x75f   :  { %20967 = vmatmul.mubr.msk.bf16.gmra.mrb[36].mxu1 %vm9029_vm7, %v10174_v53  ;;  %v10226_v22 = vrot.slane %v32177_v41, 3  ;;  %v10209_v49 = vor.u32 %v10208_v18, %v10205_v32  ;;  %v32183_v41 = vshll.u32 %v27514_v43, 16  ;;  %v28095_v18 = vld [vmem:[#allocation2 + $0x20] sm:$0xff]  ;;  %32186 = vst [vmem:[#allocation35_spill] sm:$0xff] %v28103_v48  ;;  %32189 = vst [vmem:[#allocation40_spill] sm:$0xff] %v28122_v30  ;;  %v12832_v43 = vrot.slane %v28122_v30, 4 }
 0x760   :  { %20970 = vmatprep.mubr.msk.bf16.mxu1 %vm9029_vm7, %v10183_v14  ;;  %v10192_v14 = vsel %vm967_vm4, %v10182_v28, %v10191_v10  ;;  %v32178_v28 = vshrl.u32 %v27477_v29, 16  ;;  %v32179_v10 = vshll.u32 %v27477_v29, 16  ;;  %v10250_v38 = vrot.slane %v32182_v2, 2  ;;  %32185 = vst [vmem:[#allocation36_spill] sm:$0xff] %v28095_v18  ;;  %v11740_v30 = vld [vmem:[#allocation2 + $0xa8] sm:$0xff] }
 0x761   :  { %v10253_v50 = vrot.slane %v32183_v41, 3  ;;  %v10227_v29 = vor.u32 %v10226_v22, %v10223_v31  ;;  %v10210_v61 = vsel %vm967_vm4, %v10200_v13, %v10209_v49  ;;  %v31594_v41 = vshrl.u32 %v27545_v26, 16  ;;  %v28105_v22 = vld [vmem:[#allocation2 + $0x30] sm:$0xff] }
 0x762   :  { %v10232_v53 = vrot.slane %v32178_v28, 2  ;;  %v31586_v28 = vshll.u32 %v27516_v7, 16  ;;  %v31595_v31 = vshll.u32 %v27545_v26, 16  ;;  %32187 = vst [vmem:[#allocation38_spill] sm:$0xff] %v28105_v22  ;;  %v28163_v26 = vld [vmem:[#allocation2 + $0x78] sm:$0xff] }
 0x763   :  { %v28091_v45 = vor.u32 %v10253_v50, %v10250_v38  ;;  %v10219_v50 = vsel %vm967_vm4, %v10209_v49, %v10218_v15  ;;  %v10228_v38 = vsel %vm967_vm4, %v10218_v15, %v10227_v29  ;;  %v28124_v49 = vld [vmem:[#allocation2 + $0x48] sm:$0xff]  ;;  %v12824_v15 = vrot.slane %v28095_v18, 4  ;;  %32200 = vst [vmem:[#allocation50_spill] sm:$0xff] %v28163_v26 }
 0x764   :  { %v10262_v2 = vrot.slane %v31586_v28, 3  ;;  %32190 = vst [vmem:[#allocation39_spill] sm:$0xff] %v28124_v49  ;;  %v28135_v28 = vrot.slane %v31594_v41, 2  ;;  %v28146_v18 = vld [vmem:[#allocation2 + $0x68] sm:$0xff]  ;;  %v12834_v0 = vrot.slane %v28124_v49, 4 }
 0x765   :  { %v28120_v54 = vsel %vm967_vm4, %v10245_v63, %v28091_v45  ;;  %32194 = vst [vmem:[#allocation43_spill] sm:$0xff] %v28146_v18 }
 0x767   :  { %20971 = vmatmul.mubr.msk.bf16.gmra.mrb[40].mxu1 %vm9029_vm7, %v10192_v14  ;;  %v10235_v14 = vrot.slane %v32179_v10, 3 }
 0x768   :  { %20974 = vmatprep.mubr.msk.bf16.mxu1 %vm9029_vm7, %v10201_v5  ;;  %v31587_v5 = vshrl.u32 %v27516_v7, 16  ;;  %v28144_v7 = vld [vmem:[#allocation2 + $0x60] sm:$0xff] }
 0x769   :  { %v10236_v10 = vor.u32 %v10235_v14, %v10232_v53  ;;  %v28115_v53 = vld [vmem:[#allocation2 + $0x38] sm:$0xff]  ;;  %32193 = vst [vmem:[#allocation44_spill] sm:$0xff] %v28144_v7 }
 0x76a   :  { %v10259_v32 = vrot.slane %v31587_v5, 2  ;;  %32188 = vst [vmem:[#allocation37_spill] sm:$0xff] %v28115_v53  ;;  %v28142_v14 = vld [vmem:[#allocation2 + $0x58] sm:$0xff]  ;;  %v12830_v5 = vrot.slane %v28115_v53, 4 }
 0x76b   :  { %v10237_v13 = vsel %vm967_vm4, %v10227_v29, %v10236_v10  ;;  %v28113_v42 = vsel %vm967_vm4, %v10236_v10, %v10245_v63  ;;  %v12826_v29 = vrot.slane %v28103_v48, 4  ;;  %v12828_v10 = vrot.slane %v28105_v22, 4  ;;  %32192 = vst [vmem:[#allocation41_spill] sm:$0xff] %v28142_v14  ;;  %v28148_v48 = vld [vmem:[#allocation2 + $0x70] sm:$0xff]  ;;  %v11738_v53 = vld [vmem:[#allocation2 + $0x98] sm:$0xff] }
 0x76c   :  { %v28139_v63 = vrot.slane %v31595_v31, 3  ;;  %32195 = vst [vmem:[#allocation46_spill] sm:$0xff] %v28148_v48  ;;  %v12842_v22 = vrot.slane %v28146_v18, 4  ;;  %v28177_v49 = vsel %vm9121_vm12, %v12830_v5, %v12832_v43 }
 0x76d   :  { %v28156_v41 = vsel %vm9121_vm12, %v12824_v15, %v12826_v29  ;;  %v28159_v31 = vsel %vm9121_vm12, %v12826_v29, %v12828_v10  ;;  %v12838_v29 = vrot.slane %v28142_v14, 4  ;;  %32203 = vst [vmem:[#allocation51_spill] sm:$0xff] %v28177_v49  ;;  %v11747_v14 = vld [vmem:[#allocation2 + $0xe0] sm:$0xff] }
 0x76e   :  { %32198 = vst [vmem:[#allocation48_spill] sm:$0xff] %v28156_v41  ;;  %32199 = vst [vmem:[#allocation47_spill] sm:$0xff] %v28159_v31  ;;  %v28171_v41 = vsel %vm9121_vm12, %v12828_v10, %v12830_v5  ;;  %v12840_v31 = vrot.slane %v28144_v7, 4  ;;  %v12844_v10 = vrot.slane %v28148_v48, 4  ;;  %v11745_v48 = vld [vmem:[#allocation2 + $0xd0] sm:$0xff] }
 0x76f   :  { %20975 = vmatmul.mubr.msk.bf16.gmra.mrb[44].mxu1 %vm9029_vm7, %v10210_v61  ;;  %v28126_v61 = vld [vmem:[#allocation2 + $0x50] sm:$0xff]  ;;  %32202 = vst [vmem:[#allocation52_spill] sm:$0xff] %v28171_v41 }
 0x770   :  { %20978 = vmatprep.mubr.msk.bf16.mxu1 %vm9029_vm7, %v10219_v50  ;;  %32191 = vst [vmem:[#allocation42_spill] sm:$0xff] %v28126_v61  ;;  %v28131_v50 = vor.u32 %v10262_v2, %v10259_v32  ;;  %v32196_v32 = vrot.slane %v28093_v36, 4  ;;  %v12836_v36 = vrot.slane %v28126_v61, 4  ;;  %v28180_v61 = vsel %vm9121_vm12, %v12832_v43, %v12834_v0  ;;  %v11741_v41 = vld [vmem:[#allocation2 + $0xb0] sm:$0xff] }
 0x771   :  { %32204 = vst [vmem:[#allocation54_spill] sm:$0xff] %v28180_v61  ;;  %v28191_v18 = vsel %vm9121_vm12, %v12838_v29, %v12840_v31  ;;  %v28194_v5 = vsel %vm9121_vm12, %v12840_v31, %v12842_v22  ;;  %v12846_v43 = vrot.slane %v28163_v26, 4  ;;  %v12854_v31 = vrot.slane %v11738_v53, 4  ;;  %v11746_v26 = vld [vmem:[#allocation2 + $0xd8] sm:$0xff] }
 0x772   :  { %v28153_v2 = vsel %vm9121_vm12, %v32196_v32, %v12824_v15  ;;  %v28168_v32 = vld [vmem:[#allocation2 + $0x80] sm:$0xff]  ;;  %v11737_v15 = vld [vmem:[#allocation2 + $0x90] sm:$0xff]  ;;  %v28183_v1 = vsel %vm9121_vm12, %v12834_v0, %v12836_v36  ;;  %v28188_v7 = vsel %vm9121_vm12, %v12836_v36, %v12838_v29  ;;  %32207 = vst [vmem:[#allocation7_spill] sm:$0xff] %v28191_v18  ;;  %32208 = vst [vmem:[#allocation56_spill] sm:$0xff] %v28194_v5  ;;  %v12856_v5 = vrot.slane %v11739_v34, 4 }
 0x773   :  { %32197 = vst [vmem:[#allocation45_spill] sm:$0xff] %v28153_v2  ;;  %32201 = vst [vmem:[#allocation49_spill] sm:$0xff] %v28168_v32  ;;  %v11736_v2 = vld [vmem:[#allocation2 + $0x88] sm:$0xff]  ;;  %v11742_v0 = vld [vmem:[#allocation2 + $0xb8] sm:$0xff]  ;;  %v12852_v49 = vrot.slane %v11737_v15, 4  ;;  %v28203_v29 = vsel %vm9121_vm12, %v12844_v10, %v12846_v43  ;;  %v12858_v18 = vrot.slane %v11740_v30, 4 }
 0x774   :  { %32205 = vst [vmem:[#allocation53_spill] sm:$0xff] %v28183_v1  ;;  %32206 = vst [vmem:[#allocation55_spill] sm:$0xff] %v28188_v7  ;;  %v28199_v1 = vsel %vm9121_vm12, %v12842_v22, %v12844_v10  ;;  %v12850_v61 = vrot.slane %v11736_v2, 4  ;;  %v11743_v36 = vld [vmem:[#allocation2 + $0xc0] sm:$0xff]  ;;  %v11744_v7 = vld [vmem:[#allocation2 + $0xc8] sm:$0xff]  ;;  %v12860_v15 = vrot.slane %v11741_v41, 4  ;;  %v28218_v34 = vsel %vm9121_vm12, %v12854_v31, %v12856_v5 }
 0x775   :  { %32209 = vst [vmem:[#allocation57_spill] sm:$0xff] %v28199_v1  ;;  %32210 = vst [vmem:[#allocation58_spill] sm:$0xff] %v28203_v29  ;;  %v11749_v1 = vld [vmem:[#allocation2 + $0xf0] sm:$0xff]  ;;  %v28215_v10 = vsel %vm9121_vm12, %v12852_v49, %v12854_v31  ;;  %v28221_v53 = vsel %vm9121_vm12, %v12856_v5, %v12858_v18  ;;  %v12862_v30 = vrot.slane %v11742_v0, 4  ;;  %v11752_v41 = vld [vmem:[#allocation2 + $0x108] sm:$0xff]  ;;  %v12872_v31 = vrot.slane %v11747_v14, 4 }
 0x776   :  { %v28212_v2 = vsel %vm9121_vm12, %v12850_v61, %v12852_v49  ;;  %32214 = vst [vmem:[#allocation62_spill] sm:$0xff] %v28215_v10  ;;  %32215 = vst [vmem:[#allocation63_spill] sm:$0xff] %v28218_v34  ;;  %v11753_v29 = vld [vmem:[#allocation2 + $0x110] sm:$0xff]  ;;  %v12870_v10 = vrot.slane %v11746_v26, 4  ;;  %v11755_v5 = vld [vmem:[#allocation2 + $0x120] sm:$0xff] }
 0x777   :  { %20979 = vmatmul.mubr.msk.bf16.gmra.mrb[48].mxu1 %vm9029_vm7, %v10228_v38  ;;  %v12848_v38 = vrot.slane %v28168_v32, 4  ;;  %32213 = vst [vmem:[#allocation61_spill] sm:$0xff] %v28212_v2  ;;  %32216 = vst [vmem:[#allocation64_spill] sm:$0xff] %v28221_v53  ;;  %v11751_v2 = vld [vmem:[#allocation2 + $0x100] sm:$0xff]  ;;  %v28227_v49 = vsel %vm9121_vm12, %v12860_v15, %v12862_v30  ;;  %v11754_v32 = vld [vmem:[#allocation2 + $0x118] sm:$0xff] }
 0x778   :  { %20982 = vmatprep.mubr.msk.bf16.mxu1 %vm9029_vm7, %v10237_v13  ;;  %v11748_v13 = vld [vmem:[#allocation2 + $0xe8] sm:$0xff]  ;;  %v28244_v14 = vsel %vm9121_vm12, %v12870_v10, %v12872_v31 }
 0x779   :  { %v28206_v59 = vsel %vm9121_vm12, %v12846_v43, %v12848_v38  ;;  %v28209_v22 = vsel %vm9121_vm12, %v12848_v38, %v12850_v61  ;;  %v11750_v43 = vld [vmem:[#allocation2 + $0xf8] sm:$0xff]  ;;  %v12864_v38 = vrot.slane %v11743_v36, 4  ;;  %v12868_v61 = vrot.slane %v11745_v48, 4  ;;  %v11756_v53 = vld [vmem:[#allocation2 + $0x128] sm:$0xff]  ;;  %v11757_v36 = vld [vmem:[#allocation2 + $0x130] sm:$0xff]  ;;  %32218 = vst [vmem:[#allocation66_spill] sm:$0xff] %v28244_v14 }
 0x77a   :  { %32211 = vst [vmem:[#allocation59_spill] sm:$0xff] %v28206_v59  ;;  %32212 = vst [vmem:[#allocation60_spill] sm:$0xff] %v28209_v22  ;;  %v28224_v59 = vsel %vm9121_vm12, %v12858_v18, %v12860_v15  ;;  %v12866_v22 = vrot.slane %v11744_v7, 4  ;;  %v12874_v34 = vrot.slane %v11748_v13, 4  ;;  %v12876_v48 = vrot.slane %v11749_v1, 4 }
 0x77b   :  { %v28230_v0 = vsel %vm9121_vm12, %v12862_v30, %v12864_v38  ;;  %v28241_v26 = vsel %vm9121_vm12, %v12868_v61, %v12870_v10  ;;  %v12878_v15 = vrot.slane %v11750_v43, 4  ;;  %v12880_v1 = vrot.slane %v11751_v2, 4 }
 0x77c   :  { %v28233_v18 = vsel %vm9121_vm12, %v12864_v38, %v12866_v22  ;;  %v28236_v7 = vsel %vm9121_vm12, %v12866_v22, %v12868_v61  ;;  %32217 = vst [vmem:[#allocation65_spill] sm:$0xff] %v28241_v26  ;;  %v28247_v13 = vsel %vm9121_vm12, %v12872_v31, %v12874_v34  ;;  %v28252_v22 = vsel %vm9121_vm12, %v12874_v34, %v12876_v48  ;;  %v11758_v31 = vld [vmem:[#allocation2 + $0x138] sm:$0xff] }
 0x77d   :  { %v12882_v30 = vrot.slane %v11752_v41, 4  ;;  %v28255_v38 = vsel %vm9121_vm12, %v12876_v48, %v12878_v15  ;;  %v12886_v61 = vrot.slane %v11754_v32, 4  ;;  %v12888_v26 = vrot.slane %v11755_v5, 4  ;;  %v11759_v5 = vld [vmem:[#allocation2 + $0x140] sm:$0xff] }
 0x77e   :  { %v12890_v10 = vrot.slane %v11756_v53, 4  ;;  %v28258_v14 = vsel %vm9121_vm12, %v12878_v15, %v12880_v1  ;;  %v12892_v34 = vrot.slane %v11757_v36, 4  ;;  %v10272_v2 = vor.u32 %v28139_v63, %v28135_v28 }
 0x77f   :  { %20983 = vmatmul.mubr.msk.bf16.gmra.mrb[52].mxu1 %vm9029_vm7, %v28113_v42  ;;  %v12884_v42 = vrot.slane %v11753_v29, 4  ;;  %v28261_v43 = vsel %vm9121_vm12, %v12880_v1, %v12882_v30  ;;  %v28272_v32 = vsel %vm9121_vm12, %v12886_v61, %v12888_v26  ;;  %v10264_v48 = vsel %vm967_vm4, %v28091_v45, %v28131_v50 }
 0x780   :  { %20986 = vmatprep.mubr.msk.bf16.mxu1 %vm9029_vm7, %v28120_v54  ;;  %v28275_v53 = vsel %vm9121_vm12, %v12888_v26, %v12890_v10  ;;  %v28278_v41 = vsel %vm9121_vm12, %v12890_v10, %v12892_v34  ;;  %v32219_v28 = vshrl.u32 %v27547_v56, 16  ;;  %v32220_v36 = vshll.u32 %v27547_v56, 16  ;;  %v11760_v10 = vld [vmem:[#allocation2 + $0x148] sm:$0xff] }
 0x781   :  { %v28264_v54 = vsel %vm9121_vm12, %v12882_v30, %v12884_v42  ;;  %v28269_v29 = vsel %vm9121_vm12, %v12884_v42, %v12886_v61  ;;  %v10273_v26 = vsel %vm967_vm4, %v28131_v50, %v10272_v2  ;;  %v12894_v1 = vrot.slane %v11758_v31, 4 }
 0x782   :  { %v10277_v63 = vrot.slane %v32219_v28, 2  ;;  %v10280_v15 = vrot.slane %v32220_v36, 3  ;;  %v12896_v30 = vrot.slane %v11759_v5, 4  ;;  %v11761_v28 = vld [vmem:[#allocation2 + $0x150] sm:$0xff]  ;;  %v12898_v31 = vrot.slane %v11760_v10, 4 }
 0x783   :  { %v28292_v61 = vsel %vm9121_vm12, %v12892_v34, %v12894_v1  ;;  %v12900_v5 = vrot.slane %v11761_v28, 4 }
 0x784   :  { %v10281_v42 = vor.u32 %v10280_v15, %v10277_v63  ;;  %v28295_v45 = vsel %vm9121_vm12, %v12894_v1, %v12896_v30  ;;  %v11762_v63 = vld [vmem:[#allocation2 + $0x158] sm:$0xff] }
 0x785   :  { %v28306_v34 = vsel %vm9121_vm12, %v12898_v31, %v12900_v5 }
 0x786   :  { %v10282_v36 = vsel %vm967_vm4, %v10272_v2, %v10281_v42  ;;  %v10291_v50 = vsel %vm967_vm4, %v10281_v42, %v27601_v33  ;;  %v28310_v2 = vld [vmem:[#allocation2 + $0x160] sm:$0x3f]  ;;  %v12902_v33 = vrot.slane %v11762_v63, 4  ;;  %v32232_v63 = vshll.u32 %v27942_v44, 16 }
 0x787   :  { %20987 = vmatmul.mubr.msk.bf16.gmra.mrb[56].mxu1 %vm9029_vm7, %v10264_v48  ;;  %v28303_v48 = vsel %vm9121_vm12, %v12896_v30, %v12898_v31  ;;  %v31633_v15 = vrot.slane %v28310_v2, 4  ;;  %v32230_v30 = vshll.u32 %v27925_v16, 16  ;;  %v32231_v31 = vshrl.u32 %v27942_v44, 16 }
 0x788   :  { %20990 = vmatprep.mubr.msk.bf16.mxu1 %vm9029_vm7, %v10273_v26  ;;  %v28316_v26 = vsel %vm9121_vm12, %v12900_v5, %v12902_v33  ;;  %vm17177_vm4 = vcmask 257024  }
 0x789   :  { %v28321_v1 = vsel %vm9121_vm12, %v12902_v33, %v31633_v15  ;;  %v10975_v42 = vrot.slane %v32230_v30, 4  ;;  %v10978_v5 = vrot.slane %v32231_v31, 3  ;;  %v10979_v33 = vrot.slane %v32232_v63, 4  ;;  %v14319_v31 = vld [vmem:[#allocation2 + $0x38] sm:$0xff]  ;;  %v14336_v15 = vld [vmem:[#allocation2 + $0xc0] sm:$0xff] }
 0x78f   :  { %20991 = vmatmul.mubr.msk.bf16.gmra.mrb[60].mxu1 %vm9029_vm7, %v10282_v36 }
 0x790   :  { %20994 = vmatprep.mubr.msk.bf16.mxu1 %vm9029_vm7, %v10291_v50 }
 0x797   :  { %20995 = vmatmul.mubr.msk.bf16.gmra.mrb[64].mxu1 %vm9029_vm7, %v27626_v12  ;;  %v23308_v12 = vld [vmem:[%s31297_s5 + $0x18] sm:$0xff]  }
 0x798   :  { %20998 = vmatprep.mubr.msk.bf16.mxu1 %vm9029_vm7, %v27654_v39  ;;  %21112 = vmatprep.subr.bf16.mxu1 %v23308_v12 }
 0x79f   :  { %20999 = vmatmul.mubr.msk.bf16.gmra.mrb[68].mxu1 %vm9029_vm7, %v27664_v58  ;;  %v32222_v58 = vshll.u32 %v27818_v37, 16 }
 0x7a0   :  { %21002 = vmatprep.mubr.msk.bf16.mxu1 %vm9029_vm7, %v27691_v27 }
 0x7a1   :  { %v10963_v27 = vrot.slane %v32222_v58, 4 }
 0x7a7   :  { %21003 = vmatmul.mubr.msk.bf16.gmra.mrb[72].mxu1 %vm9029_vm7, %v27700_v60 }
 0x7a8   :  { %21006 = vmatprep.mubr.msk.bf16.mxu1 %vm9029_vm7, %v27733_v3  ;;  %v32225_v3 = vld [vmem:[#allocation14_spill] sm:$0xff] }
 0x7af   :  { %21007 = vmatmul.mubr.msk.bf16.gmra.mrb[76].mxu1 %vm9029_vm7, %v27743_v52  ;;  %v32226_v52 = vld [vmem:[#allocation11_spill] sm:$0xff] }
 0x7b0   :  { %21010 = vmatprep.mubr.msk.bf16.mxu1 %vm9029_vm7, %v27763_v25 }
 0x7b7   :  { %21011 = vmatmul.mubr.msk.bf16.gmra.mrb[80].mxu1 %vm9029_vm7, %v27773_v17  ;;  %v32221_v17 = vshrl.u32 %v27818_v37, 16  ;;  %v32229_v37 = vshrl.u32 %v27925_v16, 16  ;;  %v32233_v16 = vshrl.u32 %v27946_v9, 16 }
 0x7b8   :  { %21014 = vmatprep.mubr.msk.bf16.mxu1 %vm9029_vm7, %v27788_v55 }
 0x7b9   :  { %v10962_v39 = vrot.slane %v32221_v17, 3  ;;  %v10982_v17 = vrot.slane %v32233_v16, 3 }
 0x7bf   :  { %21015 = vmatmul.mubr.msk.bf16.gmra.mrb[84].mxu1 %vm9029_vm7, %v27791_v23  ;;  %v32227_v23 = vshrl.u32 %v27921_v62, 16 }
 0x7c0   :  { %21018 = vmatprep.mubr.msk.bf16.mxu1 %vm9029_vm7, %v27803_v51 }
 0x7c1   :  { %v10970_v55 = vrot.slane %v32227_v23, 3 }
 0x7c7   :  { %21019 = vmatmul.mubr.msk.bf16.gmra.mrb[92].mxu1 %vm9029_vm7, %v27798_v8  ;;  %v32228_v8 = vshll.u32 %v27921_v62, 16 }
 0x7c8   :  { %21024 = vmatprep.mubr.msk.bf16.mxu1 %vm9029_vm7, %v27149_v11  ;;  %v32223_v11 = vshrl.u32 %v27830_v24, 16 }
 0x7cf   :  { %21025 = vmatmul.mubr.msk.bf16.vlgmr.msra.gmra.mrb[4].mxu1 %vm9029_vm7, %v27255_v6  ;;  %v10966_v6 = vrot.slane %v32223_v11, 3 }
 0x7d0   :  { %21028 = vmatprep.mubr.msk.bf16.mxu1 %vm9029_vm7, %v27288_v46  ;;  %21113 = vmatpush3.bf16.msra.mxu1 %v23308_v12  ;;  %v32224_v46 = vshll.u32 %v27830_v24, 16  ;;  %v10974_v24 = vrot.slane %v32229_v37, 3  ;;  %v28413_v37 = vld [vmem:[#allocation2 + $0x28] sm:$0xff] }
 0x7d1   :  { %32241 = vst [vmem:[#allocation14_spill] sm:$0xff] %v28413_v37 }
 0x7d2   :  { %v10967_v60 = vrot.slane %v32224_v46, 4  ;;  %v10976_v50 = vor.u32 %v10975_v42, %v10974_v24  ;;  %v32242_v24 = vshrl.u32 %v27986_v57, 16  ;;  %v32243_v42 = vshll.u32 %v27986_v57, 16 }
 0x7d3   :  { %v32245_v57 = vshll.u32 %v28002_v4, 16 }
 0x7d4   :  { %v10998_v30 = vrot.slane %v32242_v24, 3 }
 0x7d7   :  { %21029 = vmatmul.mubr.msk.bf16.gmra.mrb[8].mxu1 %vm9029_vm7, %v27363_v40  ;;  %v10964_v40 = vor.u32 %v10963_v27, %v10962_v39  ;;  %v32234_v39 = vshll.u32 %v27946_v9, 16  ;;  %v32235_v27 = vshrl.u32 %v27962_v35, 16  ;;  %v32239_v9 = vshrl.u32 %v27982_v19, 16 }
 0x7d8   :  { %21032 = vmatprep.mubr.msk.bf16.mxu1 %vm9029_vm7, %v27416_v21  ;;  %v10968_v21 = vor.u32 %v10967_v60, %v10966_v6  ;;  %v32236_v6 = vshll.u32 %v27962_v35, 16  ;;  %v10980_v35 = vor.u32 %v10979_v33, %v10978_v5  ;;  %v32244_v33 = vshrl.u32 %v28002_v4, 16  ;;  %v14325_v4 = vld [vmem:[#allocation2 + $0x68] sm:$0xff] }
 0x7d9   :  { %v10965_v25 = vsel %vm1888_vm5, %v32226_v52, %v10964_v40  ;;  %v10983_v58 = vrot.slane %v32234_v39, 4  ;;  %v10986_v11 = vrot.slane %v32235_v27, 3  ;;  %v10994_v23 = vrot.slane %v32239_v9, 3  ;;  %v14321_v39 = vld [vmem:[#allocation2 + $0x48] sm:$0xff] }
 0x7da   :  { %v10969_v51 = vsel %vm1888_vm5, %v10964_v40, %v10968_v21  ;;  %v10987_v46 = vrot.slane %v32236_v6, 4  ;;  %v32238_v40 = vshll.u32 %v27966_v20, 16  ;;  %v28426_v16 = vrot.slane %v32244_v33, 3  ;;  %v14323_v6 = vld [vmem:[#allocation2 + $0x58] sm:$0xff]  ;;  %v14332_v33 = vld [vmem:[#allocation2 + $0xa0] sm:$0xff] }
 0x7dc   :  { %v10991_v52 = vrot.slane %v32238_v40, 4 }
 0x7df   :  { %21033 = vmatmul.mubr.msk.bf16.gmra.mrb[12].mxu1 %vm9029_vm7, %v27469_v47  ;;  %v10971_v47 = vrot.slane %v32228_v8, 4 }
 0x7e0   :  { %21036 = vmatprep.mubr.msk.bf16.mxu1 %vm9029_vm7, %v32225_v3  ;;  %v32237_v3 = vshrl.u32 %v27966_v20, 16 }
 0x7e1   :  { %v10972_v28 = vor.u32 %v10971_v47, %v10970_v55  ;;  %v32240_v55 = vshll.u32 %v27982_v19, 16  ;;  %v10988_v47 = vor.u32 %v10987_v46, %v10986_v11  ;;  %v10981_v19 = vsel %vm1888_vm5, %v10976_v50, %v10980_v35  ;;  %v14324_v46 = vld [vmem:[#allocation2 + $0x60] sm:$0xff] }
 0x7e2   :  { %v10990_v44 = vrot.slane %v32237_v3, 3  ;;  %v28434_v11 = vrot.slane %v32245_v57, 4  ;;  %v15423_v3 = vrot.slane %v14319_v31, 5  ;;  %v15433_v31 = vrot.slane %v14324_v46, 5 }
 0x7e3   :  { %v10973_v60 = vsel %vm1888_vm5, %v10968_v21, %v10972_v28  ;;  %v10995_v8 = vrot.slane %v32240_v55, 4  ;;  %v10984_v21 = vor.u32 %v10983_v58, %v10982_v17  ;;  %v14320_v17 = vld [vmem:[#allocation2 + $0x40] sm:$0xff]  ;;  %v31632_v58 = vrot.slane %v28413_v37, 5  ;;  %v14327_v55 = vld [vmem:[#allocation2 + $0x78] sm:$0xff] }
 0x7e4   :  { %v15439_v46 = vrot.slane %v14327_v55, 5  ;;  %v14340_v55 = vld [vmem:[#allocation2 + $0xe0] sm:$0xff] }
 0x7e5   :  { %v28415_v20 = vor.u32 %v10995_v8, %v10994_v23  ;;  %v10985_v63 = vsel %vm1888_vm5, %v10980_v35, %v10984_v21  ;;  %v10989_v5 = vsel %vm1888_vm5, %v10984_v21, %v10988_v47  ;;  %v14326_v23 = vld [vmem:[#allocation2 + $0x70] sm:$0xff]  ;;  %v15425_v21 = vrot.slane %v14320_v17, 5 }
 0x7e6   :  { %v15435_v17 = vrot.slane %v14325_v4, 5 }
 0x7e7   :  { %21037 = vmatmul.mubr.msk.bf16.gmra.mrb[16].mxu1 %vm9029_vm7, %v10965_v25  ;;  %v10977_v25 = vsel %vm1888_vm5, %v10972_v28, %v10976_v50  ;;  %v10999_v28 = vrot.slane %v32243_v42, 4  ;;  %v14322_v50 = vld [vmem:[#allocation2 + $0x50] sm:$0xff]  ;;  %v14329_v42 = vld [vmem:[#allocation2 + $0x88] sm:$0xff]  ;;  %v28461_v57 = vsel %vm15413_vm15, %v15423_v3, %v15425_v21 }
 0x7e8   :  { %21040 = vmatprep.mubr.msk.bf16.mxu1 %vm9029_vm7, %v10969_v51  ;;  %v10992_v51 = vor.u32 %v10991_v52, %v10990_v44  ;;  %v32246_v52 = vld [vmem:[#allocation27_spill] sm:$0xff]  ;;  %32251 = vst [vmem:[#allocation67_spill] sm:$0xff] %v28461_v57 }
 0x7e9   :  { %v28441_v40 = vor.u32 %v10999_v28, %v10998_v30  ;;  %v14328_v30 = vld [vmem:[#allocation2 + $0x80] sm:$0xff]  ;;  %v15429_v28 = vrot.slane %v14322_v50, 5 }
 0x7ea   :  { %v28383_v10 = vpop.f32.mrb[88].mxu1  ;;  %v28430_v27 = vsel %vm1888_vm5, %v10988_v47, %v10992_v51  ;;  %v28439_v44 = vsel %vm1888_vm5, %v10992_v51, %v28415_v20  ;;  %v15427_v47 = vrot.slane %v14321_v39, 5  ;;  %v32250_v51 = vshll.u32 %v32246_v52, 16 }
 0x7eb   :  { %v28385_v36 = vpop.f32.mrb[89].mxu1  ;;  %v15437_v39 = vrot.slane %v14326_v23, 5  ;;  %v15441_v4 = vrot.slane %v14328_v30, 5  ;;  %v15443_v23 = vrot.slane %v14329_v42, 5  ;;  %v14341_v42 = vld [vmem:[#allocation2 + $0xe8] sm:$0xff] }
 0x7ec   :  { %v20931_v62 = vpop.f32.mrb[90].mxu1  ;;  %v28458_v24 = vrot.slane %v32250_v51, 4  ;;  %v28467_v51 = vsel %vm15413_vm15, %v15427_v47, %v15429_v28 }
 0x7ed   :  { %v28391_v12 = vpop.f32.mrb[91].mxu1  ;;  %v14318_v62 = vld [vmem:[#allocation2 + $0x30] sm:$0xff]  ;;  %32253 = vst [vmem:[#allocation69_spill] sm:$0xff] %v28467_v51  ;;  %v15449_v51 = vrot.slane %v14332_v33, 5  ;;  %v28485_v57 = vsel %vm15413_vm15, %v15439_v46, %v15441_v4 }
 0x7ee   :  { %32259 = vst [vmem:[#allocation75_spill] sm:$0xff] %v28485_v57 }
 0x7ef   :  { %21041 = vmatmul.mubr.msk.bf16.gmra.mrb[20].mxu1 %vm9029_vm7, %v10973_v60  ;;  %v15421_v60 = vrot.slane %v14318_v62, 5  ;;  %v15431_v62 = vrot.slane %v14323_v6, 5 }
 0x7f0   :  { %21044 = vmatprep.mubr.msk.bf16.mxu1 %vm9029_vm7, %v10977_v25  ;;  %v32247_v25 = vshrl.u32 %v32246_v52, 16  ;;  %v14334_v52 = vld [vmem:[#allocation2 + $0xb0] sm:$0xff] }
 0x7f1   :  { %v28451_v8 = vsel %vm15413_vm15, %v31632_v58, %v15421_v60  ;;  %v28454_v35 = vsel %vm15413_vm15, %v15421_v60, %v15423_v3  ;;  %v28464_v60 = vsel %vm15413_vm15, %v15425_v21, %v15427_v47  ;;  %v28470_v50 = vsel %vm15413_vm15, %v15429_v28, %v15431_v62  ;;  %v14335_v58 = vld [vmem:[#allocation2 + $0xb8] sm:$0xff] }
 0x7f2   :  { %v28445_v9 = vrot.slane %v32247_v25, 3  ;;  %32248 = vst [vmem:[#allocation11_spill] sm:$0xff] %v28451_v8  ;;  %32249 = vst [vmem:[#allocation27_spill] sm:$0xff] %v28454_v35  ;;  %v14333_v25 = vld [vmem:[#allocation2 + $0xa8] sm:$0xff]  ;;  %v28473_v6 = vsel %vm15413_vm15, %v15431_v62, %v15433_v31  ;;  %v28476_v3 = vsel %vm15413_vm15, %v15433_v31, %v15435_v17  ;;  %v28479_v21 = vsel %vm15413_vm15, %v15435_v17, %v15437_v39  ;;  %v14338_v62 = vld [vmem:[#allocation2 + $0xd0] sm:$0xff] }
 0x7f3   :  { %32252 = vst [vmem:[#allocation68_spill] sm:$0xff] %v28464_v60  ;;  %32254 = vst [vmem:[#allocation70_spill] sm:$0xff] %v28470_v50  ;;  %v14337_v60 = vld [vmem:[#allocation2 + $0xc8] sm:$0xff]  ;;  %v28482_v47 = vsel %vm15413_vm15, %v15437_v39, %v15439_v46  ;;  %v28488_v31 = vsel %vm15413_vm15, %v15441_v4, %v15443_v23  ;;  %v15451_v17 = vrot.slane %v14333_v25, 5  ;;  %v15453_v30 = vrot.slane %v14334_v52, 5  ;;  %v14343_v46 = vld [vmem:[#allocation2 + $0xf8] sm:$0xff] }
 0x7f4   :  { %32255 = vst [vmem:[#allocation71_spill] sm:$0xff] %v28473_v6  ;;  %32256 = vst [vmem:[#allocation72_spill] sm:$0xff] %v28476_v3  ;;  %v14339_v6 = vld [vmem:[#allocation2 + $0xd8] sm:$0xff]  ;;  %v15455_v33 = vrot.slane %v14335_v58, 5  ;;  %v15457_v52 = vrot.slane %v14336_v15, 5  ;;  %v15459_v4 = vrot.slane %v14337_v60, 5 }
 0x7f5   :  { %32257 = vst [vmem:[#allocation73_spill] sm:$0xff] %v28479_v21  ;;  %32258 = vst [vmem:[#allocation74_spill] sm:$0xff] %v28482_v47  ;;  %v14342_v21 = vld [vmem:[#allocation2 + $0xf0] sm:$0xff]  ;;  %v28503_v25 = vsel %vm15413_vm15, %v15449_v51, %v15451_v17  ;;  %v15465_v58 = vrot.slane %v14340_v55, 5  ;;  %v14349_v60 = vld [vmem:[#allocation2 + $0x128] sm:$0xff]  ;;  %v15471_v55 = vrot.slane %v14343_v46, 5 }
 0x7f6   :  { %32260 = vst [vmem:[#allocation76_spill] sm:$0xff] %v28488_v31  ;;  %32264 = vst [vmem:[#allocation80_spill] sm:$0xff] %v28503_v25  ;;  %v14347_v31 = vld [vmem:[#allocation2 + $0x118] sm:$0xff]  ;;  %v28512_v57 = vsel %vm15413_vm15, %v15455_v33, %v15457_v52  ;;  %v15469_v15 = vrot.slane %v14342_v21, 5  ;;  %v15483_v46 = vrot.slane %v14349_v60, 5  ;;  %v28868_v3 = vld [vmem:[#allocation2 + $0xb0] sm:$0xff] }
 0x7f7   :  { %21045 = vmatmul.mubr.msk.bf16.gmra.mrb[24].mxu1 %vm9029_vm7, %v10981_v19  ;;  %v14330_v19 = vld [vmem:[#allocation2 + $0x90] sm:$0xff]  ;;  %32267 = vst [vmem:[#allocation83_spill] sm:$0xff] %v28512_v57  ;;  %v28888_v8 = vld [vmem:[#allocation2 + $0xc0] sm:$0xff] }
 0x7f8   :  { %21048 = vmatprep.mubr.msk.bf16.mxu1 %vm9029_vm7, %v10985_v63  ;;  %v14331_v63 = vld [vmem:[#allocation2 + $0x98] sm:$0xff]  ;;  %v15445_v28 = vrot.slane %v14330_v19, 5 }
 0x7f9   :  { %v15447_v50 = vrot.slane %v14331_v63, 5 }
 0x7fa   :  { %v28492_v39 = vsel %vm15413_vm15, %v15443_v23, %v15445_v28  ;;  %v14344_v23 = vld [vmem:[#allocation2 + $0x100] sm:$0xff] }
 0x7fb   :  { %32261 = vst [vmem:[#allocation77_spill] sm:$0xff] %v28492_v39  ;;  %v28495_v19 = vsel %vm15413_vm15, %v15445_v28, %v15447_v50  ;;  %v28498_v63 = vsel %vm15413_vm15, %v15447_v50, %v15449_v51  ;;  %v14345_v39 = vld [vmem:[#allocation2 + $0x108] sm:$0xff]  ;;  %v28509_v28 = vsel %vm15413_vm15, %v15453_v30, %v15455_v33  ;;  %v15461_v50 = vrot.slane %v14338_v62, 5 }
 0x7fc   :  { %32262 = vst [vmem:[#allocation78_spill] sm:$0xff] %v28495_v19  ;;  %32263 = vst [vmem:[#allocation79_spill] sm:$0xff] %v28498_v63  ;;  %v15463_v63 = vrot.slane %v14339_v6, 5  ;;  %v14346_v19 = vld [vmem:[#allocation2 + $0x110] sm:$0xff]  ;;  %v28515_v51 = vsel %vm15413_vm15, %v15457_v52, %v15459_v4  ;;  %v15475_v21 = vrot.slane %v14345_v39, 5  ;;  %v28533_v52 = vsel %vm15413_vm15, %v15469_v15, %v15471_v55 }
 0x7fd   :  { %32266 = vst [vmem:[#allocation82_spill] sm:$0xff] %v28509_v28  ;;  %32268 = vst [vmem:[#allocation84_spill] sm:$0xff] %v28515_v51  ;;  %v28518_v25 = vsel %vm15413_vm15, %v15459_v4, %v15461_v50  ;;  %v15477_v4 = vrot.slane %v14346_v19, 5  ;;  %v11001_v39 = vsel %vm1888_vm5, %v28415_v20, %v28441_v40  ;;  %v11004_v20 = vor.u32 %v28434_v11, %v28426_v16  ;;  %v32287_v11 = vld [vmem:[#allocation29_spill] sm:$0xff]  ;;  %v28848_v28 = vld [vmem:[#allocation2 + $0xa0] sm:$0xff] }
 0x7fe   :  { %32269 = vst [vmem:[#allocation85_spill] sm:$0xff] %v28518_v25  ;;  %v28521_v62 = vsel %vm15413_vm15, %v15461_v50, %v15463_v63  ;;  %v28524_v6 = vsel %vm15413_vm15, %v15463_v63, %v15465_v58  ;;  %32274 = vst [vmem:[#allocation90_spill] sm:$0xff] %v28533_v52  ;;  %v15479_v25 = vrot.slane %v14347_v31, 5 }
 0x7ff   :  { %21049 = vmatmul.mubr.msk.bf16.gmra.mrb[28].mxu1 %vm9029_vm7, %v10989_v5  ;;  %v28506_v5 = vsel %vm15413_vm15, %v15451_v17, %v15453_v30  ;;  %v15467_v17 = vrot.slane %v14341_v42, 5  ;;  %32270 = vst [vmem:[#allocation86_spill] sm:$0xff] %v28521_v62  ;;  %32271 = vst [vmem:[#allocation87_spill] sm:$0xff] %v28524_v6  ;;  %v15473_v42 = vrot.slane %v14344_v23, 5  ;;  %v28547_v23 = vsel %vm15413_vm15, %v15475_v21, %v15477_v4  ;;  %v28828_v62 = vld [vmem:[#allocation2 + $0x90] sm:$0xff] }
 0x800   :  { %21052 = vmatprep.mubr.msk.bf16.mxu1 %vm9029_vm7, %v28430_v27  ;;  %32265 = vst [vmem:[#allocation81_spill] sm:$0xff] %v28506_v5  ;;  %v14348_v27 = vld [vmem:[#allocation2 + $0x120] sm:$0xff]  ;;  %v14350_v5 = vld [vmem:[#allocation2 + $0x130] sm:$0xff]  ;;  %32277 = vst [vmem:[#allocation93_spill] sm:$0xff] %v28547_v23  ;;  %v28550_v31 = vsel %vm15413_vm15, %v15477_v4, %v15479_v25 }
 0x801   :  { %v28527_v30 = vsel %vm15413_vm15, %v15465_v58, %v15467_v17  ;;  %v28530_v33 = vsel %vm15413_vm15, %v15467_v17, %v15469_v15  ;;  %v15481_v51 = vrot.slane %v14348_v27, 5  ;;  %v28536_v50 = vsel %vm15413_vm15, %v15471_v55, %v15473_v42  ;;  %32278 = vst [vmem:[#allocation94_spill] sm:$0xff] %v28550_v31  ;;  %v14351_v27 = vld [vmem:[#allocation2 + $0x138] sm:$0xff]  ;;  %v14352_v17 = vld [vmem:[#allocation2 + $0x140] sm:$0xff] }
 0x802   :  { %32272 = vst [vmem:[#allocation88_spill] sm:$0xff] %v28527_v30  ;;  %32273 = vst [vmem:[#allocation89_spill] sm:$0xff] %v28530_v33  ;;  %v28539_v63 = vsel %vm15413_vm15, %v15473_v42, %v15475_v21  ;;  %v15485_v58 = vrot.slane %v14350_v5, 5  ;;  %v11008_v15 = vor.u32 %v28458_v24, %v28445_v9  ;;  %v15487_v60 = vrot.slane %v14351_v27, 5  ;;  %v32342_v31 = vld [vmem:[#allocation42_spill] sm:$0xff] }
 0x803   :  { %32275 = vst [vmem:[#allocation91_spill] sm:$0xff] %v28536_v50  ;;  %32276 = vst [vmem:[#allocation92_spill] sm:$0xff] %v28539_v63  ;;  %v28553_v19 = vsel %vm15413_vm15, %v15479_v25, %v15481_v51  ;;  %v28557_v5 = vsel %vm15413_vm15, %v15481_v51, %v15483_v46  ;;  %v15489_v55 = vrot.slane %v14352_v17, 5  ;;  %v32282_v25 = vld [vmem:[#allocation30_spill] sm:$0xff]  ;;  %v11005_v51 = vsel %vm1888_vm5, %v28441_v40, %v11004_v20  ;;  %v14353_v40 = vld [vmem:[#allocation2 + $0x148] sm:$0xff] }
 0x804   :  { %32279 = vst [vmem:[#allocation95_spill] sm:$0xff] %v28553_v19  ;;  %32280 = vst [vmem:[#allocation96_spill] sm:$0xff] %v28557_v5  ;;  %v32283_v42 = vshrl.u32 %v32282_v25, 16  ;;  %v32284_v4 = vshll.u32 %v32282_v25, 16  ;;  %v11009_v16 = vsel %vm1888_vm5, %v11004_v20, %v11008_v15  ;;  %v32288_v9 = vshrl.u32 %v32287_v11, 16  ;;  %v14354_v25 = vld [vmem:[#allocation2 + $0x150] sm:$0xff] }
 0x805   :  { %v32289_v27 = vshll.u32 %v32287_v11, 16  ;;  %v32344_v63 = vld [vmem:[#allocation44_spill] sm:$0xff] }
 0x806   :  { %v11010_v21 = vrot.slane %v32283_v42, 3  ;;  %v11014_v24 = vrot.slane %v32288_v9, 3 }
 0x807   :  { %21053 = vmatmul.mubr.msk.bf16.gmra.mrb[32].mxu1 %vm9029_vm7, %v28439_v44  ;;  %v28560_v44 = vsel %vm15413_vm15, %v15483_v46, %v15485_v58  ;;  %v11011_v46 = vrot.slane %v32284_v4, 4  ;;  %v11015_v17 = vrot.slane %v32289_v27, 4  ;;  %v15491_v4 = vrot.slane %v14353_v40, 5  ;;  %v14355_v40 = vld [vmem:[#allocation2 + $0x158] sm:$0xff] }
 0x808   :  { %21056 = vmatprep.mubr.msk.bf16.mxu1 %vm9029_vm7, %v11001_v39  ;;  %32281 = vst [vmem:[#allocation97_spill] sm:$0xff] %v28560_v44  ;;  %v28573_v39 = vsel %vm15413_vm15, %v15485_v58, %v15487_v60  ;;  %v28576_v44 = vsel %vm15413_vm15, %v15487_v60, %v15489_v55  ;;  %v32290_v60 = vld [vmem:[#allocation32_spill] sm:$0xff] }
 0x809   :  { %32285 = vst [vmem:[#allocation30_spill] sm:$0xff] %v28573_v39  ;;  %32286 = vst [vmem:[#allocation98_spill] sm:$0xff] %v28576_v44  ;;  %v11012_v42 = vor.u32 %v11011_v46, %v11010_v21  ;;  %v11016_v58 = vor.u32 %v11015_v17, %v11014_v24  ;;  %v15493_v39 = vrot.slane %v14354_v25, 5  ;;  %v32291_v44 = vshrl.u32 %v32290_v60, 16  ;;  %v32295_v46 = vld [vmem:[#allocation31_spill] sm:$0xff] }
 0x80a   :  { %v32292_v20 = vshll.u32 %v32290_v60, 16  ;;  %v28591_v9 = vsel %vm15413_vm15, %v15489_v55, %v15491_v4  ;;  %v14356_v55 = vld [vmem:[#allocation2 + $0x160] sm:$0xff]  ;;  %v28603_v25 = vld [vmem:[#allocation2 + $0x168] sm:$0x7f] }
 0x80b   :  { %v11018_v5 = vrot.slane %v32291_v44, 3  ;;  %32293 = vst [vmem:[#allocation29_spill] sm:$0xff] %v28591_v9  ;;  %v28594_v11 = vsel %vm15413_vm15, %v15491_v4, %v15493_v39  ;;  %v11017_v21 = vsel %vm1888_vm5, %v11012_v42, %v11016_v58  ;;  %v32297_v44 = vshll.u32 %v32295_v46, 16  ;;  %32298 = vst [vmem:[#allocation31_spill] sm:$0xff] %v28603_v25  ;;  %v32299_v4 = vld [vmem:[#allocation34_spill] sm:$0xff] }
 0x80c   :  { %v11019_v19 = vrot.slane %v32292_v20, 4  ;;  %32294 = vst [vmem:[#allocation32_spill] sm:$0xff] %v28594_v11  ;;  %v32300_v60 = vshrl.u32 %v32299_v4, 16  ;;  %v15497_v9 = vrot.slane %v14356_v55, 5 }
 0x80d   :  { %v11023_v27 = vrot.slane %v32297_v44, 4 }
 0x80e   :  { %v11026_v20 = vrot.slane %v32300_v60, 3  ;;  %v32308_v60 = vld [vmem:[#allocation10_spill] sm:$0xff] }
 0x80f   :  { %21057 = vmatmul.mubr.msk.bf16.gmra.mrb[36].mxu1 %vm9029_vm7, %v11005_v51  ;;  %v11013_v51 = vsel %vm1888_vm5, %v11008_v15, %v11012_v42  ;;  %v11020_v15 = vor.u32 %v11019_v19, %v11018_v5  ;;  %v32302_v5 = vld [vmem:[#allocation8_spill] sm:$0xff]  ;;  %32349 = vst [vmem:[#allocation10_spill] sm:$0xff] %v28868_v3 }
 0x810   :  { %21060 = vmatprep.mubr.msk.bf16.mxu1 %vm9029_vm7, %v11009_v16  ;;  %v32296_v16 = vshrl.u32 %v32295_v46, 16  ;;  %v31635_v46 = vrot.slane %v28603_v25, 5  ;;  %v32304_v44 = vshll.u32 %v32302_v5, 16 }
 0x811   :  { %v11021_v11 = vsel %vm1888_vm5, %v11016_v58, %v11020_v15 }
 0x812   :  { %v11022_v24 = vrot.slane %v32296_v16, 3  ;;  %v15495_v16 = vrot.slane %v14355_v40, 5 }
 0x814   :  { %v11024_v17 = vor.u32 %v11023_v27, %v11022_v24  ;;  %v11031_v27 = vrot.slane %v32304_v44, 4  ;;  %v28622_v58 = vsel %vm15413_vm15, %v15495_v16, %v15497_v9 }
 0x815   :  { %32306 = vst [vmem:[#allocation8_spill] sm:$0xff] %v28622_v58 }
 0x816   :  { %v11025_v19 = vsel %vm1888_vm5, %v11020_v15, %v11024_v17 }
 0x817   :  { %21061 = vmatmul.mubr.msk.bf16.gmra.mrb[40].mxu1 %vm9029_vm7, %v11013_v51  ;;  %v32301_v51 = vshll.u32 %v32299_v4, 16  ;;  %v28619_v4 = vsel %vm15413_vm15, %v15493_v39, %v15495_v16  ;;  %v32311_v16 = vld [vmem:[#allocation9_spill] sm:$0xff] }
 0x818   :  { %21064 = vmatprep.mubr.msk.bf16.mxu1 %vm9029_vm7, %v11017_v21  ;;  %v32303_v21 = vshrl.u32 %v32302_v5, 16  ;;  %32305 = vst [vmem:[#allocation34_spill] sm:$0xff] %v28619_v4  ;;  %v32312_v44 = vshrl.u32 %v32311_v16, 16 }
 0x819   :  { %v11027_v42 = vrot.slane %v32301_v51, 4  ;;  %v32309_v51 = vshrl.u32 %v32308_v60, 16 }
 0x81a   :  { %v11030_v24 = vrot.slane %v32303_v21, 3  ;;  %v11038_v25 = vrot.slane %v32312_v44, 3 }
 0x81b   :  { %v11028_v15 = vor.u32 %v11027_v42, %v11026_v20  ;;  %v11034_v5 = vrot.slane %v32309_v51, 3 }
 0x81c   :  { %v11032_v40 = vor.u32 %v11031_v27, %v11030_v24  ;;  %v32314_v24 = vld [vmem:[#allocation12_spill] sm:$0xff] }
 0x81d   :  { %v11029_v55 = vsel %vm1888_vm5, %v11024_v17, %v11028_v15  ;;  %v32315_v27 = vshrl.u32 %v32314_v24, 16  ;;  %v32316_v51 = vshll.u32 %v32314_v24, 16  ;;  %v32321_v24 = vshll.u32 %v27547_v56, 16  ;;  %32351 = vst [vmem:[#allocation12_spill] sm:$0xff] %v28888_v8 }
 0x81e   :  { %v11033_v39 = vsel %vm1888_vm5, %v11028_v15, %v11032_v40 }
 0x81f   :  { %21065 = vmatmul.mubr.msk.bf16.gmra.mrb[44].mxu1 %vm9029_vm7, %v11021_v11  ;;  %v28627_v11 = vsel %vm15413_vm15, %v15497_v9, %v31635_v46  ;;  %v32313_v9 = vshll.u32 %v32311_v16, 16 }
 0x820   :  { %21068 = vmatprep.mubr.msk.bf16.mxu1 %vm9029_vm7, %v11025_v19  ;;  %32307 = vst [vmem:[#allocation99_spill] sm:$0xff] %v28627_v11  ;;  %v32310_v19 = vshll.u32 %v32308_v60, 16  ;;  %v11042_v60 = vrot.slane %v32315_v27, 3  ;;  %v32338_v11 = vld [vmem:[#allocation38_spill] sm:$0xff] }
 0x821   :  { %v11039_v46 = vrot.slane %v32313_v9, 4 }
 0x822   :  { %v11035_v21 = vrot.slane %v32310_v19, 4  ;;  %v32317_v19 = vld [vmem:[#allocation13_spill] sm:$0xff] }
 0x823   :  { %v11040_v17 = vor.u32 %v11039_v46, %v11038_v25  ;;  %v32318_v44 = vshrl.u32 %v32317_v19, 16  ;;  %v32319_v9 = vshll.u32 %v32317_v19, 16  ;;  %v32326_v19 = vld [vmem:[#allocation20_spill] sm:$0xff] }
 0x824   :  { %v11036_v20 = vor.u32 %v11035_v21, %v11034_v5  ;;  %v32320_v5 = vshrl.u32 %v27547_v56, 16  ;;  %v32324_v56 = vld [vmem:[#allocation18_spill] sm:$0xff] }
 0x825   :  { %v11046_v16 = vrot.slane %v32318_v44, 3  ;;  %v32327_v44 = vld [vmem:[#allocation19_spill] sm:$0xff] }
 0x826   :  { %v11037_v42 = vsel %vm1888_vm5, %v11032_v40, %v11036_v20  ;;  %v11041_v15 = vsel %vm1888_vm5, %v11036_v20, %v11040_v17  ;;  %v11050_v21 = vrot.slane %v32320_v5, 3 }
 0x827   :  { %21069 = vmatmul.mubr.msk.bf16.gmra.mrb[48].mxu1 %vm9029_vm7, %v11029_v55  ;;  %v11043_v55 = vrot.slane %v32316_v51, 4 }
 0x828   :  { %21072 = vmatprep.mubr.msk.bf16.mxu1 %vm9029_vm7, %v11033_v39  ;;  %v11047_v39 = vrot.slane %v32319_v9, 4  ;;  %v32329_v9 = vld [vmem:[#allocation21_spill] sm:$0xff] }
 0x829   :  { %v11044_v25 = vor.u32 %v11043_v55, %v11042_v60  ;;  %v32322_v60 = vld [vmem:[#allocation16_spill] sm:$0xff]  ;;  %v32323_v55 = vld [vmem:[#allocation15_spill] sm:$0xff] }
 0x82a   :  { %v11048_v46 = vor.u32 %v11047_v39, %v11046_v16  ;;  %v32328_v16 = vld [vmem:[#allocation22_spill] sm:$0xff]  ;;  %v32330_v39 = vld [vmem:[#allocation24_spill] sm:$0xff] }
 0x82b   :  { %v11045_v40 = vsel %vm1888_vm5, %v11040_v17, %v11044_v25 }
 0x82c   :  { %v11049_v20 = vsel %vm1888_vm5, %v11044_v25, %v11048_v46  ;;  %v10922_v25 = vld [vmem:[#allocation2 + $0x158] sm:$0x3f] }
 0x82d   :  { %v11106_v5 = vshll.u32 %v10922_v25, 16 }
 0x82f   :  { %21073 = vmatmul.mubr.msk.bf16.gmra.mrb[52].mxu1 %vm9029_vm7, %v11037_v42  ;;  %v11051_v42 = vrot.slane %v32321_v24, 4 }
 0x830   :  { %21076 = vmatprep.mubr.msk.bf16.mxu1 %vm9029_vm7, %v11041_v15  ;;  %v32325_v15 = vld [vmem:[#allocation17_spill] sm:$0xff] }
 0x831   :  { %v11052_v27 = vor.u32 %v11051_v42, %v11050_v21  ;;  %v32331_v21 = vld [vmem:[#allocation23_spill] sm:$0xff]  ;;  %v11108_v42 = vrot.slane %v11106_v5, 4  ;;  %v32335_v5 = vld [vmem:[#allocation33_spill] sm:$0xff] }
 0x833   :  { %v11053_v51 = vsel %vm1888_vm5, %v11048_v46, %v11052_v27  ;;  %v11057_v17 = vsel %vm1888_vm5, %v11052_v27, %v32322_v60  ;;  %v23309_v46 = vld [vmem:[%s31297_s5 + $0x20] sm:$0xff]  }
 0x834   :  { %21202 = vmatprep.subr.bf16.mxu1 %v23309_v46  ;;  %v32332_v27 = vld [vmem:[#allocation26_spill] sm:$0xff] }
 0x837   :  { %21077 = vmatmul.mubr.msk.bf16.gmra.mrb[56].mxu1 %vm9029_vm7, %v11045_v40  ;;  %v11103_v40 = vshrl.u32 %v10922_v25, 16 }
 0x838   :  { %21080 = vmatprep.mubr.msk.bf16.mxu1 %vm9029_vm7, %v11049_v20  ;;  %v11720_v20 = vld [vmem:[#allocation2 + $0x8] sm:$0xf8] }
 0x839   :  { %v11105_v24 = vrot.slane %v11103_v40, 3  ;;  %v11768_v60 = vshrl.u32 %v11720_v20, 16 }
 0x83f   :  { %21081 = vmatmul.mubr.msk.bf16.gmra.mrb[60].mxu1 %vm9029_vm7, %v11053_v51  ;;  %v28689_v51 = vld [vmem:[#allocation2 + $0x10] sm:$0xff] }
 0x840   :  { %21084 = vmatprep.mubr.msk.bf16.mxu1 %vm9029_vm7, %v11057_v17  ;;  %v11109_v17 = vor.u32 %v11108_v42, %v11105_v24  ;;  %v31639_v24 = vshll.u32 %v32335_v5, 16 }
 0x847   :  { %21085 = vmatmul.mubr.msk.bf16.gmra.mrb[64].mxu1 %vm9029_vm7, %v32323_v55  ;;  %v11771_v55 = vshll.u32 %v11720_v20, 16 }
 0x848   :  { %21088 = vmatprep.mubr.msk.bf16.mxu1 %vm9029_vm7, %v32324_v56  ;;  %v31638_v56 = vshrl.u32 %v28689_v51, 16 }
 0x84a   :  { %v11778_v25 = vrot.slane %v31638_v56, 3 }
 0x84f   :  { %21089 = vmatmul.mubr.msk.bf16.gmra.mrb[68].mxu1 %vm9029_vm7, %v32325_v15  ;;  %v31636_v15 = vshll.u32 %v28689_v51, 16 }
 0x850   :  { %21092 = vmatprep.mubr.msk.bf16.mxu1 %vm9029_vm7, %v32326_v19  ;;  %v11770_v19 = vrot.slane %v11768_v60, 3 }
 0x851   :  { %v11781_v40 = vrot.slane %v31636_v15, 4 }
 0x853   :  { %v11782_v20 = vor.u32 %v11781_v40, %v11778_v25  ;;  %v32337_v25 = vld [vmem:[#allocation35_spill] sm:$0xff] }
 0x854   :  { %v31642_v40 = vshrl.u32 %v32337_v25, 16 }
 0x857   :  { %21093 = vmatmul.mubr.msk.bf16.gmra.mrb[72].mxu1 %vm9029_vm7, %v32327_v44  ;;  %v32333_v44 = vld [vmem:[#allocation28_spill] sm:$0xff] }
 0x858   :  { %21096 = vmatprep.mubr.msk.bf16.mxu1 %vm9029_vm7, %v32328_v16  ;;  %v32334_v16 = vld [vmem:[#allocation25_spill] sm:$0xff] }
 0x85f   :  { %21097 = vmatmul.mubr.msk.bf16.gmra.mrb[76].mxu1 %vm9029_vm7, %v32329_v9  ;;  %v11110_v9 = vsel %vm1888_vm5, %v32334_v16, %v11109_v17  ;;  %v11790_v16 = vrot.slane %v31639_v24, 4  ;;  %v31644_v24 = vshrl.u32 %v32338_v11, 16 }
 0x860   :  { %21100 = vmatprep.mubr.msk.bf16.mxu1 %vm9029_vm7, %v32330_v39  ;;  %v11773_v39 = vrot.slane %v11771_v55, 4 }
 0x862   :  { %v11774_v42 = vor.u32 %v11773_v39, %v11770_v19 }
 0x867   :  { %21101 = vmatmul.mubr.msk.bf16.gmra.mrb[80].mxu1 %vm9029_vm7, %v32331_v21  ;;  %v31637_v21 = vshrl.u32 %v32335_v5, 16 }
 0x868   :  { %21104 = vmatprep.mubr.msk.bf16.mxu1 %vm9029_vm7, %v32332_v27  ;;  %v32336_v27 = vld [vmem:[#allocation36_spill] sm:$0xff] }
 0x869   :  { %v31640_v60 = vshrl.u32 %v32336_v27, 16  ;;  %v11787_v55 = vrot.slane %v31637_v21, 3  ;;  %v31643_v21 = vshll.u32 %v32337_v25, 16 }
 0x86b   :  { %v11796_v15 = vrot.slane %v31640_v60, 3  ;;  %v11791_v39 = vor.u32 %v11790_v16, %v11787_v55  ;;  %v11805_v60 = vrot.slane %v31642_v40, 3  ;;  %v11814_v16 = vrot.slane %v31644_v24, 3 }
 0x86f   :  { %21105 = vmatmul.mubr.msk.bf16.gmra.mrb[84].mxu1 %vm9029_vm7, %v32333_v44  ;;  %v31641_v44 = vshll.u32 %v32336_v27, 16 }
 0x870   :  { %21108 = vmatprep.mubr.msk.bf16.mxu1 %vm9029_vm7, %v11110_v9  ;;  %v11783_v9 = vsel %vm1888_vm5, %v11774_v42, %v11782_v20  ;;  %v11792_v42 = vsel %vm1888_vm5, %v11782_v20, %v11791_v39 }
 0x871   :  { %v11799_v19 = vrot.slane %v31641_v44, 4  ;;  %v11808_v44 = vrot.slane %v31643_v21, 4  ;;  %v32340_v21 = vld [vmem:[#allocation40_spill] sm:$0xff] }
 0x872   :  { %v31648_v4 = vshrl.u32 %v32340_v21, 16 }
 0x873   :  { %v11800_v56 = vor.u32 %v11799_v19, %v11796_v15  ;;  %v11809_v20 = vor.u32 %v11808_v44, %v11805_v60 }
 0x874   :  { %v11832_v60 = vrot.slane %v31648_v4, 3 }
 0x875   :  { %v11801_v55 = vsel %vm1888_vm5, %v11791_v39, %v11800_v56  ;;  %v11810_v39 = vsel %vm1888_vm5, %v11800_v56, %v11809_v20  ;;  %v32341_v56 = vld [vmem:[#allocation39_spill] sm:$0xff] }
 0x877   :  { %21109 = vmatmul.mubr.msk.bf16.gmra.mrb[96].mxu1 %vm9029_vm7, %v11109_v17  ;;  %v31645_v17 = vshll.u32 %v32338_v11, 16 }
 0x878   :  { %21114 = vmatprep.mubr.msk.bf16.mxu1 %vm9029_vm7, %v11783_v9  ;;  %v32339_v9 = vld [vmem:[#allocation37_spill] sm:$0xff] }
 0x879   :  { %v11817_v15 = vrot.slane %v31645_v17, 4  ;;  %v31646_v19 = vshrl.u32 %v32339_v9, 16  ;;  %v31647_v40 = vshll.u32 %v32339_v9, 16 }
 0x87b   :  { %v11818_v58 = vor.u32 %v11817_v15, %v11814_v16  ;;  %v11823_v24 = vrot.slane %v31646_v19, 3  ;;  %v11826_v17 = vrot.slane %v31647_v40, 4  ;;  %v31650_v16 = vshrl.u32 %v32341_v56, 16 }
 0x87c   :  { %v31651_v15 = vshll.u32 %v32341_v56, 16  ;;  %v31652_v40 = vshrl.u32 %v32342_v31, 16 }
 0x87d   :  { %v11841_v4 = vrot.slane %v31650_v16, 3 }
 0x87f   :  { %21115 = vmatmul.mubr.msk.bf16.vlgmr.msra.gmra.mrb[4].mxu1 %vm9029_vm7, %v11792_v42  ;;  %v31649_v42 = vshll.u32 %v32340_v21, 16 }
 0x880   :  { %21118 = vmatprep.mubr.msk.bf16.mxu1 %vm9029_vm7, %v11801_v55  ;;  %21203 = vmatpush3.bf16.msra.mxu1 %v23309_v46  ;;  %v11819_v46 = vsel %vm1888_vm5, %v11809_v20, %v11818_v58  ;;  %v11827_v55 = vor.u32 %v11826_v17, %v11823_v24  ;;  %v11850_v17 = vrot.slane %v31652_v40, 3 }
 0x881   :  { %v11835_v44 = vrot.slane %v31649_v42, 4  ;;  %v11844_v42 = vrot.slane %v31651_v15, 4  ;;  %v31656_v15 = vshrl.u32 %v32344_v63, 16 }
 0x882   :  { %v11828_v20 = vsel %vm1888_vm5, %v11818_v58, %v11827_v55  ;;  %v32343_v58 = vld [vmem:[#allocation41_spill] sm:$0xff] }
 0x883   :  { %v11836_v19 = vor.u32 %v11835_v44, %v11832_v60  ;;  %v11845_v60 = vor.u32 %v11844_v42, %v11841_v4  ;;  %v31654_v44 = vshrl.u32 %v32343_v58, 16  ;;  %v31655_v16 = vshll.u32 %v32343_v58, 16 }
 0x884   :  { %v11868_v42 = vrot.slane %v31656_v15, 3 }
 0x885   :  { %v11837_v24 = vsel %vm1888_vm5, %v11827_v55, %v11836_v19  ;;  %v11846_v55 = vsel %vm1888_vm5, %v11836_v19, %v11845_v60  ;;  %v11859_v40 = vrot.slane %v31654_v44, 3 }
 0x887   :  { %21119 = vmatmul.mubr.msk.bf16.gmra.mrb[8].mxu1 %vm9029_vm7, %v11810_v39  ;;  %v31653_v39 = vshll.u32 %v32342_v31, 16 }
 0x888   :  { %21122 = vmatprep.mubr.msk.bf16.mxu1 %vm9029_vm7, %v11819_v46 }
 0x889   :  { %v11853_v46 = vrot.slane %v31653_v39, 4  ;;  %v11862_v39 = vrot.slane %v31655_v16, 4 }
 0x88b   :  { %v11854_v23 = vor.u32 %v11853_v46, %v11850_v17  ;;  %v11863_v19 = vor.u32 %v11862_v39, %v11859_v40  ;;  %v32345_v46 = vld [vmem:[#allocation43_spill] sm:$0xff] }
 0x88c   :  { %v31659_v50 = vshrl.u32 %v32345_v46, 16  ;;  %v31658_v44 = vshll.u32 %v32345_v46, 16 }
 0x88d   :  { %v11855_v4 = vsel %vm1888_vm5, %v11845_v60, %v11854_v23  ;;  %v32346_v60 = vld [vmem:[#allocation46_spill] sm:$0xff]  ;;  %v11864_v39 = vsel %vm1888_vm5, %v11854_v23, %v11863_v19 }
 0x88e   :  { %v31660_v33 = vshrl.u32 %v32346_v60, 16  ;;  %v31662_v15 = vshll.u32 %v32346_v60, 16  ;;  %v32347_v23 = vld [vmem:[#allocation50_spill] sm:$0xff] }
 0x88f   :  { %21123 = vmatmul.mubr.msk.bf16.gmra.mrb[12].mxu1 %vm9029_vm7, %v11828_v20  ;;  %v31657_v20 = vshll.u32 %v32344_v63, 16 }
 0x890   :  { %21126 = vmatprep.mubr.msk.bf16.mxu1 %vm9029_vm7, %v11837_v24 }
 0x891   :  { %v11871_v24 = vrot.slane %v31657_v20, 4 }
 0x893   :  { %v11872_v52 = vor.u32 %v11871_v24, %v11868_v42  ;;  %v11880_v42 = vrot.slane %v31658_v44, 4 }
 0x895   :  { %v11873_v24 = vsel %vm1888_vm5, %v11863_v19, %v11872_v52 }
 0x897   :  { %21127 = vmatmul.mubr.msk.bf16.gmra.mrb[16].mxu1 %vm9029_vm7, %v11846_v55 }
 0x898   :  { %21130 = vmatprep.mubr.msk.bf16.mxu1 %vm9029_vm7, %v11855_v4 }
 0x89a   :  { %v21020_v17 = vpop.f32.mrb[92].mxu1 }
 0x89b   :  { %v28784_v16 = vadd.f32 %v21020_v17, %v28383_v10  ;;  %v10908_v55 = vpop.f32.mrb[93].mxu1  ;;  %v11877_v10 = vrot.slane %v31659_v50, 3  ;;  %v31661_v17 = vshrl.u32 %v32347_v23, 16  ;;  %v32348_v50 = vld [vmem:[#allocation49_spill] sm:$0xff] }
 0x89c   :  { %v28789_v30 = vadd.f32 %v10908_v55, %v28385_v36  ;;  %v21021_v20 = vpop.f32.mrb[94].mxu1  ;;  %v11886_v36 = vrot.slane %v31660_v33, 3  ;;  %v28807_v55 = vld [vmem:[#allocation2 + $0x78] sm:$0xff]  ;;  %v31665_v19 = vshll.u32 %v32348_v50, 16 }
 0x89d   :  { %v10911_v4 = vpop.f32.mrb[95].mxu1  ;;  %v11889_v20 = vrot.slane %v31662_v15, 4  ;;  %v11895_v33 = vrot.slane %v31661_v17, 3 }
 0x89e   :  { %v28792_v40 = vadd.f32 %v10911_v4, %v28391_v12  ;;  %v11881_v12 = vor.u32 %v11880_v42, %v11877_v10  ;;  %v31663_v4 = vshll.u32 %v28807_v55, 16 }
 0x89f   :  { %21131 = vmatmul.mubr.msk.bf16.gmra.mrb[20].mxu1 %vm9029_vm7, %v11864_v39  ;;  %v11890_v44 = vor.u32 %v11889_v20, %v11886_v36  ;;  %v31664_v39 = vshrl.u32 %v32348_v50, 16  ;;  %v11907_v36 = vrot.slane %v31665_v19, 4 }
 0x8a0   :  { %21134 = vmatprep.mubr.msk.bf16.mxu1 %vm9029_vm7, %v11873_v24  ;;  %v11882_v6 = vsel %vm1888_vm5, %v11872_v52, %v11881_v12  ;;  %v11898_v24 = vrot.slane %v31663_v4, 4  ;;  %v28824_v52 = vld [vmem:[#allocation2 + $0x88] sm:$0xff] }
 0x8a1   :  { %v11891_v10 = vsel %vm1888_vm5, %v11881_v12, %v11890_v44  ;;  %v11904_v42 = vrot.slane %v31664_v39, 3  ;;  %v31666_v17 = vshrl.u32 %v28824_v52, 16  ;;  %v31667_v15 = vshll.u32 %v28824_v52, 16 }
 0x8a2   :  { %v11899_v20 = vor.u32 %v11898_v24, %v11895_v33  ;;  %v31669_v12 = vshll.u32 %v28828_v62, 16 }
 0x8a3   :  { %v11908_v4 = vor.u32 %v11907_v36, %v11904_v42  ;;  %v11913_v19 = vrot.slane %v31666_v17, 3  ;;  %v11916_v33 = vrot.slane %v31667_v15, 4 }
 0x8a4   :  { %v11900_v39 = vsel %vm1888_vm5, %v11890_v44, %v11899_v20  ;;  %v11925_v42 = vrot.slane %v31669_v12, 4  ;;  %v28844_v44 = vld [vmem:[#allocation2 + $0x98] sm:$0xff] }
 0x8a5   :  { %v11909_v24 = vsel %vm1888_vm5, %v11899_v20, %v11908_v4  ;;  %v11917_v36 = vor.u32 %v11916_v33, %v11913_v19  ;;  %v31670_v17 = vshrl.u32 %v28844_v44, 16  ;;  %v31671_v57 = vshll.u32 %v28844_v44, 16 }
 0x8a6   :  { %v31673_v20 = vshll.u32 %v28848_v28, 16 }
 0x8a7   :  { %21135 = vmatmul.mubr.msk.bf16.gmra.mrb[24].mxu1 %vm9029_vm7, %v11882_v6  ;;  %v31668_v6 = vshrl.u32 %v28828_v62, 16  ;;  %v11931_v12 = vrot.slane %v31670_v17, 3  ;;  %v11934_v19 = vrot.slane %v31671_v57, 4 }
 0x8a8   :  { %21138 = vmatprep.mubr.msk.bf16.mxu1 %vm9029_vm7, %v11891_v10 }
 0x8a9   :  { %v11922_v10 = vrot.slane %v31668_v6, 3  ;;  %v11918_v6 = vsel %vm1888_vm5, %v11908_v4, %v11917_v36  ;;  %v28864_v4 = vld [vmem:[#allocation2 + $0xa8] sm:$0xff] }
 0x8aa   :  { %v31674_v17 = vshrl.u32 %v28864_v4, 16  ;;  %v31675_v47 = vshll.u32 %v28864_v4, 16 }
 0x8ab   :  { %v11926_v15 = vor.u32 %v11925_v42, %v11922_v10  ;;  %v11943_v10 = vrot.slane %v31673_v20, 4  ;;  %v11935_v42 = vor.u32 %v11934_v19, %v11931_v12 }
 0x8ac   :  { %v11949_v20 = vrot.slane %v31674_v17, 3  ;;  %v11952_v12 = vrot.slane %v31675_v47, 4 }
 0x8ad   :  { %v11927_v33 = vsel %vm1888_vm5, %v11917_v36, %v11926_v15  ;;  %v31677_v36 = vshll.u32 %v28868_v3, 16 }
 0x8af   :  { %21139 = vmatmul.mubr.msk.bf16.gmra.mrb[28].mxu1 %vm9029_vm7, %v11900_v39  ;;  %v31672_v39 = vshrl.u32 %v28848_v28, 16 }
 0x8b0   :  { %21142 = vmatprep.mubr.msk.bf16.mxu1 %vm9029_vm7, %v11909_v24 }
 0x8b1   :  { %v11940_v24 = vrot.slane %v31672_v39, 3  ;;  %v11936_v39 = vsel %vm1888_vm5, %v11926_v15, %v11935_v42  ;;  %v28884_v15 = vld [vmem:[#allocation2 + $0xb8] sm:$0xff] }
 0x8b2   :  { %32350 = vst [vmem:[#allocation9_spill] sm:$0xff] %v28884_v15  ;;  %v31678_v17 = vshrl.u32 %v28884_v15, 16  ;;  %v31680_v35 = vshll.u32 %v28884_v15, 16  ;;  %v28908_v15 = vld [vmem:[#allocation2 + $0xd0] sm:$0xff] }
 0x8b3   :  { %v11944_v57 = vor.u32 %v11943_v10, %v11940_v24  ;;  %v11961_v24 = vrot.slane %v31677_v36, 4  ;;  %v11953_v10 = vor.u32 %v11952_v12, %v11949_v20  ;;  %32353 = vst [vmem:[#allocation16_spill] sm:$0xff] %v28908_v15 }
 0x8b4   :  { %v11967_v36 = vrot.slane %v31678_v17, 3  ;;  %v11970_v20 = vrot.slane %v31680_v35, 4 }
 0x8b5   :  { %v11945_v19 = vsel %vm1888_vm5, %v11935_v42, %v11944_v57  ;;  %v31684_v42 = vshll.u32 %v28888_v8, 16 }
 0x8b7   :  { %21143 = vmatmul.mubr.msk.bf16.gmra.mrb[32].mxu1 %vm9029_vm7, %v11918_v6  ;;  %v31676_v6 = vshrl.u32 %v28868_v3, 16 }
 0x8b8   :  { %21146 = vmatprep.mubr.msk.bf16.mxu1 %vm9029_vm7, %v11927_v33 }
 0x8b9   :  { %v11958_v33 = vrot.slane %v31676_v6, 3  ;;  %v11954_v6 = vsel %vm1888_vm5, %v11944_v57, %v11953_v10  ;;  %v28904_v57 = vld [vmem:[#allocation2 + $0xc8] sm:$0xff] }
 0x8ba   :  { %32352 = vst [vmem:[#allocation13_spill] sm:$0xff] %v28904_v57  ;;  %v31685_v17 = vshrl.u32 %v28904_v57, 16  ;;  %v31688_v37 = vshll.u32 %v28904_v57, 16 }
 0x8bb   :  { %v11962_v47 = vor.u32 %v11961_v24, %v11958_v33  ;;  %v11979_v33 = vrot.slane %v31684_v42, 4  ;;  %v11971_v24 = vor.u32 %v11970_v20, %v11967_v36 }
 0x8bc   :  { %v11985_v42 = vrot.slane %v31685_v17, 3  ;;  %v11988_v36 = vrot.slane %v31688_v37, 4 }
 0x8bd   :  { %v11963_v12 = vsel %vm1888_vm5, %v11953_v10, %v11962_v47  ;;  %v31692_v10 = vshll.u32 %v28908_v15, 16 }
 0x8bf   :  { %21147 = vmatmul.mubr.msk.bf16.gmra.mrb[36].mxu1 %vm9029_vm7, %v11936_v39  ;;  %v31683_v39 = vshrl.u32 %v28888_v8, 16  ;;  %v28928_v8 = vld [vmem:[#allocation2 + $0xe0] sm:$0xff] }
 0x8c0   :  { %21150 = vmatprep.mubr.msk.bf16.mxu1 %vm9029_vm7, %v11945_v19  ;;  %32355 = vst [vmem:[#allocation18_spill] sm:$0xff] %v28928_v8 }
 0x8c1   :  { %v11976_v19 = vrot.slane %v31683_v39, 3  ;;  %v11972_v39 = vsel %vm1888_vm5, %v11962_v47, %v11971_v24  ;;  %v28924_v47 = vld [vmem:[#allocation2 + $0xd8] sm:$0xff] }
 0x8c2   :  { %32354 = vst [vmem:[#allocation15_spill] sm:$0xff] %v28924_v47  ;;  %v31693_v17 = vshrl.u32 %v28924_v47, 16  ;;  %v31696_v57 = vshll.u32 %v28924_v47, 16 }
 0x8c3   :  { %v11980_v35 = vor.u32 %v11979_v33, %v11976_v19  ;;  %v11997_v19 = vrot.slane %v31692_v10, 4  ;;  %v11989_v33 = vor.u32 %v11988_v36, %v11985_v42 }
 0x8c4   :  { %v12003_v10 = vrot.slane %v31693_v17, 3  ;;  %v12006_v42 = vrot.slane %v31696_v57, 4 }
 0x8c5   :  { %v11981_v20 = vsel %vm1888_vm5, %v11971_v24, %v11980_v35  ;;  %v31700_v24 = vshll.u32 %v28928_v8, 16 }
 0x8c7   :  { %21151 = vmatmul.mubr.msk.bf16.gmra.mrb[40].mxu1 %vm9029_vm7, %v11954_v6  ;;  %v31691_v6 = vshrl.u32 %v28908_v15, 16  ;;  %v28948_v15 = vld [vmem:[#allocation2 + $0xf0] sm:$0xff] }
 0x8c8   :  { %21154 = vmatprep.mubr.msk.bf16.mxu1 %vm9029_vm7, %v11963_v12  ;;  %32357 = vst [vmem:[#allocation20_spill] sm:$0xff] %v28948_v15 }
 0x8c9   :  { %v11994_v12 = vrot.slane %v31691_v6, 3  ;;  %v11990_v6 = vsel %vm1888_vm5, %v11980_v35, %v11989_v33  ;;  %v28944_v35 = vld [vmem:[#allocation2 + $0xe8] sm:$0xff] }
 0x8ca   :  { %32356 = vst [vmem:[#allocation17_spill] sm:$0xff] %v28944_v35  ;;  %v31701_v17 = vshrl.u32 %v28944_v35, 16  ;;  %v31704_v47 = vshll.u32 %v28944_v35, 16 }
 0x8cb   :  { %v11998_v37 = vor.u32 %v11997_v19, %v11994_v12  ;;  %v12015_v12 = vrot.slane %v31700_v24, 4  ;;  %v12007_v19 = vor.u32 %v12006_v42, %v12003_v10 }
 0x8cc   :  { %v12021_v24 = vrot.slane %v31701_v17, 3  ;;  %v12024_v10 = vrot.slane %v31704_v47, 4 }
 0x8cd   :  { %v11999_v36 = vsel %vm1888_vm5, %v11989_v33, %v11998_v37  ;;  %v31708_v33 = vshll.u32 %v28948_v15, 16 }
 0x8cf   :  { %21155 = vmatmul.mubr.msk.bf16.gmra.mrb[44].mxu1 %vm9029_vm7, %v11972_v39  ;;  %v31699_v39 = vshrl.u32 %v28928_v8, 16  ;;  %v28968_v8 = vld [vmem:[#allocation2 + $0x100] sm:$0xff] }
 0x8d0   :  { %21158 = vmatprep.mubr.msk.bf16.mxu1 %vm9029_vm7, %v11981_v20  ;;  %32359 = vst [vmem:[#allocation22_spill] sm:$0xff] %v28968_v8 }
 0x8d1   :  { %v12012_v20 = vrot.slane %v31699_v39, 3  ;;  %v12008_v39 = vsel %vm1888_vm5, %v11998_v37, %v12007_v19  ;;  %v28964_v37 = vld [vmem:[#allocation2 + $0xf8] sm:$0xff] }
 0x8d2   :  { %32358 = vst [vmem:[#allocation19_spill] sm:$0xff] %v28964_v37  ;;  %v31709_v17 = vshrl.u32 %v28964_v37, 16  ;;  %v31712_v35 = vshll.u32 %v28964_v37, 16 }
 0x8d3   :  { %v12016_v57 = vor.u32 %v12015_v12, %v12012_v20  ;;  %v12033_v20 = vrot.slane %v31708_v33, 4  ;;  %v12025_v12 = vor.u32 %v12024_v10, %v12021_v24 }
 0x8d4   :  { %v12039_v33 = vrot.slane %v31709_v17, 3  ;;  %v12042_v24 = vrot.slane %v31712_v35, 4 }
 0x8d5   :  { %v12017_v42 = vsel %vm1888_vm5, %v12007_v19, %v12016_v57  ;;  %v31716_v19 = vshll.u32 %v28968_v8, 16 }
 0x8d7   :  { %21159 = vmatmul.mubr.msk.bf16.gmra.mrb[48].mxu1 %vm9029_vm7, %v11990_v6  ;;  %v31707_v6 = vshrl.u32 %v28948_v15, 16  ;;  %v28988_v15 = vld [vmem:[#allocation2 + $0x110] sm:$0xff] }
 0x8d8   :  { %21162 = vmatprep.mubr.msk.bf16.mxu1 %vm9029_vm7, %v11999_v36  ;;  %32361 = vst [vmem:[#allocation24_spill] sm:$0xff] %v28988_v15 }
 0x8d9   :  { %v12030_v36 = vrot.slane %v31707_v6, 3  ;;  %v12026_v6 = vsel %vm1888_vm5, %v12016_v57, %v12025_v12  ;;  %v28984_v57 = vld [vmem:[#allocation2 + $0x108] sm:$0xff] }
 0x8da   :  { %32360 = vst [vmem:[#allocation21_spill] sm:$0xff] %v28984_v57  ;;  %v31717_v17 = vshrl.u32 %v28984_v57, 16  ;;  %v31720_v37 = vshll.u32 %v28984_v57, 16 }
 0x8db   :  { %v12034_v47 = vor.u32 %v12033_v20, %v12030_v36  ;;  %v12051_v36 = vrot.slane %v31716_v19, 4  ;;  %v12043_v20 = vor.u32 %v12042_v24, %v12039_v33 }
 0x8dc   :  { %v12057_v19 = vrot.slane %v31717_v17, 3  ;;  %v12060_v33 = vrot.slane %v31720_v37, 4 }
 0x8dd   :  { %v12035_v10 = vsel %vm1888_vm5, %v12025_v12, %v12034_v47  ;;  %v31724_v12 = vshll.u32 %v28988_v15, 16 }
 0x8df   :  { %21163 = vmatmul.mubr.msk.bf16.gmra.mrb[52].mxu1 %vm9029_vm7, %v12008_v39  ;;  %v31715_v39 = vshrl.u32 %v28968_v8, 16  ;;  %v29008_v8 = vld [vmem:[#allocation2 + $0x120] sm:$0xff] }
 0x8e0   :  { %21166 = vmatprep.mubr.msk.bf16.mxu1 %vm9029_vm7, %v12017_v42  ;;  %32363 = vst [vmem:[#allocation26_spill] sm:$0xff] %v29008_v8 }
 0x8e1   :  { %v12048_v42 = vrot.slane %v31715_v39, 3  ;;  %v12044_v39 = vsel %vm1888_vm5, %v12034_v47, %v12043_v20  ;;  %v29004_v47 = vld [vmem:[#allocation2 + $0x118] sm:$0xff] }
 0x8e2   :  { %32362 = vst [vmem:[#allocation23_spill] sm:$0xff] %v29004_v47  ;;  %v31725_v17 = vshrl.u32 %v29004_v47, 16  ;;  %v31728_v57 = vshll.u32 %v29004_v47, 16 }
 0x8e3   :  { %v12052_v35 = vor.u32 %v12051_v36, %v12048_v42  ;;  %v12069_v42 = vrot.slane %v31724_v12, 4  ;;  %v12061_v36 = vor.u32 %v12060_v33, %v12057_v19 }
 0x8e4   :  { %v12075_v12 = vrot.slane %v31725_v17, 3  ;;  %v12078_v19 = vrot.slane %v31728_v57, 4 }
 0x8e5   :  { %v12053_v24 = vsel %vm1888_vm5, %v12043_v20, %v12052_v35  ;;  %v31732_v20 = vshll.u32 %v29008_v8, 16 }
 0x8e7   :  { %21167 = vmatmul.mubr.msk.bf16.gmra.mrb[56].mxu1 %vm9029_vm7, %v12026_v6  ;;  %v31723_v6 = vshrl.u32 %v28988_v15, 16  ;;  %v29028_v15 = vld [vmem:[#allocation2 + $0x130] sm:$0xff] }
 0x8e8   :  { %21170 = vmatprep.mubr.msk.bf16.mxu1 %vm9029_vm7, %v12035_v10  ;;  %32365 = vst [vmem:[#allocation25_spill] sm:$0xff] %v29028_v15 }
 0x8e9   :  { %v12066_v10 = vrot.slane %v31723_v6, 3  ;;  %v12062_v6 = vsel %vm1888_vm5, %v12052_v35, %v12061_v36  ;;  %v29024_v35 = vld [vmem:[#allocation2 + $0x128] sm:$0xff] }
 0x8ea   :  { %32364 = vst [vmem:[#allocation28_spill] sm:$0xff] %v29024_v35  ;;  %v31733_v17 = vshrl.u32 %v29024_v35, 16  ;;  %v31736_v47 = vshll.u32 %v29024_v35, 16 }
 0x8eb   :  { %v12070_v37 = vor.u32 %v12069_v42, %v12066_v10  ;;  %v12087_v10 = vrot.slane %v31732_v20, 4  ;;  %v12079_v42 = vor.u32 %v12078_v19, %v12075_v12 }
 0x8ec   :  { %v12093_v20 = vrot.slane %v31733_v17, 3  ;;  %v12096_v12 = vrot.slane %v31736_v47, 4 }
 0x8ed   :  { %v12071_v33 = vsel %vm1888_vm5, %v12061_v36, %v12070_v37  ;;  %v31740_v36 = vshll.u32 %v29028_v15, 16 }
 0x8ef   :  { %21171 = vmatmul.mubr.msk.bf16.gmra.mrb[60].mxu1 %vm9029_vm7, %v12044_v39  ;;  %v31731_v39 = vshrl.u32 %v29008_v8, 16  ;;  %v29048_v8 = vld [vmem:[#allocation2 + $0x140] sm:$0xff] }
 0x8f0   :  { %21174 = vmatprep.mubr.msk.bf16.mxu1 %vm9029_vm7, %v12053_v24  ;;  %32367 = vst [vmem:[#allocation36_spill] sm:$0xff] %v29048_v8 }
 0x8f1   :  { %v12084_v24 = vrot.slane %v31731_v39, 3  ;;  %v12080_v39 = vsel %vm1888_vm5, %v12070_v37, %v12079_v42  ;;  %v29044_v37 = vld [vmem:[#allocation2 + $0x138] sm:$0xff] }
 0x8f2   :  { %32366 = vst [vmem:[#allocation33_spill] sm:$0xff] %v29044_v37  ;;  %v31741_v17 = vshrl.u32 %v29044_v37, 16  ;;  %v31744_v35 = vshll.u32 %v29044_v37, 16 }
 0x8f3   :  { %v12088_v57 = vor.u32 %v12087_v10, %v12084_v24  ;;  %v12105_v24 = vrot.slane %v31740_v36, 4  ;;  %v12097_v10 = vor.u32 %v12096_v12, %v12093_v20 }
 0x8f4   :  { %v12111_v36 = vrot.slane %v31741_v17, 3  ;;  %v12114_v20 = vrot.slane %v31744_v35, 4 }
 0x8f5   :  { %v12089_v19 = vsel %vm1888_vm5, %v12079_v42, %v12088_v57  ;;  %v31748_v42 = vshll.u32 %v29048_v8, 16 }
 0x8f7   :  { %21175 = vmatmul.mubr.msk.bf16.gmra.mrb[64].mxu1 %vm9029_vm7, %v12062_v6  ;;  %v31739_v6 = vshrl.u32 %v29028_v15, 16  ;;  %v29068_v15 = vld [vmem:[#allocation2 + $0x150] sm:$0xff] }
 0x8f8   :  { %21178 = vmatprep.mubr.msk.bf16.mxu1 %vm9029_vm7, %v12071_v33  ;;  %32369 = vst [vmem:[#allocation38_spill] sm:$0xff] %v29068_v15 }
 0x8f9   :  { %v12102_v33 = vrot.slane %v31739_v6, 3  ;;  %v12098_v6 = vsel %vm1888_vm5, %v12088_v57, %v12097_v10  ;;  %v29064_v57 = vld [vmem:[#allocation2 + $0x148] sm:$0xff] }
 0x8fa   :  { %32368 = vst [vmem:[#allocation35_spill] sm:$0xff] %v29064_v57  ;;  %v31749_v17 = vshrl.u32 %v29064_v57, 16  ;;  %v31750_v37 = vshll.u32 %v29064_v57, 16  ;;  %v23366_v57 = vld [vmem:[#allocation2 + $0x160] sm:$0x3f] }
 0x8fb   :  { %v12106_v47 = vor.u32 %v12105_v24, %v12102_v33  ;;  %v12123_v33 = vrot.slane %v31748_v42, 4  ;;  %v12115_v24 = vor.u32 %v12114_v20, %v12111_v36 }
 0x8fc   :  { %v12129_v42 = vrot.slane %v31749_v17, 3  ;;  %v12132_v36 = vrot.slane %v31750_v37, 4  ;;  %v29087_v17 = vld [vmem:[#allocation2 + $0x158] sm:$0xff] }
 0x8fd   :  { %v12107_v12 = vsel %vm1888_vm5, %v12097_v10, %v12106_v47  ;;  %v31756_v10 = vshll.u32 %v29068_v15, 16  ;;  %v31761_v37 = vshrl.u32 %v29087_v17, 16 }
 0x8ff   :  { %21179 = vmatmul.mubr.msk.bf16.gmra.mrb[68].mxu1 %vm9029_vm7, %v12080_v39  ;;  %v31747_v39 = vshrl.u32 %v29048_v8, 16  ;;  %v12157_v8 = vshll.u32 %v23366_v57, 16 }
 0x900   :  { %21182 = vmatprep.mubr.msk.bf16.mxu1 %vm9029_vm7, %v12089_v19 }
 0x901   :  { %v12120_v19 = vrot.slane %v31747_v39, 3  ;;  %v12116_v39 = vsel %vm1888_vm5, %v12106_v47, %v12115_v24  ;;  %v23310_v47 = vld [vmem:[%s31297_s5 + $0x28] sm:$0xff]   ;;  %v12159_v3 = vrot.slane %v12157_v8, 4 }
 0x902   :  { %21292 = vmatprep.subr.bf16.mxu1 %v23310_v47 }
 0x903   :  { %v12124_v35 = vor.u32 %v12123_v33, %v12120_v19  ;;  %v12141_v19 = vrot.slane %v31756_v10, 4  ;;  %v12133_v33 = vor.u32 %v12132_v36, %v12129_v42 }
 0x905   :  { %v12125_v20 = vsel %vm1888_vm5, %v12115_v24, %v12124_v35  ;;  %v12134_v10 = vsel %vm1888_vm5, %v12124_v35, %v12133_v33 }
 0x907   :  { %21183 = vmatmul.mubr.msk.bf16.gmra.mrb[72].mxu1 %vm9029_vm7, %v12098_v6  ;;  %v31753_v6 = vshrl.u32 %v29068_v15, 16 }
 0x908   :  { %21186 = vmatprep.mubr.msk.bf16.mxu1 %vm9029_vm7, %v12107_v12 }
 0x909   :  { %v12138_v12 = vrot.slane %v31753_v6, 3  ;;  %v12154_v6 = vshrl.u32 %v23366_v57, 16 }
 0x90b   :  { %v12142_v24 = vor.u32 %v12141_v19, %v12138_v12  ;;  %v12156_v36 = vrot.slane %v12154_v6, 3  ;;  %v32371_v6 = vld [vmem:[#allocation45_spill] sm:$0xff] }
 0x90d   :  { %v12143_v42 = vsel %vm1888_vm5, %v12133_v33, %v12142_v24  ;;  %v12160_v19 = vor.u32 %v12159_v3, %v12156_v36  ;;  %v32370_v3 = vrot.slane %v32335_v5, 4  ;;  %v32372_v33 = vld [vmem:[#allocation48_spill] sm:$0xff]  ;;  %v32377_v36 = vld [vmem:[#allocation53_spill] sm:$0xff] }
 0x90f   :  { %21187 = vmatmul.mubr.msk.bf16.gmra.mrb[76].mxu1 %vm9029_vm7, %v12116_v39  ;;  %v31762_v39 = vshll.u32 %v29087_v17, 16 }
 0x910   :  { %21190 = vmatprep.mubr.msk.bf16.mxu1 %vm9029_vm7, %v12125_v20  ;;  %v12147_v20 = vrot.slane %v31761_v37, 3  ;;  %v12771_v37 = vld [vmem:[#allocation2 + $0x8] sm:$0xf0] }
 0x911   :  { %v12150_v15 = vrot.slane %v31762_v39, 4  ;;  %v12819_v39 = vrot.slane %v12771_v37, 4 }
 0x913   :  { %v12151_v12 = vor.u32 %v12150_v15, %v12147_v20  ;;  %v32374_v20 = vld [vmem:[#allocation52_spill] sm:$0xff] }
 0x915   :  { %v12152_v57 = vsel %vm1888_vm5, %v12142_v24, %v12151_v12  ;;  %v12161_v35 = vsel %vm1888_vm5, %v12151_v12, %v12160_v19  ;;  %v32373_v24 = vld [vmem:[#allocation47_spill] sm:$0xff]  ;;  %vm23439_vm5 = vmmov 0  }
 0x917   :  { %21191 = vmatmul.mubr.msk.bf16.gmra.mrb[80].mxu1 %vm9029_vm7, %v12134_v10  ;;  %v12820_v10 = vrot.slane %v28689_v51, 4 }
 0x918   :  { %21194 = vmatprep.mubr.msk.bf16.mxu1 %vm9029_vm7, %v12143_v42  ;;  %v32376_v42 = vld [vmem:[#allocation54_spill] sm:$0xff] }
 0x919   :  { %v12821_v8 = vsel %vm9121_vm12, %v12819_v39, %v12820_v10  ;;  %v12823_v15 = vsel %vm9121_vm12, %v12820_v10, %v32370_v3  ;;  %v32375_v39 = vld [vmem:[#allocation51_spill] sm:$0xff] }
 0x91a   :  { %v32378_v3 = vld [vmem:[#allocation55_spill] sm:$0xff] }
 0x91f   :  { %21195 = vmatmul.mubr.msk.bf16.gmra.mrb[84].mxu1 %vm9029_vm7, %v12152_v57 }
 0x920   :  { %21198 = vmatprep.mubr.msk.bf16.mxu1 %vm9029_vm7, %v12161_v35 }
 0x927   :  { %21199 = vmatmul.mubr.msk.bf16.gmra.mrb[100].mxu1 %vm9029_vm7, %v12160_v19 }
 0x928   :  { %21204 = vmatprep.mubr.msk.bf16.mxu1 %vm9029_vm7, %v12821_v8 }
 0x92f   :  { %21205 = vmatmul.mubr.msk.bf16.vlgmr.msra.gmra.mrb[4].mxu1 %vm9029_vm7, %v12823_v15  ;;  %v32379_v15 = vld [vmem:[#allocation7_spill] sm:$0xff] }
 0x930   :  { %21208 = vmatprep.mubr.msk.bf16.mxu1 %vm9029_vm7, %v32371_v6  ;;  %21293 = vmatpush3.bf16.msra.mxu1 %v23310_v47  ;;  %v32380_v6 = vld [vmem:[#allocation56_spill] sm:$0xff] }
 0x937   :  { %21209 = vmatmul.mubr.msk.bf16.gmra.mrb[8].mxu1 %vm9029_vm7, %v32372_v33  ;;  %v32382_v33 = vld [vmem:[#allocation58_spill] sm:$0xff] }
 0x938   :  { %21212 = vmatprep.mubr.msk.bf16.mxu1 %vm9029_vm7, %v32373_v24  ;;  %v32385_v24 = vld [vmem:[#allocation61_spill] sm:$0xff] }
 0x93f   :  { %21213 = vmatmul.mubr.msk.bf16.gmra.mrb[12].mxu1 %vm9029_vm7, %v32374_v20  ;;  %v32386_v20 = vld [vmem:[#allocation62_spill] sm:$0xff] }
 0x940   :  { %21216 = vmatprep.mubr.msk.bf16.mxu1 %vm9029_vm7, %v32375_v39  ;;  %v32387_v39 = vld [vmem:[#allocation63_spill] sm:$0xff] }
 0x947   :  { %21217 = vmatmul.mubr.msk.bf16.gmra.mrb[16].mxu1 %vm9029_vm7, %v32376_v42  ;;  %v32388_v42 = vld [vmem:[#allocation64_spill] sm:$0xff] }
 0x948   :  { %21220 = vmatprep.mubr.msk.bf16.mxu1 %vm9029_vm7, %v32377_v36  ;;  %v32389_v36 = vld [vmem:[#allocation65_spill] sm:$0xff] }
 0x94a   :  { %v21110_v12 = vpop.f32.mrb[96].mxu1 }
 0x94b   :  { %v29126_v47 = vadd.f32 %v21110_v12, %v28784_v16  ;;  %v11619_v19 = vpop.f32.mrb[97].mxu1  ;;  %v32381_v16 = vld [vmem:[#allocation57_spill] sm:$0xff]  ;;  %v32390_v12 = vld [vmem:[#allocation66_spill] sm:$0xff] }
 0x94c   :  { %v29129_v57 = vadd.f32 %v11619_v19, %v28789_v30  ;;  %v21111_v35 = vpop.f32.mrb[98].mxu1  ;;  %v32383_v30 = vld [vmem:[#allocation59_spill] sm:$0xff] }
 0x94d   :  { %v11622_v10 = vpop.f32.mrb[99].mxu1 }
 0x94e   :  { %v29132_v8 = vadd.f32 %v11622_v10, %v28792_v40  ;;  %v32384_v40 = vld [vmem:[#allocation60_spill] sm:$0xff] }
 0x94f   :  { %21221 = vmatmul.mubr.msk.bf16.gmra.mrb[20].mxu1 %vm9029_vm7, %v32378_v3 }
 0x950   :  { %21224 = vmatprep.mubr.msk.bf16.mxu1 %vm9029_vm7, %v32379_v15  ;;  %v32400_v15 = vshrl.u32 %v32338_v11, 16 }
 0x957   :  { %21225 = vmatmul.mubr.msk.bf16.gmra.mrb[24].mxu1 %vm9029_vm7, %v32380_v6  ;;  %v32401_v6 = vshll.u32 %v32338_v11, 16  ;;  %v32404_v11 = vshrl.u32 %v32340_v21, 16 }
 0x958   :  { %21228 = vmatprep.mubr.msk.bf16.mxu1 %vm9029_vm7, %v32381_v16 }
 0x959   :  { %v13545_v16 = vrot.slane %v32401_v6, 5  ;;  %v32415_v6 = vshll.u32 %v32345_v46, 16 }
 0x95f   :  { %21229 = vmatmul.mubr.msk.bf16.gmra.mrb[28].mxu1 %vm9029_vm7, %v32382_v33 }
 0x960   :  { %21232 = vmatprep.mubr.msk.bf16.mxu1 %vm9029_vm7, %v32383_v30 }
 0x967   :  { %21233 = vmatmul.mubr.msk.bf16.gmra.mrb[32].mxu1 %vm9029_vm7, %v32384_v40 }
 0x968   :  { %21236 = vmatprep.mubr.msk.bf16.mxu1 %vm9029_vm7, %v32385_v24 }
 0x96f   :  { %21237 = vmatmul.mubr.msk.bf16.gmra.mrb[36].mxu1 %vm9029_vm7, %v32386_v20  ;;  %v32403_v20 = vshll.u32 %v32339_v9, 16 }
 0x970   :  { %21240 = vmatprep.mubr.msk.bf16.mxu1 %vm9029_vm7, %v32387_v39 }
 0x971   :  { %v13549_v39 = vrot.slane %v32403_v20, 5  ;;  %v32418_v20 = vshrl.u32 %v32347_v23, 16 }
 0x977   :  { %21241 = vmatmul.mubr.msk.bf16.gmra.mrb[40].mxu1 %vm9029_vm7, %v32388_v42 }
 0x978   :  { %21244 = vmatprep.mubr.msk.bf16.mxu1 %vm9029_vm7, %v28224_v59  ;;  %v23311_v59 = vld [vmem:[%s31297_s5 + $0x30] sm:$0xff]  }
 0x979   :  { %21382 = vmatprep.subr.bf16.mxu1 %v23311_v59 }
 0x97f   :  { %21245 = vmatmul.mubr.msk.bf16.gmra.mrb[44].mxu1 %vm9029_vm7, %v28227_v49  ;;  %v13521_v49 = vshrl.u32 %v12771_v37, 16 }
 0x980   :  { %21248 = vmatprep.mubr.msk.bf16.mxu1 %vm9029_vm7, %v28230_v0  ;;  %v13524_v0 = vshll.u32 %v12771_v37, 16 }
 0x987   :  { %21249 = vmatmul.mubr.msk.bf16.gmra.mrb[48].mxu1 %vm9029_vm7, %v28233_v18  ;;  %v13523_v18 = vrot.slane %v13521_v49, 4 }
 0x988   :  { %21252 = vmatprep.mubr.msk.bf16.mxu1 %vm9029_vm7, %v28236_v7  ;;  %v13526_v7 = vrot.slane %v13524_v0, 5 }
 0x98f   :  { %21253 = vmatmul.mubr.msk.bf16.gmra.mrb[52].mxu1 %vm9029_vm7, %v32389_v36  ;;  %v13552_v36 = vrot.slane %v32404_v11, 4 }
 0x990   :  { %21256 = vmatprep.mubr.msk.bf16.mxu1 %vm9029_vm7, %v32390_v12  ;;  %v32405_v12 = vshll.u32 %v32340_v21, 16 }
 0x997   :  { %21257 = vmatmul.mubr.msk.bf16.gmra.mrb[56].mxu1 %vm9029_vm7, %v28247_v13 }
 0x998   :  { %21260 = vmatprep.mubr.msk.bf16.mxu1 %vm9029_vm7, %v28252_v22  ;;  %v32392_v22 = vshll.u32 %v28689_v51, 16 }
 0x99f   :  { %21261 = vmatmul.mubr.msk.bf16.gmra.mrb[60].mxu1 %vm9029_vm7, %v28255_v38  ;;  %v13529_v38 = vrot.slane %v32392_v22, 5 }
 0x9a0   :  { %21264 = vmatprep.mubr.msk.bf16.mxu1 %vm9029_vm7, %v28258_v14  ;;  %v32391_v14 = vshrl.u32 %v28689_v51, 16 }
 0x9a2   :  { %v13528_v13 = vrot.slane %v32391_v14, 4  ;;  %v32407_v14 = vshll.u32 %v32341_v56, 16 }
 0x9a7   :  { %21265 = vmatmul.mubr.msk.bf16.gmra.mrb[64].mxu1 %vm9029_vm7, %v28261_v43  ;;  %v13527_v43 = vor.u32 %v13526_v7, %v13523_v18  ;;  %v32406_v7 = vshrl.u32 %v32341_v56, 16 }
 0x9a8   :  { %21268 = vmatprep.mubr.msk.bf16.mxu1 %vm9029_vm7, %v28264_v54  ;;  %v13530_v54 = vor.u32 %v13529_v38, %v13528_v13  ;;  %v13557_v13 = vrot.slane %v32407_v14, 5  ;;  %v32408_v38 = vshrl.u32 %v32342_v31, 16 }
 0x9aa   :  { %v13560_v21 = vrot.slane %v32408_v38, 4 }
 0x9af   :  { %21269 = vmatmul.mubr.msk.bf16.gmra.mrb[68].mxu1 %vm9029_vm7, %v28269_v29  ;;  %v32393_v29 = vshrl.u32 %v32335_v5, 16 }
 0x9b0   :  { %21272 = vmatprep.mubr.msk.bf16.mxu1 %vm9029_vm7, %v28272_v32 }
 0x9b1   :  { %v13532_v32 = vrot.slane %v32393_v29, 4 }
 0x9b7   :  { %21273 = vmatmul.mubr.msk.bf16.gmra.mrb[72].mxu1 %vm9029_vm7, %v28275_v53  ;;  %v32394_v53 = vshll.u32 %v32335_v5, 16  ;;  %v32398_v5 = vshrl.u32 %v32337_v25, 16 }
 0x9b8   :  { %21276 = vmatprep.mubr.msk.bf16.mxu1 %vm9029_vm7, %v28278_v41 }
 0x9b9   :  { %v13533_v41 = vrot.slane %v32394_v53, 5  ;;  %v13540_v35 = vrot.slane %v32398_v5, 4 }
 0x9bb   :  { %v13534_v51 = vor.u32 %v13533_v41, %v13532_v32  ;;  %v32410_v41 = vshrl.u32 %v32343_v58, 16 }
 0x9bd   :  { %v13535_v19 = vsel %vm13519_vm0, %v13530_v54, %v13534_v51  ;;  %v13564_v56 = vrot.slane %v32410_v41, 4 }
 0x9bf   :  { %21277 = vmatmul.mubr.msk.bf16.gmra.mrb[76].mxu1 %vm9029_vm7, %v28292_v61  ;;  %v32395_v61 = vrot.slane %v28310_v2, 4  ;;  %v32399_v2 = vshll.u32 %v32337_v25, 16  ;;  %v32402_v25 = vshrl.u32 %v32339_v9, 16  ;;  %v13556_v9 = vrot.slane %v32406_v7, 4 }
 0x9c0   :  { %21280 = vmatprep.mubr.msk.bf16.mxu1 %vm9029_vm7, %v28295_v45  ;;  %v13531_v45 = vsel %vm13519_vm0, %v13527_v43, %v13530_v54  ;;  %v32409_v43 = vshll.u32 %v32342_v31, 16  ;;  %v32423_v7 = vshll.u32 %v28824_v52, 16 }
 0x9c1   :  { %v13541_v10 = vrot.slane %v32399_v2, 5  ;;  %v13548_v24 = vrot.slane %v32402_v25, 4  ;;  %v13558_v29 = vor.u32 %v13557_v13, %v13556_v9  ;;  %v32424_v13 = vshrl.u32 %v28828_v62, 16 }
 0x9c2   :  { %v13561_v54 = vrot.slane %v32409_v43, 5  ;;  %v13589_v9 = vrot.slane %v32423_v7, 5 }
 0x9c3   :  { %v13542_v33 = vor.u32 %v13541_v10, %v13540_v35  ;;  %v13550_v49 = vor.u32 %v13549_v39, %v13548_v24  ;;  %v32419_v39 = vshll.u32 %v28807_v55, 16 }
 0x9c4   :  { %v13562_v32 = vor.u32 %v13561_v54, %v13560_v21 }
 0x9c7   :  { %21281 = vmatmul.mubr.msk.bf16.gmra.mrb[80].mxu1 %vm9029_vm7, %v28303_v48  ;;  %v32396_v48 = vshrl.u32 %v32336_v27, 16 }
 0x9c8   :  { %21284 = vmatprep.mubr.msk.bf16.mxu1 %vm9029_vm7, %v28306_v34 }
 0x9c9   :  { %v13536_v34 = vrot.slane %v32396_v48, 4  ;;  %v13563_v48 = vsel %vm13519_vm0, %v13558_v29, %v13562_v32 }
 0x9cf   :  { %21285 = vmatmul.mubr.msk.bf16.gmra.mrb[84].mxu1 %vm9029_vm7, %v28316_v26  ;;  %v32397_v26 = vshll.u32 %v32336_v27, 16  ;;  %v13544_v27 = vrot.slane %v32400_v15, 4  ;;  %v32414_v15 = vshrl.u32 %v32345_v46, 16  ;;  %v13580_v46 = vrot.slane %v32418_v20, 4 }
 0x9d0   :  { %21288 = vmatprep.mubr.msk.bf16.mxu1 %vm9029_vm7, %v28321_v1 }
 0x9d1   :  { %v13537_v1 = vrot.slane %v32397_v26, 5  ;;  %v13546_v30 = vor.u32 %v13545_v16, %v13544_v27  ;;  %v32413_v26 = vshll.u32 %v32344_v63, 16  ;;  %v13572_v27 = vrot.slane %v32414_v15, 4 }
 0x9d2   :  { %v13573_v16 = vrot.slane %v32415_v6, 5  ;;  %v32435_v6 = vld [vmem:[#allocation9_spill] sm:$0xff] }
 0x9d3   :  { %v13538_v37 = vor.u32 %v13537_v1, %v13536_v34  ;;  %v13547_v42 = vsel %vm13519_vm0, %v13542_v33, %v13546_v30  ;;  %v13551_v18 = vsel %vm13519_vm0, %v13546_v30, %v13550_v49  ;;  %v32412_v34 = vshrl.u32 %v32344_v63, 16 }
 0x9d4   :  { %v13569_v1 = vrot.slane %v32413_v26, 5  ;;  %v32417_v30 = vshll.u32 %v32346_v60, 16  ;;  %v32430_v26 = vshrl.u32 %v28864_v4, 16 }
 0x9d5   :  { %v13539_v3 = vsel %vm13519_vm0, %v13534_v51, %v13538_v37  ;;  %v13543_v40 = vsel %vm13519_vm0, %v13538_v37, %v13542_v33  ;;  %v13568_v31 = vrot.slane %v32412_v34, 4 }
 0x9d7   :  { %21289 = vmatmul.mubr.msk.bf16.gmra.mrb[104].mxu1 %vm9029_vm7, %v32395_v61  ;;  %v32411_v61 = vshll.u32 %v32343_v58, 16  ;;  %v13570_v58 = vor.u32 %v13569_v1, %v13568_v31  ;;  %v32431_v1 = vshll.u32 %v28864_v4, 16 }
 0x9d8   :  { %21294 = vmatprep.mubr.msk.bf16.mxu1 %vm9029_vm7, %v13531_v45 }
 0x9d9   :  { %v13565_v45 = vrot.slane %v32411_v61, 5  ;;  %v32429_v61 = vshll.u32 %v28848_v28, 16 }
 0x9db   :  { %v13566_v37 = vor.u32 %v13565_v45, %v13564_v56  ;;  %v32428_v56 = vshrl.u32 %v28848_v28, 16  ;;  %v13601_v45 = vrot.slane %v32429_v61, 5  ;;  %v32453_v61 = vld [vmem:[#allocation17_spill] sm:$0xff] }
 0x9dd   :  { %v13567_v63 = vsel %vm13519_vm0, %v13562_v32, %v13566_v37  ;;  %v32427_v32 = vshll.u32 %v28844_v44, 16 }
 0x9df   :  { %21295 = vmatmul.mubr.msk.bf16.vlgmr.msra.gmra.mrb[4].mxu1 %vm9029_vm7, %v13535_v19 }
 0x9e0   :  { %21298 = vmatprep.mubr.msk.bf16.mxu1 %vm9029_vm7, %v13539_v3  ;;  %21383 = vmatpush3.bf16.msra.mxu1 %v23311_v59  ;;  %v13553_v59 = vrot.slane %v32405_v12, 5  ;;  %v32421_v12 = vshll.u32 %v32348_v50, 16 }
 0x9e2   :  { %v13554_v0 = vor.u32 %v13553_v59, %v13552_v36  ;;  %v32420_v36 = vshrl.u32 %v32348_v50, 16  ;;  %v13585_v59 = vrot.slane %v32421_v12, 5  ;;  %v13592_v50 = vrot.slane %v32424_v13, 4  ;;  %v32447_v13 = vld [vmem:[#allocation15_spill] sm:$0xff] }
 0x9e4   :  { %v13555_v22 = vsel %vm13519_vm0, %v13550_v49, %v13554_v0  ;;  %v13559_v53 = vsel %vm13519_vm0, %v13554_v0, %v13558_v29  ;;  %v32426_v29 = vshrl.u32 %v28844_v44, 16  ;;  %v13604_v44 = vrot.slane %v32430_v26, 4 }
 0x9e7   :  { %21299 = vmatmul.mubr.msk.bf16.gmra.mrb[8].mxu1 %vm9029_vm7, %v13543_v40  ;;  %v13577_v40 = vrot.slane %v32417_v30, 5  ;;  %v32438_v30 = vld [vmem:[#allocation12_spill] sm:$0xff] }
 0x9e8   :  { %21302 = vmatprep.mubr.msk.bf16.mxu1 %vm9029_vm7, %v13547_v42  ;;  %v13581_v42 = vrot.slane %v32419_v39, 5 }
 0x9ea   :  { %v13582_v49 = vor.u32 %v13581_v42, %v13580_v46  ;;  %v32441_v42 = vld [vmem:[#allocation13_spill] sm:$0xff] }
 0x9ef   :  { %21303 = vmatmul.mubr.msk.bf16.gmra.mrb[12].mxu1 %vm9029_vm7, %v13551_v18  ;;  %v32422_v18 = vshrl.u32 %v28824_v52, 16  ;;  %v13596_v52 = vrot.slane %v32426_v29, 4 }
 0x9f0   :  { %21306 = vmatprep.mubr.msk.bf16.mxu1 %vm9029_vm7, %v13555_v22  ;;  %v32425_v22 = vshll.u32 %v28828_v62, 16  ;;  %v13600_v62 = vrot.slane %v32428_v56, 4 }
 0x9f1   :  { %v13588_v55 = vrot.slane %v32422_v18, 4 }
 0x9f2   :  { %v13593_v38 = vrot.slane %v32425_v22, 5  ;;  %v13602_v34 = vor.u32 %v13601_v45, %v13600_v62  ;;  %v32454_v45 = vshrl.u32 %v32453_v61, 16 }
 0x9f3   :  { %v13590_v21 = vor.u32 %v13589_v9, %v13588_v55 }
 0x9f4   :  { %v13594_v43 = vor.u32 %v13593_v38, %v13592_v50  ;;  %v32448_v50 = vshrl.u32 %v32447_v13, 16  ;;  %v32449_v38 = vshll.u32 %v32447_v13, 16 }
 0x9f6   :  { %v13595_v41 = vsel %vm13519_vm0, %v13590_v21, %v13594_v43  ;;  %v13628_v22 = vrot.slane %v32448_v50, 4 }
 0x9f7   :  { %21307 = vmatmul.mubr.msk.bf16.gmra.mrb[16].mxu1 %vm9029_vm7, %v13559_v53  ;;  %v13597_v53 = vrot.slane %v32427_v32, 5 }
 0x9f8   :  { %21310 = vmatprep.mubr.msk.bf16.mxu1 %vm9029_vm7, %v13563_v48 }
 0x9f9   :  { %v13598_v48 = vor.u32 %v13597_v53, %v13596_v52 }
 0x9fa   :  { %v21200_v51 = vpop.f32.mrb[100].mxu1 }
 0x9fb   :  { %v29271_v19 = vadd.f32 %v21200_v51, %v29126_v47  ;;  %v12670_v5 = vpop.f32.mrb[101].mxu1  ;;  %v13571_v47 = vsel %vm13519_vm0, %v13566_v37, %v13570_v58  ;;  %v13599_v31 = vsel %vm13519_vm0, %v13594_v43, %v13598_v48  ;;  %v13605_v51 = vrot.slane %v32431_v1, 5 }
 0x9fc   :  { %v29274_v35 = vadd.f32 %v12670_v5, %v29129_v57  ;;  %v21201_v2 = vpop.f32.mrb[102].mxu1  ;;  %v32416_v57 = vshrl.u32 %v32346_v60, 16  ;;  %v13584_v60 = vrot.slane %v32420_v36, 4  ;;  %v13603_v37 = vsel %vm13519_vm0, %v13598_v48, %v13602_v34  ;;  %v32432_v5 = vld [vmem:[#allocation10_spill] sm:$0xff] }
 0x9fd   :  { %v12673_v10 = vpop.f32.mrb[103].mxu1  ;;  %v32434_v2 = vshll.u32 %v32432_v5, 16  ;;  %v13636_v48 = vrot.slane %v32454_v45, 4 }
 0x9fe   :  { %v29277_v3 = vadd.f32 %v12673_v10, %v29132_v8  ;;  %v13576_v33 = vrot.slane %v32416_v57, 4  ;;  %v13574_v8 = vor.u32 %v13573_v16, %v13572_v27  ;;  %v13586_v0 = vor.u32 %v13585_v59, %v13584_v60 }
 0x9ff   :  { %21311 = vmatmul.mubr.msk.bf16.gmra.mrb[20].mxu1 %vm9029_vm7, %v13567_v63  ;;  %v13609_v10 = vrot.slane %v32434_v2, 5  ;;  %v13606_v63 = vor.u32 %v13605_v51, %v13604_v44  ;;  %v32436_v16 = vshrl.u32 %v32435_v6, 16  ;;  %v32443_v60 = vshll.u32 %v32441_v42, 16  ;;  %v32456_v44 = vld [vmem:[#allocation20_spill] sm:$0xff] }
 0xa00   :  { %21314 = vmatprep.mubr.msk.bf16.mxu1 %vm9029_vm7, %v13571_v47  ;;  %v13578_v25 = vor.u32 %v13577_v40, %v13576_v33  ;;  %v13575_v24 = vsel %vm13519_vm0, %v13570_v58, %v13574_v8  ;;  %v13587_v14 = vsel %vm13519_vm0, %v13582_v49, %v13586_v0  ;;  %v13591_v54 = vsel %vm13519_vm0, %v13586_v0, %v13590_v21 }
 0xa01   :  { %v32433_v58 = vshrl.u32 %v32432_v5, 16  ;;  %v13607_v27 = vsel %vm13519_vm0, %v13602_v34, %v13606_v63  ;;  %v13612_v4 = vrot.slane %v32436_v16, 4  ;;  %v32437_v47 = vshll.u32 %v32435_v6, 16 }
 0xa02   :  { %v13579_v11 = vsel %vm13519_vm0, %v13574_v8, %v13578_v25  ;;  %v13583_v23 = vsel %vm13519_vm0, %v13578_v25, %v13582_v49  ;;  %v32439_v40 = vshrl.u32 %v32438_v30, 16  ;;  %v32440_v25 = vshll.u32 %v32438_v30, 16  ;;  %v32444_v49 = vld [vmem:[#allocation16_spill] sm:$0xff] }
 0xa03   :  { %v13608_v28 = vrot.slane %v32433_v58, 4  ;;  %v13613_v57 = vrot.slane %v32437_v47, 5  ;;  %v13621_v12 = vrot.slane %v32443_v60, 5  ;;  %v32445_v0 = vshrl.u32 %v32444_v49, 16 }
 0xa04   :  { %v13616_v8 = vrot.slane %v32439_v40, 4  ;;  %v32446_v18 = vshll.u32 %v32444_v49, 16  ;;  %v13629_v21 = vrot.slane %v32449_v38, 5  ;;  %v32455_v34 = vshll.u32 %v32453_v61, 16 }
 0xa05   :  { %v13610_v15 = vor.u32 %v13609_v10, %v13608_v28  ;;  %v13614_v20 = vor.u32 %v13613_v57, %v13612_v4  ;;  %v32457_v1 = vshrl.u32 %v32456_v44, 16  ;;  %v32459_v10 = vld [vmem:[#allocation19_spill] sm:$0xff]  ;;  %v32462_v4 = vld [vmem:[#allocation22_spill] sm:$0xff] }
 0xa06   :  { %v13625_v55 = vrot.slane %v32446_v18, 5  ;;  %v32463_v47 = vshrl.u32 %v32462_v4, 16 }
 0xa07   :  { %21315 = vmatmul.mubr.msk.bf16.gmra.mrb[24].mxu1 %vm9029_vm7, %v13575_v24  ;;  %v13611_v33 = vsel %vm13519_vm0, %v13606_v63, %v13610_v15  ;;  %v13617_v24 = vrot.slane %v32440_v25, 5  ;;  %v13615_v39 = vsel %vm13519_vm0, %v13610_v15, %v13614_v20  ;;  %v13640_v51 = vrot.slane %v32457_v1, 4 }
 0xa08   :  { %21318 = vmatprep.mubr.msk.bf16.mxu1 %vm9029_vm7, %v13579_v11  ;;  %v32442_v11 = vshrl.u32 %v32441_v42, 16  ;;  %v32460_v63 = vshrl.u32 %v32459_v10, 16  ;;  %v13648_v57 = vrot.slane %v32463_v47, 4 }
 0xa09   :  { %v13618_v46 = vor.u32 %v13617_v24, %v13616_v8  ;;  %v32465_v24 = vld [vmem:[#allocation21_spill] sm:$0xff] }
 0xa0a   :  { %v13620_v36 = vrot.slane %v32442_v11, 4  ;;  %v13644_v15 = vrot.slane %v32460_v63, 4 }
 0xa0b   :  { %v13619_v59 = vsel %vm13519_vm0, %v13614_v20, %v13618_v46  ;;  %v32466_v20 = vshrl.u32 %v32465_v24, 16 }
 0xa0c   :  { %v13622_v7 = vor.u32 %v13621_v12, %v13620_v36  ;;  %v32468_v36 = vld [vmem:[#allocation24_spill] sm:$0xff] }
 0xa0d   :  { %v32469_v60 = vshrl.u32 %v32468_v36, 16 }
 0xa0f   :  { %21319 = vmatmul.mubr.msk.bf16.gmra.mrb[28].mxu1 %vm9029_vm7, %v13583_v23  ;;  %v13624_v23 = vrot.slane %v32445_v0, 4  ;;  %v13656_v12 = vrot.slane %v32469_v60, 4  ;;  %v13515_v60 = vld [vmem:[#allocation2 + $0x160] sm:$0x7f] }
 0xa10   :  { %21322 = vmatprep.mubr.msk.bf16.mxu1 %vm9029_vm7, %v13587_v14  ;;  %v13623_v14 = vsel %vm13519_vm0, %v13618_v46, %v13622_v7  ;;  %v13652_v46 = vrot.slane %v32466_v20, 4 }
 0xa11   :  { %v13626_v9 = vor.u32 %v13625_v55, %v13624_v23  ;;  %v32471_v55 = vld [vmem:[#allocation23_spill] sm:$0xff] }
 0xa13   :  { %v13627_v43 = vsel %vm13519_vm0, %v13622_v7, %v13626_v9  ;;  %v32472_v7 = vshrl.u32 %v32471_v55, 16 }
 0xa17   :  { %21323 = vmatmul.mubr.msk.bf16.gmra.mrb[32].mxu1 %vm9029_vm7, %v13591_v54  ;;  %v32450_v54 = vld [vmem:[#allocation18_spill] sm:$0xff] }
 0xa18   :  { %21326 = vmatprep.mubr.msk.bf16.mxu1 %vm9029_vm7, %v13595_v41  ;;  %v32451_v29 = vshrl.u32 %v32450_v54, 16  ;;  %v32452_v32 = vshll.u32 %v32450_v54, 16  ;;  %v13630_v41 = vor.u32 %v13629_v21, %v13628_v22  ;;  %v32474_v22 = vld [vmem:[#allocation26_spill] sm:$0xff] }
 0xa19   :  { %v32475_v38 = vshrl.u32 %v32474_v22, 16 }
 0xa1a   :  { %v13632_v52 = vrot.slane %v32451_v29, 4  ;;  %v13633_v53 = vrot.slane %v32452_v32, 5  ;;  %v13631_v62 = vsel %vm13519_vm0, %v13626_v9, %v13630_v41  ;;  %v13660_v9 = vrot.slane %v32472_v7, 4 }
 0xa1b   :  { %v13664_v21 = vrot.slane %v32475_v38, 4  ;;  %v29470_v38 = vld [vmem:[#allocation2 + $0x18] sm:$0xff] }
 0xa1c   :  { %v13634_v56 = vor.u32 %v13633_v53, %v13632_v52  ;;  %v32477_v53 = vld [vmem:[#allocation28_spill] sm:$0xff] }
 0xa1e   :  { %v13635_v26 = vsel %vm13519_vm0, %v13630_v41, %v13634_v56  ;;  %v32478_v41 = vshrl.u32 %v32477_v53, 16 }
 0xa1f   :  { %21327 = vmatmul.mubr.msk.bf16.gmra.mrb[36].mxu1 %vm9029_vm7, %v13599_v31  ;;  %v13637_v31 = vrot.slane %v32455_v34, 5 }
 0xa20   :  { %21330 = vmatprep.mubr.msk.bf16.mxu1 %vm9029_vm7, %v13603_v37  ;;  %v32458_v37 = vshll.u32 %v32456_v44, 16 }
 0xa21   :  { %v13638_v58 = vor.u32 %v13637_v31, %v13636_v48  ;;  %v32480_v48 = vld [vmem:[#allocation25_spill] sm:$0xff] }
 0xa22   :  { %v13641_v5 = vrot.slane %v32458_v37, 5  ;;  %v32481_v34 = vshrl.u32 %v32480_v48, 16 }
 0xa23   :  { %v13639_v2 = vsel %vm13519_vm0, %v13634_v56, %v13638_v58  ;;  %v13668_v56 = vrot.slane %v32478_v41, 4 }
 0xa24   :  { %v13642_v28 = vor.u32 %v13641_v5, %v13640_v51  ;;  %v13672_v31 = vrot.slane %v32481_v34, 4  ;;  %v32483_v5 = vld [vmem:[#allocation33_spill] sm:$0xff] }
 0xa26   :  { %v13643_v16 = vsel %vm13519_vm0, %v13638_v58, %v13642_v28  ;;  %v32484_v58 = vshrl.u32 %v32483_v5, 16 }
 0xa27   :  { %21331 = vmatmul.mubr.msk.bf16.gmra.mrb[40].mxu1 %vm9029_vm7, %v13607_v27  ;;  %v32461_v27 = vshll.u32 %v32459_v10, 16 }
 0xa28   :  { %21334 = vmatprep.mubr.msk.bf16.mxu1 %vm9029_vm7, %v13611_v33  ;;  %v32464_v33 = vshll.u32 %v32462_v4, 16 }
 0xa29   :  { %v13645_v6 = vrot.slane %v32461_v27, 5 }
 0xa2a   :  { %v13649_v30 = vrot.slane %v32464_v33, 5 }
 0xa2b   :  { %v13646_v40 = vor.u32 %v13645_v6, %v13644_v15  ;;  %v32486_v15 = vld [vmem:[#allocation36_spill] sm:$0xff] }
 0xa2c   :  { %v13650_v8 = vor.u32 %v13649_v30, %v13648_v57  ;;  %v32487_v27 = vshrl.u32 %v32486_v15, 16  ;;  %v32489_v30 = vld [vmem:[#allocation35_spill] sm:$0xff] }
 0xa2d   :  { %v13647_v25 = vsel %vm13519_vm0, %v13642_v28, %v13646_v40  ;;  %v13676_v28 = vrot.slane %v32484_v58, 4 }
 0xa2e   :  { %v13651_v11 = vsel %vm13519_vm0, %v13646_v40, %v13650_v8  ;;  %v13680_v6 = vrot.slane %v32487_v27, 4  ;;  %v32490_v40 = vshrl.u32 %v32489_v30, 16 }
 0xa2f   :  { %21335 = vmatmul.mubr.msk.bf16.gmra.mrb[44].mxu1 %vm9029_vm7, %v13615_v39  ;;  %v32467_v39 = vshll.u32 %v32465_v24, 16 }
 0xa30   :  { %21338 = vmatprep.mubr.msk.bf16.mxu1 %vm9029_vm7, %v13619_v59  ;;  %v32470_v59 = vshll.u32 %v32468_v36, 16 }
 0xa31   :  { %v13653_v42 = vrot.slane %v32467_v39, 5 }
 0xa32   :  { %v13657_v49 = vrot.slane %v32470_v59, 5 }
 0xa33   :  { %v13654_v0 = vor.u32 %v13653_v42, %v13652_v46  ;;  %v32492_v46 = vld [vmem:[#allocation38_spill] sm:$0xff] }
 0xa34   :  { %v13658_v23 = vor.u32 %v13657_v49, %v13656_v12  ;;  %v32493_v39 = vshrl.u32 %v32492_v46, 16  ;;  %v23312_v12 = vld [vmem:[%s31297_s5 + $0x38] sm:$0xff]  }
 0xa35   :  { %v13655_v18 = vsel %vm13519_vm0, %v13650_v8, %v13654_v0  ;;  %v13684_v8 = vrot.slane %v32490_v40, 4  ;;  %21472 = vmatprep.subr.bf16.mxu1 %v23312_v12 }
 0xa36   :  { %v13659_v50 = vsel %vm13519_vm0, %v13654_v0, %v13658_v23  ;;  %v13688_v42 = vrot.slane %v32493_v39, 4  ;;  %v13697_v0 = vshrl.u32 %v13515_v60, 16 }
 0xa37   :  { %21339 = vmatmul.mubr.msk.bf16.gmra.mrb[48].mxu1 %vm9029_vm7, %v13623_v14  ;;  %v32473_v14 = vshll.u32 %v32471_v55, 16  ;;  %v32495_v55 = vshrl.u32 %v29087_v17, 16 }
 0xa38   :  { %21342 = vmatprep.mubr.msk.bf16.mxu1 %vm9029_vm7, %v13627_v43  ;;  %v32476_v43 = vshll.u32 %v32474_v22, 16 }
 0xa39   :  { %v13661_v13 = vrot.slane %v32473_v14, 5  ;;  %v13692_v7 = vrot.slane %v32495_v55, 4 }
 0xa3a   :  { %v13665_v54 = vrot.slane %v32476_v43, 5  ;;  %v14314_v43 = vld [vmem:[#allocation2 + $0x10] sm:$0xf0] }
 0xa3b   :  { %v13662_v29 = vor.u32 %v13661_v13, %v13660_v9  ;;  %v32496_v9 = vshll.u32 %v29087_v17, 16  ;;  %v14365_v17 = vshll.u32 %v14314_v43, 16 }
 0xa3c   :  { %v13666_v52 = vor.u32 %v13665_v54, %v13664_v21 }
 0xa3d   :  { %v13663_v32 = vsel %vm13519_vm0, %v13658_v23, %v13662_v29  ;;  %v13700_v23 = vshll.u32 %v13515_v60, 16  ;;  %v13693_v14 = vrot.slane %v32496_v9, 5  ;;  %v29541_v9 = vld [vmem:[#allocation2 + $0x50] sm:$0xff] }
 0xa3e   :  { %v13667_v45 = vsel %vm13519_vm0, %v13662_v29, %v13666_v52  ;;  %v14370_v29 = vshrl.u32 %v29470_v38, 16 }
 0xa3f   :  { %21343 = vmatmul.mubr.msk.bf16.gmra.mrb[52].mxu1 %vm9029_vm7, %v13631_v62  ;;  %v32479_v62 = vshll.u32 %v32477_v53, 16  ;;  %v13702_v22 = vrot.slane %v13700_v23, 5  ;;  %v13694_v21 = vor.u32 %v13693_v14, %v13692_v7  ;;  %v31808_v14 = vshrl.u32 %v29541_v9, 16 }
 0xa40   :  { %21346 = vmatprep.mubr.msk.bf16.mxu1 %vm9029_vm7, %v13635_v26  ;;  %v32482_v26 = vshll.u32 %v32480_v48, 16  ;;  %v14367_v48 = vrot.slane %v14365_v17, 5 }
 0xa41   :  { %v13669_v61 = vrot.slane %v32479_v62, 5 }
 0xa42   :  { %v13673_v44 = vrot.slane %v32482_v26, 5 }
 0xa43   :  { %v13670_v1 = vor.u32 %v13669_v61, %v13668_v56  ;;  %v14372_v56 = vrot.slane %v14370_v29, 4  ;;  %v29481_v61 = vld [vmem:[#allocation2 + $0x20] sm:$0xff] }
 0xa44   :  { %v13674_v51 = vor.u32 %v13673_v44, %v13672_v31  ;;  %v31842_v34 = vshrl.u32 %v29481_v61, 16  ;;  %v31841_v31 = vshll.u32 %v29481_v61, 16  ;;  %v29486_v44 = vld [vmem:[#allocation2 + $0x28] sm:$0xff] }
 0xa45   :  { %v13671_v37 = vsel %vm13519_vm0, %v13666_v52, %v13670_v1  ;;  %v14373_v52 = vshll.u32 %v29470_v38, 16 }
 0xa46   :  { %v13675_v63 = vsel %vm13519_vm0, %v13670_v1, %v13674_v51  ;;  %v31839_v1 = vshrl.u32 %v29486_v44, 16  ;;  %v14384_v58 = vrot.slane %v31841_v31, 5 }
 0xa47   :  { %21347 = vmatmul.mubr.msk.bf16.gmra.mrb[56].mxu1 %vm9029_vm7, %v13639_v2  ;;  %v32485_v2 = vshll.u32 %v32483_v5, 16  ;;  %v14375_v62 = vrot.slane %v14373_v52, 5  ;;  %v14381_v5 = vrot.slane %v31842_v34, 4 }
 0xa48   :  { %21350 = vmatprep.mubr.msk.bf16.mxu1 %vm9029_vm7, %v13643_v16  ;;  %v32488_v16 = vshll.u32 %v32486_v15, 16  ;;  %v29501_v15 = vld [vmem:[#allocation2 + $0x30] sm:$0xff] }
 0xa49   :  { %v13677_v10 = vrot.slane %v32485_v2, 5  ;;  %v14376_v26 = vor.u32 %v14375_v62, %v14372_v56  ;;  %v14390_v2 = vrot.slane %v31839_v1, 4  ;;  %v31832_v27 = vshrl.u32 %v29501_v15, 16 }
 0xa4a   :  { %v13681_v4 = vrot.slane %v32488_v16, 5 }
 0xa4b   :  { %v13678_v47 = vor.u32 %v13677_v10, %v13676_v28 }
 0xa4c   :  { %v13682_v57 = vor.u32 %v13681_v4, %v13680_v6  ;;  %v31830_v6 = vshll.u32 %v29501_v15, 16  ;;  %v29505_v4 = vld [vmem:[#allocation2 + $0x38] sm:$0xff] }
 0xa4d   :  { %v13679_v33 = vsel %vm13519_vm0, %v13674_v51, %v13678_v47  ;;  %v31837_v51 = vshll.u32 %v29486_v44, 16 }
 0xa4e   :  { %v13683_v20 = vsel %vm13519_vm0, %v13678_v47, %v13682_v57  ;;  %v31826_v47 = vshrl.u32 %v29505_v4, 16  ;;  %v14402_v40 = vrot.slane %v31830_v6, 5 }
 0xa4f   :  { %21351 = vmatmul.mubr.msk.bf16.gmra.mrb[60].mxu1 %vm9029_vm7, %v13647_v25  ;;  %v32491_v25 = vshll.u32 %v32489_v30, 16  ;;  %v14393_v10 = vrot.slane %v31837_v51, 5  ;;  %v14399_v30 = vrot.slane %v31832_v27, 4  ;;  %v29874_v27 = vld [vmem:[#allocation2 + $0x158] sm:$0xff]  ;;  %v23407_v51 = vld [vmem:[#allocation2 + $0x168] sm:$0x7f] }
 0xa50   :  { %21354 = vmatprep.mubr.msk.bf16.mxu1 %vm9029_vm7, %v13651_v11  ;;  %v32494_v11 = vshll.u32 %v32492_v46, 16  ;;  %v29521_v46 = vld [vmem:[#allocation2 + $0x40] sm:$0xff]  ;;  %v14751_v1 = vshll.u32 %v23407_v51, 16 }
 0xa51   :  { %v13685_v24 = vrot.slane %v32491_v25, 5  ;;  %v14394_v16 = vor.u32 %v14393_v10, %v14390_v2  ;;  %v14408_v25 = vrot.slane %v31826_v47, 4  ;;  %v31820_v39 = vshrl.u32 %v29521_v46, 16  ;;  %v29854_v47 = vld [vmem:[#allocation2 + $0x148] sm:$0xff] }
 0xa52   :  { %v13689_v36 = vrot.slane %v32494_v11, 5  ;;  %v14753_v34 = vrot.slane %v14751_v1, 5 }
 0xa53   :  { %v13686_v59 = vor.u32 %v13685_v24, %v13684_v8 }
 0xa54   :  { %v13690_v49 = vor.u32 %v13689_v36, %v13688_v42  ;;  %v31818_v42 = vshll.u32 %v29521_v46, 16  ;;  %v29525_v36 = vld [vmem:[#allocation2 + $0x48] sm:$0xff] }
 0xa55   :  { %v31814_v60 = vshrl.u32 %v29525_v36, 16 }
 0xa56   :  { %v13691_v13 = vsel %vm13519_vm0, %v13686_v59, %v13690_v49  ;;  %v13695_v53 = vsel %vm13519_vm0, %v13690_v49, %v13694_v21 }
 0xa57   :  { %21355 = vmatmul.mubr.msk.bf16.gmra.mrb[64].mxu1 %vm9029_vm7, %v13655_v18  ;;  %v13687_v18 = vsel %vm13519_vm0, %v13682_v57, %v13686_v59  ;;  %v31824_v57 = vshll.u32 %v29505_v4, 16  ;;  %v31812_v59 = vshll.u32 %v29525_v36, 16 }
 0xa58   :  { %21358 = vmatprep.mubr.msk.bf16.mxu1 %vm9029_vm7, %v13659_v50  ;;  %v13699_v50 = vrot.slane %v13697_v0, 4  ;;  %v14417_v0 = vrot.slane %v31820_v39, 4  ;;  %v29834_v39 = vld [vmem:[#allocation2 + $0x138] sm:$0xff] }
 0xa59   :  { %v14411_v24 = vrot.slane %v31824_v57, 5  ;;  %v14429_v55 = vrot.slane %v31812_v59, 5 }
 0xa5a   :  { %v13703_v54 = vor.u32 %v13702_v22, %v13699_v50  ;;  %v29545_v22 = vld [vmem:[#allocation2 + $0x58] sm:$0xff] }
 0xa5b   :  { %v14412_v11 = vor.u32 %v14411_v24, %v14408_v25  ;;  %v29581_v25 = vld [vmem:[#allocation2 + $0x70] sm:$0xff] }
 0xa5c   :  { %v13704_v41 = vsel %vm13519_vm0, %v13694_v21, %v13703_v54  ;;  %v31802_v21 = vshrl.u32 %v29545_v22, 16  ;;  %v31784_v24 = vshrl.u32 %v29581_v25, 16 }
 0xa5f   :  { %21359 = vmatmul.mubr.msk.bf16.gmra.mrb[68].mxu1 %vm9029_vm7, %v13663_v32  ;;  %v14362_v32 = vshrl.u32 %v14314_v43, 16  ;;  %v31800_v43 = vshll.u32 %v29545_v22, 16 }
 0xa60   :  { %21362 = vmatprep.mubr.msk.bf16.mxu1 %vm9029_vm7, %v13667_v45 }
 0xa61   :  { %v14364_v45 = vrot.slane %v14362_v32, 4  ;;  %v14435_v32 = vrot.slane %v31808_v14, 4  ;;  %v14447_v56 = vrot.slane %v31800_v43, 5  ;;  %v29794_v14 = vld [vmem:[#allocation2 + $0x118] sm:$0xff] }
 0xa67   :  { %21363 = vmatmul.mubr.msk.bf16.gmra.mrb[72].mxu1 %vm9029_vm7, %v13671_v37  ;;  %v14368_v37 = vor.u32 %v14367_v48, %v14364_v45  ;;  %v29561_v45 = vld [vmem:[#allocation2 + $0x60] sm:$0xff] }
 0xa68   :  { %21366 = vmatprep.mubr.msk.bf16.mxu1 %vm9029_vm7, %v13675_v63  ;;  %v14385_v63 = vor.u32 %v14384_v58, %v14381_v5  ;;  %v31796_v48 = vshrl.u32 %v29561_v45, 16  ;;  %v29565_v5 = vld [vmem:[#allocation2 + $0x68] sm:$0xff] }
 0xa69   :  { %v14377_v28 = vsel %vm13519_vm0, %v14368_v37, %v14376_v26  ;;  %v31790_v58 = vshrl.u32 %v29565_v5, 16 }
 0xa6a   :  { %v14395_v8 = vsel %vm13519_vm0, %v14385_v63, %v14394_v16  ;;  %v14453_v10 = vrot.slane %v31796_v48, 4  ;;  %v29754_v48 = vld [vmem:[#allocation2 + $0xf8] sm:$0xff] }
 0xa6f   :  { %21367 = vmatmul.mubr.msk.bf16.gmra.mrb[76].mxu1 %vm9029_vm7, %v13679_v33  ;;  %v14386_v33 = vsel %vm13519_vm0, %v14376_v26, %v14385_v63  ;;  %v31794_v26 = vshll.u32 %v29561_v45, 16 }
 0xa70   :  { %21370 = vmatprep.mubr.msk.bf16.mxu1 %vm9029_vm7, %v13683_v20  ;;  %v14403_v20 = vor.u32 %v14402_v40, %v14399_v30 }
 0xa71   :  { %v14456_v63 = vrot.slane %v31794_v26, 5 }
 0xa72   :  { %v14404_v49 = vsel %vm13519_vm0, %v14394_v16, %v14403_v20  ;;  %v14413_v23 = vsel %vm13519_vm0, %v14403_v20, %v14412_v11  ;;  %v31782_v20 = vshll.u32 %v29581_v25, 16 }
 0xa77   :  { %21371 = vmatmul.mubr.msk.bf16.gmra.mrb[80].mxu1 %vm9029_vm7, %v13687_v18  ;;  %v14426_v18 = vrot.slane %v31814_v60, 4  ;;  %v29814_v60 = vld [vmem:[#allocation2 + $0x128] sm:$0xff] }
 0xa78   :  { %21374 = vmatprep.mubr.msk.bf16.mxu1 %vm9029_vm7, %v13691_v13  ;;  %v31806_v13 = vshll.u32 %v29541_v9, 16 }
 0xa79   :  { %v14430_v50 = vor.u32 %v14429_v55, %v14426_v18 }
 0xa7a   :  { %v14438_v17 = vrot.slane %v31806_v13, 5 }
 0xa7c   :  { %v14439_v62 = vor.u32 %v14438_v17, %v14435_v32  ;;  %v14474_v17 = vrot.slane %v31782_v20, 5 }
 0xa7e   :  { %v14440_v2 = vsel %vm13519_vm0, %v14430_v50, %v14439_v62 }
 0xa7f   :  { %21375 = vmatmul.mubr.msk.bf16.gmra.mrb[84].mxu1 %vm9029_vm7, %v13695_v53 }
 0xa80   :  { %21378 = vmatprep.mubr.msk.bf16.mxu1 %vm9029_vm7, %v13704_v41  ;;  %v14444_v41 = vrot.slane %v31802_v21, 4  ;;  %v29774_v21 = vld [vmem:[#allocation2 + $0x108] sm:$0xff] }
 0xa82   :  { %v14448_v37 = vor.u32 %v14447_v56, %v14444_v41  ;;  %v29610_v56 = vld [vmem:[#allocation2 + $0x80] sm:$0xff] }
 0xa84   :  { %v14449_v16 = vsel %vm13519_vm0, %v14439_v62, %v14448_v37  ;;  %v31772_v62 = vshrl.u32 %v29610_v56, 16 }
 0xa87   :  { %21379 = vmatmul.mubr.msk.bf16.gmra.mrb[108].mxu1 %vm9029_vm7, %v13703_v54 }
 0xa88   :  { %21384 = vmatprep.mubr.msk.bf16.mxu1 %vm9029_vm7, %v14377_v28  ;;  %v31788_v28 = vshll.u32 %v29565_v5, 16 }
 0xa8a   :  { %v14465_v30 = vrot.slane %v31788_v28, 5 }
 0xa8f   :  { %21385 = vmatmul.mubr.msk.bf16.vlgmr.msra.gmra.mrb[4].mxu1 %vm9029_vm7, %v14386_v33  ;;  %v14462_v33 = vrot.slane %v31790_v58, 4  ;;  %v29734_v58 = vld [vmem:[#allocation2 + $0xe8] sm:$0xff] }
 0xa90   :  { %21388 = vmatprep.mubr.msk.bf16.mxu1 %vm9029_vm7, %v14395_v8  ;;  %21473 = vmatpush3.bf16.msra.mxu1 %v23312_v12  ;;  %v14420_v12 = vrot.slane %v31818_v42, 5  ;;  %v14457_v8 = vor.u32 %v14456_v63, %v14453_v10  ;;  %v29614_v10 = vld [vmem:[#allocation2 + $0x88] sm:$0xff] }
 0xa91   :  { %v31766_v63 = vshrl.u32 %v29614_v10, 16 }
 0xa92   :  { %v14421_v7 = vor.u32 %v14420_v12, %v14417_v0  ;;  %v14466_v0 = vor.u32 %v14465_v30, %v14462_v33  ;;  %v29588_v12 = vld [vmem:[#allocation2 + $0x78] sm:$0xff]  ;;  %v14458_v32 = vsel %vm13519_vm0, %v14448_v37, %v14457_v8  ;;  %v31770_v37 = vshll.u32 %v29610_v56, 16 }
 0xa93   :  { %v31776_v18 = vshll.u32 %v29588_v12, 16  ;;  %v14489_v30 = vrot.slane %v31772_v62, 4  ;;  %v29674_v62 = vld [vmem:[#allocation2 + $0xb8] sm:$0xff] }
 0xa94   :  { %v14422_v54 = vsel %vm13519_vm0, %v14412_v11, %v14421_v7  ;;  %v14431_v53 = vsel %vm13519_vm0, %v14421_v7, %v14430_v50 }
 0xa95   :  { %v14483_v41 = vrot.slane %v31776_v18, 5 }
 0xa97   :  { %21389 = vmatmul.mubr.msk.bf16.gmra.mrb[8].mxu1 %vm9029_vm7, %v14404_v49 }
 0xa98   :  { %21392 = vmatprep.mubr.msk.bf16.mxu1 %vm9029_vm7, %v14413_v23  ;;  %v31778_v23 = vshrl.u32 %v29588_v12, 16 }
 0xa9f   :  { %21393 = vmatmul.mubr.msk.bf16.gmra.mrb[12].mxu1 %vm9029_vm7, %v14422_v54 }
 0xaa0   :  { %21396 = vmatprep.mubr.msk.bf16.mxu1 %vm9029_vm7, %v14431_v53  ;;  %v14467_v53 = vsel %vm13519_vm0, %v14457_v8, %v14466_v0 }
 0xaa7   :  { %21397 = vmatmul.mubr.msk.bf16.gmra.mrb[16].mxu1 %vm9029_vm7, %v14440_v2 }
 0xaa8   :  { %21400 = vmatprep.mubr.msk.bf16.mxu1 %vm9029_vm7, %v14449_v16  ;;  %v31764_v16 = vshll.u32 %v29614_v10, 16 }
 0xaaa   :  { %v21290_v40 = vpop.f32.mrb[104].mxu1 }
 0xaab   :  { %v29586_v11 = vadd.f32 %v21290_v40, %v29271_v19  ;;  %v13414_v49 = vpop.f32.mrb[105].mxu1  ;;  %v14471_v19 = vrot.slane %v31784_v24, 4  ;;  %v14492_v40 = vrot.slane %v31770_v37, 5  ;;  %v29714_v24 = vld [vmem:[#allocation2 + $0xd8] sm:$0xff] }
 0xaac   :  { %v29593_v55 = vadd.f32 %v13414_v49, %v29274_v35  ;;  %v21291_v7 = vpop.f32.mrb[106].mxu1  ;;  %v14480_v35 = vrot.slane %v31778_v23, 4  ;;  %v14498_v49 = vrot.slane %v31766_v63, 4  ;;  %v29654_v63 = vld [vmem:[#allocation2 + $0xa8] sm:$0xff] }
 0xaad   :  { %v13417_v50 = vpop.f32.mrb[107].mxu1  ;;  %v14501_v7 = vrot.slane %v31764_v16, 5  ;;  %v29694_v23 = vld [vmem:[#allocation2 + $0xc8] sm:$0xff] }
 0xaae   :  { %v29596_v54 = vadd.f32 %v13417_v50, %v29277_v3  ;;  %v14475_v3 = vor.u32 %v14474_v17, %v14471_v19  ;;  %v14484_v2 = vor.u32 %v14483_v41, %v14480_v35  ;;  %v14493_v50 = vor.u32 %v14492_v40, %v14489_v30 }
 0xaaf   :  { %21401 = vmatmul.mubr.msk.bf16.gmra.mrb[20].mxu1 %vm9029_vm7, %v14458_v32  ;;  %v14502_v17 = vor.u32 %v14501_v7, %v14498_v49 }
 0xab0   :  { %21404 = vmatprep.mubr.msk.bf16.mxu1 %vm9029_vm7, %v14467_v53  ;;  %v14476_v33 = vsel %vm13519_vm0, %v14466_v0, %v14475_v3  ;;  %v14485_v8 = vsel %vm13519_vm0, %v14475_v3, %v14484_v2  ;;  %v29630_v0 = vld [vmem:[#allocation2 + $0x90] sm:$0xff]  ;;  %v29634_v53 = vld [vmem:[#allocation2 + $0x98] sm:$0xff]  ;;  %v14494_v3 = vsel %vm13519_vm0, %v14484_v2, %v14493_v50  ;;  %v29650_v2 = vld [vmem:[#allocation2 + $0xa0] sm:$0xff] }
 0xab1   :  { %v31763_v32 = vshrl.u32 %v29630_v0, 16  ;;  %v31765_v19 = vshll.u32 %v29630_v0, 16  ;;  %v31767_v35 = vshrl.u32 %v29634_v53, 16  ;;  %v31768_v41 = vshll.u32 %v29634_v53, 16 }
 0xab2   :  { %v14503_v40 = vsel %vm13519_vm0, %v14493_v50, %v14502_v17  ;;  %v31771_v16 = vshll.u32 %v29650_v2, 16  ;;  %v31773_v50 = vshrl.u32 %v29654_v63, 16 }
 0xab3   :  { %v14510_v30 = vrot.slane %v31765_v19, 5  ;;  %v14519_v49 = vrot.slane %v31768_v41, 5 }
 0xab7   :  { %21405 = vmatmul.mubr.msk.bf16.gmra.mrb[24].mxu1 %vm9029_vm7, %v14476_v33  ;;  %v14507_v33 = vrot.slane %v31763_v32, 4  ;;  %v31769_v32 = vshrl.u32 %v29650_v2, 16 }
 0xab8   :  { %21408 = vmatprep.mubr.msk.bf16.mxu1 %vm9029_vm7, %v14485_v8  ;;  %v14516_v8 = vrot.slane %v31767_v35, 4 }
 0xab9   :  { %v14511_v7 = vor.u32 %v14510_v30, %v14507_v33  ;;  %v14525_v41 = vrot.slane %v31769_v32, 4  ;;  %v14528_v33 = vrot.slane %v31771_v16, 5 }
 0xaba   :  { %v14520_v19 = vor.u32 %v14519_v49, %v14516_v8 }
 0xabb   :  { %v14512_v35 = vsel %vm13519_vm0, %v14502_v17, %v14511_v7  ;;  %v14529_v49 = vor.u32 %v14528_v33, %v14525_v41  ;;  %v29670_v17 = vld [vmem:[#allocation2 + $0xb0] sm:$0xff] }
 0xabc   :  { %v14521_v30 = vsel %vm13519_vm0, %v14511_v7, %v14520_v19  ;;  %v31775_v32 = vshrl.u32 %v29670_v17, 16  ;;  %v31777_v37 = vshll.u32 %v29670_v17, 16  ;;  %v31780_v7 = vshll.u32 %v29674_v62, 16 }
 0xabe   :  { %v14546_v41 = vrot.slane %v31777_v37, 5 }
 0xabf   :  { %21409 = vmatmul.mubr.msk.bf16.gmra.mrb[28].mxu1 %vm9029_vm7, %v14494_v3  ;;  %v31774_v3 = vshll.u32 %v29654_v63, 16 }
 0xac0   :  { %21412 = vmatprep.mubr.msk.bf16.mxu1 %vm9029_vm7, %v14503_v40  ;;  %v14534_v40 = vrot.slane %v31773_v50, 4  ;;  %v14530_v50 = vsel %vm13519_vm0, %v14520_v19, %v14529_v49  ;;  %v29690_v19 = vld [vmem:[#allocation2 + $0xc0] sm:$0xff] }
 0xac1   :  { %v14537_v8 = vrot.slane %v31774_v3, 5  ;;  %v14543_v3 = vrot.slane %v31775_v32, 4  ;;  %v31781_v32 = vshrl.u32 %v29690_v19, 16  ;;  %v31783_v18 = vshll.u32 %v29690_v19, 16 }
 0xac3   :  { %v14538_v16 = vor.u32 %v14537_v8, %v14534_v40  ;;  %v14555_v40 = vrot.slane %v31780_v7, 5  ;;  %v14547_v8 = vor.u32 %v14546_v41, %v14543_v3  ;;  %v14561_v7 = vrot.slane %v31781_v32, 4 }
 0xac4   :  { %v14564_v3 = vrot.slane %v31783_v18, 5 }
 0xac5   :  { %v14539_v33 = vsel %vm13519_vm0, %v14529_v49, %v14538_v16  ;;  %v31786_v49 = vshll.u32 %v29694_v23, 16 }
 0xac7   :  { %21413 = vmatmul.mubr.msk.bf16.gmra.mrb[32].mxu1 %vm9029_vm7, %v14512_v35  ;;  %v31779_v35 = vshrl.u32 %v29674_v62, 16 }
 0xac8   :  { %21416 = vmatprep.mubr.msk.bf16.mxu1 %vm9029_vm7, %v14521_v30 }
 0xac9   :  { %v14552_v30 = vrot.slane %v31779_v35, 4  ;;  %v14548_v35 = vsel %vm13519_vm0, %v14538_v16, %v14547_v8  ;;  %v29710_v16 = vld [vmem:[#allocation2 + $0xd0] sm:$0xff] }
 0xaca   :  { %v31787_v32 = vshrl.u32 %v29710_v16, 16  ;;  %v31789_v20 = vshll.u32 %v29710_v16, 16 }
 0xacb   :  { %v14556_v37 = vor.u32 %v14555_v40, %v14552_v30  ;;  %v14573_v30 = vrot.slane %v31786_v49, 5  ;;  %v14565_v40 = vor.u32 %v14564_v3, %v14561_v7 }
 0xacc   :  { %v14579_v49 = vrot.slane %v31787_v32, 4  ;;  %v14582_v7 = vrot.slane %v31789_v20, 5 }
 0xacd   :  { %v14557_v41 = vsel %vm13519_vm0, %v14547_v8, %v14556_v37  ;;  %v31792_v8 = vshll.u32 %v29714_v24, 16 }
 0xacf   :  { %21417 = vmatmul.mubr.msk.bf16.gmra.mrb[36].mxu1 %vm9029_vm7, %v14530_v50  ;;  %v31785_v50 = vshrl.u32 %v29694_v23, 16 }
 0xad0   :  { %21420 = vmatprep.mubr.msk.bf16.mxu1 %vm9029_vm7, %v14539_v33 }
 0xad1   :  { %v14570_v33 = vrot.slane %v31785_v50, 4  ;;  %v14566_v50 = vsel %vm13519_vm0, %v14556_v37, %v14565_v40  ;;  %v29730_v37 = vld [vmem:[#allocation2 + $0xe0] sm:$0xff] }
 0xad2   :  { %v31793_v32 = vshrl.u32 %v29730_v37, 16  ;;  %v31795_v28 = vshll.u32 %v29730_v37, 16 }
 0xad3   :  { %v14574_v18 = vor.u32 %v14573_v30, %v14570_v33  ;;  %v14591_v33 = vrot.slane %v31792_v8, 5  ;;  %v14583_v30 = vor.u32 %v14582_v7, %v14579_v49 }
 0xad4   :  { %v14597_v8 = vrot.slane %v31793_v32, 4  ;;  %v14600_v49 = vrot.slane %v31795_v28, 5 }
 0xad5   :  { %v14575_v3 = vsel %vm13519_vm0, %v14565_v40, %v14574_v18  ;;  %v31798_v40 = vshll.u32 %v29734_v58, 16 }
 0xad7   :  { %21421 = vmatmul.mubr.msk.bf16.gmra.mrb[40].mxu1 %vm9029_vm7, %v14548_v35  ;;  %v31791_v35 = vshrl.u32 %v29714_v24, 16 }
 0xad8   :  { %21424 = vmatprep.mubr.msk.bf16.mxu1 %vm9029_vm7, %v14557_v41 }
 0xad9   :  { %v14588_v41 = vrot.slane %v31791_v35, 4  ;;  %v14584_v35 = vsel %vm13519_vm0, %v14574_v18, %v14583_v30  ;;  %v29750_v18 = vld [vmem:[#allocation2 + $0xf0] sm:$0xff] }
 0xada   :  { %v31799_v32 = vshrl.u32 %v29750_v18, 16  ;;  %v31801_v26 = vshll.u32 %v29750_v18, 16 }
 0xadb   :  { %v14592_v20 = vor.u32 %v14591_v33, %v14588_v41  ;;  %v14609_v41 = vrot.slane %v31798_v40, 5  ;;  %v14601_v33 = vor.u32 %v14600_v49, %v14597_v8 }
 0xadc   :  { %v14615_v40 = vrot.slane %v31799_v32, 4  ;;  %v14618_v8 = vrot.slane %v31801_v26, 5 }
 0xadd   :  { %v14593_v7 = vsel %vm13519_vm0, %v14583_v30, %v14592_v20  ;;  %v31804_v30 = vshll.u32 %v29754_v48, 16 }
 0xadf   :  { %21425 = vmatmul.mubr.msk.bf16.gmra.mrb[44].mxu1 %vm9029_vm7, %v14566_v50  ;;  %v31797_v50 = vshrl.u32 %v29734_v58, 16 }
 0xae0   :  { %21428 = vmatprep.mubr.msk.bf16.mxu1 %vm9029_vm7, %v14575_v3 }
 0xae1   :  { %v14606_v3 = vrot.slane %v31797_v50, 4  ;;  %v14602_v50 = vsel %vm13519_vm0, %v14592_v20, %v14601_v33  ;;  %v29770_v20 = vld [vmem:[#allocation2 + $0x100] sm:$0xff] }
 0xae2   :  { %v31805_v32 = vshrl.u32 %v29770_v20, 16  ;;  %v31807_v43 = vshll.u32 %v29770_v20, 16 }
 0xae3   :  { %v14610_v28 = vor.u32 %v14609_v41, %v14606_v3  ;;  %v14627_v3 = vrot.slane %v31804_v30, 5  ;;  %v14619_v41 = vor.u32 %v14618_v8, %v14615_v40 }
 0xae4   :  { %v14633_v30 = vrot.slane %v31805_v32, 4  ;;  %v14636_v40 = vrot.slane %v31807_v43, 5 }
 0xae5   :  { %v14611_v49 = vsel %vm13519_vm0, %v14601_v33, %v14610_v28  ;;  %v31810_v33 = vshll.u32 %v29774_v21, 16 }
 0xae7   :  { %21429 = vmatmul.mubr.msk.bf16.gmra.mrb[48].mxu1 %vm9029_vm7, %v14584_v35  ;;  %v31803_v35 = vshrl.u32 %v29754_v48, 16 }
 0xae8   :  { %21432 = vmatprep.mubr.msk.bf16.mxu1 %vm9029_vm7, %v14593_v7 }
 0xae9   :  { %v14624_v7 = vrot.slane %v31803_v35, 4  ;;  %v14620_v35 = vsel %vm13519_vm0, %v14610_v28, %v14619_v41  ;;  %v29790_v28 = vld [vmem:[#allocation2 + $0x110] sm:$0xff] }
 0xaea   :  { %v31811_v32 = vshrl.u32 %v29790_v28, 16  ;;  %v31813_v13 = vshll.u32 %v29790_v28, 16 }
 0xaeb   :  { %v14628_v26 = vor.u32 %v14627_v3, %v14624_v7  ;;  %v14645_v7 = vrot.slane %v31810_v33, 5  ;;  %v14637_v3 = vor.u32 %v14636_v40, %v14633_v30 }
 0xaec   :  { %v14651_v33 = vrot.slane %v31811_v32, 4  ;;  %v14654_v30 = vrot.slane %v31813_v13, 5 }
 0xaed   :  { %v14629_v8 = vsel %vm13519_vm0, %v14619_v41, %v14628_v26  ;;  %v31816_v41 = vshll.u32 %v29794_v14, 16 }
 0xaef   :  { %21433 = vmatmul.mubr.msk.bf16.gmra.mrb[52].mxu1 %vm9029_vm7, %v14602_v50  ;;  %v31809_v50 = vshrl.u32 %v29774_v21, 16 }
 0xaf0   :  { %21436 = vmatprep.mubr.msk.bf16.mxu1 %vm9029_vm7, %v14611_v49 }
 0xaf1   :  { %v14642_v49 = vrot.slane %v31809_v50, 4  ;;  %v14638_v50 = vsel %vm13519_vm0, %v14628_v26, %v14637_v3  ;;  %v29810_v26 = vld [vmem:[#allocation2 + $0x120] sm:$0xff] }
 0xaf2   :  { %v31817_v32 = vshrl.u32 %v29810_v26, 16  ;;  %v31819_v59 = vshll.u32 %v29810_v26, 16 }
 0xaf3   :  { %v14646_v43 = vor.u32 %v14645_v7, %v14642_v49  ;;  %v14663_v49 = vrot.slane %v31816_v41, 5  ;;  %v14655_v7 = vor.u32 %v14654_v30, %v14651_v33 }
 0xaf4   :  { %v14669_v41 = vrot.slane %v31817_v32, 4  ;;  %v14672_v33 = vrot.slane %v31819_v59, 5 }
 0xaf5   :  { %v14647_v40 = vsel %vm13519_vm0, %v14637_v3, %v14646_v43  ;;  %v31822_v3 = vshll.u32 %v29814_v60, 16 }
 0xaf7   :  { %21437 = vmatmul.mubr.msk.bf16.gmra.mrb[56].mxu1 %vm9029_vm7, %v14620_v35  ;;  %v31815_v35 = vshrl.u32 %v29794_v14, 16 }
 0xaf8   :  { %21440 = vmatprep.mubr.msk.bf16.mxu1 %vm9029_vm7, %v14629_v8 }
 0xaf9   :  { %v14660_v8 = vrot.slane %v31815_v35, 4  ;;  %v14656_v35 = vsel %vm13519_vm0, %v14646_v43, %v14655_v7  ;;  %v29830_v43 = vld [vmem:[#allocation2 + $0x130] sm:$0xff] }
 0xafa   :  { %v31823_v32 = vshrl.u32 %v29830_v43, 16  ;;  %v31825_v42 = vshll.u32 %v29830_v43, 16 }
 0xafb   :  { %v14664_v13 = vor.u32 %v14663_v49, %v14660_v8  ;;  %v14681_v8 = vrot.slane %v31822_v3, 5  ;;  %v14673_v49 = vor.u32 %v14672_v33, %v14669_v41 }
 0xafc   :  { %v14687_v3 = vrot.slane %v31823_v32, 4  ;;  %v14690_v41 = vrot.slane %v31825_v42, 5 }
 0xafd   :  { %v14665_v30 = vsel %vm13519_vm0, %v14655_v7, %v14664_v13  ;;  %v31828_v7 = vshll.u32 %v29834_v39, 16 }
 0xaff   :  { %21441 = vmatmul.mubr.msk.bf16.gmra.mrb[60].mxu1 %vm9029_vm7, %v14638_v50  ;;  %v31821_v50 = vshrl.u32 %v29814_v60, 16 }
 0xb00   :  { %21444 = vmatprep.mubr.msk.bf16.mxu1 %vm9029_vm7, %v14647_v40 }
 0xb01   :  { %v14678_v40 = vrot.slane %v31821_v50, 4  ;;  %v14674_v50 = vsel %vm13519_vm0, %v14664_v13, %v14673_v49  ;;  %v29850_v13 = vld [vmem:[#allocation2 + $0x140] sm:$0xff] }
 0xb02   :  { %v31829_v32 = vshrl.u32 %v29850_v13, 16  ;;  %v31831_v57 = vshll.u32 %v29850_v13, 16 }
 0xb03   :  { %v14682_v59 = vor.u32 %v14681_v8, %v14678_v40  ;;  %v14699_v40 = vrot.slane %v31828_v7, 5  ;;  %v14691_v8 = vor.u32 %v14690_v41, %v14687_v3 }
 0xb04   :  { %v14705_v7 = vrot.slane %v31829_v32, 4  ;;  %v14708_v3 = vrot.slane %v31831_v57, 5 }
 0xb05   :  { %v14683_v33 = vsel %vm13519_vm0, %v14673_v49, %v14682_v59  ;;  %v31834_v49 = vshll.u32 %v29854_v47, 16 }
 0xb07   :  { %21445 = vmatmul.mubr.msk.bf16.gmra.mrb[64].mxu1 %vm9029_vm7, %v14656_v35  ;;  %v31827_v35 = vshrl.u32 %v29834_v39, 16 }
 0xb08   :  { %21448 = vmatprep.mubr.msk.bf16.mxu1 %vm9029_vm7, %v14665_v30 }
 0xb09   :  { %v14696_v30 = vrot.slane %v31827_v35, 4  ;;  %v14692_v35 = vsel %vm13519_vm0, %v14682_v59, %v14691_v8  ;;  %v29870_v59 = vld [vmem:[#allocation2 + $0x150] sm:$0xff] }
 0xb0a   :  { %v31835_v32 = vshrl.u32 %v29870_v59, 16  ;;  %v31836_v6 = vshll.u32 %v29870_v59, 16 }
 0xb0b   :  { %v14700_v42 = vor.u32 %v14699_v40, %v14696_v30  ;;  %v14717_v30 = vrot.slane %v31834_v49, 5  ;;  %v14709_v40 = vor.u32 %v14708_v3, %v14705_v7 }
 0xb0c   :  { %v14723_v49 = vrot.slane %v31835_v32, 4  ;;  %v14726_v7 = vrot.slane %v31836_v6, 5  ;;  %v29893_v32 = vld [vmem:[#allocation2 + $0x160] sm:$0xff] }
 0xb0d   :  { %v14701_v41 = vsel %vm13519_vm0, %v14691_v8, %v14700_v42  ;;  %v31840_v8 = vshll.u32 %v29874_v27, 16  ;;  %v31843_v6 = vshrl.u32 %v29893_v32, 16 }
 0xb0f   :  { %21449 = vmatmul.mubr.msk.bf16.gmra.mrb[68].mxu1 %vm9029_vm7, %v14674_v50  ;;  %v31833_v50 = vshrl.u32 %v29854_v47, 16 }
 0xb10   :  { %21452 = vmatprep.mubr.msk.bf16.mxu1 %vm9029_vm7, %v14683_v33 }
 0xb11   :  { %v14714_v33 = vrot.slane %v31833_v50, 4  ;;  %v14710_v50 = vsel %vm13519_vm0, %v14700_v42, %v14709_v40  ;;  %v23313_v42 = vld [vmem:[%s31297_s5 + $0x40] sm:$0xff]  }
 0xb12   :  { %21562 = vmatprep.subr.bf16.mxu1 %v23313_v42 }
 0xb13   :  { %v14718_v57 = vor.u32 %v14717_v30, %v14714_v33  ;;  %v14735_v33 = vrot.slane %v31840_v8, 5  ;;  %v14727_v30 = vor.u32 %v14726_v7, %v14723_v49 }
 0xb15   :  { %v14719_v3 = vsel %vm13519_vm0, %v14709_v40, %v14718_v57  ;;  %v14728_v8 = vsel %vm13519_vm0, %v14718_v57, %v14727_v30 }
 0xb17   :  { %21453 = vmatmul.mubr.msk.bf16.gmra.mrb[72].mxu1 %vm9029_vm7, %v14692_v35  ;;  %v31838_v35 = vshrl.u32 %v29874_v27, 16 }
 0xb18   :  { %21456 = vmatprep.mubr.msk.bf16.mxu1 %vm9029_vm7, %v14701_v41 }
 0xb19   :  { %v14732_v41 = vrot.slane %v31838_v35, 4  ;;  %v14748_v35 = vshrl.u32 %v23407_v51, 16 }
 0xb1b   :  { %v14736_v40 = vor.u32 %v14735_v33, %v14732_v41  ;;  %v14750_v7 = vrot.slane %v14748_v35, 4  ;;  %v32497_v35 = vld [vmem:[#allocation14_spill] sm:$0xff] }
 0xb1d   :  { %v14737_v49 = vsel %vm13519_vm0, %v14727_v30, %v14736_v40  ;;  %v14754_v33 = vor.u32 %v14753_v34, %v14750_v7  ;;  %v15417_v34 = vrot.slane %v29481_v61, 5  ;;  %v32500_v7 = vld [vmem:[#allocation27_spill] sm:$0xff] }
 0xb1f   :  { %21457 = vmatmul.mubr.msk.bf16.gmra.mrb[76].mxu1 %vm9029_vm7, %v14710_v50  ;;  %v14742_v50 = vshll.u32 %v29893_v32, 16 }
 0xb20   :  { %21460 = vmatprep.mubr.msk.bf16.mxu1 %vm9029_vm7, %v14719_v3  ;;  %v14741_v3 = vrot.slane %v31843_v6, 4  ;;  %v29909_v6 = vld [vmem:[#allocation2 + $0x10] sm:$0xe0] }
 0xb21   :  { %v14744_v31 = vrot.slane %v14742_v50, 5  ;;  %v15414_v30 = vrot.slane %v29909_v6, 5 }
 0xb23   :  { %v14745_v41 = vor.u32 %v14744_v31, %v14741_v3 }
 0xb25   :  { %v14746_v51 = vsel %vm13519_vm0, %v14736_v40, %v14745_v41  ;;  %v14755_v57 = vsel %vm13519_vm0, %v14745_v41, %v14754_v33  ;;  %v32498_v40 = vrot.slane %v32497_v35, 5  ;;  %v32501_v41 = vld [vmem:[#allocation67_spill] sm:$0xff] }
 0xb27   :  { %21461 = vmatmul.mubr.msk.bf16.gmra.mrb[80].mxu1 %vm9029_vm7, %v14728_v8  ;;  %v15415_v8 = vrot.slane %v29470_v38, 5  ;;  %v15420_v3 = vsel %vm15413_vm15, %v15417_v34, %v32498_v40  ;;  %v32505_v40 = vld [vmem:[#allocation71_spill] sm:$0xff] }
 0xb28   :  { %21464 = vmatprep.mubr.msk.bf16.mxu1 %vm9029_vm7, %v14737_v49  ;;  %v32499_v49 = vld [vmem:[#allocation11_spill] sm:$0xff] }
 0xb29   :  { %v15416_v1 = vsel %vm15413_vm15, %v15414_v30, %v15415_v8  ;;  %v15418_v31 = vsel %vm15413_vm15, %v15415_v8, %v15417_v34 }
 0xb2f   :  { %21465 = vmatmul.mubr.msk.bf16.gmra.mrb[84].mxu1 %vm9029_vm7, %v14746_v51  ;;  %v32503_v51 = vld [vmem:[#allocation69_spill] sm:$0xff] }
 0xb30   :  { %21468 = vmatprep.mubr.msk.bf16.mxu1 %vm9029_vm7, %v14755_v57  ;;  %v32504_v57 = vld [vmem:[#allocation70_spill] sm:$0xff] }
 0xb37   :  { %21469 = vmatmul.mubr.msk.bf16.gmra.mrb[112].mxu1 %vm9029_vm7, %v14754_v33  ;;  %v32502_v33 = vld [vmem:[#allocation68_spill] sm:$0xff] }
 0xb38   :  { %21474 = vmatprep.mubr.msk.bf16.mxu1 %vm9029_vm7, %v15416_v1 }
 0xb3f   :  { %21475 = vmatmul.mubr.msk.bf16.vlgmr.msra.gmra.mrb[4].mxu1 %vm9029_vm7, %v15418_v31 }
 0xb40   :  { %21478 = vmatprep.mubr.msk.bf16.mxu1 %vm9029_vm7, %v15420_v3  ;;  %21563 = vmatpush3.bf16.msra.mxu1 %v23313_v42  ;;  %v32506_v3 = vld [vmem:[#allocation72_spill] sm:$0xff] }
 0xb47   :  { %21479 = vmatmul.mubr.msk.bf16.gmra.mrb[8].mxu1 %vm9029_vm7, %v32499_v49  ;;  %v32507_v49 = vld [vmem:[#allocation73_spill] sm:$0xff] }
 0xb48   :  { %21482 = vmatprep.mubr.msk.bf16.mxu1 %vm9029_vm7, %v32500_v7  ;;  %v32509_v7 = vld [vmem:[#allocation75_spill] sm:$0xff] }
 0xb4f   :  { %21483 = vmatmul.mubr.msk.bf16.gmra.mrb[12].mxu1 %vm9029_vm7, %v32501_v41  ;;  %v32512_v41 = vld [vmem:[#allocation78_spill] sm:$0xff] }
 0xb50   :  { %21486 = vmatprep.mubr.msk.bf16.mxu1 %vm9029_vm7, %v32502_v33  ;;  %v32513_v33 = vld [vmem:[#allocation79_spill] sm:$0xff] }
 0xb57   :  { %21487 = vmatmul.mubr.msk.bf16.gmra.mrb[16].mxu1 %vm9029_vm7, %v32503_v51  ;;  %v32514_v51 = vld [vmem:[#allocation80_spill] sm:$0xff] }
 0xb58   :  { %21490 = vmatprep.mubr.msk.bf16.mxu1 %vm9029_vm7, %v32504_v57  ;;  %v32515_v57 = vld [vmem:[#allocation81_spill] sm:$0xff] }
 0xb5a   :  { %v21380_v8 = vpop.f32.mrb[108].mxu1 }
 0xb5b   :  { %v29936_v42 = vadd.f32 %v21380_v8, %v29586_v11  ;;  %v14213_v30 = vpop.f32.mrb[109].mxu1  ;;  %v32508_v11 = vld [vmem:[#allocation74_spill] sm:$0xff] }
 0xb5c   :  { %v29939_v1 = vadd.f32 %v14213_v30, %v29593_v55  ;;  %v21381_v34 = vpop.f32.mrb[110].mxu1  ;;  %v32510_v55 = vld [vmem:[#allocation76_spill] sm:$0xff]  ;;  %v32516_v8 = vld [vmem:[#allocation82_spill] sm:$0xff]  ;;  %v32517_v30 = vld [vmem:[#allocation83_spill] sm:$0xff] }
 0xb5d   :  { %v14216_v31 = vpop.f32.mrb[111].mxu1  ;;  %v32518_v34 = vld [vmem:[#allocation84_spill] sm:$0xff] }
 0xb5e   :  { %v29942_v35 = vadd.f32 %v14216_v31, %v29596_v54  ;;  %v32511_v54 = vld [vmem:[#allocation77_spill] sm:$0xff] }
 0xb5f   :  { %21491 = vmatmul.mubr.msk.bf16.gmra.mrb[20].mxu1 %vm9029_vm7, %v32505_v40  ;;  %v32519_v31 = vld [vmem:[#allocation85_spill] sm:$0xff]  ;;  %v32520_v40 = vld [vmem:[#allocation86_spill] sm:$0xff] }
 0xb60   :  { %21494 = vmatprep.mubr.msk.bf16.mxu1 %vm9029_vm7, %v32506_v3  ;;  %v32521_v3 = vld [vmem:[#allocation87_spill] sm:$0xff] }
 0xb67   :  { %21495 = vmatmul.mubr.msk.bf16.gmra.mrb[24].mxu1 %vm9029_vm7, %v32507_v49  ;;  %v32522_v49 = vld [vmem:[#allocation88_spill] sm:$0xff] }
 0xb68   :  { %21498 = vmatprep.mubr.msk.bf16.mxu1 %vm9029_vm7, %v32508_v11  ;;  %v32523_v11 = vld [vmem:[#allocation89_spill] sm:$0xff] }
 0xb6f   :  { %21499 = vmatmul.mubr.msk.bf16.gmra.mrb[28].mxu1 %vm9029_vm7, %v32509_v7  ;;  %v32524_v7 = vld [vmem:[#allocation90_spill] sm:$0xff] }
 0xb70   :  { %21502 = vmatprep.mubr.msk.bf16.mxu1 %vm9029_vm7, %v32510_v55  ;;  %v32525_v55 = vld [vmem:[#allocation91_spill] sm:$0xff] }
 0xb77   :  { %21503 = vmatmul.mubr.msk.bf16.gmra.mrb[32].mxu1 %vm9029_vm7, %v32511_v54  ;;  %v32526_v54 = vld [vmem:[#allocation92_spill] sm:$0xff] }
 0xb78   :  { %21506 = vmatprep.mubr.msk.bf16.mxu1 %vm9029_vm7, %v32512_v41  ;;  %v32527_v41 = vld [vmem:[#allocation93_spill] sm:$0xff] }
 0xb7f   :  { %21507 = vmatmul.mubr.msk.bf16.gmra.mrb[36].mxu1 %vm9029_vm7, %v32513_v33  ;;  %v32528_v33 = vld [vmem:[#allocation94_spill] sm:$0xff] }
 0xb80   :  { %21510 = vmatprep.mubr.msk.bf16.mxu1 %vm9029_vm7, %v32514_v51  ;;  %v32529_v51 = vld [vmem:[#allocation95_spill] sm:$0xff] }
 0xb87   :  { %21511 = vmatmul.mubr.msk.bf16.gmra.mrb[40].mxu1 %vm9029_vm7, %v32515_v57  ;;  %v32530_v57 = vld [vmem:[#allocation96_spill] sm:$0xff] }
 0xb88   :  { %21514 = vmatprep.mubr.msk.bf16.mxu1 %vm9029_vm7, %v32516_v8  ;;  %v32531_v8 = vld [vmem:[#allocation97_spill] sm:$0xff] }
 0xb8f   :  { %21515 = vmatmul.mubr.msk.bf16.gmra.mrb[44].mxu1 %vm9029_vm7, %v32517_v30  ;;  %v32532_v30 = vld [vmem:[#allocation30_spill] sm:$0xff] }
 0xb90   :  { %21518 = vmatprep.mubr.msk.bf16.mxu1 %vm9029_vm7, %v32518_v34  ;;  %v32533_v34 = vld [vmem:[#allocation98_spill] sm:$0xff] }
 0xb97   :  { %21519 = vmatmul.mubr.msk.bf16.gmra.mrb[48].mxu1 %vm9029_vm7, %v32519_v31  ;;  %v32534_v31 = vld [vmem:[#allocation29_spill] sm:$0xff] }
 0xb98   :  { %21522 = vmatprep.mubr.msk.bf16.mxu1 %vm9029_vm7, %v32520_v40  ;;  %v32535_v40 = vld [vmem:[#allocation32_spill] sm:$0xff] }
 0xb9f   :  { %21523 = vmatmul.mubr.msk.bf16.gmra.mrb[52].mxu1 %vm9029_vm7, %v32521_v3  ;;  %v32536_v3 = vld [vmem:[#allocation34_spill] sm:$0xff] }
 0xba0   :  { %21526 = vmatprep.mubr.msk.bf16.mxu1 %vm9029_vm7, %v32522_v49  ;;  %v16116_v49 = vshrl.u32 %v29909_v6, 16 }
 0xba7   :  { %21527 = vmatmul.mubr.msk.bf16.gmra.mrb[56].mxu1 %vm9029_vm7, %v32523_v11  ;;  %v16119_v11 = vshll.u32 %v29909_v6, 16 }
 0xba8   :  { %21530 = vmatprep.mubr.msk.bf16.mxu1 %vm9029_vm7, %v32524_v7  ;;  %v32537_v7 = vld [vmem:[#allocation8_spill] sm:$0xff] }
 0xbaf   :  { %21531 = vmatmul.mubr.msk.bf16.gmra.mrb[60].mxu1 %vm9029_vm7, %v32525_v55  ;;  %v16123_v55 = vrot.slane %v14370_v29, 5  ;;  %v32543_v29 = vshrl.u32 %v29486_v44, 16 }
 0xbb0   :  { %21534 = vmatprep.mubr.msk.bf16.mxu1 %vm9029_vm7, %v32526_v54  ;;  %v16124_v54 = vrot.slane %v14373_v52, 6 }
 0xbb1   :  { %v16131_v52 = vrot.slane %v32543_v29, 5 }
 0xbb7   :  { %21535 = vmatmul.mubr.msk.bf16.gmra.mrb[64].mxu1 %vm9029_vm7, %v32527_v41  ;;  %v32538_v41 = vld [vmem:[#allocation99_spill] sm:$0xff] }
 0xbb8   :  { %21538 = vmatprep.mubr.msk.bf16.mxu1 %vm9029_vm7, %v32528_v33  ;;  %v16118_v33 = vrot.slane %v16116_v49, 5  ;;  %v32544_v49 = vshll.u32 %v29486_v44, 16 }
 0xbbf   :  { %21539 = vmatmul.mubr.msk.bf16.gmra.mrb[68].mxu1 %vm9029_vm7, %v32529_v51  ;;  %v16121_v51 = vrot.slane %v16119_v11, 6  ;;  %v16132_v11 = vrot.slane %v32544_v49, 6  ;;  %v32551_v49 = vshrl.u32 %v29525_v36, 16 }
 0xbc0   :  { %21542 = vmatprep.mubr.msk.bf16.mxu1 %vm9029_vm7, %v32530_v57  ;;  %v16125_v57 = vor.u32 %v16124_v54, %v16123_v55 }
 0xbc1   :  { %v16133_v55 = vor.u32 %v16132_v11, %v16131_v52  ;;  %v32552_v11 = vshll.u32 %v29525_v36, 16 }
 0xbc7   :  { %21543 = vmatmul.mubr.msk.bf16.gmra.mrb[72].mxu1 %vm9029_vm7, %v32531_v8  ;;  %v16122_v8 = vor.u32 %v16121_v51, %v16118_v33  ;;  %v32546_v33 = vshll.u32 %v29501_v15, 16 }
 0xbc8   :  { %21546 = vmatprep.mubr.msk.bf16.mxu1 %vm9029_vm7, %v32532_v30  ;;  %v32539_v30 = vshrl.u32 %v29481_v61, 16 }
 0xbc9   :  { %v16126_v38 = vsel %vm16114_vm1, %v16122_v8, %v16125_v57  ;;  %v16136_v51 = vrot.slane %v32546_v33, 6  ;;  %v32554_v33 = vshll.u32 %v29541_v9, 16 }
 0xbca   :  { %v16127_v6 = vrot.slane %v32539_v30, 5  ;;  %v32547_v30 = vshrl.u32 %v29505_v4, 16 }
 0xbcc   :  { %v16139_v44 = vrot.slane %v32547_v30, 5  ;;  %v32555_v30 = vshrl.u32 %v29545_v22, 16 }
 0xbce   :  { %v16155_v36 = vrot.slane %v32555_v30, 5 }
 0xbcf   :  { %21547 = vmatmul.mubr.msk.bf16.gmra.mrb[76].mxu1 %vm9029_vm7, %v32533_v34  ;;  %v32540_v34 = vshll.u32 %v29481_v61, 16  ;;  %v32545_v61 = vshrl.u32 %v29501_v15, 16 }
 0xbd0   :  { %21550 = vmatprep.mubr.msk.bf16.mxu1 %vm9029_vm7, %v32534_v31 }
 0xbd1   :  { %v16128_v31 = vrot.slane %v32540_v34, 6  ;;  %v32548_v34 = vshll.u32 %v29505_v4, 16  ;;  %v16147_v4 = vrot.slane %v32551_v49, 5 }
 0xbd7   :  { %21551 = vmatmul.mubr.msk.bf16.gmra.mrb[80].mxu1 %vm9029_vm7, %v32535_v40  ;;  %v32541_v40 = vld [vmem:[#allocation31_spill] sm:$0xff] }
 0xbd8   :  { %21554 = vmatprep.mubr.msk.bf16.mxu1 %vm9029_vm7, %v32536_v3  ;;  %v32542_v3 = vrot.slane %v32541_v40, 5  ;;  %v16140_v40 = vrot.slane %v32548_v34, 6 }
 0xbdf   :  { %21555 = vmatmul.mubr.msk.bf16.gmra.mrb[84].mxu1 %vm9029_vm7, %v32537_v7  ;;  %v16129_v7 = vor.u32 %v16128_v31, %v16127_v6 }
 0xbe0   :  { %21558 = vmatprep.mubr.msk.bf16.mxu1 %vm9029_vm7, %v32538_v41  ;;  %v16135_v41 = vrot.slane %v32545_v61, 5 }
 0xbe1   :  { %v16130_v54 = vsel %vm16114_vm1, %v16125_v57, %v16129_v7  ;;  %v16134_v8 = vsel %vm16114_vm1, %v16129_v7, %v16133_v55  ;;  %v16141_v57 = vor.u32 %v16140_v40, %v16139_v44  ;;  %v16148_v7 = vrot.slane %v32552_v11, 6 }
 0xbe2   :  { %v16137_v6 = vor.u32 %v16136_v51, %v16135_v41  ;;  %v32553_v41 = vshrl.u32 %v29541_v9, 16  ;;  %v16152_v51 = vrot.slane %v32554_v33, 6  ;;  %v32556_v44 = vshll.u32 %v29545_v22, 16 }
 0xbe3   :  { %v32561_v33 = vshrl.u32 %v29581_v25, 16 }
 0xbe4   :  { %v16138_v31 = vsel %vm16114_vm1, %v16133_v55, %v16137_v6  ;;  %v16142_v52 = vsel %vm16114_vm1, %v16137_v6, %v16141_v57  ;;  %v16149_v55 = vor.u32 %v16148_v7, %v16147_v4  ;;  %v16156_v34 = vrot.slane %v32556_v44, 6 }
 0xbe5   :  { %v32564_v44 = vshll.u32 %v29588_v12, 16 }
 0xbe6   :  { %v16157_v6 = vor.u32 %v16156_v34, %v16155_v36 }
 0xbe7   :  { %21559 = vmatmul.mubr.msk.bf16.gmra.mrb[116].mxu1 %vm9029_vm7, %v32542_v3  ;;  %v32549_v3 = vshrl.u32 %v29521_v46, 16  ;;  %v16172_v34 = vrot.slane %v32564_v44, 6  ;;  %v32575_v44 = vshrl.u32 %v29654_v63, 16 }
 0xbe8   :  { %21564 = vmatprep.mubr.msk.bf16.mxu1 %vm9029_vm7, %v16126_v38  ;;  %v32550_v38 = vshll.u32 %v29521_v46, 16  ;;  %v16151_v46 = vrot.slane %v32553_v41, 5 }
 0xbe9   :  { %v16143_v15 = vrot.slane %v32549_v3, 5  ;;  %v32558_v3 = vshll.u32 %v29561_v45, 16 }
 0xbea   :  { %v16144_v29 = vrot.slane %v32550_v38, 6  ;;  %v16153_v40 = vor.u32 %v16152_v51, %v16151_v46  ;;  %v16167_v51 = vrot.slane %v32561_v33, 5 }
 0xbec   :  { %v16158_v38 = vsel %vm16114_vm1, %v16153_v40, %v16157_v6 }
 0xbef   :  { %21565 = vmatmul.mubr.msk.bf16.vlgmr.msra.gmra.mrb[4].mxu1 %vm9029_vm7, %v16130_v54  ;;  %v16145_v54 = vor.u32 %v16144_v29, %v16143_v15  ;;  %v16160_v15 = vrot.slane %v32558_v3, 6  ;;  %v32559_v29 = vshrl.u32 %v29565_v5, 16 }
 0xbf0   :  { %21568 = vmatprep.mubr.msk.bf16.mxu1 %vm9029_vm7, %v16134_v8 }
 0xbf1   :  { %v16146_v61 = vsel %vm16114_vm1, %v16141_v57, %v16145_v54  ;;  %v16150_v8 = vsel %vm16114_vm1, %v16145_v54, %v16149_v55  ;;  %v16154_v57 = vsel %vm16114_vm1, %v16149_v55, %v16153_v40  ;;  %v16163_v22 = vrot.slane %v32559_v29, 5 }
 0xbf7   :  { %21569 = vmatmul.mubr.msk.bf16.gmra.mrb[8].mxu1 %vm9029_vm7, %v16138_v31  ;;  %v32557_v31 = vshrl.u32 %v29561_v45, 16 }
 0xbf8   :  { %21572 = vmatprep.mubr.msk.bf16.mxu1 %vm9029_vm7, %v16142_v52  ;;  %v32560_v52 = vshll.u32 %v29565_v5, 16 }
 0xbf9   :  { %v16159_v9 = vrot.slane %v32557_v31, 5  ;;  %v32566_v31 = vshll.u32 %v29610_v56, 16 }
 0xbfa   :  { %v16164_v49 = vrot.slane %v32560_v52, 6 }
 0xbfb   :  { %v16161_v11 = vor.u32 %v16160_v15, %v16159_v9  ;;  %v16176_v9 = vrot.slane %v32566_v31, 6  ;;  %v32567_v15 = vshrl.u32 %v29614_v10, 16  ;;  %v32578_v31 = vshll.u32 %v29670_v17, 16 }
 0xbfc   :  { %v16165_v45 = vor.u32 %v16164_v49, %v16163_v22 }
 0xbfd   :  { %v16162_v5 = vsel %vm16114_vm1, %v16157_v6, %v16161_v11 }
 0xbff   :  { %21573 = vmatmul.mubr.msk.bf16.gmra.mrb[12].mxu1 %vm9029_vm7, %v16146_v61 }
 0xc00   :  { %21576 = vmatprep.mubr.msk.bf16.mxu1 %vm9029_vm7, %v16150_v8  ;;  %v32562_v8 = vshll.u32 %v29581_v25, 16 }
 0xc02   :  { %v16168_v30 = vrot.slane %v32562_v8, 6 }
 0xc07   :  { %21577 = vmatmul.mubr.msk.bf16.gmra.mrb[16].mxu1 %vm9029_vm7, %v16154_v57  ;;  %v32565_v57 = vshrl.u32 %v29610_v56, 16 }
 0xc08   :  { %21580 = vmatprep.mubr.msk.bf16.mxu1 %vm9029_vm7, %v16158_v38  ;;  %v32568_v38 = vshll.u32 %v29614_v10, 16 }
 0xc09   :  { %v16175_v25 = vrot.slane %v32565_v57, 5 }
 0xc0a   :  { %v21470_v4 = vpop.f32.mrb[112].mxu1  ;;  %v16180_v29 = vrot.slane %v32568_v38, 6 }
 0xc0b   :  { %v30080_v7 = vadd.f32 %v21470_v4, %v29936_v42  ;;  %v15264_v54 = vpop.f32.mrb[113].mxu1  ;;  %v16166_v42 = vsel %vm16114_vm1, %v16161_v11, %v16165_v45  ;;  %v16177_v22 = vor.u32 %v16176_v9, %v16175_v25  ;;  %v32569_v4 = vshrl.u32 %v29630_v0, 16 }
 0xc0c   :  { %v30083_v55 = vadd.f32 %v15264_v54, %v29939_v1  ;;  %v21471_v61 = vpop.f32.mrb[114].mxu1  ;;  %v32563_v1 = vshrl.u32 %v29588_v12, 16  ;;  %v16179_v12 = vrot.slane %v32567_v15, 5  ;;  %v32570_v11 = vshll.u32 %v29630_v0, 16 }
 0xc0d   :  { %v15267_v41 = vpop.f32.mrb[115].mxu1  ;;  %v16183_v56 = vrot.slane %v32569_v4, 5  ;;  %v32571_v61 = vshrl.u32 %v29634_v53, 16  ;;  %v32577_v25 = vshrl.u32 %v29670_v17, 16  ;;  %v16200_v9 = vrot.slane %v32578_v31, 6 }
 0xc0e   :  { %v30086_v46 = vadd.f32 %v15267_v41, %v29942_v35  ;;  %v16171_v36 = vrot.slane %v32563_v1, 5  ;;  %v16169_v35 = vor.u32 %v16168_v30, %v16167_v51  ;;  %v16181_v52 = vor.u32 %v16180_v29, %v16179_v12 }
 0xc0f   :  { %21581 = vmatmul.mubr.msk.bf16.gmra.mrb[20].mxu1 %vm9029_vm7, %v16162_v5  ;;  %v16184_v54 = vrot.slane %v32570_v11, 6  ;;  %v16187_v10 = vrot.slane %v32571_v61, 5  ;;  %v32572_v41 = vshll.u32 %v29634_v53, 16  ;;  %v32573_v30 = vshrl.u32 %v29650_v2, 16 }
 0xc10   :  { %21584 = vmatprep.mubr.msk.bf16.mxu1 %vm9029_vm7, %v16166_v42  ;;  %v16173_v40 = vor.u32 %v16172_v34, %v16171_v36  ;;  %v16170_v6 = vsel %vm16114_vm1, %v16165_v45, %v16169_v35  ;;  %v16182_v45 = vsel %vm16114_vm1, %v16177_v22, %v16181_v52  ;;  %v32574_v42 = vshll.u32 %v29650_v2, 16 }
 0xc11   :  { %v16188_v5 = vrot.slane %v32572_v41, 6  ;;  %v16185_v33 = vor.u32 %v16184_v54, %v16183_v56  ;;  %v16191_v0 = vrot.slane %v32573_v30, 5  ;;  %v16195_v53 = vrot.slane %v32575_v44, 5 }
 0xc12   :  { %v16174_v3 = vsel %vm16114_vm1, %v16169_v35, %v16173_v40  ;;  %v16178_v49 = vsel %vm16114_vm1, %v16173_v40, %v16177_v22  ;;  %v16192_v1 = vrot.slane %v32574_v42, 6  ;;  %v32576_v34 = vshll.u32 %v29654_v63, 16 }
 0xc13   :  { %v16189_v51 = vor.u32 %v16188_v5, %v16187_v10  ;;  %v16186_v8 = vsel %vm16114_vm1, %v16181_v52, %v16185_v33  ;;  %v16199_v2 = vrot.slane %v32577_v25, 5  ;;  %v32579_v15 = vshrl.u32 %v29674_v62, 16 }
 0xc14   :  { %v16196_v35 = vrot.slane %v32576_v34, 6  ;;  %v16193_v40 = vor.u32 %v16192_v1, %v16191_v0  ;;  %v32580_v12 = vshll.u32 %v29674_v62, 16  ;;  %v32582_v4 = vshll.u32 %v29690_v19, 16 }
 0xc15   :  { %v16190_v36 = vsel %vm16114_vm1, %v16185_v33, %v16189_v51  ;;  %v16203_v63 = vrot.slane %v32579_v15, 5  ;;  %v16201_v29 = vor.u32 %v16200_v9, %v16199_v2  ;;  %v32583_v54 = vshrl.u32 %v29694_v23, 16 }
 0xc16   :  { %v16194_v57 = vsel %vm16114_vm1, %v16189_v51, %v16193_v40  ;;  %v16204_v38 = vrot.slane %v32580_v12, 6  ;;  %v16208_v56 = vrot.slane %v32582_v4, 6  ;;  %v32585_v33 = vshrl.u32 %v29710_v16, 16 }
 0xc17   :  { %21585 = vmatmul.mubr.msk.bf16.gmra.mrb[24].mxu1 %vm9029_vm7, %v16170_v6  ;;  %v16197_v6 = vor.u32 %v16196_v35, %v16195_v53  ;;  %v16211_v62 = vrot.slane %v32583_v54, 5  ;;  %v32586_v51 = vshll.u32 %v29710_v16, 16  ;;  %v32587_v0 = vshrl.u32 %v29714_v24, 16 }
 0xc18   :  { %21588 = vmatprep.mubr.msk.bf16.mxu1 %vm9029_vm7, %v16174_v3  ;;  %v16205_v22 = vor.u32 %v16204_v38, %v16203_v63  ;;  %v32588_v42 = vshll.u32 %v29714_v24, 16  ;;  %v32589_v34 = vshrl.u32 %v29730_v37, 16  ;;  %v32590_v35 = vshll.u32 %v29730_v37, 16 }
 0xc19   :  { %v16198_v3 = vsel %vm16114_vm1, %v16193_v40, %v16197_v6  ;;  %v16202_v52 = vsel %vm16114_vm1, %v16197_v6, %v16201_v29  ;;  %v32592_v25 = vshll.u32 %v29734_v58, 16  ;;  %v32593_v15 = vshrl.u32 %v29750_v18, 16 }
 0xc1a   :  { %v16206_v11 = vsel %vm16114_vm1, %v16201_v29, %v16205_v22  ;;  %v16220_v1 = vrot.slane %v32588_v42, 6  ;;  %v16223_v16 = vrot.slane %v32589_v34, 5  ;;  %v16224_v40 = vrot.slane %v32590_v35, 6 }
 0xc1b   :  { %v16228_v2 = vrot.slane %v32592_v25, 6  ;;  %v16231_v37 = vrot.slane %v32593_v15, 5  ;;  %v32594_v63 = vshll.u32 %v29750_v18, 16  ;;  %v32595_v29 = vshrl.u32 %v29754_v48, 16 }
 0xc1c   :  { %v16225_v31 = vor.u32 %v16224_v40, %v16223_v16  ;;  %v32606_v34 = vshll.u32 %v29810_v26, 16  ;;  %v32607_v40 = vshrl.u32 %v29814_v60, 16 }
 0xc1d   :  { %v16232_v12 = vrot.slane %v32594_v63, 6  ;;  %v32612_v63 = vshll.u32 %v29834_v39, 16 }
 0xc1e   :  { %v16256_v16 = vrot.slane %v32606_v34, 6 }
 0xc1f   :  { %21589 = vmatmul.mubr.msk.bf16.gmra.mrb[28].mxu1 %vm9029_vm7, %v16178_v49  ;;  %v32581_v49 = vshrl.u32 %v29690_v19, 16  ;;  %v16215_v19 = vrot.slane %v32585_v33, 5 }
 0xc20   :  { %21592 = vmatprep.mubr.msk.bf16.mxu1 %vm9029_vm7, %v16182_v45  ;;  %v32584_v45 = vshll.u32 %v29694_v23, 16  ;;  %v16219_v23 = vrot.slane %v32587_v0, 5  ;;  %v32603_v0 = vshrl.u32 %v29794_v14, 16 }
 0xc21   :  { %v16207_v17 = vrot.slane %v32581_v49, 5  ;;  %v16233_v49 = vor.u32 %v16232_v12, %v16231_v37  ;;  %v32611_v37 = vshrl.u32 %v29834_v39, 16  ;;  %v16268_v12 = vrot.slane %v32612_v63, 6 }
 0xc22   :  { %v16212_v61 = vrot.slane %v32584_v45, 6  ;;  %v16221_v44 = vor.u32 %v16220_v1, %v16219_v23  ;;  %v32599_v45 = vshrl.u32 %v29774_v21, 16  ;;  %v32604_v23 = vshll.u32 %v29794_v14, 16 }
 0xc23   :  { %v16209_v10 = vor.u32 %v16208_v56, %v16207_v17  ;;  %v32597_v56 = vshrl.u32 %v29770_v20, 16  ;;  %v16259_v14 = vrot.slane %v32607_v40, 5 }
 0xc24   :  { %v16213_v41 = vor.u32 %v16212_v61, %v16211_v62  ;;  %v32600_v61 = vshll.u32 %v29774_v21, 16  ;;  %v16251_v21 = vrot.slane %v32603_v0, 5  ;;  %v16252_v42 = vrot.slane %v32604_v23, 6 }
 0xc25   :  { %v16210_v5 = vsel %vm16114_vm1, %v16205_v22, %v16209_v10  ;;  %v32596_v22 = vshll.u32 %v29754_v48, 16  ;;  %v16239_v18 = vrot.slane %v32597_v56, 5  ;;  %v16243_v48 = vrot.slane %v32599_v45, 5 }
 0xc26   :  { %v16214_v30 = vsel %vm16114_vm1, %v16209_v10, %v16213_v41  ;;  %v16244_v10 = vrot.slane %v32600_v61, 6  ;;  %v32616_v56 = vshll.u32 %v29854_v47, 16  ;;  %v32617_v45 = vshrl.u32 %v29870_v59, 16 }
 0xc27   :  { %21593 = vmatmul.mubr.msk.bf16.gmra.mrb[32].mxu1 %vm9029_vm7, %v16186_v8  ;;  %v16216_v8 = vrot.slane %v32586_v51, 6  ;;  %v32602_v51 = vshll.u32 %v29790_v28, 16  ;;  %v32621_v0 = vshrl.u32 %v29893_v32, 16  ;;  %v16288_v23 = vrot.slane %v14742_v50, 6 }
 0xc28   :  { %21596 = vmatprep.mubr.msk.bf16.mxu1 %vm9029_vm7, %v16190_v36 }
 0xc29   :  { %v16217_v36 = vor.u32 %v16216_v8, %v16215_v19  ;;  %v32601_v19 = vshrl.u32 %v29790_v28, 16  ;;  %v16248_v8 = vrot.slane %v32602_v51, 6 }
 0xc2b   :  { %v16218_v53 = vsel %vm16114_vm1, %v16213_v41, %v16217_v36  ;;  %v16222_v6 = vsel %vm16114_vm1, %v16217_v36, %v16221_v44  ;;  %v16253_v36 = vor.u32 %v16252_v42, %v16251_v21  ;;  %v16287_v21 = vrot.slane %v32621_v0, 5 }
 0xc2f   :  { %21597 = vmatmul.mubr.msk.bf16.gmra.mrb[36].mxu1 %vm9029_vm7, %v16194_v57  ;;  %v32591_v57 = vshrl.u32 %v29734_v58, 16  ;;  %v16235_v58 = vrot.slane %v32595_v29, 5 }
 0xc30   :  { %21600 = vmatprep.mubr.msk.bf16.mxu1 %vm9029_vm7, %v16198_v3  ;;  %v16226_v3 = vsel %vm16114_vm1, %v16221_v44, %v16225_v31 }
 0xc31   :  { %v16227_v24 = vrot.slane %v32591_v57, 5 }
 0xc33   :  { %v16229_v9 = vor.u32 %v16228_v2, %v16227_v24 }
 0xc35   :  { %v16230_v38 = vsel %vm16114_vm1, %v16225_v31, %v16229_v9  ;;  %v16234_v4 = vsel %vm16114_vm1, %v16229_v9, %v16233_v49  ;;  %v32609_v31 = vshrl.u32 %v29830_v43, 16  ;;  %v32610_v9 = vshll.u32 %v29830_v43, 16 }
 0xc37   :  { %21601 = vmatmul.mubr.msk.bf16.gmra.mrb[40].mxu1 %vm9029_vm7, %v16202_v52  ;;  %v16236_v52 = vrot.slane %v32596_v22, 6  ;;  %v32613_v22 = vshrl.u32 %v29850_v13, 16 }
 0xc38   :  { %21604 = vmatprep.mubr.msk.bf16.mxu1 %vm9029_vm7, %v16206_v11  ;;  %v32598_v11 = vshll.u32 %v29770_v20, 16  ;;  %v16247_v20 = vrot.slane %v32601_v19, 5  ;;  %v16110_v19 = vld [vmem:[#allocation2 + $0x168] sm:$0xff] }
 0xc39   :  { %v16237_v17 = vor.u32 %v16236_v52, %v16235_v58  ;;  %v16271_v43 = vrot.slane %v32613_v22, 5  ;;  %v32614_v52 = vshll.u32 %v29850_v13, 16  ;;  %v16279_v13 = vrot.slane %v32617_v45, 5 }
 0xc3a   :  { %v16240_v54 = vrot.slane %v32598_v11, 6  ;;  %v16249_v1 = vor.u32 %v16248_v8, %v16247_v20  ;;  %v16292_v8 = vshrl.u32 %v16110_v19, 16 }
 0xc3b   :  { %v16238_v62 = vsel %vm16114_vm1, %v16233_v49, %v16237_v17  ;;  %v16272_v49 = vrot.slane %v32614_v52, 6 }
 0xc3c   :  { %v16241_v41 = vor.u32 %v16240_v54, %v16239_v18  ;;  %v16254_v35 = vsel %vm16114_vm1, %v16249_v1, %v16253_v36  ;;  %v16276_v18 = vrot.slane %v32616_v56, 6  ;;  %v16294_v42 = vrot.slane %v16292_v8, 5 }
 0xc3d   :  { %v16273_v11 = vor.u32 %v16272_v49, %v16271_v43 }
 0xc3e   :  { %v16242_v33 = vsel %vm16114_vm1, %v16237_v17, %v16241_v41 }
 0xc3f   :  { %21605 = vmatmul.mubr.msk.bf16.gmra.mrb[44].mxu1 %vm9029_vm7, %v16210_v5  ;;  %v16245_v5 = vor.u32 %v16244_v10, %v16243_v48  ;;  %v32618_v48 = vshll.u32 %v29870_v59, 16 }
 0xc40   :  { %21608 = vmatprep.mubr.msk.bf16.mxu1 %vm9029_vm7, %v16214_v30 }
 0xc41   :  { %v16246_v30 = vsel %vm16114_vm1, %v16241_v41, %v16245_v5  ;;  %v16250_v44 = vsel %vm16114_vm1, %v16245_v5, %v16249_v1  ;;  %v16280_v61 = vrot.slane %v32618_v48, 6  ;;  %v32619_v41 = vshrl.u32 %v29874_v27, 16 }
 0xc42   :  { %v32620_v5 = vshll.u32 %v29874_v27, 16 }
 0xc43   :  { %v16281_v20 = vor.u32 %v16280_v61, %v16279_v13 }
 0xc47   :  { %21609 = vmatmul.mubr.msk.bf16.gmra.mrb[48].mxu1 %vm9029_vm7, %v16218_v53  ;;  %v32605_v53 = vshrl.u32 %v29810_v26, 16  ;;  %v16263_v26 = vrot.slane %v32609_v31, 5 }
 0xc48   :  { %21612 = vmatprep.mubr.msk.bf16.mxu1 %vm9029_vm7, %v16222_v6  ;;  %v32608_v6 = vshll.u32 %v29814_v60, 16  ;;  %v16267_v60 = vrot.slane %v32611_v37, 5 }
 0xc49   :  { %v16255_v28 = vrot.slane %v32605_v53, 5 }
 0xc4a   :  { %v16260_v57 = vrot.slane %v32608_v6, 6  ;;  %v16269_v29 = vor.u32 %v16268_v12, %v16267_v60  ;;  %v30293_v6 = vld [vmem:[%s31298_s6] ss:$0 sm:$0xff] }
 0xc4b   :  { %v16257_v24 = vor.u32 %v16256_v16, %v16255_v28 }
 0xc4c   :  { %v16261_v25 = vor.u32 %v16260_v57, %v16259_v14 }
 0xc4d   :  { %v16258_v2 = vsel %vm16114_vm1, %v16253_v36, %v16257_v24  ;;  %v16289_v36 = vor.u32 %v16288_v23, %v16287_v21 }
 0xc4e   :  { %v16262_v15 = vsel %vm16114_vm1, %v16257_v24, %v16261_v25 }
 0xc4f   :  { %21613 = vmatmul.mubr.msk.bf16.gmra.mrb[52].mxu1 %vm9029_vm7, %v16226_v3  ;;  %v16264_v3 = vrot.slane %v32610_v9, 6 }
 0xc50   :  { %21616 = vmatprep.mubr.msk.bf16.mxu1 %vm9029_vm7, %v16230_v38 }
 0xc51   :  { %v16265_v38 = vor.u32 %v16264_v3, %v16263_v26 }
 0xc53   :  { %v16266_v58 = vsel %vm16114_vm1, %v16261_v25, %v16265_v38  ;;  %v16270_v17 = vsel %vm16114_vm1, %v16265_v38, %v16269_v29 }
 0xc57   :  { %21617 = vmatmul.mubr.msk.bf16.gmra.mrb[56].mxu1 %vm9029_vm7, %v16234_v4  ;;  %v32615_v4 = vshrl.u32 %v29854_v47, 16  ;;  %v16283_v47 = vrot.slane %v32619_v41, 5 }
 0xc58   :  { %21620 = vmatprep.mubr.msk.bf16.mxu1 %vm9029_vm7, %v16238_v62  ;;  %v16274_v62 = vsel %vm16114_vm1, %v16269_v29, %v16273_v11 }
 0xc59   :  { %v16275_v39 = vrot.slane %v32615_v4, 5 }
 0xc5b   :  { %v16277_v54 = vor.u32 %v16276_v18, %v16275_v39 }
 0xc5d   :  { %v16278_v10 = vsel %vm16114_vm1, %v16273_v11, %v16277_v54  ;;  %v16282_v59 = vsel %vm16114_vm1, %v16277_v54, %v16281_v20 }
 0xc5f   :  { %21621 = vmatmul.mubr.msk.bf16.gmra.mrb[60].mxu1 %vm9029_vm7, %v16242_v33  ;;  %v16284_v33 = vrot.slane %v32620_v5, 6 }
 0xc60   :  { %21624 = vmatprep.mubr.msk.bf16.mxu1 %vm9029_vm7, %v16246_v30  ;;  %v16295_v30 = vshll.u32 %v16110_v19, 16 }
 0xc61   :  { %v16285_v51 = vor.u32 %v16284_v33, %v16283_v47 }
 0xc62   :  { %v16297_v1 = vrot.slane %v16295_v30, 6 }
 0xc63   :  { %v16286_v27 = vsel %vm16114_vm1, %v16281_v20, %v16285_v51  ;;  %v16290_v53 = vsel %vm16114_vm1, %v16285_v51, %v16289_v36 }
 0xc67   :  { %21625 = vmatmul.mubr.msk.bf16.gmra.mrb[64].mxu1 %vm9029_vm7, %v16250_v44  ;;  %v16298_v44 = vor.u32 %v16297_v1, %v16294_v42 }
 0xc68   :  { %21628 = vmatprep.mubr.msk.bf16.mxu1 %vm9029_vm7, %v16254_v35 }
 0xc69   :  { %v16299_v28 = vsel %vm16114_vm1, %v16289_v36, %v16298_v44 }
 0xc6f   :  { %21629 = vmatmul.mubr.msk.bf16.gmra.mrb[68].mxu1 %vm9029_vm7, %v16258_v2 }
 0xc70   :  { %21632 = vmatprep.mubr.msk.bf16.mxu1 %vm9029_vm7, %v16262_v15 }
 0xc77   :  { %21633 = vmatmul.mubr.msk.bf16.gmra.mrb[72].mxu1 %vm9029_vm7, %v16266_v58 }
 0xc78   :  { %21636 = vmatprep.mubr.msk.bf16.mxu1 %vm9029_vm7, %v16270_v17 }
 0xc7f   :  { %21637 = vmatmul.mubr.msk.bf16.gmra.mrb[76].mxu1 %vm9029_vm7, %v16274_v62 }
 0xc80   :  { %21640 = vmatprep.mubr.msk.bf16.mxu1 %vm9029_vm7, %v16278_v10 }
 0xc87   :  { %21641 = vmatmul.mubr.msk.bf16.gmra.mrb[80].mxu1 %vm9029_vm7, %v16282_v59 }
 0xc88   :  { %21644 = vmatprep.mubr.msk.bf16.mxu1 %vm9029_vm7, %v16286_v27 }
 0xc8f   :  { %21645 = vmatmul.mubr.msk.bf16.gmra.mrb[84].mxu1 %vm9029_vm7, %v16290_v53 }
 0xc90   :  { %21648 = vmatprep.mubr.msk.bf16.mxu1 %vm9029_vm7, %v16299_v28 }
 0xc97   :  { %21649 = vmatmul.mubr.msk.bf16.gmra.mrb[120].mxu1 %vm9029_vm7, %v16298_v44  ;;  %vm18107_vm7 = vcmask 74752  }
 0xcba   :  { %v21560_v32 = vpop.f32.mrb[116].mxu1 }
 0xcbb   :  { %v30282_v50 = vadd.f32 %v21560_v32, %v30080_v7  ;;  %v16009_v34 = vpop.f32.mrb[117].mxu1 }
 0xcbc   :  { %v30285_v16 = vadd.f32 %v16009_v34, %v30083_v55  ;;  %v21561_v35 = vpop.f32.mrb[118].mxu1 }
 0xcbd   :  { %v16012_v40 = vpop.f32.mrb[119].mxu1 }
 0xcbe   :  { %v30288_v14 = vadd.f32 %v16012_v40, %v30086_v46 }
 0xcc2   :  { %v21566_v57 = vpop.f32.mrb[4].mxu1 }
 0xcc3   :  { %v30296_v24 = vadd.f32 %v21566_v57, %v30293_v6  ;;  %v16472_v7 = vpop.f32.mrb[5].mxu1 }
 0xcc4   :  { %v16916_v25 = vadd.f32 %v30293_v6, %v16472_v7  ;;  %v21567_v55 = vpop.f32.mrb[6].mxu1 }
 0xcc5   :  { %v17005_v2 = vmax.f32 %v30296_v24, 0.0  ;;  %v30301_v31 = vadd.f32 %v21567_v55, %v30293_v6  ;;  %v16475_v46 = vpop.f32.mrb[7].mxu1 }
 0xcc6   :  { %v17003_v26 = vmax.f32 %v16916_v25, 0.0  ;;  %v16917_v9 = vadd.f32 %v30293_v6, %v16475_v46 }
 0xcc7   :  { %17093 = vst.msk [vmem:[#allocation3 + $0x10] sm:$0xff] %vm17090_vm2, %v17005_v2  ;;  %v17006_v3 = vmax.f32 %v30301_v31, 0.0 }
 0xcc8   :  { %17091 = vst.msk [vmem:[#allocation3] sm:$0xff] %vm17090_vm2, %v17003_v26  ;;  %v17004_v15 = vmax.f32 %v16917_v9, 0.0 }
 0xcc9   :  { %17094 = vst.msk [vmem:[#allocation3 + $0x18] sm:$0xff] %vm17090_vm2, %v17006_v3 }
 0xcca   :  { %17092 = vst.msk [vmem:[#allocation3 + $0x8] sm:$0xff] %vm17090_vm2, %v17004_v15  ;;  %v21570_v37 = vpop.f32.mrb[8].mxu1 }
 0xccb   :  { %v30310_v60 = vadd.f32 %v21570_v37, %v30293_v6  ;;  %v16488_v63 = vpop.f32.mrb[9].mxu1 }
 0xccc   :  { %v30313_v12 = vadd.f32 %v30293_v6, %v16488_v63  ;;  %v21571_v38 = vpop.f32.mrb[10].mxu1 }
 0xccd   :  { %v17009_v29 = vmax.f32 %v30310_v60, 0.0  ;;  %v30317_v58 = vadd.f32 %v21571_v38, %v30293_v6  ;;  %v16491_v22 = vpop.f32.mrb[11].mxu1 }
 0xcce   :  { %v17007_v43 = vmax.f32 %v30313_v12, 0.0  ;;  %v30321_v52 = vadd.f32 %v30293_v6, %v16491_v22 }
 0xccf   :  { %17097 = vst.msk [vmem:[#allocation3 + $0x30] sm:$0xff] %vm17090_vm2, %v17009_v29  ;;  %v17010_v49 = vmax.f32 %v30317_v58, 0.0 }
 0xcd0   :  { %17095 = vst.msk [vmem:[#allocation3 + $0x20] sm:$0xff] %vm17090_vm2, %v17007_v43  ;;  %v17008_v17 = vmax.f32 %v30321_v52, 0.0  ;;  %v17356_v11 = vld [vmem:[#allocation3 + $0x12] sm:$0xff] }
 0xcd1   :  { %17098 = vst.msk [vmem:[#allocation3 + $0x38] sm:$0xff] %vm17090_vm2, %v17010_v49  ;;  %v17182_v18 = vld [vmem:[#allocation3 + $0x1] sm:$0xff]  ;;  %v17443_v54 = vld [vmem:[#allocation3 + $0x13] sm:$0xff]  ;;  %v17183_v13 = vld [vmem:[#allocation3 + $0x9] sm:$0xff] }
 0xcd2   :  { %17096 = vst.msk [vmem:[#allocation3 + $0x28] sm:$0xff] %vm17090_vm2, %v17008_v17  ;;  %v21574_v4 = vpop.f32.mrb[12].mxu1  ;;  %v17269_v5 = vmax.f32 %v17003_v26, %v17182_v18  ;;  %v17530_v33 = vmax.f32 %v17356_v11, %v17443_v54  ;;  %v17184_v8 = vld [vmem:[#allocation3 + $0x11] sm:$0xff]  ;;  %v17270_v30 = vmax.f32 %v17004_v15, %v17183_v13 }
 0xcd3   :  { %v30338_v39 = vadd.f32 %v21574_v4, %v30293_v6  ;;  %v16504_v56 = vpop.f32.mrb[13].mxu1  ;;  %v17271_v44 = vmax.f32 %v17005_v2, %v17184_v8 }
 0xcd4   :  { %v30341_v62 = vadd.f32 %v30293_v6, %v16504_v56  ;;  %v21575_v45 = vpop.f32.mrb[14].mxu1  ;;  %v30365_v1 = vmax.f32 %v17269_v5, %v17530_v33 }
 0xcd5   :  { %v17013_v48 = vmax.f32 %v30338_v39, 0.0  ;;  %v30345_v61 = vadd.f32 %v21575_v45, %v30293_v6  ;;  %v16507_v10 = vpop.f32.mrb[15].mxu1 }
 0xcd6   :  { %v17011_v41 = vmax.f32 %v30341_v62, 0.0  ;;  %v30349_v47 = vadd.f32 %v30293_v6, %v16507_v10 }
 0xcd7   :  { %17101 = vst.msk [vmem:[#allocation3 + $0x50] sm:$0xff] %vm17090_vm2, %v17013_v48  ;;  %v17014_v19 = vmax.f32 %v30345_v61, 0.0  ;;  %v17357_v20 = vld [vmem:[#allocation3 + $0x1a] sm:$0xff]  ;;  %v23436_v61 = vmov 1983009808  }
 0xcd8   :  { %v17444_v51 = vld [vmem:[#allocation3 + $0x1b] sm:$0xff]  ;;  %17099 = vst.msk [vmem:[#allocation3 + $0x40] sm:$0xff] %vm17090_vm2, %v17011_v41  ;;  %v17012_v59 = vmax.f32 %v30349_v47, 0.0  ;;  %v17360_v7 = vld [vmem:[#allocation3 + $0x32] sm:$0xff] }
 0xcd9   :  { %v17531_v0 = vmax.f32 %v17357_v20, %v17444_v51  ;;  %v17185_v21 = vld [vmem:[#allocation3 + $0x19] sm:$0xff]  ;;  %17102 = vst.msk [vmem:[#allocation3 + $0x58] sm:$0xff] %vm17090_vm2, %v17014_v19  ;;  %v17358_v23 = vld [vmem:[#allocation3 + $0x22] sm:$0xff]  ;;  %v17359_v27 = vld [vmem:[#allocation3 + $0x2a] sm:$0xff] }
 0xcda   :  { %17100 = vst.msk [vmem:[#allocation3 + $0x48] sm:$0xff] %vm17090_vm2, %v17012_v59  ;;  %v21578_v42 = vpop.f32.mrb[16].mxu1  ;;  %v17445_v53 = vld [vmem:[#allocation3 + $0x23] sm:$0xff]  ;;  %v17446_v28 = vld [vmem:[#allocation3 + $0x2b] sm:$0xff]  ;;  %v17272_v35 = vmax.f32 %v17006_v3, %v17185_v21  ;;  %v17447_v25 = vld [vmem:[#allocation3 + $0x33] sm:$0xff] }
 0xcdb   :  { %v30367_v36 = vmax.f32 %v17270_v30, %v17531_v0  ;;  %v30370_v32 = vadd.f32 %v21578_v42, %v30293_v6  ;;  %v16520_v34 = vpop.f32.mrb[17].mxu1  ;;  %v17532_v40 = vmax.f32 %v17358_v23, %v17445_v53  ;;  %v17533_v57 = vmax.f32 %v17359_v27, %v17446_v28  ;;  %v17186_v24 = vld [vmem:[#allocation3 + $0x21] sm:$0xff]  ;;  %v17187_v2 = vld [vmem:[#allocation3 + $0x29] sm:$0xff]  ;;  %v17188_v45 = vld [vmem:[#allocation3 + $0x31] sm:$0xff] }
 0xcdc   :  { %v30373_v55 = vadd.f32 %v30293_v6, %v16520_v34  ;;  %v21579_v31 = vpop.f32.mrb[18].mxu1  ;;  %v17273_v22 = vmax.f32 %v17007_v43, %v17186_v24  ;;  %v17534_v4 = vmax.f32 %v17360_v7, %v17447_v25  ;;  %v17274_v13 = vmax.f32 %v17008_v17, %v17187_v2 }
 0xcdd   :  { %v21674_v46 = vpack.c.bf16 %v30367_v36, %v30365_v1  ;;  %v17017_v26 = vmax.f32 %v30370_v32, 0.0  ;;  %v30379_v9 = vadd.f32 %v21579_v31, %v30293_v6  ;;  %v16523_v15 = vpop.f32.mrb[19].mxu1  ;;  %v30381_v3 = vmax.f32 %v17271_v44, %v17532_v40 }
 0xcde   :  { %v30383_v37 = vmax.f32 %v17272_v35, %v17533_v57  ;;  %v17015_v63 = vmax.f32 %v30373_v55, 0.0  ;;  %v30387_v38 = vadd.f32 %v30293_v6, %v16523_v15  ;;  %v30409_v17 = vmax.f32 %v17273_v22, %v17534_v4 }
 0xcdf   :  { %17105 = vst.msk [vmem:[#allocation3 + $0x70] sm:$0xff] %vm17090_vm2, %v17017_v26  ;;  %v17018_v56 = vmax.f32 %v30379_v9, 0.0  ;;  %v17361_v11 = vld [vmem:[#allocation3 + $0x3a] sm:$0xff]  ;;  %v17275_v30 = vmax.f32 %v17009_v29, %v17188_v45 }
 0xce0   :  { %v21678_v18 = vpack.c.bf16 %v30383_v37, %v30381_v3  ;;  %v17448_v54 = vld [vmem:[#allocation3 + $0x3b] sm:$0xff]  ;;  %17103 = vst.msk [vmem:[#allocation3 + $0x60] sm:$0xff] %vm17090_vm2, %v17015_v63  ;;  %v17016_v12 = vmax.f32 %v30387_v38, 0.0  ;;  %v17364_v5 = vld [vmem:[#allocation3 + $0x52] sm:$0xff] }
 0xce1   :  { %v17535_v43 = vmax.f32 %v17361_v11, %v17448_v54  ;;  %v17189_v10 = vld [vmem:[#allocation3 + $0x39] sm:$0xff]  ;;  %17106 = vst.msk [vmem:[#allocation3 + $0x78] sm:$0xff] %vm17090_vm2, %v17018_v56  ;;  %v17362_v33 = vld [vmem:[#allocation3 + $0x42] sm:$0xff]  ;;  %v17363_v20 = vld [vmem:[#allocation3 + $0x4a] sm:$0xff] }
 0xce2   :  { %v17451_v51 = vld [vmem:[#allocation3 + $0x53] sm:$0xff]  ;;  %17104 = vst.msk [vmem:[#allocation3 + $0x68] sm:$0xff] %vm17090_vm2, %v17016_v12  ;;  %v21582_v52 = vpop.f32.mrb[20].mxu1  ;;  %v17449_v0 = vld [vmem:[#allocation3 + $0x43] sm:$0xff]  ;;  %v17450_v21 = vld [vmem:[#allocation3 + $0x4b] sm:$0xff]  ;;  %v17276_v44 = vmax.f32 %v17010_v49, %v17189_v10 }
 0xce3   :  { %v30411_v8 = vmax.f32 %v17274_v13, %v17535_v43  ;;  %v17190_v23 = vld [vmem:[#allocation3 + $0x41] sm:$0xff]  ;;  %v30416_v27 = vadd.f32 %v21582_v52, %v30293_v6  ;;  %v16536_v42 = vpop.f32.mrb[21].mxu1  ;;  %v17536_v53 = vmax.f32 %v17362_v33, %v17449_v0  ;;  %v17537_v28 = vmax.f32 %v17363_v20, %v17450_v21  ;;  %v17191_v57 = vld [vmem:[#allocation3 + $0x49] sm:$0xff]  ;;  %v17192_v15 = vld [vmem:[#allocation3 + $0x51] sm:$0xff] }
 0xce4   :  { %v30421_v34 = vadd.f32 %v30293_v6, %v16536_v42  ;;  %v21583_v35 = vpop.f32.mrb[22].mxu1  ;;  %v17277_v29 = vmax.f32 %v17011_v41, %v17190_v23  ;;  %v17538_v40 = vmax.f32 %v17364_v5, %v17451_v51  ;;  %v17278_v54 = vmax.f32 %v17012_v59, %v17191_v57 }
 0xce5   :  { %v17021_v24 = vmax.f32 %v30416_v27, 0.0  ;;  %v30429_v7 = vadd.f32 %v21583_v35, %v30293_v6  ;;  %v16539_v58 = vpop.f32.mrb[23].mxu1  ;;  %v30431_v49 = vmax.f32 %v17275_v30, %v17536_v53  ;;  %v30433_v25 = vmax.f32 %v17276_v44, %v17537_v28 }
 0xce6   :  { %v17019_v31 = vmax.f32 %v30421_v34, 0.0  ;;  %v30437_v2 = vadd.f32 %v30293_v6, %v16539_v58  ;;  %v30454_v5 = vmax.f32 %v17277_v29, %v17538_v40  ;;  %v17279_v33 = vmax.f32 %v17013_v48, %v17192_v15 }
 0xce7   :  { %17109 = vst.msk [vmem:[#allocation3 + $0x90] sm:$0xff] %vm17090_vm2, %v17021_v24  ;;  %v17022_v62 = vmax.f32 %v30429_v7, 0.0  ;;  %v17365_v22 = vld [vmem:[#allocation3 + $0x5a] sm:$0xff]  ;;  %v17712_v21 = vlaneseq }
 0xce8   :  { %v17452_v4 = vld [vmem:[#allocation3 + $0x5b] sm:$0xff]  ;;  %17107 = vst.msk [vmem:[#allocation3 + $0x80] sm:$0xff] %vm17090_vm2, %v17019_v31  ;;  %v17020_v45 = vmax.f32 %v30437_v2, 0.0  ;;  %v17368_v43 = vld [vmem:[#allocation3 + $0x72] sm:$0xff] }
 0xce9   :  { %v17193_v11 = vld [vmem:[#allocation3 + $0x59] sm:$0xff]  ;;  %v17539_v13 = vmax.f32 %v17365_v22, %v17452_v4  ;;  %17110 = vst.msk [vmem:[#allocation3 + $0x98] sm:$0xff] %vm17090_vm2, %v17022_v62  ;;  %v17366_v47 = vld [vmem:[#allocation3 + $0x62] sm:$0xff]  ;;  %v17367_v59 = vld [vmem:[#allocation3 + $0x6a] sm:$0xff]  ;;  %v17713_v40 = vshrl.u32 %v17712_v21, 7 }
 0xcea   :  { %v17455_v10 = vld [vmem:[#allocation3 + $0x73] sm:$0xff]  ;;  %17108 = vst.msk [vmem:[#allocation3 + $0x88] sm:$0xff] %vm17090_vm2, %v17020_v45  ;;  %v21586_v20 = vpop.f32.mrb[24].mxu1  ;;  %v17280_v52 = vmax.f32 %v17014_v19, %v17193_v11  ;;  %v17453_v30 = vld [vmem:[#allocation3 + $0x63] sm:$0xff]  ;;  %v17454_v0 = vld [vmem:[#allocation3 + $0x6b] sm:$0xff]  ;;  %v17710_v19 = vunpack.c.l.s4 %v23436_v61 }
 0xceb   :  { %v30461_v51 = vmax.f32 %v17278_v54, %v17539_v13  ;;  %v30466_v23 = vadd.f32 %v21586_v20, %v30293_v6  ;;  %v16552_v39 = vpop.f32.mrb[25].mxu1  ;;  %v17540_v48 = vmax.f32 %v17366_v47, %v17453_v30  ;;  %v17541_v42 = vmax.f32 %v17367_v59, %v17454_v0  ;;  %v17194_v44 = vld [vmem:[#allocation3 + $0x61] sm:$0xff]  ;;  %v17195_v57 = vld [vmem:[#allocation3 + $0x69] sm:$0xff] }
 0xcec   :  { %v17542_v53 = vmax.f32 %v17368_v43, %v17455_v10  ;;  %v30469_v28 = vadd.f32 %v30293_v6, %v16552_v39  ;;  %v21587_v35 = vpop.f32.mrb[26].mxu1  ;;  %v17281_v43 = vmax.f32 %v17015_v63, %v17194_v44  ;;  %v17196_v10 = vld [vmem:[#allocation3 + $0x71] sm:$0xff]  ;;  %v17711_v47 = vunpack.c.0.s8 %v17710_v19 }
 0xced   :  { %v17025_v58 = vmax.f32 %v30466_v23, 0.0  ;;  %v30475_v15 = vadd.f32 %v21587_v35, %v30293_v6  ;;  %v16555_v22 = vpop.f32.mrb[27].mxu1  ;;  %v30477_v4 = vmax.f32 %v17279_v33, %v17540_v48  ;;  %v30479_v11 = vmax.f32 %v17280_v52, %v17541_v42  ;;  %v30496_v30 = vld [vmem:[%s31294_s2] sm:$0xff] }
 0xcee   :  { %v17023_v54 = vmax.f32 %v30469_v28, 0.0  ;;  %v30483_v13 = vadd.f32 %v30293_v6, %v16555_v22  ;;  %v17282_v55 = vmax.f32 %v17016_v12, %v17195_v57  ;;  %v30504_v39 = vsub.s32 %v17711_v47, %v17713_v40 }
 0xcef   :  { %17113 = vst.msk [vmem:[#allocation3 + $0xb0] sm:$0xff] %vm17090_vm2, %v17025_v58  ;;  %v17026_v59 = vmax.f32 %v30475_v15, 0.0  ;;  %v17369_v20 = vld [vmem:[#allocation3 + $0x7a] sm:$0xff]  ;;  %v30512_v12 = vmax.f32 %v17281_v43, %v17542_v53  ;;  %v17283_v61 = vmax.f32 %v17017_v26, %v17196_v10 }
 0xcf0   :  { %v17456_v52 = vld [vmem:[#allocation3 + $0x7b] sm:$0xff]  ;;  %17111 = vst.msk [vmem:[#allocation3 + $0xa0] sm:$0xff] %vm17090_vm2, %v17023_v54  ;;  %v17024_v63 = vmax.f32 %v30483_v13, 0.0  ;;  %v17372_v48 = vld [vmem:[#allocation3 + $0x92] sm:$0xff]  ;;  %v30520_v22 = vrot.slane %v30496_v30, %v30504_v39 }
 0xcf1   :  { %v17543_v0 = vmax.f32 %v17369_v20, %v17456_v52  ;;  %v17197_v21 = vld [vmem:[#allocation3 + $0x79] sm:$0xff]  ;;  %17114 = vst.msk [vmem:[#allocation3 + $0xb8] sm:$0xff] %vm17090_vm2, %v17026_v59  ;;  %v17370_v44 = vld [vmem:[#allocation3 + $0x82] sm:$0xff]  ;;  %v17371_v19 = vld [vmem:[#allocation3 + $0x8a] sm:$0xff] }
 0xcf2   :  { %v17459_v42 = vld [vmem:[#allocation3 + $0x93] sm:$0xff]  ;;  %17112 = vst.msk [vmem:[#allocation3 + $0xa8] sm:$0xff] %vm17090_vm2, %v17024_v63  ;;  %v21590_v38 = vpop.f32.mrb[28].mxu1  ;;  %v17457_v40 = vld [vmem:[#allocation3 + $0x83] sm:$0xff]  ;;  %v17458_v57 = vld [vmem:[#allocation3 + $0x8b] sm:$0xff]  ;;  %v17284_v53 = vmax.f32 %v17018_v56, %v17197_v21  ;;  %v17723_v33 = vcombine.high %v30520_v22, %v30520_v22 }
 0xcf3   :  { %v30514_v35 = vmax.f32 %v17282_v55, %v17543_v0  ;;  %v30523_v47 = vadd.f32 %v21590_v38, %v30293_v6  ;;  %v16568_v20 = vpop.f32.mrb[29].mxu1  ;;  %v17198_v52 = vld [vmem:[#allocation3 + $0x81] sm:$0xff]  ;;  %v17544_v43 = vmax.f32 %v17370_v44, %v17457_v40  ;;  %v17545_v55 = vmax.f32 %v17371_v19, %v17458_v57  ;;  %v17199_v38 = vld [vmem:[#allocation3 + $0x89] sm:$0xff]  ;;  %v17200_v57 = vld [vmem:[#allocation3 + $0x91] sm:$0xff] }
 0xcf4   :  { %v30528_v32 = vadd.f32 %v30293_v6, %v16568_v20  ;;  %v21591_v26 = vpop.f32.mrb[30].mxu1  ;;  %v17546_v10 = vmax.f32 %v17372_v48, %v17459_v42  ;;  %v17285_v42 = vmax.f32 %v17019_v31, %v17198_v52  ;;  %17809 = vmatprep.mubr.f32.mxu0 %v17723_v33  ;;  %v17286_v34 = vmax.f32 %v17020_v45, %v17199_v38 }
 0xcf5   :  { %v31847_v29 = vmax.f32 %v30523_v47, 0.0  ;;  %v30536_v41 = vadd.f32 %v21591_v26, %v30293_v6  ;;  %v16571_v9 = vpop.f32.mrb[31].mxu1  ;;  %v30538_v56 = vmax.f32 %v17283_v61, %v17544_v43  ;;  %v30540_v21 = vmax.f32 %v17284_v53, %v17545_v55 }
 0xcf6   :  { %v17027_v44 = vmax.f32 %v30528_v32, 0.0  ;;  %v30544_v48 = vadd.f32 %v30293_v6, %v16571_v9  ;;  %v31844_v53 = vmov 0.0   ;;  %v17633_v45 = vmax.f32 %v17285_v42, %v17546_v10 }
 0xcf7   :  { %17117 = vst.msk [vmem:[#allocation3 + $0xd0] sm:$0xff] %vm17090_vm2, %v31847_v29  ;;  %v31846_v19 = vmax.f32 %v30536_v41, 0.0  ;;  %v17373_v40 = vld [vmem:[#allocation3 + $0x9a] sm:$0xff]  ;;  %17179 = vst.msk [vmem:[#allocation3 + $0x2b4] sm:$0xff] %vm17090_vm2, %v31844_v53  ;;  %v17287_v38 = vmax.f32 %v17021_v24, %v17200_v57 }
 0xcf8   :  { %v17460_v61 = vld [vmem:[#allocation3 + $0x9b] sm:$0xff]  ;;  %17180 = vst.msk [vmem:[#allocation3 + $0x2bc] sm:$0xff] %vm17090_vm2, %v31844_v53  ;;  %17181 = vst.msk [vmem:[#allocation3 + $0x2c4] sm:$0xff] %vm17090_vm2, %v31844_v53  ;;  %v31848_v31 = vmax.f32 %v30544_v48, 0.0  ;;  %v17376_v60 = vld [vmem:[#allocation3 + $0xb2] sm:$0xff] }
 0xcf9   :  { %17115 = vst.msk [vmem:[#allocation3 + $0xc0] sm:$0xff] %vm17090_vm2, %v17027_v44  ;;  %v17547_v33 = vmax.f32 %v17373_v40, %v17460_v61  ;;  %v17201_v52 = vld [vmem:[#allocation3 + $0x99] sm:$0xff]  ;;  %17118 = vst.msk [vmem:[#allocation3 + $0xd8] sm:$0xff] %vm17090_vm2, %v31846_v19  ;;  %v17374_v43 = vld [vmem:[#allocation3 + $0xa2] sm:$0xff] }
 0xcfa   :  { %v17375_v55 = vld [vmem:[#allocation3 + $0xaa] sm:$0xff]  ;;  %17116 = vst.msk [vmem:[#allocation3 + $0xc8] sm:$0xff] %vm17090_vm2, %v31848_v31  ;;  %v21594_v2 = vpop.f32.mrb[32].mxu1  ;;  %v17288_v20 = vmax.f32 %v17022_v62, %v17201_v52  ;;  %v17202_v29 = vld [vmem:[#allocation3 + $0xa1] sm:$0xff]  ;;  %v17463_v31 = vld [vmem:[#allocation3 + $0xb3] sm:$0xff] }
 0xcfb   :  { %v17634_v26 = vmax.f32 %v17286_v34, %v17547_v33  ;;  %v17461_v9 = vld [vmem:[#allocation3 + $0xa3] sm:$0xff]  ;;  %v17462_v53 = vld [vmem:[#allocation3 + $0xab] sm:$0xff]  ;;  %v30575_v40 = vadd.f32 %v21594_v2, %v30293_v6  ;;  %v16584_v61 = vpop.f32.mrb[33].mxu1  ;;  %v17289_v52 = vmax.f32 %v17023_v54, %v17202_v29 }
 0xcfc   :  { %v17548_v0 = vmax.f32 %v17374_v43, %v17461_v9  ;;  %v17549_v19 = vmax.f32 %v17375_v55, %v17462_v53  ;;  %v30580_v10 = vadd.f32 %v30293_v6, %v16584_v61  ;;  %v21595_v42 = vpop.f32.mrb[34].mxu1  ;;  %v17203_v24 = vld [vmem:[#allocation3 + $0xa9] sm:$0xff]  ;;  %v17550_v43 = vmax.f32 %v17376_v60, %v17463_v31 }
 0xcfd   :  { %v21672_v27 = vpack.c.bf16 %v17634_v26, %v17633_v45  ;;  %v17033_v57 = vmax.f32 %v30575_v40, 0.0  ;;  %v30584_v34 = vadd.f32 %v21595_v42, %v30293_v6  ;;  %v16587_v33 = vpop.f32.mrb[35].mxu1  ;;  %v17204_v45 = vld [vmem:[#allocation3 + $0xb1] sm:$0xff]  ;;  %v17290_v26 = vmax.f32 %v17024_v63, %v17203_v24 }
 0xcfe   :  { %v17635_v2 = vmax.f32 %v17287_v38, %v17548_v0  ;;  %v17636_v7 = vmax.f32 %v17288_v20, %v17549_v19  ;;  %v17031_v62 = vmax.f32 %v30580_v10, 0.0  ;;  %v30588_v53 = vadd.f32 %v30293_v6, %v16587_v33 }
 0xcff   :  { %21673 = vmatprep.subr.bf16.mxu0 %v21672_v27  ;;  %17121 = vst.msk [vmem:[#allocation3 + $0xf0] sm:$0xff] %vm17090_vm2, %v17033_v57  ;;  %v17034_v55 = vmax.f32 %v30584_v34, 0.0  ;;  %v17637_v54 = vmax.f32 %v17289_v52, %v17550_v43  ;;  %v17291_v63 = vmax.f32 %v17025_v58, %v17204_v45 }
 0xd00   :  { %21675 = vmatpush3.bf16.msra.mxu0 %v21674_v46  ;;  %v21676_v0 = vpack.c.bf16 %v17636_v7, %v17635_v2  ;;  %v17377_v19 = vld [vmem:[#allocation3 + $0xba] sm:$0xff]  ;;  %17119 = vst.msk [vmem:[#allocation3 + $0xe0] sm:$0xff] %vm17090_vm2, %v17031_v62  ;;  %v17032_v60 = vmax.f32 %v30588_v53, 0.0  ;;  %v17380_v2 = vld [vmem:[#allocation3 + $0xd2] sm:$0xff] }
 0xd01   :  { %v17464_v20 = vld [vmem:[#allocation3 + $0xbb] sm:$0xff]  ;;  %17122 = vst.msk [vmem:[#allocation3 + $0xf8] sm:$0xff] %vm17090_vm2, %v17034_v55  ;;  %v17379_v36 = vld [vmem:[#allocation3 + $0xca] sm:$0xff]  ;;  %v17467_v7 = vld [vmem:[#allocation3 + $0xd3] sm:$0xff] }
 0xd02   :  { %v17551_v28 = vmax.f32 %v17377_v19, %v17464_v20  ;;  %v17205_v29 = vld [vmem:[#allocation3 + $0xb9] sm:$0xff]  ;;  %21677 = vmatprep.subr.bf16.mxu0 %v21676_v0  ;;  %v17378_v1 = vld [vmem:[#allocation3 + $0xc2] sm:$0xff]  ;;  %17120 = vst.msk [vmem:[#allocation3 + $0xe8] sm:$0xff] %vm17090_vm2, %v17032_v60  ;;  %v21598_v46 = vpop.f32.mrb[36].mxu1  ;;  %v17466_v38 = vld [vmem:[#allocation3 + $0xcb] sm:$0xff]  ;;  %v17554_v45 = vmax.f32 %v17380_v2, %v17467_v7 }
 0xd03   :  { %v17465_v31 = vld [vmem:[#allocation3 + $0xc3] sm:$0xff]  ;;  %v30614_v9 = vadd.f32 %v21598_v46, %v30293_v6  ;;  %v16600_v61 = vpop.f32.mrb[37].mxu1  ;;  %v17292_v42 = vmax.f32 %v17026_v59, %v17205_v29  ;;  %v17553_v24 = vmax.f32 %v17379_v36, %v17466_v38  ;;  %v17208_v46 = vld [vmem:[#allocation3 + $0xd1] sm:$0xff] }
 0xd04   :  { %v17638_v13 = vmax.f32 %v17290_v26, %v17551_v28  ;;  %21679 = vmatpush3.bf16.msra.mxu0 %v21678_v18  ;;  %v17552_v27 = vmax.f32 %v17378_v1, %v17465_v31  ;;  %v17206_v33 = vld [vmem:[#allocation3 + $0xc1] sm:$0xff]  ;;  %v30622_v23 = vadd.f32 %v30293_v6, %v16600_v61  ;;  %v21599_v58 = vpop.f32.mrb[38].mxu1  ;;  %v17207_v43 = vld [vmem:[#allocation3 + $0xc9] sm:$0xff]  ;;  %v32622_v28 = vpack.c.bf16 %v30411_v8, %v30409_v17 }
 0xd05   :  { %v17037_v0 = vmax.f32 %v30614_v9, 0.0  ;;  %v30626_v19 = vadd.f32 %v21599_v58, %v30293_v6  ;;  %v16603_v3 = vpop.f32.mrb[39].mxu1  ;;  %v17640_v18 = vmax.f32 %v17292_v42, %v17553_v24  ;;  %v17293_v20 = vmax.f32 %v17027_v44, %v17206_v33 }
 0xd06   :  { %v21680_v52 = vpack.c.bf16 %v17638_v13, %v17637_v54  ;;  %v17639_v37 = vmax.f32 %v17291_v63, %v17552_v27  ;;  %v17035_v15 = vmax.f32 %v30622_v23, 0.0  ;;  %v30630_v59 = vadd.f32 %v30293_v6, %v16603_v3 }
 0xd07   :  { %17125 = vst.msk [vmem:[#allocation3 + $0x110] sm:$0xff] %vm17090_vm2, %v17037_v0  ;;  %v17038_v26 = vmax.f32 %v30626_v19, 0.0  ;;  %v17381_v1 = vld [vmem:[#allocation3 + $0xda] sm:$0xff]  ;;  %v32623_v54 = vmax.f32 %v30544_v48, 0.0  ;;  %v17641_v61 = vmax.f32 %v17293_v20, %v17554_v45  ;;  %v32624_v27 = vmax.f32 %v30523_v47, 0.0 }
 0xd08   :  { %21681 = vmatprep.subr.bf16.mxu0 %v21680_v52  ;;  %v21684_v29 = vpack.c.bf16 %v17640_v18, %v17639_v37  ;;  %v17468_v36 = vld [vmem:[#allocation3 + $0xdb] sm:$0xff]  ;;  %17123 = vst.msk [vmem:[#allocation3 + $0x100] sm:$0xff] %vm17090_vm2, %v17035_v15  ;;  %v17036_v32 = vmax.f32 %v30630_v59, 0.0  ;;  %v17384_v31 = vld [vmem:[#allocation3 + $0xf2] sm:$0xff]  ;;  %v32625_v52 = vpack.c.bf16 %v30433_v25, %v30431_v49 }
 0xd09   :  { %21683 = vmatpush3.bf16.msra.mxu0 %v32622_v28  ;;  %v17294_v13 = vmax.f32 %v32623_v54, %v17207_v43  ;;  %v17555_v44 = vmax.f32 %v17381_v1, %v17468_v36  ;;  %v17209_v63 = vld [vmem:[#allocation3 + $0xd9] sm:$0xff]  ;;  %17126 = vst.msk [vmem:[#allocation3 + $0x118] sm:$0xff] %vm17090_vm2, %v17038_v26  ;;  %v17382_v17 = vld [vmem:[#allocation3 + $0xe2] sm:$0xff]  ;;  %v17383_v8 = vld [vmem:[#allocation3 + $0xea] sm:$0xff]  ;;  %v17295_v24 = vmax.f32 %v32624_v27, %v17208_v46  ;;  %v32626_v43 = vmax.f32 %v30536_v41, 0.0 }
 0xd0a   :  { %21685 = vmatprep.subr.bf16.mxu0 %v21684_v29  ;;  %v17471_v38 = vld [vmem:[#allocation3 + $0xf3] sm:$0xff]  ;;  %17124 = vst.msk [vmem:[#allocation3 + $0x108] sm:$0xff] %vm17090_vm2, %v17036_v32  ;;  %v21602_v48 = vpop.f32.mrb[40].mxu1  ;;  %v17469_v33 = vld [vmem:[#allocation3 + $0xe3] sm:$0xff]  ;;  %v17470_v2 = vld [vmem:[#allocation3 + $0xeb] sm:$0xff]  ;;  %v17708_v1 = vcombine.high %v30496_v30, %v30496_v30 }
 0xd0b   :  { %v17642_v42 = vmax.f32 %v17294_v13, %v17555_v44  ;;  %v30656_v7 = vadd.f32 %v21602_v48, %v30293_v6  ;;  %v16616_v58 = vpop.f32.mrb[41].mxu1  ;;  %v17296_v3 = vmax.f32 %v32626_v43, %v17209_v63  ;;  %v17556_v37 = vmax.f32 %v17382_v17, %v17469_v33  ;;  %v17210_v20 = vld [vmem:[#allocation3 + $0xe1] sm:$0xff]  ;;  %v17211_v36 = vld [vmem:[#allocation3 + $0xe9] sm:$0xff] }
 0xd0c   :  { %v17557_v18 = vmax.f32 %v17383_v8, %v17470_v2  ;;  %v30664_v45 = vadd.f32 %v30293_v6, %v16616_v58  ;;  %v21603_v47 = vpop.f32.mrb[42].mxu1  ;;  %v17558_v29 = vmax.f32 %v17384_v31, %v17471_v38  ;;  %v17297_v63 = vmax.f32 %v17031_v62, %v17210_v20 }
 0xd0d   :  { %21687 = vmatpush3.bf16.msra.mxu0 %v32625_v52  ;;  %v21688_v28 = vpack.c.bf16 %v17642_v42, %v17641_v61  ;;  %v17041_v46 = vmax.f32 %v30656_v7, 0.0  ;;  %v30670_v49 = vadd.f32 %v21603_v47, %v30293_v6  ;;  %v16619_v25 = vpop.f32.mrb[43].mxu1  ;;  %v17643_v41 = vmax.f32 %v17295_v24, %v17556_v37  ;;  %v17212_v61 = vld [vmem:[#allocation3 + $0xf1] sm:$0xff] }
 0xd0e   :  { %v17644_v54 = vmax.f32 %v17296_v3, %v17557_v18  ;;  %v17039_v13 = vmax.f32 %v30664_v45, 0.0  ;;  %v30674_v44 = vadd.f32 %v30293_v6, %v16619_v25  ;;  %v30679_v30 = vrot.slane %v17708_v1, %v30504_v39 }
 0xd0f   :  { %21689 = vmatprep.subr.bf16.mxu0 %v21688_v28  ;;  %17129 = vst.msk [vmem:[#allocation3 + $0x130] sm:$0xff] %vm17090_vm2, %v17041_v46  ;;  %v17042_v31 = vmax.f32 %v30670_v49, 0.0  ;;  %v32627_v17 = vpack.c.bf16 %v30461_v51, %v30454_v5  ;;  %v17385_v38 = vld [vmem:[#allocation3 + $0xfa] sm:$0xff]  ;;  %v17298_v10 = vmax.f32 %v17032_v60, %v17211_v36  ;;  %v17645_v60 = vmax.f32 %v17297_v63, %v17558_v29 }
 0xd10   :  { %v21692_v8 = vpack.c.bf16 %v17644_v54, %v17643_v41  ;;  %v17472_v48 = vld [vmem:[#allocation3 + $0xfb] sm:$0xff]  ;;  %17127 = vst.msk [vmem:[#allocation3 + $0x120] sm:$0xff] %vm17090_vm2, %v17039_v13  ;;  %v17040_v39 = vmax.f32 %v30674_v44, 0.0  ;;  %v17724_v27 = vcombine.high %v30679_v30, %v30679_v30  ;;  %v17299_v33 = vmax.f32 %v17033_v57, %v17212_v61  ;;  %v17388_v28 = vld [vmem:[#allocation3 + $0x112] sm:$0xff] }
 0xd11   :  { %21691 = vmatpush3.bf16.msra.mxu0 %v32627_v17  ;;  %v17559_v62 = vmax.f32 %v17385_v38, %v17472_v48  ;;  %v17213_v42 = vld [vmem:[#allocation3 + $0xf9] sm:$0xff]  ;;  %17130 = vst.msk [vmem:[#allocation3 + $0x138] sm:$0xff] %vm17090_vm2, %v17042_v31  ;;  %v17386_v5 = vld [vmem:[#allocation3 + $0x102] sm:$0xff]  ;;  %v17387_v51 = vld [vmem:[#allocation3 + $0x10a] sm:$0xff]  ;;  %v32628_v3 = vpack.c.bf16 %v30479_v11, %v30477_v4  ;;  %v32629_v48 = vpack.c.bf16 %v30514_v35, %v30512_v12 }
 0xd12   :  { %21693 = vmatprep.subr.bf16.mxu0 %v21692_v8  ;;  %17128 = vst.msk [vmem:[#allocation3 + $0x128] sm:$0xff] %vm17090_vm2, %v17040_v39  ;;  %v21606_v53 = vpop.f32.mrb[44].mxu1  ;;  %v17473_v2 = vld [vmem:[#allocation3 + $0x103] sm:$0xff]  ;;  %v17474_v58 = vld [vmem:[#allocation3 + $0x10b] sm:$0xff]  ;;  %17879 = vmatprep.mubr.f32.mxu1 %v17724_v27  ;;  %v17300_v37 = vmax.f32 %v17034_v55, %v17213_v42  ;;  %v17475_v40 = vld [vmem:[#allocation3 + $0x113] sm:$0xff] }
 0xd13   :  { %v17646_v24 = vmax.f32 %v17298_v10, %v17559_v62  ;;  %v30705_v52 = vadd.f32 %v21606_v53, %v30293_v6  ;;  %v16632_v43 = vpop.f32.mrb[45].mxu1  ;;  %v17560_v18 = vmax.f32 %v17386_v5, %v17473_v2  ;;  %v17561_v20 = vmax.f32 %v17387_v51, %v17474_v58  ;;  %v17214_v47 = vld [vmem:[#allocation3 + $0x101] sm:$0xff]  ;;  %v17215_v36 = vld [vmem:[#allocation3 + $0x109] sm:$0xff]  ;;  %v17216_v23 = vld [vmem:[#allocation3 + $0x111] sm:$0xff] }
 0xd14   :  { %v30713_v57 = vadd.f32 %v30293_v6, %v16632_v43  ;;  %v21607_v29 = vpop.f32.mrb[46].mxu1  ;;  %v17301_v63 = vmax.f32 %v17035_v15, %v17214_v47  ;;  %v17562_v17 = vmax.f32 %v17388_v28, %v17475_v40  ;;  %v19131_v8 = vld.sshfl [vmem:[%s31294_s2 + $0x8] sm:$0x33 pattern:$0x76325410]  ;;  %v17302_v15 = vmax.f32 %v17036_v32, %v17215_v36 }
 0xd15   :  { %21695 = vmatpush3.bf16.msra.mxu0 %v32628_v3  ;;  %v21696_v1 = vpack.c.bf16 %v17646_v24, %v17645_v60  ;;  %v17045_v25 = vmax.f32 %v30705_v52, 0.0  ;;  %v30717_v41 = vadd.f32 %v21607_v29, %v30293_v6  ;;  %v16635_v4 = vpop.f32.mrb[47].mxu1  ;;  %v17647_v11 = vmax.f32 %v17299_v33, %v17560_v18 }
 0xd16   :  { %v17648_v34 = vmax.f32 %v17300_v37, %v17561_v20  ;;  %v17043_v55 = vmax.f32 %v30713_v57, 0.0  ;;  %v30721_v54 = vadd.f32 %v30293_v6, %v16635_v4  ;;  %v30747_v32 = vmax.f32 %v17301_v63, %v17562_v17 }
 0xd17   :  { %21697 = vmatprep.subr.bf16.mxu0 %v21696_v1  ;;  %17133 = vst.msk [vmem:[#allocation3 + $0x150] sm:$0xff] %vm17090_vm2, %v17045_v25  ;;  %v17046_v38 = vmax.f32 %v30717_v41, 0.0  ;;  %v17389_v10 = vld [vmem:[#allocation3 + $0x11a] sm:$0xff]  ;;  %v17303_v53 = vmax.f32 %v17037_v0, %v17216_v23  ;;  %v17732_v33 = vcombine.high %v19131_v8, %v19131_v8  ;;  %v32630_v43 = vpack.c.bf16 %v30540_v21, %v30538_v56 }
 0xd18   :  { %v21700_v61 = vpack.c.bf16 %v17648_v34, %v17647_v11  ;;  %v17476_v62 = vld [vmem:[#allocation3 + $0x11b] sm:$0xff]  ;;  %17131 = vst.msk [vmem:[#allocation3 + $0x140] sm:$0xff] %vm17090_vm2, %v17043_v55  ;;  %v17044_v42 = vmax.f32 %v30721_v54, 0.0  ;;  %v17392_v47 = vld [vmem:[#allocation3 + $0x132] sm:$0xff]  ;;  %v31849_v29 = vmov 0.0|0.0  }
 0xd19   :  { %21699 = vmatpush3.bf16.msra.mxu0 %v32629_v48  ;;  %v17563_v27 = vmax.f32 %v17389_v10, %v17476_v62  ;;  %v17217_v5 = vld [vmem:[#allocation3 + $0x119] sm:$0xff]  ;;  %17134 = vst.msk [vmem:[#allocation3 + $0x158] sm:$0xff] %vm17090_vm2, %v17046_v38  ;;  %v17390_v12 = vld [vmem:[#allocation3 + $0x122] sm:$0xff]  ;;  %v17391_v35 = vld [vmem:[#allocation3 + $0x12a] sm:$0xff] }
 0xd1a   :  { %21701 = vmatprep.subr.bf16.mxu0 %v21700_v61  ;;  %17132 = vst.msk [vmem:[#allocation3 + $0x148] sm:$0xff] %vm17090_vm2, %v17044_v42  ;;  %v21610_v59 = vpop.f32.mrb[48].mxu1  ;;  %v17477_v60 = vld [vmem:[#allocation3 + $0x123] sm:$0xff]  ;;  %v17478_v24 = vld [vmem:[#allocation3 + $0x12b] sm:$0xff]  ;;  %v17304_v3 = vmax.f32 %v17038_v26, %v17217_v5  ;;  %v17479_v9 = vld [vmem:[#allocation3 + $0x133] sm:$0xff] }
 0xd1b   :  { %v30749_v51 = vmax.f32 %v17302_v15, %v17563_v27  ;;  %v30754_v2 = vadd.f32 %v21610_v59, %v30293_v6  ;;  %v16648_v58 = vpop.f32.mrb[49].mxu1  ;;  %v17564_v37 = vmax.f32 %v17390_v12, %v17477_v60  ;;  %v17565_v18 = vmax.f32 %v17391_v35, %v17478_v24  ;;  %v17218_v20 = vld [vmem:[#allocation3 + $0x121] sm:$0xff]  ;;  %v17219_v56 = vld [vmem:[#allocation3 + $0x129] sm:$0xff]  ;;  %v17220_v10 = vld [vmem:[#allocation3 + $0x131] sm:$0xff] }
 0xd1c   :  { %v30762_v0 = vadd.f32 %v30293_v6, %v16648_v58  ;;  %v21611_v28 = vpop.f32.mrb[50].mxu1  ;;  %v17305_v34 = vmax.f32 %v17039_v13, %v17218_v20  ;;  %v17566_v63 = vmax.f32 %v17392_v47, %v17479_v9  ;;  %v17306_v45 = vmax.f32 %v17040_v39, %v17219_v56 }
 0xd1d   :  { %21703 = vmatpush3.bf16.msra.mxu0 %v32630_v43  ;;  %v21706_v40 = vpack.c.bf16 %v30749_v51, %v30747_v32  ;;  %v17049_v21 = vmax.f32 %v30754_v2, 0.0  ;;  %v30769_v19 = vadd.f32 %v21611_v28, %v30293_v6  ;;  %v16651_v26 = vpop.f32.mrb[51].mxu1  ;;  %v30771_v1 = vmax.f32 %v17303_v53, %v17564_v37 }
 0xd1e   :  { %21736 = vmatprep.subr.bf16.mxu0 %v31849_v29  ;;  %v30773_v36 = vmax.f32 %v17304_v3, %v17565_v18  ;;  %v17047_v4 = vmax.f32 %v30762_v0, 0.0  ;;  %v30777_v11 = vadd.f32 %v30293_v6, %v16651_v26  ;;  %v30801_v39 = vmax.f32 %v17305_v34, %v17566_v63 }
 0xd1f   :  { %17137 = vst.msk [vmem:[#allocation3 + $0x170] sm:$0xff] %vm17090_vm2, %v17049_v21  ;;  %v17050_v17 = vmax.f32 %v30769_v19, 0.0  ;;  %v17393_v48 = vld [vmem:[#allocation3 + $0x13a] sm:$0xff]  ;;  %v17307_v5 = vmax.f32 %v17041_v46, %v17220_v10 }
 0xd20   :  { %17810 = vmatmul.mubr.f32.vlgmr.msra.gmra.mrb[116].mxu0 %v30520_v22  ;;  %v21710_v8 = vpack.c.bf16 %v30773_v36, %v30771_v1  ;;  %v17480_v61 = vld [vmem:[#allocation3 + $0x13b] sm:$0xff]  ;;  %17135 = vst.msk [vmem:[#allocation3 + $0x160] sm:$0xff] %vm17090_vm2, %v17047_v4  ;;  %v17048_v22 = vmax.f32 %v30777_v11, 0.0  ;;  %v17396_v43 = vld [vmem:[#allocation3 + $0x152] sm:$0xff] }
 0xd21   :  { %19133 = vmatprep.mubr.msk.f32.mxu0 %vm17738_vm3, %v17732_v33  ;;  %v17567_v13 = vmax.f32 %v17393_v48, %v17480_v61  ;;  %v17221_v62 = vld [vmem:[#allocation3 + $0x139] sm:$0xff]  ;;  %17138 = vst.msk [vmem:[#allocation3 + $0x178] sm:$0xff] %vm17090_vm2, %v17050_v17  ;;  %v17394_v23 = vld [vmem:[#allocation3 + $0x142] sm:$0xff]  ;;  %v17395_v15 = vld [vmem:[#allocation3 + $0x14a] sm:$0xff] }
 0xd22   :  { %17136 = vst.msk [vmem:[#allocation3 + $0x168] sm:$0xff] %vm17090_vm2, %v17048_v22  ;;  %v21614_v44 = vpop.f32.mrb[52].mxu1  ;;  %v17481_v12 = vld [vmem:[#allocation3 + $0x143] sm:$0xff]  ;;  %v17482_v35 = vld [vmem:[#allocation3 + $0x14b] sm:$0xff]  ;;  %v17308_v60 = vmax.f32 %v17042_v31, %v17221_v62  ;;  %v17483_v3 = vld [vmem:[#allocation3 + $0x153] sm:$0xff] }
 0xd23   :  { %v30803_v27 = vmax.f32 %v17306_v45, %v17567_v13  ;;  %v30808_v59 = vadd.f32 %v21614_v44, %v30293_v6  ;;  %v16664_v53 = vpop.f32.mrb[53].mxu1  ;;  %v17568_v24 = vmax.f32 %v17394_v23, %v17481_v12  ;;  %v17569_v33 = vmax.f32 %v17395_v15, %v17482_v35  ;;  %v17222_v58 = vld [vmem:[#allocation3 + $0x141] sm:$0xff]  ;;  %v17223_v46 = vld [vmem:[#allocation3 + $0x149] sm:$0xff]  ;;  %v17224_v45 = vld [vmem:[#allocation3 + $0x151] sm:$0xff] }
 0xd24   :  { %v30813_v37 = vadd.f32 %v30293_v6, %v16664_v53  ;;  %v21615_v18 = vpop.f32.mrb[54].mxu1  ;;  %v17309_v26 = vmax.f32 %v17043_v55, %v17222_v58  ;;  %v17570_v34 = vmax.f32 %v17396_v43, %v17483_v3  ;;  %v17311_v44 = vmax.f32 %v17045_v25, %v17224_v45  ;;  %v30858_v35 = vld [vmem:[%s31298_s6] ss:$0 sm:$0xff] }
 0xd25   :  { %v21714_v7 = vpack.c.bf16 %v30803_v27, %v30801_v39  ;;  %v17053_v20 = vmax.f32 %v30808_v59, 0.0  ;;  %v30819_v47 = vadd.f32 %v21615_v18, %v30293_v6  ;;  %v16667_v49 = vpop.f32.mrb[55].mxu1  ;;  %v30821_v31 = vmax.f32 %v17307_v5, %v17568_v24 }
 0xd26   :  { %v30823_v9 = vmax.f32 %v17308_v60, %v17569_v33  ;;  %v17051_v28 = vmax.f32 %v30813_v37, 0.0  ;;  %v30827_v56 = vadd.f32 %v30293_v6, %v16667_v49  ;;  %v17310_v6 = vmax.f32 %v17044_v42, %v17223_v46 }
 0xd27   :  { %17141 = vst.msk [vmem:[#allocation3 + $0x190] sm:$0xff] %vm17090_vm2, %v17053_v20  ;;  %v17054_v63 = vmax.f32 %v30819_v47, 0.0  ;;  %v17397_v61 = vld [vmem:[#allocation3 + $0x15a] sm:$0xff]  ;;  %v30849_v42 = vmax.f32 %v17309_v26, %v17570_v34 }
 0xd28   :  { %v17484_v10 = vld [vmem:[#allocation3 + $0x15b] sm:$0xff]  ;;  %17139 = vst.msk [vmem:[#allocation3 + $0x180] sm:$0xff] %vm17090_vm2, %v17051_v28  ;;  %v17052_v57 = vmax.f32 %v30827_v56, 0.0  ;;  %v17400_v3 = vld [vmem:[#allocation3 + $0x172] sm:$0xff] }
 0xd29   :  { %v17571_v55 = vmax.f32 %v17397_v61, %v17484_v10  ;;  %v17225_v13 = vld [vmem:[#allocation3 + $0x159] sm:$0xff]  ;;  %17142 = vst.msk [vmem:[#allocation3 + $0x198] sm:$0xff] %vm17090_vm2, %v17054_v63  ;;  %v17398_v62 = vld [vmem:[#allocation3 + $0x162] sm:$0xff]  ;;  %v17399_v23 = vld [vmem:[#allocation3 + $0x16a] sm:$0xff] }
 0xd2a   :  { %17140 = vst.msk [vmem:[#allocation3 + $0x188] sm:$0xff] %vm17090_vm2, %v17052_v57  ;;  %v21618_v54 = vpop.f32.mrb[56].mxu1  ;;  %v17485_v5 = vld [vmem:[#allocation3 + $0x163] sm:$0xff]  ;;  %v17486_v12 = vld [vmem:[#allocation3 + $0x16b] sm:$0xff]  ;;  %v17312_v24 = vmax.f32 %v17046_v38, %v17225_v13  ;;  %v17487_v52 = vld [vmem:[#allocation3 + $0x173] sm:$0xff] }
 0xd2b   :  { %v30851_v15 = vmax.f32 %v17310_v6, %v17571_v55  ;;  %v30861_v53 = vadd.f32 %v30858_v35, %v21618_v54  ;;  %v16680_v60 = vpop.f32.mrb[57].mxu1  ;;  %v17572_v33 = vmax.f32 %v17398_v62, %v17485_v5  ;;  %v17573_v58 = vmax.f32 %v17399_v23, %v17486_v12  ;;  %v17226_v43 = vld [vmem:[#allocation3 + $0x161] sm:$0xff]  ;;  %v17227_v49 = vld [vmem:[#allocation3 + $0x169] sm:$0xff] }
 0xd2c   :  { %v30866_v25 = vadd.f32 %v30858_v35, %v16680_v60  ;;  %v21619_v18 = vpop.f32.mrb[58].mxu1  ;;  %v17313_v6 = vmax.f32 %v17047_v4, %v17226_v43  ;;  %v17574_v55 = vmax.f32 %v17400_v3, %v17487_v52  ;;  %v17314_v5 = vmax.f32 %v17048_v22, %v17227_v49 }
 0xd2d   :  { %v17057_v26 = vmax.f32 %v30861_v53, 0.0  ;;  %v30872_v34 = vadd.f32 %v30858_v35, %v21619_v18  ;;  %v16683_v41 = vpop.f32.mrb[59].mxu1  ;;  %v30874_v38 = vmax.f32 %v17311_v44, %v17572_v33  ;;  %v30876_v61 = vmax.f32 %v17312_v24, %v17573_v58  ;;  %v17228_v44 = vld [vmem:[#allocation3 + $0x171] sm:$0xff] }
 0xd2e   :  { %v17055_v10 = vmax.f32 %v30866_v25, 0.0  ;;  %v30880_v45 = vadd.f32 %v30858_v35, %v16683_v41  ;;  %v30902_v11 = vmax.f32 %v17313_v6, %v17574_v55  ;;  %v17315_v33 = vmax.f32 %v17049_v21, %v17228_v44 }
 0xd2f   :  { %17145 = vst.msk [vmem:[#allocation3 + $0x1b0] sm:$0xff] %vm17090_vm2, %v17057_v26  ;;  %v17058_v13 = vmax.f32 %v30872_v34, 0.0  ;;  %v17401_v23 = vld [vmem:[#allocation3 + $0x17a] sm:$0xff] }
 0xd30   :  { %v17488_v54 = vld [vmem:[#allocation3 + $0x17b] sm:$0xff]  ;;  %17143 = vst.msk [vmem:[#allocation3 + $0x1a0] sm:$0xff] %vm17090_vm2, %v17055_v10  ;;  %v17056_v0 = vmax.f32 %v30880_v45, 0.0  ;;  %v17404_v41 = vld [vmem:[#allocation3 + $0x192] sm:$0xff] }
 0xd31   :  { %v17575_v4 = vmax.f32 %v17401_v23, %v17488_v54  ;;  %v17229_v12 = vld [vmem:[#allocation3 + $0x179] sm:$0xff]  ;;  %17146 = vst.msk [vmem:[#allocation3 + $0x1b8] sm:$0xff] %vm17090_vm2, %v17058_v13  ;;  %v17402_v60 = vld [vmem:[#allocation3 + $0x182] sm:$0xff]  ;;  %v17403_v58 = vld [vmem:[#allocation3 + $0x18a] sm:$0xff] }
 0xd32   :  { %17144 = vst.msk [vmem:[#allocation3 + $0x1a8] sm:$0xff] %vm17090_vm2, %v17056_v0  ;;  %v21622_v24 = vpop.f32.mrb[60].mxu1  ;;  %v17489_v43 = vld [vmem:[#allocation3 + $0x183] sm:$0xff]  ;;  %v17490_v3 = vld [vmem:[#allocation3 + $0x18b] sm:$0xff]  ;;  %v17491_v23 = vld [vmem:[#allocation3 + $0x193] sm:$0xff]  ;;  %v17316_v54 = vmax.f32 %v17050_v17, %v17229_v12 }
 0xd33   :  { %v30904_v22 = vmax.f32 %v17314_v5, %v17575_v4  ;;  %v30909_v52 = vadd.f32 %v30858_v35, %v21622_v24  ;;  %v16696_v18 = vpop.f32.mrb[61].mxu1  ;;  %v17230_v49 = vld [vmem:[#allocation3 + $0x181] sm:$0xff]  ;;  %v17576_v6 = vmax.f32 %v17402_v60, %v17489_v43  ;;  %v17577_v55 = vmax.f32 %v17403_v58, %v17490_v3  ;;  %v17231_v44 = vld [vmem:[#allocation3 + $0x189] sm:$0xff] }
 0xd34   :  { %v30914_v5 = vadd.f32 %v30858_v35, %v16696_v18  ;;  %v21623_v2 = vpop.f32.mrb[62].mxu1  ;;  %v17317_v60 = vmax.f32 %v17051_v28, %v17230_v49  ;;  %v17578_v58 = vmax.f32 %v17404_v41, %v17491_v23  ;;  %v17232_v18 = vld [vmem:[#allocation3 + $0x191] sm:$0xff] }
 0xd35   :  { %v31852_v4 = vmax.f32 %v30909_v52, 0.0  ;;  %v30920_v24 = vadd.f32 %v30858_v35, %v21623_v2  ;;  %v16699_v29 = vpop.f32.mrb[63].mxu1  ;;  %v30922_v62 = vmax.f32 %v17315_v33, %v17576_v6  ;;  %v30924_v19 = vmax.f32 %v17316_v54, %v17577_v55 }
 0xd36   :  { %v17059_v17 = vmax.f32 %v30914_v5, 0.0  ;;  %v30928_v12 = vadd.f32 %v30858_v35, %v16699_v29  ;;  %v17318_v29 = vmax.f32 %v17052_v57, %v17231_v44  ;;  %v17665_v57 = vmax.f32 %v17317_v60, %v17578_v58 }
 0xd37   :  { %17149 = vst.msk [vmem:[#allocation3 + $0x1d0] sm:$0xff] %vm17090_vm2, %v31852_v4  ;;  %v31851_v43 = vmax.f32 %v30920_v24, 0.0  ;;  %v17405_v3 = vld [vmem:[#allocation3 + $0x19a] sm:$0xff]  ;;  %v17319_v55 = vmax.f32 %v17053_v20, %v17232_v18 }
 0xd38   :  { %v17492_v33 = vld [vmem:[#allocation3 + $0x19b] sm:$0xff]  ;;  %17147 = vst.msk [vmem:[#allocation3 + $0x1c0] sm:$0xff] %vm17090_vm2, %v17059_v17  ;;  %v17060_v37 = vmax.f32 %v30928_v12, 0.0  ;;  %v17408_v48 = vld [vmem:[#allocation3 + $0x1b2] sm:$0xff] }
 0xd39   :  { %v17579_v28 = vmax.f32 %v17405_v3, %v17492_v33  ;;  %v17233_v49 = vld [vmem:[#allocation3 + $0x199] sm:$0xff]  ;;  %17150 = vst.msk [vmem:[#allocation3 + $0x1d8] sm:$0xff] %vm17090_vm2, %v31851_v43  ;;  %v17406_v41 = vld [vmem:[#allocation3 + $0x1a2] sm:$0xff]  ;;  %v17407_v23 = vld [vmem:[#allocation3 + $0x1aa] sm:$0xff] }
 0xd3a   :  { %17148 = vst.msk [vmem:[#allocation3 + $0x1c8] sm:$0xff] %vm17090_vm2, %v17060_v37  ;;  %v21626_v56 = vpop.f32.mrb[64].mxu1  ;;  %v17493_v2 = vld [vmem:[#allocation3 + $0x1a3] sm:$0xff]  ;;  %v17494_v44 = vld [vmem:[#allocation3 + $0x1ab] sm:$0xff]  ;;  %v17320_v54 = vmax.f32 %v17054_v63, %v17233_v49  ;;  %v17495_v4 = vld [vmem:[#allocation3 + $0x1b3] sm:$0xff] }
 0xd3b   :  { %v17666_v6 = vmax.f32 %v17318_v29, %v17579_v28  ;;  %v30953_v3 = vadd.f32 %v30858_v35, %v21626_v56  ;;  %v16712_v33 = vpop.f32.mrb[65].mxu1  ;;  %v17580_v21 = vmax.f32 %v17406_v41, %v17493_v2  ;;  %v17581_v46 = vmax.f32 %v17407_v23, %v17494_v44  ;;  %v17234_v43 = vld [vmem:[#allocation3 + $0x1a1] sm:$0xff]  ;;  %v17235_v20 = vld [vmem:[#allocation3 + $0x1a9] sm:$0xff] }
 0xd3c   :  { %v30958_v60 = vadd.f32 %v30858_v35, %v16712_v33  ;;  %v21627_v58 = vpop.f32.mrb[66].mxu1  ;;  %v17321_v41 = vmax.f32 %v17055_v10, %v17234_v43  ;;  %v17582_v23 = vmax.f32 %v17408_v48, %v17495_v4 }
 0xd3d   :  { %v21704_v59 = vpack.c.bf16 %v17666_v6, %v17665_v57  ;;  %v17065_v18 = vmax.f32 %v30953_v3, 0.0  ;;  %v30962_v29 = vadd.f32 %v30858_v35, %v21627_v58  ;;  %v16715_v28 = vpop.f32.mrb[67].mxu1  ;;  %v17667_v56 = vmax.f32 %v17319_v55, %v17580_v21  ;;  %v17236_v6 = vld [vmem:[#allocation3 + $0x1b1] sm:$0xff] }
 0xd3e   :  { %v17668_v47 = vmax.f32 %v17320_v54, %v17581_v46  ;;  %v17063_v63 = vmax.f32 %v30958_v60, 0.0  ;;  %v30966_v49 = vadd.f32 %v30858_v35, %v16715_v28  ;;  %v17322_v55 = vmax.f32 %v17056_v0, %v17235_v20 }
 0xd3f   :  { %21705 = vmatprep.subr.bf16.mxu1 %v21704_v59  ;;  %17153 = vst.msk [vmem:[#allocation3 + $0x1f0] sm:$0xff] %vm17090_vm2, %v17065_v18  ;;  %v17066_v57 = vmax.f32 %v30962_v29, 0.0  ;;  %v17409_v21 = vld [vmem:[#allocation3 + $0x1ba] sm:$0xff]  ;;  %v17669_v45 = vmax.f32 %v17321_v41, %v17582_v23  ;;  %v17323_v4 = vmax.f32 %v17057_v26, %v17236_v6 }
 0xd40   :  { %21707 = vmatpush3.bf16.msra.mxu1 %v21706_v40  ;;  %v21708_v46 = vpack.c.bf16 %v17668_v47, %v17667_v56  ;;  %v17496_v54 = vld [vmem:[#allocation3 + $0x1bb] sm:$0xff]  ;;  %17151 = vst.msk [vmem:[#allocation3 + $0x1e0] sm:$0xff] %vm17090_vm2, %v17063_v63  ;;  %v17064_v48 = vmax.f32 %v30966_v49, 0.0  ;;  %v17412_v56 = vld [vmem:[#allocation3 + $0x1d2] sm:$0xff] }
 0xd41   :  { %v17583_v25 = vmax.f32 %v17409_v21, %v17496_v54  ;;  %v17237_v10 = vld [vmem:[#allocation3 + $0x1b9] sm:$0xff]  ;;  %17154 = vst.msk [vmem:[#allocation3 + $0x1f8] sm:$0xff] %vm17090_vm2, %v17066_v57  ;;  %v17410_v32 = vld [vmem:[#allocation3 + $0x1c2] sm:$0xff]  ;;  %v17411_v51 = vld [vmem:[#allocation3 + $0x1ca] sm:$0xff] }
 0xd42   :  { %21709 = vmatprep.subr.bf16.mxu1 %v21708_v46  ;;  %17152 = vst.msk [vmem:[#allocation3 + $0x1e8] sm:$0xff] %vm17090_vm2, %v17064_v48  ;;  %v21630_v40 = vpop.f32.mrb[68].mxu1  ;;  %v17497_v43 = vld [vmem:[#allocation3 + $0x1c3] sm:$0xff]  ;;  %v17498_v2 = vld [vmem:[#allocation3 + $0x1cb] sm:$0xff]  ;;  %v17324_v58 = vmax.f32 %v17058_v13, %v17237_v10  ;;  %v17499_v47 = vld [vmem:[#allocation3 + $0x1d3] sm:$0xff] }
 0xd43   :  { %v17670_v0 = vmax.f32 %v17322_v55, %v17583_v25  ;;  %v30992_v44 = vadd.f32 %v30858_v35, %v21630_v40  ;;  %v16728_v33 = vpop.f32.mrb[69].mxu1  ;;  %v17584_v59 = vmax.f32 %v17410_v32, %v17497_v43  ;;  %v17585_v20 = vmax.f32 %v17411_v51, %v17498_v2  ;;  %v17238_v28 = vld [vmem:[#allocation3 + $0x1c1] sm:$0xff]  ;;  %v17239_v23 = vld [vmem:[#allocation3 + $0x1c9] sm:$0xff]  ;;  %v17240_v51 = vld [vmem:[#allocation3 + $0x1d1] sm:$0xff] }
 0xd44   :  { %21711 = vmatpush3.bf16.msra.mxu1 %v21710_v8  ;;  %v31000_v53 = vadd.f32 %v30858_v35, %v16728_v33  ;;  %v21631_v26 = vpop.f32.mrb[70].mxu1  ;;  %v17325_v54 = vmax.f32 %v17059_v17, %v17238_v28  ;;  %v17586_v6 = vmax.f32 %v17412_v56, %v17499_v47  ;;  %v17326_v40 = vmax.f32 %v17060_v37, %v17239_v23 }
 0xd45   :  { %v21712_v41 = vpack.c.bf16 %v17670_v0, %v17669_v45  ;;  %v17069_v46 = vmax.f32 %v30992_v44, 0.0  ;;  %v31004_v21 = vadd.f32 %v30858_v35, %v21631_v26  ;;  %v16731_v1 = vpop.f32.mrb[71].mxu1  ;;  %v17671_v36 = vmax.f32 %v17323_v4, %v17584_v59 }
 0xd46   :  { %v17672_v8 = vmax.f32 %v17324_v58, %v17585_v20  ;;  %v17067_v34 = vmax.f32 %v31000_v53, 0.0  ;;  %v31008_v13 = vadd.f32 %v30858_v35, %v16731_v1  ;;  %v17673_v12 = vmax.f32 %v17325_v54, %v17586_v6 }
 0xd47   :  { %21713 = vmatprep.subr.bf16.mxu1 %v21712_v41  ;;  %17157 = vst.msk [vmem:[#allocation3 + $0x210] sm:$0xff] %vm17090_vm2, %v17069_v46  ;;  %v17070_v55 = vmax.f32 %v31004_v21, 0.0  ;;  %v17413_v10 = vld [vmem:[#allocation3 + $0x1da] sm:$0xff]  ;;  %v32631_v0 = vmax.f32 %v30909_v52, 0.0  ;;  %v32632_v59 = vpack.c.bf16 %v30823_v9, %v30821_v31  ;;  %v32633_v20 = vmax.f32 %v30920_v24, 0.0 }
 0xd48   :  { %21715 = vmatpush3.bf16.msra.mxu1 %v21714_v7  ;;  %v21716_v25 = vpack.c.bf16 %v17672_v8, %v17671_v36  ;;  %v17500_v32 = vld [vmem:[#allocation3 + $0x1db] sm:$0xff]  ;;  %17155 = vst.msk [vmem:[#allocation3 + $0x200] sm:$0xff] %vm17090_vm2, %v17067_v34  ;;  %v17068_v5 = vmax.f32 %v31008_v13, 0.0  ;;  %v17416_v41 = vld [vmem:[#allocation3 + $0x1f2] sm:$0xff] }
 0xd49   :  { %v17587_v17 = vmax.f32 %v17413_v10, %v17500_v32  ;;  %v17241_v45 = vld [vmem:[#allocation3 + $0x1d9] sm:$0xff]  ;;  %17158 = vst.msk [vmem:[#allocation3 + $0x218] sm:$0xff] %vm17090_vm2, %v17070_v55  ;;  %v17414_v39 = vld [vmem:[#allocation3 + $0x1e2] sm:$0xff]  ;;  %v17415_v27 = vld [vmem:[#allocation3 + $0x1ea] sm:$0xff]  ;;  %v17327_v4 = vmax.f32 %v32631_v0, %v17240_v51 }
 0xd4a   :  { %21717 = vmatprep.subr.bf16.mxu1 %v21716_v25  ;;  %17156 = vst.msk [vmem:[#allocation3 + $0x208] sm:$0xff] %vm17090_vm2, %v17068_v5  ;;  %v21634_v7 = vpop.f32.mrb[72].mxu1  ;;  %v17501_v43 = vld [vmem:[#allocation3 + $0x1e3] sm:$0xff]  ;;  %v17502_v2 = vld [vmem:[#allocation3 + $0x1eb] sm:$0xff]  ;;  %v17328_v28 = vmax.f32 %v32633_v20, %v17241_v45  ;;  %v17503_v23 = vld [vmem:[#allocation3 + $0x1f3] sm:$0xff]  ;;  %v32635_v20 = vpack.c.bf16 %v30876_v61, %v30874_v38 }
 0xd4b   :  { %v17674_v37 = vmax.f32 %v17326_v40, %v17587_v17  ;;  %v31034_v33 = vadd.f32 %v30858_v35, %v21634_v7  ;;  %v16744_v58 = vpop.f32.mrb[73].mxu1  ;;  %v17588_v56 = vmax.f32 %v17414_v39, %v17501_v43  ;;  %v17589_v47 = vmax.f32 %v17415_v27, %v17502_v2  ;;  %v17242_v26 = vld [vmem:[#allocation3 + $0x1e1] sm:$0xff]  ;;  %v17243_v8 = vld [vmem:[#allocation3 + $0x1e9] sm:$0xff]  ;;  %v17244_v7 = vld [vmem:[#allocation3 + $0x1f1] sm:$0xff] }
 0xd4c   :  { %21719 = vmatpush3.bf16.msra.mxu1 %v32632_v59  ;;  %v31042_v52 = vadd.f32 %v30858_v35, %v16744_v58  ;;  %v21635_v1 = vpop.f32.mrb[74].mxu1  ;;  %v17329_v32 = vmax.f32 %v17063_v63, %v17242_v26  ;;  %v17590_v51 = vmax.f32 %v17416_v41, %v17503_v23  ;;  %v32634_v17 = vpack.c.bf16 %v30851_v15, %v30849_v42 }
 0xd4d   :  { %v21720_v36 = vpack.c.bf16 %v17674_v37, %v17673_v12  ;;  %v17073_v54 = vmax.f32 %v31034_v33, 0.0  ;;  %v31046_v6 = vadd.f32 %v30858_v35, %v21635_v1  ;;  %v16747_v31 = vpop.f32.mrb[75].mxu1  ;;  %v17675_v9 = vmax.f32 %v17327_v4, %v17588_v56 }
 0xd4e   :  { %v17676_v24 = vmax.f32 %v17328_v28, %v17589_v47  ;;  %v17071_v25 = vmax.f32 %v31042_v52, 0.0  ;;  %v31050_v10 = vadd.f32 %v30858_v35, %v16747_v31  ;;  %v17330_v12 = vmax.f32 %v17064_v48, %v17243_v8 }
 0xd4f   :  { %21721 = vmatprep.subr.bf16.mxu1 %v21720_v36  ;;  %17161 = vst.msk [vmem:[#allocation3 + $0x230] sm:$0xff] %vm17090_vm2, %v17073_v54  ;;  %v17074_v40 = vmax.f32 %v31046_v6, 0.0  ;;  %v17417_v39 = vld [vmem:[#allocation3 + $0x1fa] sm:$0xff]  ;;  %v17677_v48 = vmax.f32 %v17329_v32, %v17590_v51  ;;  %v17331_v4 = vmax.f32 %v17065_v18, %v17244_v7 }
 0xd50   :  { %21723 = vmatpush3.bf16.msra.mxu1 %v32634_v17  ;;  %v21724_v45 = vpack.c.bf16 %v17676_v24, %v17675_v9  ;;  %v17504_v27 = vld [vmem:[#allocation3 + $0x1fb] sm:$0xff]  ;;  %17159 = vst.msk [vmem:[#allocation3 + $0x220] sm:$0xff] %vm17090_vm2, %v17071_v25  ;;  %v17072_v60 = vmax.f32 %v31050_v10, 0.0  ;;  %v17420_v41 = vld [vmem:[#allocation3 + $0x212] sm:$0xff]  ;;  %v32636_v17 = vpack.c.bf16 %v30904_v22, %v30902_v11 }
 0xd51   :  { %v17591_v63 = vmax.f32 %v17417_v39, %v17504_v27  ;;  %v17245_v37 = vld [vmem:[#allocation3 + $0x1f9] sm:$0xff]  ;;  %17162 = vst.msk [vmem:[#allocation3 + $0x238] sm:$0xff] %vm17090_vm2, %v17074_v40  ;;  %v17418_v42 = vld [vmem:[#allocation3 + $0x202] sm:$0xff]  ;;  %v17419_v15 = vld [vmem:[#allocation3 + $0x20a] sm:$0xff] }
 0xd52   :  { %21725 = vmatprep.subr.bf16.mxu1 %v21724_v45  ;;  %17160 = vst.msk [vmem:[#allocation3 + $0x228] sm:$0xff] %vm17090_vm2, %v17072_v60  ;;  %v21638_v49 = vpop.f32.mrb[76].mxu1  ;;  %v17505_v43 = vld [vmem:[#allocation3 + $0x203] sm:$0xff]  ;;  %v17506_v2 = vld [vmem:[#allocation3 + $0x20b] sm:$0xff]  ;;  %v17332_v28 = vmax.f32 %v17066_v57, %v17245_v37  ;;  %v17507_v23 = vld [vmem:[#allocation3 + $0x213] sm:$0xff] }
 0xd53   :  { %v17678_v0 = vmax.f32 %v17330_v12, %v17591_v63  ;;  %v31076_v58 = vadd.f32 %v30858_v35, %v21638_v49  ;;  %v16760_v59 = vpop.f32.mrb[77].mxu1  ;;  %v17592_v56 = vmax.f32 %v17418_v42, %v17505_v43  ;;  %v17593_v47 = vmax.f32 %v17419_v15, %v17506_v2  ;;  %v17246_v26 = vld [vmem:[#allocation3 + $0x201] sm:$0xff]  ;;  %v17247_v36 = vld [vmem:[#allocation3 + $0x209] sm:$0xff]  ;;  %v17248_v7 = vld [vmem:[#allocation3 + $0x211] sm:$0xff] }
 0xd54   :  { %21727 = vmatpush3.bf16.msra.mxu1 %v32635_v20  ;;  %v31084_v3 = vadd.f32 %v30858_v35, %v16760_v59  ;;  %v21639_v18 = vpop.f32.mrb[78].mxu1  ;;  %v17333_v24 = vmax.f32 %v17067_v34, %v17246_v26  ;;  %v17594_v32 = vmax.f32 %v17420_v41, %v17507_v23  ;;  %v17334_v12 = vmax.f32 %v17068_v5, %v17247_v36 }
 0xd55   :  { %v21728_v1 = vpack.c.bf16 %v17678_v0, %v17677_v48  ;;  %v17077_v8 = vmax.f32 %v31076_v58, 0.0  ;;  %v31088_v31 = vadd.f32 %v30858_v35, %v21639_v18  ;;  %v16763_v38 = vpop.f32.mrb[79].mxu1  ;;  %v17679_v61 = vmax.f32 %v17331_v4, %v17592_v56 }
 0xd56   :  { %v17680_v29 = vmax.f32 %v17332_v28, %v17593_v47  ;;  %v17075_v57 = vmax.f32 %v31084_v3, 0.0  ;;  %v31092_v9 = vadd.f32 %v30858_v35, %v16763_v38  ;;  %v17681_v5 = vmax.f32 %v17333_v24, %v17594_v32 }
 0xd57   :  { %21729 = vmatprep.subr.bf16.mxu1 %v21728_v1  ;;  %17165 = vst.msk [vmem:[#allocation3 + $0x250] sm:$0xff] %vm17090_vm2, %v17077_v8  ;;  %v17078_v51 = vmax.f32 %v31088_v31, 0.0  ;;  %v17421_v39 = vld [vmem:[#allocation3 + $0x21a] sm:$0xff]  ;;  %v17335_v42 = vmax.f32 %v17069_v46, %v17248_v7  ;;  %v32637_v4 = vpack.c.bf16 %v30924_v19, %v30922_v62  ;;  %v32638_v26 = vmov 0.0  }
 0xd58   :  { %21731 = vmatpush3.bf16.msra.mxu1 %v32636_v17  ;;  %v21732_v45 = vpack.c.bf16 %v17680_v29, %v17679_v61  ;;  %v17508_v27 = vld [vmem:[#allocation3 + $0x21b] sm:$0xff]  ;;  %17163 = vst.msk [vmem:[#allocation3 + $0x240] sm:$0xff] %vm17090_vm2, %v17075_v57  ;;  %v17076_v53 = vmax.f32 %v31092_v9, 0.0  ;;  %v17424_v28 = vld [vmem:[#allocation3 + $0x232] sm:$0xff]  ;;  %v32639_v29 = vmov 0.0|0.0  }
 0xd59   :  { %v17595_v34 = vmax.f32 %v17421_v39, %v17508_v27  ;;  %v17249_v63 = vld [vmem:[#allocation3 + $0x219] sm:$0xff]  ;;  %17166 = vst.msk [vmem:[#allocation3 + $0x258] sm:$0xff] %vm17090_vm2, %v17078_v51  ;;  %v17422_v11 = vld [vmem:[#allocation3 + $0x222] sm:$0xff]  ;;  %v17423_v22 = vld [vmem:[#allocation3 + $0x22a] sm:$0xff] }
 0xd5a   :  { %21733 = vmatprep.subr.bf16.mxu1 %v21732_v45  ;;  %17164 = vst.msk [vmem:[#allocation3 + $0x248] sm:$0xff] %vm17090_vm2, %v17076_v53  ;;  %v21642_v13 = vpop.f32.mrb[80].mxu1  ;;  %v17509_v15 = vld [vmem:[#allocation3 + $0x223] sm:$0xff]  ;;  %v17510_v49 = vld [vmem:[#allocation3 + $0x22b] sm:$0xff]  ;;  %v17336_v43 = vmax.f32 %v17070_v55, %v17249_v63  ;;  %v17511_v56 = vld [vmem:[#allocation3 + $0x233] sm:$0xff] }
 0xd5b   :  { %v17682_v37 = vmax.f32 %v17334_v12, %v17595_v34  ;;  %v31118_v48 = vadd.f32 %v30858_v35, %v21642_v13  ;;  %v16776_v0 = vpop.f32.mrb[81].mxu1  ;;  %v17596_v2 = vmax.f32 %v17422_v11, %v17509_v15  ;;  %v17597_v59 = vmax.f32 %v17423_v22, %v17510_v49  ;;  %v17250_v20 = vld [vmem:[#allocation3 + $0x221] sm:$0xff]  ;;  %v17251_v41 = vld [vmem:[#allocation3 + $0x229] sm:$0xff]  ;;  %v17252_v45 = vld [vmem:[#allocation3 + $0x231] sm:$0xff] }
 0xd5c   :  { %21735 = vmatpush3.bf16.msra.mxu1 %v32637_v4  ;;  %v31126_v44 = vadd.f32 %v30858_v35, %v16776_v0  ;;  %v21643_v46 = vpop.f32.mrb[82].mxu1  ;;  %v17337_v36 = vmax.f32 %v17071_v25, %v17250_v20  ;;  %v17598_v38 = vmax.f32 %v17424_v28, %v17511_v56  ;;  %v17338_v39 = vmax.f32 %v17072_v60, %v17251_v41 }
 0xd5d   :  { %v21737_v47 = vpack.c.bf16 %v17682_v37, %v17681_v5  ;;  %21652 = vmatprep.subr.bf16.mxu1 %v32638_v26  ;;  %v17081_v23 = vmax.f32 %v31118_v48, 0.0  ;;  %v31131_v62 = vadd.f32 %v30858_v35, %v21643_v46  ;;  %v16779_v19 = vpop.f32.mrb[83].mxu1  ;;  %v17683_v21 = vmax.f32 %v17335_v42, %v17596_v2 }
 0xd5e   :  { %v17684_v55 = vmax.f32 %v17336_v43, %v17597_v59  ;;  %v17079_v18 = vmax.f32 %v31126_v44, 0.0  ;;  %v31135_v1 = vadd.f32 %v30858_v35, %v16779_v19  ;;  %v17685_v60 = vmax.f32 %v17337_v36, %v17598_v38 }
 0xd5f   :  { %21738 = vmatpush1.bf16.msra.mxu0 %v21737_v47  ;;  %17880 = vmatmul.mubr.f32.vlgmr.msra.gmra.mrb[124].mxu1 %v30679_v30  ;;  %17169 = vst.msk [vmem:[#allocation3 + $0x270] sm:$0xff] %vm17090_vm2, %v17081_v23  ;;  %v17082_v61 = vmax.f32 %v31131_v62, 0.0  ;;  %v17425_v32 = vld [vmem:[#allocation3 + $0x23a] sm:$0xff]  ;;  %v17339_v34 = vmax.f32 %v17073_v54, %v17252_v45 }
 0xd60   :  { %21739 = vmatprep.subr.bf16.mxu0 %v32639_v29  ;;  %v21740_v24 = vpack.c.bf16 %v17684_v55, %v17683_v21  ;;  %v17512_v17 = vld [vmem:[#allocation3 + $0x23b] sm:$0xff]  ;;  %17167 = vst.msk [vmem:[#allocation3 + $0x260] sm:$0xff] %vm17090_vm2, %v17079_v18  ;;  %v17080_v30 = vmax.f32 %v31135_v1, 0.0  ;;  %v17428_v49 = vld [vmem:[#allocation3 + $0x252] sm:$0xff]  ;;  %21656 = vmatprep.mubr.msk.bf16.mxu1 %vm23439_vm5, %v32638_v26 }
 0xd61   :  { %v17599_v52 = vmax.f32 %v17425_v32, %v17512_v17  ;;  %v17253_v25 = vld [vmem:[#allocation3 + $0x239] sm:$0xff]  ;;  %17170 = vst.msk [vmem:[#allocation3 + $0x278] sm:$0xff] %vm17090_vm2, %v17082_v61  ;;  %v17426_v27 = vld [vmem:[#allocation3 + $0x242] sm:$0xff]  ;;  %v17427_v7 = vld [vmem:[#allocation3 + $0x24a] sm:$0xff] }
 0xd62   :  { %17168 = vst.msk [vmem:[#allocation3 + $0x268] sm:$0xff] %vm17090_vm2, %v17080_v30  ;;  %v21646_v10 = vpop.f32.mrb[84].mxu1  ;;  %v17513_v63 = vld [vmem:[#allocation3 + $0x243] sm:$0xff]  ;;  %v17514_v11 = vld [vmem:[#allocation3 + $0x24b] sm:$0xff]  ;;  %v17340_v5 = vmax.f32 %v17074_v40, %v17253_v25  ;;  %v17515_v0 = vld [vmem:[#allocation3 + $0x253] sm:$0xff] }
 0xd63   :  { %21741 = vmatpush1.bf16.msra.mxu0 %v21740_v24  ;;  %v17686_v12 = vmax.f32 %v17338_v39, %v17599_v52  ;;  %v31160_v22 = vadd.f32 %v30858_v35, %v21646_v10  ;;  %v16792_v13 = vpop.f32.mrb[85].mxu1  ;;  %v17600_v37 = vmax.f32 %v17426_v27, %v17513_v63  ;;  %v17601_v42 = vmax.f32 %v17427_v7, %v17514_v11  ;;  %v17254_v15 = vld [vmem:[#allocation3 + $0x241] sm:$0xff]  ;;  %v17255_v43 = vld [vmem:[#allocation3 + $0x249] sm:$0xff]  ;;  %v17256_v36 = vld [vmem:[#allocation3 + $0x251] sm:$0xff] }
 0xd64   :  { %21742 = vmatprep.subr.bf16.mxu0 %v32639_v29  ;;  %v31166_v4 = vadd.f32 %v30858_v35, %v16792_v13  ;;  %v21647_v33 = vpop.f32.mrb[86].mxu1  ;;  %v17341_v46 = vmax.f32 %v17075_v57, %v17254_v15  ;;  %v17602_v47 = vmax.f32 %v17428_v49, %v17515_v0  ;;  %v17342_v38 = vmax.f32 %v17076_v53, %v17255_v43 }
 0xd65   :  { %v21743_v54 = vpack.c.bf16 %v17686_v12, %v17685_v60  ;;  %v17085_v2 = vmax.f32 %v31160_v22, 0.0  ;;  %v31170_v59 = vadd.f32 %v30858_v35, %v21647_v33  ;;  %v16795_v20 = vpop.f32.mrb[87].mxu1  ;;  %v17687_v28 = vmax.f32 %v17339_v34, %v17600_v37 }
 0xd66   :  { %v17688_v6 = vmax.f32 %v17340_v5, %v17601_v42  ;;  %v17083_v40 = vmax.f32 %v31166_v4, 0.0  ;;  %v31174_v56 = vadd.f32 %v30858_v35, %v16795_v20  ;;  %v17689_v53 = vmax.f32 %v17341_v46, %v17602_v47 }
 0xd67   :  { %21744 = vmatpush1.bf16.msra.mxu0 %v21743_v54  ;;  %17173 = vst.msk [vmem:[#allocation3 + $0x290] sm:$0xff] %vm17090_vm2, %v17085_v2  ;;  %v17086_v41 = vmax.f32 %v31170_v59, 0.0  ;;  %v17429_v21 = vld [vmem:[#allocation3 + $0x25a] sm:$0xff]  ;;  %v17343_v39 = vmax.f32 %v17077_v8, %v17256_v36 }
 0xd68   :  { %21745 = vmatprep.subr.bf16.mxu0 %v32639_v29  ;;  %v21746_v19 = vpack.c.bf16 %v17688_v6, %v17687_v28  ;;  %v17516_v55 = vld [vmem:[#allocation3 + $0x25b] sm:$0xff]  ;;  %17171 = vst.msk [vmem:[#allocation3 + $0x280] sm:$0xff] %vm17090_vm2, %v17083_v40  ;;  %v17084_v3 = vmax.f32 %v31174_v56, 0.0  ;;  %v17432_v63 = vld [vmem:[#allocation3 + $0x272] sm:$0xff] }
 0xd69   :  { %v17603_v57 = vmax.f32 %v17429_v21, %v17516_v55  ;;  %v17257_v24 = vld [vmem:[#allocation3 + $0x259] sm:$0xff]  ;;  %17174 = vst.msk [vmem:[#allocation3 + $0x298] sm:$0xff] %vm17090_vm2, %v17086_v41  ;;  %v17430_v32 = vld [vmem:[#allocation3 + $0x262] sm:$0xff]  ;;  %v17431_v17 = vld [vmem:[#allocation3 + $0x26a] sm:$0xff] }
 0xd6a   :  { %17172 = vst.msk [vmem:[#allocation3 + $0x288] sm:$0xff] %vm17090_vm2, %v17084_v3  ;;  %v21650_v9 = vpop.f32.mrb[120].mxu1  ;;  %v17517_v52 = vld [vmem:[#allocation3 + $0x263] sm:$0xff]  ;;  %v17518_v25 = vld [vmem:[#allocation3 + $0x26b] sm:$0xff]  ;;  %v17344_v10 = vmax.f32 %v17078_v51, %v17257_v24  ;;  %v17519_v11 = vld [vmem:[#allocation3 + $0x273] sm:$0xff] }
 0xd6b   :  { %21747 = vmatpush1.bf16.msra.mxu0 %v21746_v19  ;;  %v17690_v45 = vmax.f32 %v17342_v38, %v17603_v57  ;;  %v16908_v27 = vadd.f32 %v21650_v9, %v30282_v50  ;;  %v16808_v7 = vpop.f32.mrb[121].mxu1  ;;  %v17604_v60 = vmax.f32 %v17430_v32, %v17517_v52  ;;  %v17605_v12 = vmax.f32 %v17431_v17, %v17518_v25  ;;  %v17258_v34 = vld [vmem:[#allocation3 + $0x261] sm:$0xff]  ;;  %v17259_v8 = vld [vmem:[#allocation3 + $0x269] sm:$0xff]  ;;  %v17260_v46 = vld [vmem:[#allocation3 + $0x271] sm:$0xff] }
 0xd6c   :  { %21748 = vmatprep.subr.bf16.mxu0 %v32639_v29  ;;  %v16906_v13 = vadd.f32 %v16808_v7, %v30285_v16  ;;  %v21651_v5 = vpop.f32.mrb[122].mxu1  ;;  %v17345_v49 = vmax.f32 %v17079_v18, %v17258_v34  ;;  %v17606_v16 = vmax.f32 %v17432_v63, %v17519_v11  ;;  %v17346_v20 = vmax.f32 %v17080_v30, %v17259_v8  ;;  %v17441_v52 = vld [vmem:[#allocation3 + $0x2ba] sm:$0xff] }
 0xd6d   :  { %v21749_v58 = vpack.c.bf16 %v17690_v45, %v17689_v53  ;;  %v31203_v37 = vadd.f32 %v30858_v35, %v16908_v27  ;;  %v16811_v50 = vpop.f32.mrb[123].mxu1  ;;  %v17691_v42 = vmax.f32 %v17343_v39, %v17604_v60  ;;  %v17692_v15 = vmax.f32 %v17344_v10, %v17605_v12  ;;  %v17528_v25 = vld [vmem:[#allocation3 + $0x2bb] sm:$0xff] }
 0xd6e   :  { %v31206_v31 = vadd.f32 %v30858_v35, %v16906_v13  ;;  %v16907_v51 = vadd.f32 %v16811_v50, %v30288_v14  ;;  %v17693_v21 = vmax.f32 %v17345_v49, %v17606_v16  ;;  %v17615_v34 = vmax.f32 %v17441_v52, %v17528_v25 }
 0xd6f   :  { %21750 = vmatpush1.bf16.msra.mxu0 %v21749_v58  ;;  %v17089_v0 = vmax.f32 %v31203_v37, 0.0  ;;  %v21752_v33 = vpack.c.bf16 %v17692_v15, %v17691_v42  ;;  %v17433_v54 = vld [vmem:[#allocation3 + $0x27a] sm:$0xff] }
 0xd70   :  { %21751 = vmatprep.subr.bf16.mxu0 %v32639_v29  ;;  %v17520_v43 = vld [vmem:[#allocation3 + $0x27b] sm:$0xff]  ;;  %v17087_v28 = vmax.f32 %v31206_v31, 0.0  ;;  %v17001_v6 = vadd.f32 %v30858_v35, %v16907_v51  ;;  %v17347_v35 = vmax.f32 %v17081_v23, %v17260_v46  ;;  %v17436_v53 = vld [vmem:[#allocation3 + $0x292] sm:$0xff] }
 0xd71   :  { %v17607_v14 = vmax.f32 %v17433_v54, %v17520_v43  ;;  %v17261_v47 = vld [vmem:[#allocation3 + $0x279] sm:$0xff]  ;;  %17178 = vst.msk [vmem:[#allocation3 + $0x2b0] sm:$0xf] %vm17177_vm4, %v17089_v0  ;;  %v17434_v44 = vld [vmem:[#allocation3 + $0x282] sm:$0xff]  ;;  %v17435_v18 = vld [vmem:[#allocation3 + $0x28a] sm:$0xff] }
 0xd72   :  { %17175 = vst.msk [vmem:[#allocation3 + $0x2a0] sm:$0xff] %vm17090_vm2, %v17087_v28  ;;  %v17088_v19 = vmax.f32 %v17001_v6, 0.0  ;;  %v17521_v30 = vld [vmem:[#allocation3 + $0x283] sm:$0xff]  ;;  %v17522_v55 = vld [vmem:[#allocation3 + $0x28b] sm:$0xff]  ;;  %v17348_v36 = vmax.f32 %v17082_v61, %v17261_v47  ;;  %v17523_v45 = vld [vmem:[#allocation3 + $0x293] sm:$0xff] }
 0xd73   :  { %21753 = vmatpush1.bf16.msra.mxu0 %v21752_v33  ;;  %v17694_v1 = vmax.f32 %v17346_v20, %v17607_v14  ;;  %v17608_v38 = vmax.f32 %v17434_v44, %v17521_v30  ;;  %v17609_v57 = vmax.f32 %v17435_v18, %v17522_v55  ;;  %v17262_v9 = vld [vmem:[#allocation3 + $0x281] sm:$0xff]  ;;  %v17263_v39 = vld [vmem:[#allocation3 + $0x289] sm:$0xff]  ;;  %v17610_v62 = vmax.f32 %v17436_v53, %v17523_v45  ;;  %v17264_v61 = vld [vmem:[#allocation3 + $0x291] sm:$0xff] }
 0xd74   :  { %21754 = vmatprep.subr.bf16.mxu0 %v32639_v29  ;;  %17176 = vst.msk [vmem:[#allocation3 + $0x2a8] sm:$0xff] %vm17090_vm2, %v17088_v19  ;;  %v17349_v23 = vmax.f32 %v17083_v40, %v17262_v9  ;;  %v17350_v12 = vmax.f32 %v17084_v3, %v17263_v39  ;;  %v17351_v4 = vmax.f32 %v17085_v2, %v17264_v61  ;;  %v17442_v46 = vld [vmem:[#allocation3 + $0x2c2] sm:$0xf]  ;;  %v23314_v18 = vld [vmem:[%s31299_s7] sm:$0xff]   ;;  %v23319_v9 = vld [vmem:[%s31301_s9 + $0x18] sm:$0xff]  }
 0xd75   :  { %v21755_v24 = vpack.c.bf16 %v17694_v1, %v17693_v21  ;;  %v17695_v32 = vmax.f32 %v17347_v35, %v17608_v38  ;;  %v17696_v17 = vmax.f32 %v17348_v36, %v17609_v57  ;;  %v17529_v47 = vld [vmem:[#allocation3 + $0x2c3] sm:$0xf]  ;;  %v23409_v44 = vld.sshfl [vmem:[%s31294_s2 + $0x8] sm:$0x33 pattern:$0x76325410]  ;;  %21653 = vmatpush3.bf16.msra.mxu1 %v23314_v18 }
 0xd76   :  { %v17697_v8 = vmax.f32 %v17349_v23, %v17610_v62  ;;  %21654 = vmatprep.subr.bf16.mxu1 %v32638_v26  ;;  %v23316_v57 = vld [vmem:[%s31301_s9] sm:$0xff]  }
 0xd77   :  { %21756 = vmatpush1.bf16.msra.mxu0 %v21755_v24  ;;  %v21758_v48 = vpack.c.bf16 %v17696_v17, %v17695_v32  ;;  %v23317_v32 = vld [vmem:[%s31301_s9 + $0x8] sm:$0xff]   ;;  %v23318_v17 = vld [vmem:[%s31301_s9 + $0x10] sm:$0xff]   ;;  %v19134_v53 = vld [vmem:[%s31300_s8] ss:$0 sm:$0xff]  ;;  %s23440_s9 = smov [#allocation4]  }
 0xd78   :  { %21757 = vmatprep.subr.bf16.mxu0 %v32639_v29  ;;  %v17440_v27 = vld [vmem:[#allocation3 + $0x2b2] sm:$0xff]  ;;  %v19138_v61 = vld [vmem:[%s31302_s10] ss:$0 sm:$0xff]  ;;  %s18115_s1 = sshll.u32 %s23440_s9, 4  ;;  %s18116_s1 = int_to_ptr.vmem [resolvable:$true] %s18115_s1 }
 0xd79   :  { %v17437_v7 = vld [vmem:[#allocation3 + $0x29a] sm:$0xff]  ;;  %v17268_v14 = vld [vmem:[#allocation3 + $0x2b1] sm:$0xf]  ;;  %s23410_s8 = scalar_lea.vmem %s18116_s1, 32  ;;  %p23415_p1 = scmp.lt.s32.totalorder %s18116_s1, %s18116_s1 }
 0xd7a   :  { %v17524_v10 = vld [vmem:[#allocation3 + $0x29b] sm:$0xff]  ;;  %v17527_v60 = vld [vmem:[#allocation3 + $0x2b3] sm:$0xff]  ;;  %v17355_v59 = vmax.f32 %v17089_v0, %v17268_v14  ;;  %p23411_p0 = scmp.ne.s32.totalorder %s18116_s1, %s23410_s8  ;;  %p23416_p2 = scmp.lt.s32.totalorder %s23410_s8, %s23410_s8 }
 0xd7b   :  { %21759 = vmatpush1.bf16.msra.mxu0 %v21758_v48  ;;  %v17611_v63 = vmax.f32 %v17437_v7, %v17524_v10  ;;  %v17265_v11 = vld [vmem:[#allocation3 + $0x299] sm:$0xff]  ;;  %v17267_v13 = vld [vmem:[#allocation3 + $0x2a9] sm:$0xff]  ;;  %v17266_v31 = vld [vmem:[#allocation3 + $0x2a1] sm:$0xff]  ;;  %v17614_v56 = vmax.f32 %v17440_v27, %v17527_v60 }
 0xd7c   :  { %21760 = vmatprep.subr.bf16.mxu0 %v32639_v29  ;;  %v17438_v40 = vld [vmem:[#allocation3 + $0x2a2] sm:$0xff]  ;;  %v17439_v5 = vld [vmem:[#allocation3 + $0x2aa] sm:$0xff]  ;;  %v17354_v58 = vmax.f32 %v17088_v19, %v17267_v13  ;;  %v17352_v3 = vmax.f32 %v17086_v41, %v17265_v11  ;;  %v17353_v16 = vmax.f32 %v17087_v28, %v17266_v31  ;;  %v17616_v41 = vmax.f32 %v17442_v46, %v17529_v47  ;;  %p23417_p3 = por %p23416_p2, %p23415_p1 }
 0xd7d   :  { %v17698_v50 = vmax.f32 %v17350_v12, %v17611_v63  ;;  %v17525_v42 = vld [vmem:[#allocation3 + $0x2a3] sm:$0xff]  ;;  %v17526_v15 = vld [vmem:[#allocation3 + $0x2ab] sm:$0xff] }
 0xd7e   :  { %v17612_v51 = vmax.f32 %v17438_v40, %v17525_v42  ;;  %v17613_v49 = vmax.f32 %v17439_v5, %v17526_v15  ;;  %v17702_v33 = vmax.f32 %v17354_v58, %v17615_v34  ;;  %v17701_v2 = vmax.f32 %v17353_v16, %v17614_v56  ;;  %p23418_p4 = pnand %p23417_p3, %p23411_p0 }
 0xd7f   :  { %v21761_v54 = vpack.c.bf16 %v17698_v50, %v17697_v8  ;;  %v17703_v28 = vmax.f32 %v17355_v59, %v17616_v41 }
 0xd80   :  { %v17699_v43 = vmax.f32 %v17351_v4, %v17612_v51  ;;  %v17700_v22 = vmax.f32 %v17352_v3, %v17613_v49  ;;  %v21767_v6 = vpack.c.bf16 %v17702_v33, %v17701_v2 }
 0xd81   :  { %21762 = vmatpush1.bf16.msra.mxu0 %v21761_v54 }
 0xd82   :  { %21763 = vmatprep.subr.bf16.mxu0 %v32639_v29  ;;  %v21764_v20 = vpack.c.bf16 %v17700_v22, %v17699_v43 }
 0xd85   :  { %21765 = vmatpush1.bf16.msra.mxu0 %v21764_v20 }
 0xd86   :  { %21766 = vmatprep.subr.bf16.mxu0 %v32639_v29  ;;  %v23315_v29 = vld [vmem:[%s31299_s7 + $0x8] sm:$0xff]  }
 0xd87   :  { %21655 = vmatpush3.bf16.msra.mxu1 %v23315_v29 }
 0xd88   :  { %21660 = vmatprep.subr.bf16.mxu1 %v32638_v26 }
 0xd89   :  { %21768 = vmatpush1.bf16.msra.mxu0 %v21767_v6 }
 0xd8a   :  { %17929 = vmatprep.subr.mxu0 %v32638_v26 }
 0xd8d   :  { %19132 = vmatpush1.msk.msra.mxu0 %vm9121_vm12, %v17703_v28 }
 0xd8e   :  { %17950 = vmatmul.mubr.f32.vlgmr.msra.gmra.mrb[118].mxu0 %v23409_v44 }
 0xdf3   :  { %v19986_v37 = vpop.f32.mrb[116].mxu0 }
 0xdf4   :  { %v19987_v0 = vpop.f32.mrb[117].mxu0 }
 0xdf5   :  { %v19988_v19 = vadd.f32 %v19987_v0, %v19986_v37 }
 0xe32   :  { %v20021_v21 = vpop.f32.mrb[124].mxu1 }
 0xe33   :  { %v20022_v1 = vpop.f32.mrb[125].mxu1 }
 0xe34   :  { %v20023_v30 = vadd.f32 %v20022_v1, %v20021_v21 }
 0xe36   :  { %v17882_v55 = vadd.f32 %v20023_v30, %v19988_v19 }
 0xe61   :  { %v17951_v35 = vpop.f32.mrb[118].mxu0 }
 0xe62   :  { %v17952_v36 = vadd.f32 %v17951_v35, %v17882_v55  ;;  %v17953_v38 = vpop.f32.mrb[119].mxu0 }
 0xe64   :  { %v17955_v24 = vpack.c.bf16 %v17952_v36, %v17952_v36 }
 0xe66   :  { %21657 = vmatmul.mubr.msk.bf16.vlgmr.msra.gmra.mrb[128].mxu1 %vm17090_vm2, %v17955_v24 }
 0xe67   :  { %21661 = vmatpush3.bf16.msra.mxu1 %v23316_v57  ;;  %21668 = vmatprep.mubr.msk.bf16.mxu1 %vm23439_vm5, %v32638_v26 }
 0xe68   :  { %21662 = vmatprep.subr.bf16.mxu1 %v32638_v26 }
 0xe6b   :  { %21663 = vmatpush3.bf16.msra.mxu1 %v23317_v32 }
 0xe6c   :  { %21664 = vmatprep.subr.bf16.mxu1 %v32638_v26 }
 0xe6f   :  { %21665 = vmatpush3.bf16.msra.mxu1 %v23318_v17 }
 0xe70   :  { %21666 = vmatprep.subr.bf16.mxu1 %v32638_v26 }
 0xe73   :  { %21667 = vmatpush3.bf16.msra.mxu1 %v23319_v9 }
 0xf39   :  { %v18016_v45 = vpop.f32.mrb[128].mxu1 }
 0xf3a   :  { %v18017_v39 = vadd.f32 %v19134_v53, %v18016_v45  ;;  %v21658_v52 = vpop.f32.mrb[129].mxu1 }
 0xf3b   :  { %v18019_v25 = vpop.f32.mrb[130].mxu1 }
 0xf3c   :  { %v18022_v48 = vmax.f32 %v18017_v39, 0.0  ;;  %v21659_v23 = vpop.f32.mrb[131].mxu1 }
 0xf3e   :  { %v18023_v62 = vpack.c.bf16 %v18022_v48, %v18022_v48 }
 0xf40   :  { %21669 = vmatmul.mubr.msk.bf16.vlgmr.msra.gmra.mrb[132].mxu1 %vm18063_vm6, %v18023_v62 }
0x1013   :  { %v18101_v26 = vpop.f32.mrb[132].mxu1 }
0x1014   :  { %v18102_v27 = vadd.f32 %v19138_v61, %v18101_v26  ;;  %v21670_v7 = vpop.f32.mrb[133].mxu1 }
0x1015   :  { %v18104_v10 = vpop.f32.mrb[134].mxu1 }
0x1016   :  { %v21671_v60 = vpop.f32.mrb[135].mxu1  ;;  %18108 = vst.msk [vmem:[#allocation4] sm:$0x3] %vm18107_vm7, %v18102_v27 }
0x1017   :  { %23421 = shalt.err (!%p23418_p4)
}
0x1018   :  { %s23422_s10 = scalar_lea.hbm %s31303_s11, 32 }
0x1019   :  { %p23423_p5 = scmp.ne.s32.totalorder %s31303_s11, %s23422_s10  ;;  %p23426_p6 = scmp.lt.u32.totalorder %s23422_s10, %s31303_s11 }
0x101b   :  { %p23428_p7 = pnand %p23426_p6, %p23423_p5 }
0x101d   :  { %23431 = shalt.err (!%p23428_p7)
}
0x101e   :  { %18118 = dma.vmem_to_hbm [thread:$0]  %s18116_s1, 32, %s31303_s11, [#allocation5]  }
0x101f   :  { %23432 = dma.done.wait [#allocation5], 32  }
0x1020   :  { %23433 = vsyncadd [#allocation5], 4294967264 }
0x1021   :  { %18122 = vsyncpa [#allocation5], 1 }

</bundles_post_ra>
